<compile_context>
chip_gen: v6e
topology: v6e:2x2x1
jax: 0.10.0
libtpu: 0.0.40
codegen_flags: <defaults>
</compile_context>

<pallas_src>
import math

import jax
import jax.numpy as jnp
from jax import lax
from jax.experimental import pallas as pl
from jax.experimental.pallas import tpu as pltpu

LANE = 128


def unet_conv_block_kernel(x_ref, w1_ref, b1_ref, w2_ref, b2_ref, out_ref, mid_ref):
    """One (batch, row-strip) grid step: conv1+ReLU -> conv2+ReLU.

    x_ref   : (H_pad, W_pad, Cin)       full padded image, resident across strips
    w1_ref  : (9, Cin, F)               conv-1 taps
    b1_ref  : (1, F)            f32
    w2_ref  : (9, F, F_out)             conv-2 taps (output channels zero-padded)
    b2_ref  : (1, F_out)        f32
    out_ref : (tile_h, Wo_pad, F_out)   output row strip (lane-dense store)
    mid_ref : (tile_h+2, Wo_pad+2, F)   conv-1 activation strip (VMEM scratch)
    """
    tile_h, wo, f_out = out_ref.shape
    hm, wo1, f_mid = mid_ref.shape           # hm = tile_h + 2, wo1 = wo + 2
    cin = x_ref.shape[-1]
    mm_dtype = w1_ref.dtype

    row0 = pl.multiple_of(pl.program_id(1) * tile_h, tile_h)

    # ---------------- conv 1 + ReLU: 9 accumulating matmuls, K = Cin ----------
    acc1 = jnp.zeros((hm * wo1, f_mid), jnp.float32)
    for kh in range(3):
        for kw in range(3):
            xt = x_ref[pl.ds(row0 + kh, hm), kw:kw + wo1, :]
            xt = xt.reshape(hm * wo1, cin).astype(mm_dtype)
            acc1 = acc1 + jnp.dot(xt, w1_ref[3 * kh + kw],
                                  preferred_element_type=jnp.float32)
    acc1 = jnp.maximum(acc1 + b1_ref[...], 0.0)
    mid_ref[...] = acc1.reshape(hm, wo1, f_mid).astype(mid_ref.dtype)

    # ---------------- conv 2 + ReLU: 9 accumulating matmuls, K = F ------------
    # TODO(synk): on v6e/v7x, fusing taps in pairs (K = 2F) would double MXU
    # depth utilization when F < 128; skipped to avoid lane-axis concats.
    acc2 = jnp.zeros((tile_h * wo, f_out), jnp.float32)
    for kh in range(3):
        for kw in range(3):
            mt = mid_ref[kh:kh + tile_h, kw:kw + wo, :]
            mt = mt.reshape(tile_h * wo, f_mid)
            acc2 = acc2 + jnp.dot(mt, w2_ref[3 * kh + kw],
                                  preferred_element_type=jnp.float32)
    acc2 = jnp.maximum(acc2 + b2_ref[...], 0.0)
    out_ref[...] = acc2.reshape(tile_h, wo, f_out).astype(out_ref.dtype)


def _round_up(x, m):
    return ((x + m - 1) // m) * m


def _pick_vmem_limit_bytes():
    """Generation-aware VMEM request (None -> Mosaic default)."""
    kind = ""
    try:
        kind = jax.devices()[0].device_kind.lower()
    except Exception:
        pass
    if "v4" in kind or "v5" in kind or "v6" in kind:
        return 100 * 1024 * 1024       # 128 MiB physical: big strips, few steps
    if "v7" in kind or "7x" in kind:
        return 48 * 1024 * 1024        # 64 MiB physical: leave compiler headroom
    return None


def _pick_tile_h(ho, wo_pad, cin, f_mid, f_out, itemsize, budget_bytes):
    """Output rows per strip so per-strip VMEM temporaries stay within budget."""
    wo1 = wo_pad + 2
    cin_l = _round_up(cin, LANE)
    fmid_l = _round_up(f_mid, LANE)
    fout_l = _round_up(f_out, LANE)
    per_row = (2 * wo_pad * fout_l * itemsize     # out block (double buffered)
               + wo1 * fmid_l * itemsize          # mid scratch
               + wo1 * fmid_l * 4                 # conv-1 f32 accumulator
               + wo_pad * fout_l * 4              # conv-2 f32 accumulator
               + 2 * wo1 * cin_l * itemsize)      # per-tap input slice temps
    tile_h = max(1, min(ho, budget_bytes // max(1, per_row)))
    if tile_h < ho and tile_h >= 16:
        tile_h -= tile_h % 8                      # sublane-aligned strip starts
    return tile_h


def unet_conv_block(x_nchw, w1_oihw, b1, w2_oihw, b2, *, use_bf16_matmul=False):
    """x_nchw: (N, Cin, H, W); weights PyTorch-style (Cout, Cin, 3, 3); padding=0."""
    N, Cin, H, W = x_nchw.shape
    F = int(w1_oihw.shape[0])
    assert H >= 5 and W >= 5, "two valid 3x3 convs need H, W >= 5"
    Ho, Wo = H - 4, W - 4                    # true output spatial dims

    F_out = _round_up(F, LANE)               # lane-dense store channels only
    Wo_pad = _round_up(Wo, 8)                # aligned reshapes / aligned stores
    W_pad = Wo_pad + 4
    Wo1 = Wo_pad + 2

    mm_dtype = jnp.bfloat16 if use_bf16_matmul else x_nchw.dtype
    store_dtype = x_nchw.dtype
    itemsize = max(jnp.dtype(mm_dtype).itemsize, jnp.dtype(store_dtype).itemsize)

    vmem_limit = _pick_vmem_limit_bytes()
    avail = vmem_limit if vmem_limit is not None else 32 * 1024 * 1024
    # Fixed VMEM, independent of tile_h: resident image (x2 pipeline buffers,
    # channel dim lane-padded in VMEM layout) + weights/biases (x2).
    fixed = (2 * (Ho + 16) * W_pad * _round_up(Cin, LANE) * itemsize
             + 2 * (9 * Cin * F + 9 * F * F_out + F + F_out) * itemsize)
    budget = max(2 * 1024 * 1024, int(avail * 0.6) - fixed)

    tile_h = _pick_tile_h(Ho, Wo_pad, Cin, F, F_out, itemsize, budget)
    n_strips = (Ho + tile_h - 1) // tile_h
    Ho_pad = n_strips * tile_h               # pad H instead of forcing tile_h | Ho
    H_pad = Ho_pad + 4

    # ---- boundary glue (plain XLA ops) ----
    x = jnp.transpose(x_nchw, (0, 2, 3, 1))                       # NCHW -> NHWC
    x = jnp.pad(x, ((0, 0), (0, H_pad - H), (0, W_pad - W), (0, 0)))
    w1_taps = jnp.transpose(w1_oihw, (2, 3, 1, 0)).reshape(9, Cin, F)
    w1_taps = w1_taps.astype(mm_dtype)
    w2_taps = jnp.transpose(w2_oihw, (2, 3, 1, 0)).reshape(9, F, F)
    w2_taps = jnp.pad(w2_taps, ((0, 0), (0, 0), (0, F_out - F))).astype(mm_dtype)
    b1_r = b1.reshape(1, F).astype(jnp.float32)
    b2_r = jnp.pad(b2, (0, F_out - F)).reshape(1, F_out).astype(jnp.float32)

    flops = (2 * N * Ho_pad * Wo1 * 9 * Cin * F
             + 2 * N * Ho_pad * Wo_pad * 9 * F * F_out)
    bytes_accessed = (x.size * x.dtype.itemsize
                      + w1_taps.size * w1_taps.dtype.itemsize
                      + w2_taps.size * w2_taps.dtype.itemsize
                      + (b1_r.size + b2_r.size) * 4
                      + N * Ho_pad * Wo_pad * F_out * jnp.dtype(store_dtype).itemsize)

    cparams = dict(dimension_semantics=("parallel", "parallel"))
    if vmem_limit is not None:
        cparams["vmem_limit_bytes"] = vmem_limit

    out_padded = pl.pallas_call(
        unet_conv_block_kernel,
        out_shape=jax.ShapeDtypeStruct((N, Ho_pad, Wo_pad, F_out), store_dtype),
        grid_spec=pltpu.PrefetchScalarGridSpec(
            num_scalar_prefetch=0,
            grid=(N, n_strips),
            in_specs=[
                # Full padded image of batch n; constant block index along the
                # strip axis => stays resident in VMEM, DMA'd once per n.
                # TODO(synk): for very large images on v7x (64 MiB VMEM) this
                # should become a (tile_h+4)-row halo strip block instead.
                pl.BlockSpec((None, H_pad, W_pad, Cin), lambda n, s: (n, 0, 0, 0)),
                pl.BlockSpec((9, Cin, F), lambda n, s: (0, 0, 0)),
                pl.BlockSpec((1, F), lambda n, s: (0, 0)),
                pl.BlockSpec((9, F, F_out), lambda n, s: (0, 0, 0)),
                pl.BlockSpec((1, F_out), lambda n, s: (0, 0)),
            ],
            out_specs=pl.BlockSpec((None, tile_h, Wo_pad, F_out),
                                   lambda n, s: (n, s, 0, 0)),
            scratch_shapes=[
                pltpu.VMEM((tile_h + 2, Wo1, F), mm_dtype),
            ],
        ),
        compiler_params=pltpu.CompilerParams(**cparams),
        cost_estimate=pl.CostEstimate(
            flops=flops, transcendentals=0, bytes_accessed=bytes_accessed),
    )(x, w1_taps, b1_r, w2_taps, b2_r)

    # Drop spatial / channel padding and go back to PyTorch's NCHW convention.
    out = out_padded[:, :Ho, :Wo, :F]
    return jnp.transpose(out, (0, 3, 1, 2)).astype(x_nchw.dtype)


def _reference_forward(x_nchw, w1, b1, w2, b2):
    """Plain-JAX reference mirroring the PyTorch forward (NCHW / OIHW, f32)."""
    dn = ("NCHW", "OIHW", "NCHW")
    hi = lax.Precision.HIGHEST
    y = lax.conv_general_dilated(x_nchw, w1, (1, 1), "VALID",
                                 dimension_numbers=dn, precision=hi)
    y = jnp.maximum(y + b1[None, :, None, None], 0.0)
    y = lax.conv_general_dilated(y, w2, (1, 1), "VALID",
                                 dimension_numbers=dn, precision=hi)
    y = jnp.maximum(y + b2[None, :, None, None], 0.0)
    return y


if __name__ == "__main__":
    # Small shapes consistent with the module: batch=2, Cin=4, filters=8, 16x16.
    N, Cin, F, H, W = 2, 4, 8, 16, 16
    key = jax.random.PRNGKey(0)
    k_x, k_w1, k_b1, k_w2, k_b2 = jax.random.split(key, 5)

    x = jax.random.normal(k_x, (N, Cin, H, W), jnp.float32)

    # Deterministic PyTorch-like (kaiming-uniform) parameter init.
    bound1 = 1.0 / math.sqrt(Cin * 3 * 3)
    w1 = jax.random.uniform(k_w1, (F, Cin, 3, 3), jnp.float32, -bound1, bound1)
    b1 = jax.random.uniform(k_b1, (F,), jnp.float32, -bound1, bound1)

    bound2 = 1.0 / math.sqrt(F * 3 * 3)
    w2 = jax.random.uniform(k_w2, (F, F, 3, 3), jnp.float32, -bound2, bound2)
    b2 = jax.random.uniform(k_b2, (F,), jnp.float32, -bound2, bound2)

    out = jax.block_until_ready(unet_conv_block(x, w1, b1, w2, b2))
    ref = jax.block_until_ready(_reference_forward(x, w1, b1, w2, b2))

    assert out.shape == (N, F, H - 4, W - 4), out.shape
    max_err = float(jnp.max(jnp.abs(out - ref)))
    assert jnp.allclose(out, ref, atol=1e-3, rtol=1e-3), max_err
    print("KERNEL_OK")
</pallas_src>

<mosaic_0001>
module attributes {stable_mosaic.version = 11 : i64} {
  func.func @unet_conv_block_kernel(%arg0: i32, %arg1: i32, %arg2: memref<1x16x20x4xf32, #tpu.memory_space<vmem>>, %arg3: memref<9x4x8xf32, #tpu.memory_space<vmem>>, %arg4: memref<1x8xf32, #tpu.memory_space<vmem>>, %arg5: memref<9x8x128xf32, #tpu.memory_space<vmem>>, %arg6: memref<1x128xf32, #tpu.memory_space<vmem>>, %arg7: memref<1x12x16x128xf32, #tpu.memory_space<vmem>>, %arg8: memref<14x18x8xf32, #tpu.memory_space<vmem>>) attributes {dimension_semantics = [#tpu.dimension_semantics<parallel>, #tpu.dimension_semantics<parallel>], iteration_bounds = array<i64: 2, 1>, scalar_prefetch = 0 : i64, scratch_operands = 1 : i64, tpu.core_type = #tpu.core_type<tc>, window_params = [{transform_indices = @transform_0, window_bounds = array<i64: 1, 16, 20, 4>}, {pipeline_mode = #tpu.pipeline_mode<synchronous>, transform_indices = @transform_1, window_bounds = array<i64: 9, 4, 8>}, {pipeline_mode = #tpu.pipeline_mode<synchronous>, transform_indices = @transform_2, window_bounds = array<i64: 1, 8>}, {pipeline_mode = #tpu.pipeline_mode<synchronous>, transform_indices = @transform_3, window_bounds = array<i64: 9, 8, 128>}, {pipeline_mode = #tpu.pipeline_mode<synchronous>, transform_indices = @transform_4, window_bounds = array<i64: 1, 128>}, {transform_indices = @transform_5, window_bounds = array<i64: 1, 12, 16, 128>}]} {
    %c12_i32 = arith.constant 12 : i32
    %0 = arith.muli %arg1, %c12_i32 : i32
    %1 = tpu.assume_multiple %0, 12 : i32
    %cst = arith.constant 0.000000e+00 : f32
    %2 = vector.broadcast %cst : f32 to vector<252x8xf32>
    %c0_i32 = arith.constant 0 : i32
    %3 = arith.addi %1, %c0_i32 : i32
    %c0 = arith.constant 0 : index
    %4 = arith.index_cast %3 : i32 to index
    %c0_0 = arith.constant 0 : index
    %c0_1 = arith.constant 0 : index
    %5 = vector.load %arg2[%c0, %4, %c0_0, %c0_1] : memref<1x16x20x4xf32, #tpu.memory_space<vmem>>, vector<1x14x18x4xf32>
    %6 = vector.shape_cast %5 : vector<1x14x18x4xf32> to vector<14x18x4xf32>
    %7 = vector.shape_cast %6 : vector<14x18x4xf32> to vector<252x4xf32>
    %c0_2 = arith.constant 0 : index
    %c0_3 = arith.constant 0 : index
    %c0_4 = arith.constant 0 : index
    %8 = vector.load %arg3[%c0_2, %c0_3, %c0_4] : memref<9x4x8xf32, #tpu.memory_space<vmem>>, vector<1x4x8xf32>
    %9 = vector.shape_cast %8 : vector<1x4x8xf32> to vector<4x8xf32>
    %cst_5 = arith.constant dense<0.000000e+00> : vector<252x8xf32>
    %10 = tpu.matmul %7, %9, %cst_5 {dimension_numbers = #tpu.dot_dimension_numbers<[1], [0], [0], [1], [0, 0, 1, 1], [], []>} : vector<252x4xf32>, vector<4x8xf32>, vector<252x8xf32> -> vector<252x8xf32>
    %11 = arith.addf %2, %10 : vector<252x8xf32>
    %c0_i32_6 = arith.constant 0 : i32
    %12 = arith.addi %1, %c0_i32_6 : i32
    %c0_7 = arith.constant 0 : index
    %13 = arith.index_cast %12 : i32 to index
    %c1 = arith.constant 1 : index
    %c0_8 = arith.constant 0 : index
    %14 = vector.load %arg2[%c0_7, %13, %c1, %c0_8] : memref<1x16x20x4xf32, #tpu.memory_space<vmem>>, vector<1x14x18x4xf32>
    %15 = vector.shape_cast %14 : vector<1x14x18x4xf32> to vector<14x18x4xf32>
    %16 = vector.shape_cast %15 : vector<14x18x4xf32> to vector<252x4xf32>
    %c1_9 = arith.constant 1 : index
    %c0_10 = arith.constant 0 : index
    %c0_11 = arith.constant 0 : index
    %17 = vector.load %arg3[%c1_9, %c0_10, %c0_11] : memref<9x4x8xf32, #tpu.memory_space<vmem>>, vector<1x4x8xf32>
    %18 = vector.shape_cast %17 : vector<1x4x8xf32> to vector<4x8xf32>
    %cst_12 = arith.constant dense<0.000000e+00> : vector<252x8xf32>
    %19 = tpu.matmul %16, %18, %cst_12 {dimension_numbers = #tpu.dot_dimension_numbers<[1], [0], [0], [1], [0, 0, 1, 1], [], []>} : vector<252x4xf32>, vector<4x8xf32>, vector<252x8xf32> -> vector<252x8xf32>
    %20 = arith.addf %11, %19 : vector<252x8xf32>
    %c0_i32_13 = arith.constant 0 : i32
    %21 = arith.addi %1, %c0_i32_13 : i32
    %c0_14 = arith.constant 0 : index
    %22 = arith.index_cast %21 : i32 to index
    %c2 = arith.constant 2 : index
    %c0_15 = arith.constant 0 : index
    %23 = vector.load %arg2[%c0_14, %22, %c2, %c0_15] : memref<1x16x20x4xf32, #tpu.memory_space<vmem>>, vector<1x14x18x4xf32>
    %24 = vector.shape_cast %23 : vector<1x14x18x4xf32> to vector<14x18x4xf32>
    %25 = vector.shape_cast %24 : vector<14x18x4xf32> to vector<252x4xf32>
    %c2_16 = arith.constant 2 : index
    %c0_17 = arith.constant 0 : index
    %c0_18 = arith.constant 0 : index
    %26 = vector.load %arg3[%c2_16, %c0_17, %c0_18] : memref<9x4x8xf32, #tpu.memory_space<vmem>>, vector<1x4x8xf32>
    %27 = vector.shape_cast %26 : vector<1x4x8xf32> to vector<4x8xf32>
    %cst_19 = arith.constant dense<0.000000e+00> : vector<252x8xf32>
    %28 = tpu.matmul %25, %27, %cst_19 {dimension_numbers = #tpu.dot_dimension_numbers<[1], [0], [0], [1], [0, 0, 1, 1], [], []>} : vector<252x4xf32>, vector<4x8xf32>, vector<252x8xf32> -> vector<252x8xf32>
    %29 = arith.addf %20, %28 : vector<252x8xf32>
    %c1_i32 = arith.constant 1 : i32
    %30 = arith.addi %1, %c1_i32 : i32
    %c0_20 = arith.constant 0 : index
    %31 = arith.index_cast %30 : i32 to index
    %c0_21 = arith.constant 0 : index
    %c0_22 = arith.constant 0 : index
    %32 = vector.load %arg2[%c0_20, %31, %c0_21, %c0_22] : memref<1x16x20x4xf32, #tpu.memory_space<vmem>>, vector<1x14x18x4xf32>
    %33 = vector.shape_cast %32 : vector<1x14x18x4xf32> to vector<14x18x4xf32>
    %34 = vector.shape_cast %33 : vector<14x18x4xf32> to vector<252x4xf32>
    %c3 = arith.constant 3 : index
    %c0_23 = arith.constant 0 : index
    %c0_24 = arith.constant 0 : index
    %35 = vector.load %arg3[%c3, %c0_23, %c0_24] : memref<9x4x8xf32, #tpu.memory_space<vmem>>, vector<1x4x8xf32>
    %36 = vector.shape_cast %35 : vector<1x4x8xf32> to vector<4x8xf32>
    %cst_25 = arith.constant dense<0.000000e+00> : vector<252x8xf32>
    %37 = tpu.matmul %34, %36, %cst_25 {dimension_numbers = #tpu.dot_dimension_numbers<[1], [0], [0], [1], [0, 0, 1, 1], [], []>} : vector<252x4xf32>, vector<4x8xf32>, vector<252x8xf32> -> vector<252x8xf32>
    %38 = arith.addf %29, %37 : vector<252x8xf32>
    %c1_i32_26 = arith.constant 1 : i32
    %39 = arith.addi %1, %c1_i32_26 : i32
    %c0_27 = arith.constant 0 : index
    %40 = arith.index_cast %39 : i32 to index
    %c1_28 = arith.constant 1 : index
    %c0_29 = arith.constant 0 : index
    %41 = vector.load %arg2[%c0_27, %40, %c1_28, %c0_29] : memref<1x16x20x4xf32, #tpu.memory_space<vmem>>, vector<1x14x18x4xf32>
    %42 = vector.shape_cast %41 : vector<1x14x18x4xf32> to vector<14x18x4xf32>
    %43 = vector.shape_cast %42 : vector<14x18x4xf32> to vector<252x4xf32>
    %c4 = arith.constant 4 : index
    %c0_30 = arith.constant 0 : index
    %c0_31 = arith.constant 0 : index
    %44 = vector.load %arg3[%c4, %c0_30, %c0_31] : memref<9x4x8xf32, #tpu.memory_space<vmem>>, vector<1x4x8xf32>
    %45 = vector.shape_cast %44 : vector<1x4x8xf32> to vector<4x8xf32>
    %cst_32 = arith.constant dense<0.000000e+00> : vector<252x8xf32>
    %46 = tpu.matmul %43, %45, %cst_32 {dimension_numbers = #tpu.dot_dimension_numbers<[1], [0], [0], [1], [0, 0, 1, 1], [], []>} : vector<252x4xf32>, vector<4x8xf32>, vector<252x8xf32> -> vector<252x8xf32>
    %47 = arith.addf %38, %46 : vector<252x8xf32>
    %c1_i32_33 = arith.constant 1 : i32
    %48 = arith.addi %1, %c1_i32_33 : i32
    %c0_34 = arith.constant 0 : index
    %49 = arith.index_cast %48 : i32 to index
    %c2_35 = arith.constant 2 : index
    %c0_36 = arith.constant 0 : index
    %50 = vector.load %arg2[%c0_34, %49, %c2_35, %c0_36] : memref<1x16x20x4xf32, #tpu.memory_space<vmem>>, vector<1x14x18x4xf32>
    %51 = vector.shape_cast %50 : vector<1x14x18x4xf32> to vector<14x18x4xf32>
    %52 = vector.shape_cast %51 : vector<14x18x4xf32> to vector<252x4xf32>
    %c5 = arith.constant 5 : index
    %c0_37 = arith.constant 0 : index
    %c0_38 = arith.constant 0 : index
    %53 = vector.load %arg3[%c5, %c0_37, %c0_38] : memref<9x4x8xf32, #tpu.memory_space<vmem>>, vector<1x4x8xf32>
    %54 = vector.shape_cast %53 : vector<1x4x8xf32> to vector<4x8xf32>
    %cst_39 = arith.constant dense<0.000000e+00> : vector<252x8xf32>
    %55 = tpu.matmul %52, %54, %cst_39 {dimension_numbers = #tpu.dot_dimension_numbers<[1], [0], [0], [1], [0, 0, 1, 1], [], []>} : vector<252x4xf32>, vector<4x8xf32>, vector<252x8xf32> -> vector<252x8xf32>
    %56 = arith.addf %47, %55 : vector<252x8xf32>
    %c2_i32 = arith.constant 2 : i32
    %57 = arith.addi %1, %c2_i32 : i32
    %c0_40 = arith.constant 0 : index
    %58 = arith.index_cast %57 : i32 to index
    %c0_41 = arith.constant 0 : index
    %c0_42 = arith.constant 0 : index
    %59 = vector.load %arg2[%c0_40, %58, %c0_41, %c0_42] : memref<1x16x20x4xf32, #tpu.memory_space<vmem>>, vector<1x14x18x4xf32>
    %60 = vector.shape_cast %59 : vector<1x14x18x4xf32> to vector<14x18x4xf32>
    %61 = vector.shape_cast %60 : vector<14x18x4xf32> to vector<252x4xf32>
    %c6 = arith.constant 6 : index
    %c0_43 = arith.constant 0 : index
    %c0_44 = arith.constant 0 : index
    %62 = vector.load %arg3[%c6, %c0_43, %c0_44] : memref<9x4x8xf32, #tpu.memory_space<vmem>>, vector<1x4x8xf32>
    %63 = vector.shape_cast %62 : vector<1x4x8xf32> to vector<4x8xf32>
    %cst_45 = arith.constant dense<0.000000e+00> : vector<252x8xf32>
    %64 = tpu.matmul %61, %63, %cst_45 {dimension_numbers = #tpu.dot_dimension_numbers<[1], [0], [0], [1], [0, 0, 1, 1], [], []>} : vector<252x4xf32>, vector<4x8xf32>, vector<252x8xf32> -> vector<252x8xf32>
    %65 = arith.addf %56, %64 : vector<252x8xf32>
    %c2_i32_46 = arith.constant 2 : i32
    %66 = arith.addi %1, %c2_i32_46 : i32
    %c0_47 = arith.constant 0 : index
    %67 = arith.index_cast %66 : i32 to index
    %c1_48 = arith.constant 1 : index
    %c0_49 = arith.constant 0 : index
    %68 = vector.load %arg2[%c0_47, %67, %c1_48, %c0_49] : memref<1x16x20x4xf32, #tpu.memory_space<vmem>>, vector<1x14x18x4xf32>
    %69 = vector.shape_cast %68 : vector<1x14x18x4xf32> to vector<14x18x4xf32>
    %70 = vector.shape_cast %69 : vector<14x18x4xf32> to vector<252x4xf32>
    %c7 = arith.constant 7 : index
    %c0_50 = arith.constant 0 : index
    %c0_51 = arith.constant 0 : index
    %71 = vector.load %arg3[%c7, %c0_50, %c0_51] : memref<9x4x8xf32, #tpu.memory_space<vmem>>, vector<1x4x8xf32>
    %72 = vector.shape_cast %71 : vector<1x4x8xf32> to vector<4x8xf32>
    %cst_52 = arith.constant dense<0.000000e+00> : vector<252x8xf32>
    %73 = tpu.matmul %70, %72, %cst_52 {dimension_numbers = #tpu.dot_dimension_numbers<[1], [0], [0], [1], [0, 0, 1, 1], [], []>} : vector<252x4xf32>, vector<4x8xf32>, vector<252x8xf32> -> vector<252x8xf32>
    %74 = arith.addf %65, %73 : vector<252x8xf32>
    %c2_i32_53 = arith.constant 2 : i32
    %75 = arith.addi %1, %c2_i32_53 : i32
    %c0_54 = arith.constant 0 : index
    %76 = arith.index_cast %75 : i32 to index
    %c2_55 = arith.constant 2 : index
    %c0_56 = arith.constant 0 : index
    %77 = vector.load %arg2[%c0_54, %76, %c2_55, %c0_56] : memref<1x16x20x4xf32, #tpu.memory_space<vmem>>, vector<1x14x18x4xf32>
    %78 = vector.shape_cast %77 : vector<1x14x18x4xf32> to vector<14x18x4xf32>
    %79 = vector.shape_cast %78 : vector<14x18x4xf32> to vector<252x4xf32>
    %c8 = arith.constant 8 : index
    %c0_57 = arith.constant 0 : index
    %c0_58 = arith.constant 0 : index
    %80 = vector.load %arg3[%c8, %c0_57, %c0_58] : memref<9x4x8xf32, #tpu.memory_space<vmem>>, vector<1x4x8xf32>
    %81 = vector.shape_cast %80 : vector<1x4x8xf32> to vector<4x8xf32>
    %cst_59 = arith.constant dense<0.000000e+00> : vector<252x8xf32>
    %82 = tpu.matmul %79, %81, %cst_59 {dimension_numbers = #tpu.dot_dimension_numbers<[1], [0], [0], [1], [0, 0, 1, 1], [], []>} : vector<252x4xf32>, vector<4x8xf32>, vector<252x8xf32> -> vector<252x8xf32>
    %83 = arith.addf %74, %82 : vector<252x8xf32>
    %c0_60 = arith.constant 0 : index
    %c0_61 = arith.constant 0 : index
    %84 = vector.load %arg4[%c0_60, %c0_61] : memref<1x8xf32, #tpu.memory_space<vmem>>, vector<1x8xf32>
    %85 = vector.broadcast %84 : vector<1x8xf32> to vector<252x8xf32>
    %86 = arith.addf %83, %85 : vector<252x8xf32>
    %cst_62 = arith.constant 0.000000e+00 : f32
    %87 = vector.broadcast %cst_62 : f32 to vector<252x8xf32>
    %88 = arith.maximumf %86, %87 : vector<252x8xf32>
    %89 = vector.shape_cast %88 : vector<252x8xf32> to vector<14x18x8xf32>
    %c0_63 = arith.constant 0 : index
    %c0_64 = arith.constant 0 : index
    %c0_65 = arith.constant 0 : index
    %90 = vector.load %arg8[%c0_63, %c0_64, %c0_65] : memref<14x18x8xf32, #tpu.memory_space<vmem>>, vector<14x18x8xf32>
    tpu.vector_store %arg8[%c0_63, %c0_64, %c0_65], %89 {strides = array<i32>} : memref<14x18x8xf32, #tpu.memory_space<vmem>>, vector<14x18x8xf32>,
    %cst_66 = arith.constant 0.000000e+00 : f32
    %91 = vector.broadcast %cst_66 : f32 to vector<192x128xf32>
    %c0_67 = arith.constant 0 : index
    %c0_68 = arith.constant 0 : index
    %c0_69 = arith.constant 0 : index
    %92 = vector.load %arg8[%c0_67, %c0_68, %c0_69] : memref<14x18x8xf32, #tpu.memory_space<vmem>>, vector<12x16x8xf32>
    %93 = vector.shape_cast %92 : vector<12x16x8xf32> to vector<192x8xf32>
    %c0_70 = arith.constant 0 : index
    %c0_71 = arith.constant 0 : index
    %c0_72 = arith.constant 0 : index
    %94 = vector.load %arg5[%c0_70, %c0_71, %c0_72] : memref<9x8x128xf32, #tpu.memory_space<vmem>>, vector<1x8x128xf32>
    %95 = vector.shape_cast %94 : vector<1x8x128xf32> to vector<8x128xf32>
    %cst_73 = arith.constant dense<0.000000e+00> : vector<192x128xf32>
    %96 = tpu.matmul %93, %95, %cst_73 {dimension_numbers = #tpu.dot_dimension_numbers<[1], [0], [0], [1], [0, 0, 1, 1], [], []>} : vector<192x8xf32>, vector<8x128xf32>, vector<192x128xf32> -> vector<192x128xf32>
    %97 = arith.addf %91, %96 : vector<192x128xf32>
    %c0_74 = arith.constant 0 : index
    %c1_75 = arith.constant 1 : index
    %c0_76 = arith.constant 0 : index
    %98 = vector.load %arg8[%c0_74, %c1_75, %c0_76] : memref<14x18x8xf32, #tpu.memory_space<vmem>>, vector<12x16x8xf32>
    %99 = vector.shape_cast %98 : vector<12x16x8xf32> to vector<192x8xf32>
    %c1_77 = arith.constant 1 : index
    %c0_78 = arith.constant 0 : index
    %c0_79 = arith.constant 0 : index
    %100 = vector.load %arg5[%c1_77, %c0_78, %c0_79] : memref<9x8x128xf32, #tpu.memory_space<vmem>>, vector<1x8x128xf32>
    %101 = vector.shape_cast %100 : vector<1x8x128xf32> to vector<8x128xf32>
    %cst_80 = arith.constant dense<0.000000e+00> : vector<192x128xf32>
    %102 = tpu.matmul %99, %101, %cst_80 {dimension_numbers = #tpu.dot_dimension_numbers<[1], [0], [0], [1], [0, 0, 1, 1], [], []>} : vector<192x8xf32>, vector<8x128xf32>, vector<192x128xf32> -> vector<192x128xf32>
    %103 = arith.addf %97, %102 : vector<192x128xf32>
    %c0_81 = arith.constant 0 : index
    %c2_82 = arith.constant 2 : index
    %c0_83 = arith.constant 0 : index
    %104 = vector.load %arg8[%c0_81, %c2_82, %c0_83] : memref<14x18x8xf32, #tpu.memory_space<vmem>>, vector<12x16x8xf32>
    %105 = vector.shape_cast %104 : vector<12x16x8xf32> to vector<192x8xf32>
    %c2_84 = arith.constant 2 : index
    %c0_85 = arith.constant 0 : index
    %c0_86 = arith.constant 0 : index
    %106 = vector.load %arg5[%c2_84, %c0_85, %c0_86] : memref<9x8x128xf32, #tpu.memory_space<vmem>>, vector<1x8x128xf32>
    %107 = vector.shape_cast %106 : vector<1x8x128xf32> to vector<8x128xf32>
    %cst_87 = arith.constant dense<0.000000e+00> : vector<192x128xf32>
    %108 = tpu.matmul %105, %107, %cst_87 {dimension_numbers = #tpu.dot_dimension_numbers<[1], [0], [0], [1], [0, 0, 1, 1], [], []>} : vector<192x8xf32>, vector<8x128xf32>, vector<192x128xf32> -> vector<192x128xf32>
    %109 = arith.addf %103, %108 : vector<192x128xf32>
    %c1_88 = arith.constant 1 : index
    %c0_89 = arith.constant 0 : index
    %c0_90 = arith.constant 0 : index
    %110 = vector.load %arg8[%c1_88, %c0_89, %c0_90] : memref<14x18x8xf32, #tpu.memory_space<vmem>>, vector<12x16x8xf32>
    %111 = vector.shape_cast %110 : vector<12x16x8xf32> to vector<192x8xf32>
    %c3_91 = arith.constant 3 : index
    %c0_92 = arith.constant 0 : index
    %c0_93 = arith.constant 0 : index
    %112 = vector.load %arg5[%c3_91, %c0_92, %c0_93] : memref<9x8x128xf32, #tpu.memory_space<vmem>>, vector<1x8x128xf32>
    %113 = vector.shape_cast %112 : vector<1x8x128xf32> to vector<8x128xf32>
    %cst_94 = arith.constant dense<0.000000e+00> : vector<192x128xf32>
    %114 = tpu.matmul %111, %113, %cst_94 {dimension_numbers = #tpu.dot_dimension_numbers<[1], [0], [0], [1], [0, 0, 1, 1], [], []>} : vector<192x8xf32>, vector<8x128xf32>, vector<192x128xf32> -> vector<192x128xf32>
    %115 = arith.addf %109, %114 : vector<192x128xf32>
    %c1_95 = arith.constant 1 : index
    %c1_96 = arith.constant 1 : index
    %c0_97 = arith.constant 0 : index
    %116 = vector.load %arg8[%c1_95, %c1_96, %c0_97] : memref<14x18x8xf32, #tpu.memory_space<vmem>>, vector<12x16x8xf32>
    %117 = vector.shape_cast %116 : vector<12x16x8xf32> to vector<192x8xf32>
    %c4_98 = arith.constant 4 : index
    %c0_99 = arith.constant 0 : index
    %c0_100 = arith.constant 0 : index
    %118 = vector.load %arg5[%c4_98, %c0_99, %c0_100] : memref<9x8x128xf32, #tpu.memory_space<vmem>>, vector<1x8x128xf32>
    %119 = vector.shape_cast %118 : vector<1x8x128xf32> to vector<8x128xf32>
    %cst_101 = arith.constant dense<0.000000e+00> : vector<192x128xf32>
    %120 = tpu.matmul %117, %119, %cst_101 {dimension_numbers = #tpu.dot_dimension_numbers<[1], [0], [0], [1], [0, 0, 1, 1], [], []>} : vector<192x8xf32>, vector<8x128xf32>, vector<192x128xf32> -> vector<192x128xf32>
    %121 = arith.addf %115, %120 : vector<192x128xf32>
    %c1_102 = arith.constant 1 : index
    %c2_103 = arith.constant 2 : index
    %c0_104 = arith.constant 0 : index
    %122 = vector.load %arg8[%c1_102, %c2_103, %c0_104] : memref<14x18x8xf32, #tpu.memory_space<vmem>>, vector<12x16x8xf32>
    %123 = vector.shape_cast %122 : vector<12x16x8xf32> to vector<192x8xf32>
    %c5_105 = arith.constant 5 : index
    %c0_106 = arith.constant 0 : index
    %c0_107 = arith.constant 0 : index
    %124 = vector.load %arg5[%c5_105, %c0_106, %c0_107] : memref<9x8x128xf32, #tpu.memory_space<vmem>>, vector<1x8x128xf32>
    %125 = vector.shape_cast %124 : vector<1x8x128xf32> to vector<8x128xf32>
    %cst_108 = arith.constant dense<0.000000e+00> : vector<192x128xf32>
    %126 = tpu.matmul %123, %125, %cst_108 {dimension_numbers = #tpu.dot_dimension_numbers<[1], [0], [0], [1], [0, 0, 1, 1], [], []>} : vector<192x8xf32>, vector<8x128xf32>, vector<192x128xf32> -> vector<192x128xf32>
    %127 = arith.addf %121, %126 : vector<192x128xf32>
    %c2_109 = arith.constant 2 : index
    %c0_110 = arith.constant 0 : index
    %c0_111 = arith.constant 0 : index
    %128 = vector.load %arg8[%c2_109, %c0_110, %c0_111] : memref<14x18x8xf32, #tpu.memory_space<vmem>>, vector<12x16x8xf32>
    %129 = vector.shape_cast %128 : vector<12x16x8xf32> to vector<192x8xf32>
    %c6_112 = arith.constant 6 : index
    %c0_113 = arith.constant 0 : index
    %c0_114 = arith.constant 0 : index
    %130 = vector.load %arg5[%c6_112, %c0_113, %c0_114] : memref<9x8x128xf32, #tpu.memory_space<vmem>>, vector<1x8x128xf32>
    %131 = vector.shape_cast %130 : vector<1x8x128xf32> to vector<8x128xf32>
    %cst_115 = arith.constant dense<0.000000e+00> : vector<192x128xf32>
    %132 = tpu.matmul %129, %131, %cst_115 {dimension_numbers = #tpu.dot_dimension_numbers<[1], [0], [0], [1], [0, 0, 1, 1], [], []>} : vector<192x8xf32>, vector<8x128xf32>, vector<192x128xf32> -> vector<192x128xf32>
    %133 = arith.addf %127, %132 : vector<192x128xf32>
    %c2_116 = arith.constant 2 : index
    %c1_117 = arith.constant 1 : index
    %c0_118 = arith.constant 0 : index
    %134 = vector.load %arg8[%c2_116, %c1_117, %c0_118] : memref<14x18x8xf32, #tpu.memory_space<vmem>>, vector<12x16x8xf32>
    %135 = vector.shape_cast %134 : vector<12x16x8xf32> to vector<192x8xf32>
    %c7_119 = arith.constant 7 : index
    %c0_120 = arith.constant 0 : index
    %c0_121 = arith.constant 0 : index
    %136 = vector.load %arg5[%c7_119, %c0_120, %c0_121] : memref<9x8x128xf32, #tpu.memory_space<vmem>>, vector<1x8x128xf32>
    %137 = vector.shape_cast %136 : vector<1x8x128xf32> to vector<8x128xf32>
    %cst_122 = arith.constant dense<0.000000e+00> : vector<192x128xf32>
    %138 = tpu.matmul %135, %137, %cst_122 {dimension_numbers = #tpu.dot_dimension_numbers<[1], [0], [0], [1], [0, 0, 1, 1], [], []>} : vector<192x8xf32>, vector<8x128xf32>, vector<192x128xf32> -> vector<192x128xf32>
    %139 = arith.addf %133, %138 : vector<192x128xf32>
    %c2_123 = arith.constant 2 : index
    %c2_124 = arith.constant 2 : index
    %c0_125 = arith.constant 0 : index
    %140 = vector.load %arg8[%c2_123, %c2_124, %c0_125] : memref<14x18x8xf32, #tpu.memory_space<vmem>>, vector<12x16x8xf32>
    %141 = vector.shape_cast %140 : vector<12x16x8xf32> to vector<192x8xf32>
    %c8_126 = arith.constant 8 : index
    %c0_127 = arith.constant 0 : index
    %c0_128 = arith.constant 0 : index
    %142 = vector.load %arg5[%c8_126, %c0_127, %c0_128] : memref<9x8x128xf32, #tpu.memory_space<vmem>>, vector<1x8x128xf32>
    %143 = vector.shape_cast %142 : vector<1x8x128xf32> to vector<8x128xf32>
    %cst_129 = arith.constant dense<0.000000e+00> : vector<192x128xf32>
    %144 = tpu.matmul %141, %143, %cst_129 {dimension_numbers = #tpu.dot_dimension_numbers<[1], [0], [0], [1], [0, 0, 1, 1], [], []>} : vector<192x8xf32>, vector<8x128xf32>, vector<192x128xf32> -> vector<192x128xf32>
    %145 = arith.addf %139, %144 : vector<192x128xf32>
    %c0_130 = arith.constant 0 : index
    %c0_131 = arith.constant 0 : index
    %146 = vector.load %arg6[%c0_130, %c0_131] : memref<1x128xf32, #tpu.memory_space<vmem>>, vector<1x128xf32>
    %147 = vector.broadcast %146 : vector<1x128xf32> to vector<192x128xf32>
    %148 = arith.addf %145, %147 : vector<192x128xf32>
    %cst_132 = arith.constant 0.000000e+00 : f32
    %149 = vector.broadcast %cst_132 : f32 to vector<192x128xf32>
    %150 = arith.maximumf %148, %149 : vector<192x128xf32>
    %151 = vector.shape_cast %150 : vector<192x128xf32> to vector<12x16x128xf32>
    %c0_133 = arith.constant 0 : index
    %c0_134 = arith.constant 0 : index
    %c0_135 = arith.constant 0 : index
    %c0_136 = arith.constant 0 : index
    %152 = vector.load %arg7[%c0_133, %c0_134, %c0_135, %c0_136] : memref<1x12x16x128xf32, #tpu.memory_space<vmem>>, vector<1x12x16x128xf32>
    %153 = vector.shape_cast %152 : vector<1x12x16x128xf32> to vector<12x16x128xf32>
    %154 = vector.shape_cast %151 : vector<12x16x128xf32> to vector<1x12x16x128xf32>
    tpu.vector_store %arg7[%c0_133, %c0_134, %c0_135, %c0_136], %154 {strides = array<i32>} : memref<1x12x16x128xf32, #tpu.memory_space<vmem>>, vector<1x12x16x128xf32>,
    return
  }
  func.func @transform_0(%arg0: i32, %arg1: i32) -> (i32, i32, i32, i32) {
    %c0_i32 = arith.constant 0 : i32
    %c0_i32_0 = arith.constant 0 : i32
    %c0_i32_1 = arith.constant 0 : i32
    %c0_i32_2 = arith.constant 0 : i32
    return %arg0, %c0_i32, %c0_i32_0, %c0_i32_1 : i32, i32, i32, i32
  }
  func.func @transform_1(%arg0: i32, %arg1: i32) -> (i32, i32, i32) {
    %c0_i32 = arith.constant 0 : i32
    %c0_i32_0 = arith.constant 0 : i32
    %c0_i32_1 = arith.constant 0 : i32
    %c0_i32_2 = arith.constant 0 : i32
    return %c0_i32, %c0_i32_0, %c0_i32_1 : i32, i32, i32
  }
  func.func @transform_2(%arg0: i32, %arg1: i32) -> (i32, i32) {
    %c0_i32 = arith.constant 0 : i32
    %c0_i32_0 = arith.constant 0 : i32
    %c0_i32_1 = arith.constant 0 : i32
    return %c0_i32, %c0_i32_0 : i32, i32
  }
  func.func @transform_3(%arg0: i32, %arg1: i32) -> (i32, i32, i32) {
    %c0_i32 = arith.constant 0 : i32
    %c0_i32_0 = arith.constant 0 : i32
    %c0_i32_1 = arith.constant 0 : i32
    %c0_i32_2 = arith.constant 0 : i32
    return %c0_i32, %c0_i32_0, %c0_i32_1 : i32, i32, i32
  }
  func.func @transform_4(%arg0: i32, %arg1: i32) -> (i32, i32) {
    %c0_i32 = arith.constant 0 : i32
    %c0_i32_0 = arith.constant 0 : i32
    %c0_i32_1 = arith.constant 0 : i32
    return %c0_i32, %c0_i32_0 : i32, i32
  }
  func.func @transform_5(%arg0: i32, %arg1: i32) -> (i32, i32, i32, i32) {
    %c0_i32 = arith.constant 0 : i32
    %c0_i32_0 = arith.constant 0 : i32
    %c0_i32_1 = arith.constant 0 : i32
    return %arg0, %arg1, %c0_i32, %c0_i32_0 : i32, i32, i32, i32
  }
}

</mosaic_0001>

<bundles_post_ra>
// kernel: tpu_custom_call.1
= control target key start
LH: loop header
LB: loop body
LE: loop exit
PB: predicated region body
PF: predicated region fallthrough
CT: control target
= control target key end

     0   :  { %10 = vsyncpa [#allocation4], 0  ;;  %s24881_s0 = inlined_call_operand.vmem [shape: f32[2,16,20,4], index: 0, kind: input, shape index: {}]   ;;  %s24882_s1 = inlined_call_operand.vmem [shape: f32[9,4,8], index: 1, kind: input, shape index: {}]   ;;  %s24883_s2 = inlined_call_operand.vmem [shape: f32[1,8], index: 2, kind: input, shape index: {}]   ;;  %s24884_s3 = inlined_call_operand.vmem [shape: f32[9,8,128], index: 3, kind: input, shape index: {}]   ;;  %s24885_s4 = inlined_call_operand.vmem [shape: f32[1,128], index: 4, kind: input, shape index: {}]   ;;  %s24886_s5 = inlined_call_operand.hbm [shape: f32[2,12,16,128], index: 5, kind: output, shape index: {}]  }
   0x1   :  { %12 = vsyncpa [#allocation4 + $0x1], 0  ;;  %s20717_s18 = smov 0   ;;  %s20719_s19 = smov 0  }
   0x2   :  { %s20721_s20 = smov 0   ;;  %s20723_s21 = smov 0  }
   0x3   :  { %s20725_s22 = smov 0   ;;  %s20727_s23 = smov 0  }
   0x4 LB: > { %s18048_s24 = sadd.s32 4294967295, %s20681_s23   ;;  %s18049_s25 = sadd.s32 4294967294, %s20681_s23   ;;  %s20681_s23 = sphi %s20727_s23, %s18_s23   ;;  %s20677_s22 = sphi %s20725_s22, %s25362_s22   ;;  %s20673_s21 = sphi %s20723_s21, %s25361_s21   ;;  %s20669_s20 = sphi %s20721_s20, %s25360_s20   ;;  %s20665_s19 = sphi %s20719_s19, %s25359_s19   ;;  %s20661_s18 = sphi %s20717_s18, %s25358_s18  }
   0x5   : > { %s30_s26 = sadd.s32 1, %s20677_s22  ;;  %s149_s27 = sadd.s32 1, %s20669_s20 }
   0x6   : > { %p32_p0 = scmp.ge.s32.totalorder %s30_s26, 2  ;;  %p159_p1 = scmp.ne.s32.totalorder %s20669_s20, %s20665_s19 }
   0x7   : > { %p160_p2 = scmp.eq.s32.totalorder %s18048_s24, 1  ;;  %p165_p3 = scmp.ne.s32.totalorder %s20665_s19, %s20661_s18 }
   0x8   : > { %s25364_s26 = smov (%p32_p0, %s30_s26), 0  ;;  %p166_p5 = scmp.eq.s32.totalorder %s18049_s25, 1 }
   0x9   : > { %p20757_p4 = por %p160_p2, %p159_p1  ;;  %s144_s29 = ssub.s32 %s20677_s22, %s25364_s26 }
   0xa   : > { %p18052_p6 = scmp.ge.s32.totalorder %s20681_s23, 1  ;;  %p147_p7 = scmp.eq.s32.totalorder %s144_s29, 0 }
   0xb   : > { %p20764_p8 = por %p166_p5, %p165_p3  ;;  %p204_p9 = scmp.lt.s32.totalorder %s20681_s23, 3 }
   0xc   : > { %s20770_s6 = scalar_select %p147_p7, %s20669_s20, %s149_s27  }
   0xd   : > { %p205_p10 = pnand %p18052_p6, %p204_p9 }
   0xf   : > { %208 = sbr.rel (%p205_p10) target bundleno = 1356 (0x54c), region = 40 }
  0x14   : > { %v18082_v0 = vld [vmem:[%s24882_s1 + $0x4] sm:$0xf]  ;;  %vm2160_vm0 = vcmask 1043456   ;;  %p232_p11 = scmp.lt.s32.totalorder %s20673_s21, 1  ;;  %v329_v1 = vlaneseq  ;;  %v20683_v2 = vmov 1983009808  }
  0x15   : > { %19488 = vmatprep.subr.msk.mxu0 %vm2160_vm0, %v18082_v0  ;;  %20280 = vmatprep.subr.msk.mxu1 %vm2160_vm0, %v18082_v0  ;;  %v327_v3 = vunpack.c.l.s4 %v20683_v2  ;;  %v20781_v4 = vld [vmem:[%s24882_s1 + $0x8] sm:$0xf]  ;;  %v20786_v5 = vld [vmem:[%s24882_s1] sm:$0xf]  ;;  %vm2095_vm1 = vcmask 31744   ;;  %vm15109_vm2 = vcmask 64512  }
  0x16   : > { %19489 = vmatpush3.msk.msra.mxu0 %vm2160_vm0, %v18082_v0  ;;  %20281 = vmatpush3.msk.msra.mxu1 %vm2160_vm0, %v18082_v0  ;;  %s233_s13 = scalar_select %p232_p11, %s20673_s21, 1  ;;  %v330_v6 = vshrl.u32 %v329_v1, 7  ;;  %vm15112_vm3 = vcmask 58368  }
  0x17   : > { %v328_v7 = vunpack.c.0.s8 %v327_v3  ;;  %19588 = vmatprep.subr.msk.mxu0 %vm2160_vm0, %v20781_v4  ;;  %19538 = vmatprep.subr.msk.mxu1 %vm2160_vm0, %v20786_v5  ;;  %s229_s15 = sand.u32 1, %s20665_s19   ;;  %s20284_s29 = smul.u32 3072, %s20673_s21 }
  0x18   : > { %s20283_s14 = smul.u32 384, %s233_s13  ;;  %s24836_s21 = scalar_lea.sflag [#allocation4], %s229_s15 }
  0x19   : > { %v20795_v8 = vsub.s32 %v328_v7, %v330_v6  ;;  %s20282_s16 = smul.u32 192, %s229_s15  ;;  %s24831_s9 = scalar_lea.hbm %s24886_s5, %s20284_s29 }
  0x1a   : > { %s20800_s17 = scalar_lea.vmem %s24881_s0, %s20283_s14  ;;  %s20684_s11 = smov [#allocation3]  }
  0x1b   : > { %24892 = vst [vmem:[#allocation6_spill] sm:$0xff] %v20795_v8  ;;  %v900_v9 = vld [vmem:[%s20800_s17 + $0x1] sm:$0xff]  ;;  %v937_v10 = vld [vmem:[%s20800_s17 + $0x129] sm:$0xff]  ;;  %v939_v16 = vld [vmem:[%s20800_s17 + $0x139] sm:$0xff]  ;;  %s24707_s27 = scalar_lea.vmem [#allocation3], %s20282_s16  ;;  %s20609_s12 = sshll.u32 %s20684_s11, 4  ;;  %s20610_s12 = int_to_ptr.vmem [resolvable:$false] %s20609_s12 }
  0x1c   : > { %v901_v11 = vld [vmem:[%s20800_s17 + $0x9] sm:$0xff]  ;;  %v984_v12 = vcombine.high %v900_v9, %v900_v9  ;;  %v991_v13 = vrot.slane %v900_v9, %v20795_v8  ;;  %v1493_v14 = vcombine.high %v937_v10, %v937_v10  ;;  %v1500_v15 = vrot.slane %v937_v10, %v20795_v8  ;;  %v18080_v25 = vld.sshfl [vmem:[%s20800_s17 + $0x131] sm:$0x3 pattern:$0x76325410]  ;;  %v903_v38 = vld [vmem:[%s20800_s17 + $0x19] sm:$0xff] }
  0x1d   : > { %v1001_v17 = vcombine.high %v901_v11, %v901_v11  ;;  %v1008_v18 = vrot.slane %v901_v11, %v20795_v8  ;;  %v1517_v19 = vcombine.high %v939_v16, %v939_v16  ;;  %v1524_v20 = vrot.slane %v939_v16, %v20795_v8  ;;  %v940_v43 = vld [vmem:[%s20800_s17 + $0x141] sm:$0xff]  ;;  %v18068_v50 = vld.sshfl [vmem:[%s20800_s17 + $0x11] sm:$0x3 pattern:$0x76325410]  ;;  %s17965_s7 = sshll.u32 %s24707_s27, 4  ;;  %s24825_s7 = int_to_ptr.vmem [resolvable:$true] %s17965_s7 }
  0x1e   : > { %v998_v21 = vrot.slane %v984_v12, %v20795_v8  ;;  %v999_v22 = vcombine.high %v991_v13, %v991_v13  ;;  %v1507_v23 = vrot.slane %v1493_v14, %v20795_v8  ;;  %v1508_v24 = vcombine.high %v1500_v15, %v1500_v15  ;;  %v904_v57 = vld [vmem:[%s20800_s17 + $0x21] sm:$0xff]  ;;  %v906_v7 = vld [vmem:[%s20800_s17 + $0x31] sm:$0xff]  ;;  %s20605_s10 = scalar_lea.vmem %s24825_s7, 3072  ;;  %s20611_s13 = scalar_lea.vmem %s20610_s12, 6144 }
  0x1f   : > { %v1015_v26 = vrot.slane %v1001_v17, %v20795_v8  ;;  %v1016_v27 = vcombine.high %v1008_v18, %v1008_v18  ;;  %v1531_v28 = vrot.slane %v1517_v19, %v20795_v8  ;;  %v1532_v29 = vcombine.high %v1524_v20, %v1524_v20  ;;  %v241_v9 = vld [vmem:[%s20800_s17] sm:$0xff]  ;;  %p20606_p12 = scmp.ne.s32.totalorder %s24825_s7, %s20605_s10  ;;  %p20612_p1 = scmp.lt.s32.totalorder %s24825_s7, %s20610_s12 }
  0x20   : > { %v1000_v30 = vcombine.high %v998_v21, %v998_v21  ;;  %v1560_v31 = vcombine.low %v991_v13, %v999_v22  ;;  %v1509_v32 = vcombine.high %v1507_v23, %v1507_v23  ;;  %v2036_v33 = vcombine.low %v1500_v15, %v1508_v24  ;;  %v18081_v13 = vld.sshfl [vmem:[%s20800_s17 + $0x149] sm:$0x3 pattern:$0x76325410]  ;;  %p20613_p2 = scmp.lt.s32.totalorder %s20611_s13, %s20605_s10 }
  0x21   : > { %v1017_v34 = vcombine.high %v1015_v26, %v1015_v26  ;;  %v1577_v35 = vcombine.low %v1008_v18, %v1016_v27  ;;  %v2053_v36 = vcombine.low %v18080_v25, %v1524_v20  ;;  %v2054_v37 = vcombine.low %v1532_v29, %v1531_v28  ;;  %v18069_v25 = vld.sshfl [vmem:[%s20800_s17 + $0x29] sm:$0x3 pattern:$0x76325410]  ;;  %p20607_p13 = pnand %p20606_p12, %p20757_p4 }
  0x22   : > { %v1561_v39 = vcombine.low %v998_v21, %v1000_v30  ;;  %v1568_v40 = vrot.slane %v1560_v31, %v20795_v8  ;;  %v2037_v41 = vcombine.low %v1507_v23, %v1509_v32  ;;  %v2044_v42 = vrot.slane %v2036_v33, %v20795_v8  ;;  %v907_v30 = vld [vmem:[%s20800_s17 + $0x39] sm:$0xff]  ;;  %p20614_p3 = por %p20613_p2, %p20612_p1 }
  0x23   : > { %v1578_v44 = vcombine.low %v1015_v26, %v1017_v34  ;;  %v1585_v45 = vrot.slane %v1577_v35, %v20795_v8  ;;  %v2061_v46 = vrot.slane %v2053_v36, %v20795_v8  ;;  %v2068_v47 = vrot.slane %v2054_v37, %v20795_v8  ;;  %v242_v34 = vld [vmem:[%s20800_s17 + $0x8] sm:$0xff]  ;;  %p20608_p0 = pneg %p20607_p13 }
  0x24   : > { %v1575_v48 = vrot.slane %v1561_v39, %v20795_v8  ;;  %v2051_v49 = vrot.slane %v2037_v41, %v20795_v8  ;;  %v1025_v51 = vcombine.high %v903_v38, %v903_v38  ;;  %v1032_v52 = vrot.slane %v903_v38, %v20795_v8 }
  0x25   : > { %v1592_v53 = vrot.slane %v1578_v44, %v20795_v8  ;;  %v2069_v54 = vcombine.low %v2061_v46, %v2068_v47  ;;  %v1533_v55 = vcombine.high %v1531_v28, %v1531_v28  ;;  %v1534_v56 = vcombine.high %v940_v43, %v940_v43  ;;  %p20615_p5 = pnand %p20614_p3, %p20608_p0 }
  0x26   : > { %v1576_v58 = vcombine.low %v1568_v40, %v1575_v48  ;;  %v2052_v59 = vcombine.low %v2044_v42, %v2051_v49  ;;  %v1039_v60 = vrot.slane %v1025_v51, %v20795_v8  ;;  %v1040_v61 = vcombine.high %v1032_v52, %v1032_v52  ;;  %v244_v51 = vld [vmem:[%s20800_s17 + $0x18] sm:$0xff] }
  0x27   : > { %v1593_v62 = vcombine.low %v1585_v45, %v1592_v53  ;;  %v1594_v63 = vcombine.low %v18068_v50, %v1032_v52  ;;  %v1541_v0 = vrot.slane %v940_v43, %v20795_v8  ;;  %v1548_v1 = vrot.slane %v1534_v56, %v20795_v8  ;;  %v18070_v56 = vld.sshfl [vmem:[%s20800_s17 + $0x41] sm:$0x3 pattern:$0x76325410] }
  0x28   : > { %19490 = vmatprep.mubr.msk.f32.mxu0 %vm2095_vm1, %v1576_v58  ;;  %19532 = vmatprep.mubr.msk.f32.mxu1 %vm2095_vm1, %v2052_v59  ;;  %v1595_v2 = vcombine.low %v1040_v61, %v1039_v60  ;;  %v1041_v3 = vcombine.high %v1039_v60, %v1039_v60  ;;  %v1042_v6 = vcombine.high %v904_v57, %v904_v57  ;;  %v909_v60 = vld [vmem:[%s20800_s17 + $0x49] sm:$0xff] }
  0x29   : > { %19491 = vmatmul.mubr.msk.f32.vlgmr.msra.gmra.mxu0 %vm2095_vm1, %v1593_v62  ;;  %19533 = vmatmul.mubr.msk.f32.vlgmr.msra.gmra.mxu1 %vm2095_vm1, %v2069_v54  ;;  %v1602_v10 = vrot.slane %v1594_v63, %v20795_v8  ;;  %v1549_v11 = vcombine.high %v1541_v0, %v1541_v0  ;;  %v2070_v12 = vcombine.low %v1533_v55, %v1541_v0  ;;  %v18253_v62 = vld [vmem:[%s24882_s1 + $0xc] sm:$0xf] }
  0x2a   : > { %19589 = vmatpush3.msk.msra.mxu0 %vm2160_vm0, %v20781_v4  ;;  %v1609_v14 = vrot.slane %v1595_v2, %v20795_v8  ;;  %v1049_v15 = vrot.slane %v904_v57, %v20795_v8  ;;  %v1056_v16 = vrot.slane %v1042_v6, %v20795_v8  ;;  %v1550_v17 = vcombine.high %v1548_v1, %v1548_v1 }
  0x2b   : > { %v2071_v18 = vcombine.low %v1549_v11, %v1548_v1  ;;  %v2078_v19 = vrot.slane %v2070_v12, %v20795_v8  ;;  %v1073_v20 = vrot.slane %v906_v7, %v20795_v8  ;;  %19539 = vmatpush3.msk.msra.mxu1 %vm2160_vm0, %v20786_v5  ;;  %v325_v21 = vcombine.high %v241_v9, %v241_v9 }
  0x2c   : > { %v1610_v22 = vcombine.low %v1602_v10, %v1609_v14  ;;  %v1057_v4 = vcombine.high %v1049_v15, %v1049_v15  ;;  %v1611_v23 = vcombine.low %v1041_v3, %v1049_v15  ;;  %v2087_v24 = vcombine.low %v1550_v17, %v18081_v13  ;;  %v18343_v3 = vld [vmem:[%s24882_s1 + $0x10] sm:$0xf]  ;;  %19638 = vmatprep.subr.msk.mxu1 %vm2160_vm0, %v18253_v62 }
  0x2d   : > { %v2085_v26 = vrot.slane %v2071_v18, %v20795_v8  ;;  %v1058_v27 = vcombine.high %v1056_v16, %v1056_v16  ;;  %v1081_v28 = vcombine.high %v1073_v20, %v1073_v20  ;;  %v332_v29 = vrot.slane %v241_v9, %v20795_v8  ;;  %v18054_v14 = vld.sshfl [vmem:[%s20800_s17 + $0x10] sm:$0x3 pattern:$0x76325410]  ;;  %19688 = vmatprep.subr.msk.mxu0 %vm2160_vm0, %v18343_v3 }
  0x2e   : > { %19493 = vmatprep.mubr.msk.f32.mxu0 %vm2095_vm1, %v1610_v22  ;;  %v1612_v31 = vcombine.low %v1057_v4, %v1056_v16  ;;  %v1619_v32 = vrot.slane %v1611_v23, %v20795_v8  ;;  %v2094_v5 = vrot.slane %v2087_v24, %v20795_v8  ;;  %v339_v33 = vrot.slane %v325_v21, %v20795_v8 }
  0x2f   : > { %v2086_v35 = vcombine.low %v2078_v19, %v2085_v26  ;;  %v1628_v36 = vcombine.low %v1058_v27, %v18069_v25  ;;  %v1629_v37 = vcombine.low %v1073_v20, %v1081_v28  ;;  %v340_v38 = vcombine.high %v332_v29, %v332_v29  ;;  %v910_v19 = vld [vmem:[%s20800_s17 + $0x51] sm:$0xff]  ;;  %v245_v28 = vld [vmem:[%s20800_s17 + $0x20] sm:$0xff] }
  0x30   : > { %v1626_v39 = vrot.slane %v1612_v31, %v20795_v8  ;;  %v341_v40 = vcombine.high %v339_v33, %v339_v33  ;;  %v1066_v41 = vcombine.high %v906_v7, %v906_v7  ;;  %v1090_v42 = vrot.slane %v907_v30, %v20795_v8 }
  0x31   : > { %19535 = vmatprep.mubr.msk.f32.mxu1 %vm2095_vm1, %v2086_v35  ;;  %v1636_v43 = vrot.slane %v1628_v36, %v20795_v8  ;;  %v1643_v44 = vrot.slane %v1629_v37, %v20795_v8  ;;  %v2389_v45 = vcombine.low %v332_v29, %v340_v38  ;;  %v342_v46 = vcombine.high %v242_v34, %v242_v34 }
  0x32   : > { %v1627_v47 = vcombine.low %v1619_v32, %v1626_v39  ;;  %19536 = vmatmul.mubr.msk.f32.gmra.mxu1 %vm2095_vm1, %v2094_v5  ;;  %v2390_v48 = vcombine.low %v339_v33, %v341_v40  ;;  %v1080_v49 = vrot.slane %v1066_v41, %v20795_v8  ;;  %v1098_v50 = vcombine.high %v1090_v42, %v1090_v42  ;;  %v247_v40 = vld [vmem:[%s20800_s17 + $0x30] sm:$0xff] }
  0x33   : > { %v1644_v52 = vcombine.low %v1636_v43, %v1643_v44  ;;  %v2397_v53 = vrot.slane %v2389_v45, %v20795_v8  ;;  %v349_v54 = vrot.slane %v242_v34, %v20795_v8  ;;  %v356_v55 = vrot.slane %v342_v46, %v20795_v8  ;;  %v912_v45 = vld [vmem:[%s20800_s17 + $0x61] sm:$0xff] }
  0x34   : > { %19494 = vmatmul.mubr.msk.f32.gmra.mxu0 %vm2095_vm1, %v1627_v47  ;;  %v2404_v57 = vrot.slane %v2390_v48, %v20795_v8  ;;  %v1082_v58 = vcombine.high %v1080_v49, %v1080_v49  ;;  %v1646_v59 = vcombine.low %v1090_v42, %v1098_v50  ;;  %v1083_v61 = vcombine.high %v907_v30, %v907_v30 }
  0x35   : > { %19496 = vmatprep.mubr.msk.f32.mxu0 %vm2095_vm1, %v1644_v52  ;;  %v357_v63 = vcombine.high %v349_v54, %v349_v54  ;;  %v358_v0 = vcombine.high %v356_v55, %v356_v55  ;;  %v1114_v1 = vrot.slane %v909_v60, %v20795_v8  ;;  %v366_v2 = vcombine.high %v244_v51, %v244_v51 }
  0x36   : > { %v2405_v6 = vcombine.low %v2397_v53, %v2404_v57  ;;  %v1645_v7 = vcombine.low %v1080_v49, %v1082_v58  ;;  %v1660_v9 = vrot.slane %v1646_v59, %v20795_v8  ;;  %v1097_v10 = vrot.slane %v1083_v61, %v20795_v8  ;;  %v18055_v53 = vld.sshfl [vmem:[%s20800_s17 + $0x28] sm:$0x3 pattern:$0x76325410] }
  0x37   : > { %v2406_v11 = vcombine.low %v349_v54, %v357_v63  ;;  %v2407_v12 = vcombine.low %v356_v55, %v358_v0  ;;  %v1663_v13 = vcombine.low %v18070_v56, %v1114_v1  ;;  %v373_v15 = vrot.slane %v244_v51, %v20795_v8  ;;  %v18071_v56 = vld.sshfl [vmem:[%s20800_s17 + $0x59] sm:$0x3 pattern:$0x76325410] }
  0x38   : > { %19540 = vmatprep.mubr.msk.f32.mxu1 %vm2095_vm1, %v2405_v6  ;;  %v1653_v16 = vrot.slane %v1645_v7, %v20795_v8  ;;  %v1099_v17 = vcombine.high %v1097_v10, %v1097_v10  ;;  %v380_v18 = vrot.slane %v366_v2, %v20795_v8  ;;  %v1107_v20 = vcombine.high %v909_v60, %v909_v60  ;;  %v248_v6 = vld [vmem:[%s20800_s17 + $0x38] sm:$0xff] }
  0x39   : > { %v2414_v21 = vrot.slane %v2406_v11, %v20795_v8  ;;  %v2421_v22 = vrot.slane %v2407_v12, %v20795_v8  ;;  %v1677_v4 = vrot.slane %v1663_v13, %v20795_v8  ;;  %v381_v23 = vcombine.high %v373_v15, %v373_v15  ;;  %v913_v12 = vld [vmem:[%s20800_s17 + $0x69] sm:$0xff] }
  0x3a   : > { %v1661_v24 = vcombine.low %v1653_v16, %v1660_v9  ;;  %v1662_v25 = vcombine.low %v1097_v10, %v1099_v17  ;;  %v2423_v26 = vcombine.low %v18054_v14, %v373_v15  ;;  %v1121_v27 = vrot.slane %v1107_v20, %v20795_v8 }
  0x3b   : > { %v2422_v29 = vcombine.low %v2414_v21, %v2421_v22  ;;  %v2424_v30 = vcombine.low %v381_v23, %v380_v18  ;;  %v1122_v31 = vcombine.high %v1114_v1, %v1114_v1  ;;  %v1131_v32 = vrot.slane %v910_v19, %v20795_v8 }
  0x3c   : > { %19497 = vmatmul.mubr.msk.f32.gmra.mxu0 %vm2095_vm1, %v1661_v24  ;;  %v1670_v5 = vrot.slane %v1662_v25, %v20795_v8  ;;  %v2431_v33 = vrot.slane %v2423_v26, %v20795_v8  ;;  %v1123_v34 = vcombine.high %v1121_v27, %v1121_v27  ;;  %v382_v35 = vcombine.high %v380_v18, %v380_v18 }
  0x3d   : > { %19541 = vmatmul.mubr.msk.f32.vlgmr.msra.gmra.mxu1 %vm2095_vm1, %v2422_v29  ;;  %v2438_v36 = vrot.slane %v2424_v30, %v20795_v8  ;;  %v1679_v37 = vcombine.low %v1122_v31, %v1121_v27  ;;  %v383_v38 = vcombine.high %v245_v28, %v245_v28  ;;  %v390_v39 = vrot.slane %v245_v28, %v20795_v8  ;;  %v915_v28 = vld [vmem:[%s20800_s17 + $0x79] sm:$0xff] }
  0x3e   : > { %v1678_v41 = vcombine.low %v1670_v5, %v1677_v4  ;;  %v1680_v42 = vcombine.low %v1123_v34, %v1131_v32  ;;  %v1124_v43 = vcombine.high %v910_v19, %v910_v19  ;;  %v1139_v44 = vcombine.high %v1131_v32, %v1131_v32  ;;  %19639 = vmatpush3.msk.msra.mxu1 %vm2160_vm0, %v18253_v62  ;;  %v18056_v5 = vld.sshfl [vmem:[%s20800_s17 + $0x40] sm:$0x3 pattern:$0x76325410] }
  0x3f   : > { %v2439_v46 = vcombine.low %v2431_v33, %v2438_v36  ;;  %v1687_v47 = vrot.slane %v1679_v37, %v20795_v8  ;;  %v397_v48 = vrot.slane %v383_v38, %v20795_v8  ;;  %v398_v49 = vcombine.high %v390_v39, %v390_v39  ;;  %v250_v33 = vld [vmem:[%s20800_s17 + $0x48] sm:$0xff] }
  0x40   : > { %19499 = vmatprep.mubr.msk.f32.mxu0 %vm2095_vm1, %v1678_v41  ;;  %v1694_v50 = vrot.slane %v1680_v42, %v20795_v8  ;;  %v2440_v51 = vcombine.low %v382_v35, %v390_v39  ;;  %v1138_v52 = vrot.slane %v1124_v43, %v20795_v8  ;;  %v414_v54 = vrot.slane %v247_v40, %v20795_v8 }
  0x41   : > { %19543 = vmatprep.mubr.msk.f32.mxu1 %vm2095_vm1, %v2439_v46  ;;  %v2441_v55 = vcombine.low %v398_v49, %v397_v48  ;;  %v399_v57 = vcombine.high %v397_v48, %v397_v48  ;;  %v1148_v58 = vcombine.high %v912_v45, %v912_v45  ;;  %v1155_v59 = vrot.slane %v912_v45, %v20795_v8  ;;  %v18072_v46 = vld.sshfl [vmem:[%s20800_s17 + $0x71] sm:$0x3 pattern:$0x76325410] }
  0x42   : > { %v1695_v60 = vcombine.low %v1687_v47, %v1694_v50  ;;  %v2448_v61 = vrot.slane %v2440_v51, %v20795_v8  ;;  %v1140_v62 = vcombine.high %v1138_v52, %v1138_v52  ;;  %v1696_v63 = vcombine.low %v1139_v44, %v1138_v52  ;;  %v251_v51 = vld [vmem:[%s20800_s17 + $0x50] sm:$0xff] }
  0x43   : > { %v2455_v0 = vrot.slane %v2441_v55, %v20795_v8  ;;  %v422_v1 = vcombine.high %v414_v54, %v414_v54  ;;  %v2457_v2 = vcombine.low %v399_v57, %v18055_v53  ;;  %v1162_v3 = vrot.slane %v1148_v58, %v20795_v8 }
  0x44   : > { %19500 = vmatmul.mubr.msk.f32.gmra.mxu0 %vm2095_vm1, %v1695_v60  ;;  %v1697_v7 = vcombine.low %v1140_v62, %v18071_v56  ;;  %v1704_v9 = vrot.slane %v1696_v63, %v20795_v8  ;;  %v1163_v10 = vcombine.high %v1155_v59, %v1155_v59  ;;  %v407_v11 = vcombine.high %v247_v40, %v247_v40  ;;  %v916_v56 = vld [vmem:[%s20800_s17 + $0x81] sm:$0xff] }
  0x45   : > { %v2456_v13 = vcombine.low %v2448_v61, %v2455_v0  ;;  %v2458_v14 = vcombine.low %v414_v54, %v422_v1  ;;  %v2465_v15 = vrot.slane %v2457_v2, %v20795_v8  ;;  %v1164_v16 = vcombine.high %v1162_v3, %v1162_v3 }
  0x46   : > { %v1711_v17 = vrot.slane %v1697_v7, %v20795_v8  ;;  %v1713_v18 = vcombine.low %v1155_v59, %v1163_v10  ;;  %v421_v19 = vrot.slane %v407_v11, %v20795_v8  ;;  %v431_v20 = vrot.slane %v248_v6, %v20795_v8 }
  0x47   : > { %19544 = vmatmul.mubr.msk.f32.gmra.mxu1 %vm2095_vm1, %v2456_v13  ;;  %v2472_v21 = vrot.slane %v2458_v14, %v20795_v8  ;;  %v1714_v22 = vcombine.low %v1162_v3, %v1164_v16  ;;  %v1165_v4 = vcombine.high %v913_v12, %v913_v12  ;;  %v1172_v23 = vrot.slane %v913_v12, %v20795_v8  ;;  %v918_v16 = vld [vmem:[%s20800_s17 + $0x91] sm:$0xff] }
  0x48   : > { %v1712_v24 = vcombine.low %v1704_v9, %v1711_v17  ;;  %v1721_v25 = vrot.slane %v1713_v18, %v20795_v8  ;;  %v423_v26 = vcombine.high %v421_v19, %v421_v19  ;;  %v439_v27 = vcombine.high %v431_v20, %v431_v20  ;;  %v253_v17 = vld [vmem:[%s20800_s17 + $0x60] sm:$0xff] }
  0x49   : > { %v2473_v29 = vcombine.low %v2465_v15, %v2472_v21  ;;  %v1728_v30 = vrot.slane %v1714_v22, %v20795_v8  ;;  %v1179_v31 = vrot.slane %v1165_v4, %v20795_v8  ;;  %v1180_v32 = vcombine.high %v1172_v23, %v1172_v23  ;;  %v18073_v22 = vld.sshfl [vmem:[%s20800_s17 + $0x89] sm:$0x3 pattern:$0x76325410] }
  0x4a   : > { %19502 = vmatprep.mubr.msk.f32.mxu0 %vm2095_vm1, %v1712_v24  ;;  %v2474_v34 = vcombine.low %v421_v19, %v423_v26  ;;  %v2475_v35 = vcombine.low %v431_v20, %v439_v27  ;;  %v424_v36 = vcombine.high %v248_v6, %v248_v6  ;;  %v455_v37 = vrot.slane %v250_v33, %v20795_v8 }
  0x4b   : > { %19546 = vmatprep.mubr.msk.f32.mxu1 %vm2095_vm1, %v2473_v29  ;;  %v1729_v38 = vcombine.low %v1721_v25, %v1728_v30  ;;  %v1181_v39 = vcombine.high %v1179_v31, %v1179_v31  ;;  %v1730_v40 = vcombine.low %v1172_v23, %v1180_v32  ;;  %v1189_v41 = vcombine.high %v915_v28, %v915_v28 }
  0x4c   : > { %v2482_v42 = vrot.slane %v2474_v34, %v20795_v8  ;;  %v2489_v43 = vrot.slane %v2475_v35, %v20795_v8  ;;  %v438_v44 = vrot.slane %v424_v36, %v20795_v8  ;;  %v2492_v45 = vcombine.low %v18056_v5, %v455_v37 }
  0x4d   : > { %19503 = vmatmul.mubr.msk.f32.gmra.mxu0 %vm2095_vm1, %v1729_v38  ;;  %v1731_v47 = vcombine.low %v1179_v31, %v1181_v39  ;;  %v1738_v48 = vrot.slane %v1730_v40, %v20795_v8  ;;  %v1196_v49 = vrot.slane %v915_v28, %v20795_v8  ;;  %v1203_v50 = vrot.slane %v1189_v41, %v20795_v8  ;;  %v18057_v28 = vld.sshfl [vmem:[%s20800_s17 + $0x58] sm:$0x3 pattern:$0x76325410]  ;;  %v254_v39 = vld [vmem:[%s20800_s17 + $0x68] sm:$0xff] }
  0x4e   : > { %v2490_v52 = vcombine.low %v2482_v42, %v2489_v43  ;;  %v440_v53 = vcombine.high %v438_v44, %v438_v44  ;;  %v2506_v54 = vrot.slane %v2492_v45, %v20795_v8  ;;  %v448_v55 = vcombine.high %v250_v33, %v250_v33  ;;  %v919_v38 = vld [vmem:[%s20800_s17 + $0x99] sm:$0xff] }
  0x4f   : > { %v1745_v57 = vrot.slane %v1731_v47, %v20795_v8  ;;  %v1204_v58 = vcombine.high %v1196_v49, %v1196_v49  ;;  %v1747_v59 = vcombine.low %v18072_v46, %v1196_v49  ;;  %v463_v60 = vcombine.high %v455_v37, %v455_v37 }
  0x50   : > { %19547 = vmatmul.mubr.msk.f32.gmra.mxu1 %vm2095_vm1, %v2490_v52  ;;  %v2491_v61 = vcombine.low %v438_v44, %v440_v53  ;;  %v462_v62 = vrot.slane %v448_v55, %v20795_v8  ;;  %v472_v63 = vrot.slane %v251_v51, %v20795_v8  ;;  %v1205_v0 = vcombine.high %v1203_v50, %v1203_v50 }
  0x51   : > { %v1746_v1 = vcombine.low %v1738_v48, %v1745_v57  ;;  %v1748_v2 = vcombine.low %v1204_v58, %v1203_v50  ;;  %v1755_v3 = vrot.slane %v1747_v59, %v20795_v8  ;;  %v1206_v6 = vcombine.high %v916_v56, %v916_v56 }
  0x52   : > { %v2499_v7 = vrot.slane %v2491_v61, %v20795_v8  ;;  %v464_v9 = vcombine.high %v462_v62, %v462_v62  ;;  %v2508_v10 = vcombine.low %v463_v60, %v462_v62  ;;  %v1213_v11 = vrot.slane %v916_v56, %v20795_v8  ;;  %v921_v60 = vld [vmem:[%s20800_s17 + $0xa9] sm:$0xff]  ;;  %v256_v61 = vld [vmem:[%s20800_s17 + $0x78] sm:$0xff] }
  0x53   : > { %19505 = vmatprep.mubr.msk.f32.mxu0 %vm2095_vm1, %v1746_v1  ;;  %v1762_v12 = vrot.slane %v1748_v2, %v20795_v8  ;;  %v1220_v13 = vrot.slane %v1206_v6, %v20795_v8  ;;  %v465_v14 = vcombine.high %v251_v51, %v251_v51  ;;  %v480_v15 = vcombine.high %v472_v63, %v472_v63 }
  0x54   : > { %v2507_v18 = vcombine.low %v2499_v7, %v2506_v54  ;;  %v2509_v19 = vcombine.low %v464_v9, %v472_v63  ;;  %v2516_v20 = vrot.slane %v2508_v10, %v20795_v8  ;;  %v1221_v21 = vcombine.high %v1213_v11, %v1213_v11  ;;  %v18074_v7 = vld.sshfl [vmem:[%s20800_s17 + $0xa1] sm:$0x3 pattern:$0x76325410] }
  0x55   : > { %v1763_v4 = vcombine.low %v1755_v3, %v1762_v12  ;;  %v1764_v23 = vcombine.low %v1205_v0, %v1213_v11  ;;  %v479_v24 = vrot.slane %v465_v14, %v20795_v8  ;;  %v1222_v25 = vcombine.high %v1220_v13, %v1220_v13 }
  0x56   : > { %19549 = vmatprep.mubr.msk.f32.mxu1 %vm2095_vm1, %v2507_v18  ;;  %v2523_v26 = vrot.slane %v2509_v19, %v20795_v8  ;;  %v1765_v27 = vcombine.low %v1221_v21, %v1220_v13  ;;  %v1237_v29 = vrot.slane %v918_v16, %v20795_v8  ;;  %v489_v30 = vcombine.high %v253_v17, %v253_v17  ;;  %v18058_v18 = vld.sshfl [vmem:[%s20800_s17 + $0x70] sm:$0x3 pattern:$0x76325410] }
  0x57   : > { %19506 = vmatmul.mubr.msk.f32.gmra.mxu0 %vm2095_vm1, %v1763_v4  ;;  %v1772_v31 = vrot.slane %v1764_v23, %v20795_v8  ;;  %v481_v32 = vcombine.high %v479_v24, %v479_v24  ;;  %v2525_v5 = vcombine.low %v480_v15, %v479_v24  ;;  %v1781_v33 = vcombine.low %v1222_v25, %v18073_v22 }
  0x58   : > { %v2524_v34 = vcombine.low %v2516_v20, %v2523_v26  ;;  %v1779_v35 = vrot.slane %v1765_v27, %v20795_v8  ;;  %v1245_v36 = vcombine.high %v1237_v29, %v1237_v29  ;;  %v496_v37 = vrot.slane %v253_v17, %v20795_v8 }
  0x59   : > { %v2526_v40 = vcombine.low %v481_v32, %v18057_v28  ;;  %v2533_v41 = vrot.slane %v2525_v5, %v20795_v8  ;;  %v1789_v42 = vrot.slane %v1781_v33, %v20795_v8  ;;  %v503_v43 = vrot.slane %v489_v30, %v20795_v8  ;;  %v257_v30 = vld [vmem:[%s20800_s17 + $0x80] sm:$0xff]  ;;  %v922_v5 = vld [vmem:[%s20800_s17 + $0xb1] sm:$0xff] }
  0x5a   : > { %19550 = vmatmul.mubr.msk.f32.gmra.mxu1 %vm2095_vm1, %v2524_v34  ;;  %v1780_v44 = vcombine.low %v1772_v31, %v1779_v35  ;;  %v1782_v45 = vcombine.low %v1237_v29, %v1245_v36  ;;  %v504_v46 = vcombine.high %v496_v37, %v496_v37  ;;  %v1230_v47 = vcombine.high %v918_v16, %v918_v16 }
  0x5b   : > { %v2540_v48 = vrot.slane %v2526_v40, %v20795_v8  ;;  %v505_v49 = vcombine.high %v503_v43, %v503_v43  ;;  %v1254_v50 = vrot.slane %v919_v38, %v20795_v8  ;;  %v506_v51 = vcombine.high %v254_v39, %v254_v39 }
  0x5c   : > { %19508 = vmatprep.mubr.msk.f32.mxu0 %vm2095_vm1, %v1780_v44  ;;  %v1796_v52 = vrot.slane %v1782_v45, %v20795_v8  ;;  %v2542_v53 = vcombine.low %v496_v37, %v504_v46  ;;  %v1244_v54 = vrot.slane %v1230_v47, %v20795_v8  ;;  %v513_v55 = vrot.slane %v254_v39, %v20795_v8  ;;  %v259_v47 = vld [vmem:[%s20800_s17 + $0x90] sm:$0xff] }
  0x5d   : > { %v2541_v56 = vcombine.low %v2533_v41, %v2540_v48  ;;  %v2543_v57 = vcombine.low %v503_v43, %v505_v49  ;;  %v1262_v58 = vcombine.high %v1254_v50, %v1254_v50  ;;  %v520_v59 = vrot.slane %v506_v51, %v20795_v8  ;;  %v924_v48 = vld [vmem:[%s20800_s17 + $0xc1] sm:$0xff] }
  0x5e   : > { %v1797_v62 = vcombine.low %v1789_v42, %v1796_v52  ;;  %v2550_v63 = vrot.slane %v2542_v53, %v20795_v8  ;;  %v1246_v0 = vcombine.high %v1244_v54, %v1244_v54  ;;  %v521_v1 = vcombine.high %v513_v55, %v513_v55 }
  0x5f   : > { %19552 = vmatprep.mubr.msk.f32.mxu1 %vm2095_vm1, %v2541_v56  ;;  %v2557_v2 = vrot.slane %v2543_v57, %v20795_v8  ;;  %v1799_v3 = vcombine.low %v1254_v50, %v1262_v58  ;;  %v522_v6 = vcombine.high %v520_v59, %v520_v59  ;;  %v1247_v9 = vcombine.high %v919_v38, %v919_v38  ;;  %v18059_v57 = vld.sshfl [vmem:[%s20800_s17 + $0x88] sm:$0x3 pattern:$0x76325410] }
  0x60   : > { %19509 = vmatmul.mubr.msk.f32.gmra.mxu0 %vm2095_vm1, %v1797_v62  ;;  %v1798_v10 = vcombine.low %v1244_v54, %v1246_v0  ;;  %v2559_v11 = vcombine.low %v513_v55, %v521_v1  ;;  %v1278_v12 = vrot.slane %v921_v60, %v20795_v8  ;;  %v530_v13 = vcombine.high %v256_v61, %v256_v61 }
  0x61   : > { %v2558_v14 = vcombine.low %v2550_v63, %v2557_v2  ;;  %v1813_v15 = vrot.slane %v1799_v3, %v20795_v8  ;;  %v2560_v16 = vcombine.low %v520_v59, %v522_v6  ;;  %v1261_v17 = vrot.slane %v1247_v9, %v20795_v8  ;;  %v18075_v59 = vld.sshfl [vmem:[%s20800_s17 + $0xb9] sm:$0x3 pattern:$0x76325410] }
  0x62   : > { %v1806_v19 = vrot.slane %v1798_v10, %v20795_v8  ;;  %v2567_v20 = vrot.slane %v2559_v11, %v20795_v8  ;;  %v1816_v21 = vcombine.low %v18074_v7, %v1278_v12  ;;  %v537_v22 = vrot.slane %v256_v61, %v20795_v8  ;;  %v260_v10 = vld [vmem:[%s20800_s17 + $0x98] sm:$0xff] }
  0x63   : > { %19553 = vmatmul.mubr.msk.f32.gmra.mxu1 %vm2095_vm1, %v2558_v14  ;;  %v2574_v4 = vrot.slane %v2560_v16, %v20795_v8  ;;  %v1263_v23 = vcombine.high %v1261_v17, %v1261_v17  ;;  %v544_v24 = vrot.slane %v530_v13, %v20795_v8  ;;  %v1271_v25 = vcombine.high %v921_v60, %v921_v60 }
  0x64   : > { %v1814_v26 = vcombine.low %v1806_v19, %v1813_v15  ;;  %v1830_v27 = vrot.slane %v1816_v21, %v20795_v8  ;;  %v545_v28 = vcombine.high %v537_v22, %v537_v22  ;;  %v2576_v29 = vcombine.low %v18058_v18, %v537_v22  ;;  %v925_v15 = vld [vmem:[%s20800_s17 + $0xc9] sm:$0xff] }
  0x65   : > { %v2575_v31 = vcombine.low %v2567_v20, %v2574_v4  ;;  %v1815_v32 = vcombine.low %v1261_v17, %v1263_v23  ;;  %v1285_v33 = vrot.slane %v1271_v25, %v20795_v8  ;;  %v1286_v34 = vcombine.high %v1278_v12, %v1278_v12 }
  0x66   : > { %19511 = vmatprep.mubr.msk.f32.mxu0 %vm2095_vm1, %v1814_v26  ;;  %v2577_v35 = vcombine.low %v545_v28, %v544_v24  ;;  %v2584_v36 = vrot.slane %v2576_v29, %v20795_v8  ;;  %v1295_v37 = vrot.slane %v922_v5, %v20795_v8  ;;  %v546_v38 = vcombine.high %v544_v24, %v544_v24 }
  0x67   : > { %19555 = vmatprep.mubr.msk.f32.mxu1 %vm2095_vm1, %v2575_v31  ;;  %v1823_v39 = vrot.slane %v1815_v32, %v20795_v8  ;;  %v1287_v40 = vcombine.high %v1285_v33, %v1285_v33  ;;  %v1832_v41 = vcombine.low %v1286_v34, %v1285_v33  ;;  %v547_v42 = vcombine.high %v257_v30, %v257_v30  ;;  %v262_v31 = vld [vmem:[%s20800_s17 + $0xa8] sm:$0xff]  ;;  %v927_v32 = vld [vmem:[%s20800_s17 + $0xd9] sm:$0xff] }
  0x68   : > { %v2591_v43 = vrot.slane %v2577_v35, %v20795_v8  ;;  %v554_v44 = vrot.slane %v257_v30, %v20795_v8  ;;  %v1288_v45 = vcombine.high %v922_v5, %v922_v5  ;;  %v1303_v46 = vcombine.high %v1295_v37, %v1295_v37 }
  0x69   : > { %v1831_v49 = vcombine.low %v1823_v39, %v1830_v27  ;;  %v1833_v50 = vcombine.low %v1287_v40, %v1295_v37  ;;  %v1840_v51 = vrot.slane %v1832_v41, %v20795_v8  ;;  %v561_v52 = vrot.slane %v547_v42, %v20795_v8  ;;  %v18060_v39 = vld.sshfl [vmem:[%s20800_s17 + $0xa0] sm:$0x3 pattern:$0x76325410] }
  0x6a   : > { %v2592_v53 = vcombine.low %v2584_v36, %v2591_v43  ;;  %v562_v54 = vcombine.high %v554_v44, %v554_v44  ;;  %v2593_v55 = vcombine.low %v546_v38, %v554_v44  ;;  %v1302_v56 = vrot.slane %v1288_v45, %v20795_v8 }
  0x6b   : > { %19512 = vmatmul.mubr.msk.f32.gmra.mxu0 %vm2095_vm1, %v1831_v49  ;;  %v1847_v58 = vrot.slane %v1833_v50, %v20795_v8  ;;  %v563_v60 = vcombine.high %v561_v52, %v561_v52  ;;  %v578_v61 = vrot.slane %v259_v47, %v20795_v8  ;;  %v1312_v62 = vcombine.high %v924_v48, %v924_v48 }
  0x6c   : > { %19556 = vmatmul.mubr.msk.f32.gmra.mxu1 %vm2095_vm1, %v2592_v53  ;;  %v2594_v63 = vcombine.low %v562_v54, %v561_v52  ;;  %v2601_v0 = vrot.slane %v2593_v55, %v20795_v8  ;;  %v1304_v1 = vcombine.high %v1302_v56, %v1302_v56  ;;  %v1849_v2 = vcombine.low %v1303_v46, %v1302_v56  ;;  %v18076_v52 = vld.sshfl [vmem:[%s20800_s17 + $0xd1] sm:$0x3 pattern:$0x76325410] }
  0x6d   : > { %v1848_v3 = vcombine.low %v1840_v51, %v1847_v58  ;;  %v586_v6 = vcombine.high %v578_v61, %v578_v61  ;;  %v2610_v7 = vcombine.low %v563_v60, %v18059_v57  ;;  %v1319_v9 = vrot.slane %v924_v48, %v20795_v8 }
  0x6e   : > { %v2608_v11 = vrot.slane %v2594_v63, %v20795_v8  ;;  %v1850_v12 = vcombine.low %v1304_v1, %v18075_v59  ;;  %v1857_v13 = vrot.slane %v1849_v2, %v20795_v8  ;;  %v1326_v14 = vrot.slane %v1312_v62, %v20795_v8 }
  0x6f   : > { %19514 = vmatprep.mubr.msk.f32.mxu0 %vm2095_vm1, %v1848_v3  ;;  %v2611_v16 = vcombine.low %v578_v61, %v586_v6  ;;  %v2618_v17 = vrot.slane %v2610_v7, %v20795_v8  ;;  %v1327_v18 = vcombine.high %v1319_v9, %v1319_v9  ;;  %v571_v19 = vcombine.high %v259_v47, %v259_v47  ;;  %v928_v3 = vld [vmem:[%s20800_s17 + $0xe1] sm:$0xff] }
  0x70   : > { %v2609_v20 = vcombine.low %v2601_v0, %v2608_v11  ;;  %v1864_v21 = vrot.slane %v1850_v12, %v20795_v8  ;;  %v1328_v22 = vcombine.high %v1326_v14, %v1326_v14  ;;  %v595_v4 = vrot.slane %v260_v10, %v20795_v8  ;;  %v263_v0 = vld [vmem:[%s20800_s17 + $0xb0] sm:$0xff] }
  0x71   : > { %v2625_v23 = vrot.slane %v2611_v16, %v20795_v8  ;;  %v1866_v24 = vcombine.low %v1319_v9, %v1327_v18  ;;  %v585_v25 = vrot.slane %v571_v19, %v20795_v8  ;;  %v1329_v26 = vcombine.high %v925_v15, %v925_v15  ;;  %v930_v19 = vld [vmem:[%s20800_s17 + $0xf1] sm:$0xff] }
  0x72   : > { %19558 = vmatprep.mubr.msk.f32.mxu1 %vm2095_vm1, %v2609_v20  ;;  %v1865_v27 = vcombine.low %v1857_v13, %v1864_v21  ;;  %v1867_v28 = vcombine.low %v1326_v14, %v1328_v22  ;;  %v603_v29 = vcombine.high %v595_v4, %v595_v4  ;;  %v1336_v30 = vrot.slane %v925_v15, %v20795_v8  ;;  %v265_v20 = vld [vmem:[%s20800_s17 + $0xc0] sm:$0xff] }
  0x73   : > { %v2626_v5 = vcombine.low %v2618_v17, %v2625_v23  ;;  %v1874_v33 = vrot.slane %v1866_v24, %v20795_v8  ;;  %v587_v34 = vcombine.high %v585_v25, %v585_v25  ;;  %v1343_v35 = vrot.slane %v1329_v26, %v20795_v8 }
  0x74   : > { %19515 = vmatmul.mubr.msk.f32.gmra.mxu0 %vm2095_vm1, %v1865_v27  ;;  %v1881_v36 = vrot.slane %v1867_v28, %v20795_v8  ;;  %v2628_v37 = vcombine.low %v595_v4, %v603_v29  ;;  %v1344_v38 = vcombine.high %v1336_v30, %v1336_v30  ;;  %v588_v40 = vcombine.high %v260_v10, %v260_v10 }
  0x75   : > { %19559 = vmatmul.mubr.msk.f32.gmra.mxu1 %vm2095_vm1, %v2626_v5  ;;  %v2627_v41 = vcombine.low %v585_v25, %v587_v34  ;;  %v1345_v42 = vcombine.high %v1343_v35, %v1343_v35  ;;  %v619_v43 = vrot.slane %v262_v31, %v20795_v8  ;;  %v1353_v44 = vcombine.high %v927_v32, %v927_v32  ;;  %v18061_v34 = vld.sshfl [vmem:[%s20800_s17 + $0xb8] sm:$0x3 pattern:$0x76325410] }
  0x76   : > { %v1882_v45 = vcombine.low %v1874_v33, %v1881_v36  ;;  %v2642_v46 = vrot.slane %v2628_v37, %v20795_v8  ;;  %v1883_v47 = vcombine.low %v1336_v30, %v1344_v38  ;;  %v602_v48 = vrot.slane %v588_v40, %v20795_v8  ;;  %v18077_v30 = vld.sshfl [vmem:[%s20800_s17 + $0xe9] sm:$0x3 pattern:$0x76325410] }
  0x77   : > { %v2635_v49 = vrot.slane %v2627_v41, %v20795_v8  ;;  %v1884_v50 = vcombine.low %v1343_v35, %v1345_v42  ;;  %v2645_v51 = vcombine.low %v18060_v39, %v619_v43  ;;  %v1360_v53 = vrot.slane %v927_v32, %v20795_v8 }
  0x78   : > { %19517 = vmatprep.mubr.msk.f32.mxu0 %vm2095_vm1, %v1882_v45  ;;  %v1891_v54 = vrot.slane %v1883_v47, %v20795_v8  ;;  %v604_v55 = vcombine.high %v602_v48, %v602_v48  ;;  %v1367_v56 = vrot.slane %v1353_v44, %v20795_v8  ;;  %v612_v57 = vcombine.high %v262_v31, %v262_v31  ;;  %v931_v45 = vld [vmem:[%s20800_s17 + $0xf9] sm:$0xff] }
  0x79   : > { %v2643_v58 = vcombine.low %v2635_v49, %v2642_v46  ;;  %v1898_v59 = vrot.slane %v1884_v50, %v20795_v8  ;;  %v2659_v60 = vrot.slane %v2645_v51, %v20795_v8  ;;  %v1368_v61 = vcombine.high %v1360_v53, %v1360_v53  ;;  %v266_v50 = vld [vmem:[%s20800_s17 + $0xc8] sm:$0xff] }
  0x7a   : > { %v2644_v62 = vcombine.low %v602_v48, %v604_v55  ;;  %v1900_v63 = vcombine.low %v18076_v52, %v1360_v53  ;;  %v626_v1 = vrot.slane %v612_v57, %v20795_v8  ;;  %v627_v2 = vcombine.high %v619_v43, %v619_v43 }
  0x7b   : > { %19561 = vmatprep.mubr.msk.f32.mxu1 %vm2095_vm1, %v2643_v58  ;;  %v1899_v6 = vcombine.low %v1891_v54, %v1898_v59  ;;  %v1901_v7 = vcombine.low %v1368_v61, %v1367_v56  ;;  %v636_v9 = vrot.slane %v263_v0, %v20795_v8  ;;  %v1369_v10 = vcombine.high %v1367_v56, %v1367_v56 }
  0x7c   : > { %v2652_v11 = vrot.slane %v2644_v62, %v20795_v8  ;;  %v1908_v12 = vrot.slane %v1900_v63, %v20795_v8  ;;  %v628_v13 = vcombine.high %v626_v1, %v626_v1  ;;  %v2661_v14 = vcombine.low %v627_v2, %v626_v1 }
  0x7d   : > { %19518 = vmatmul.mubr.msk.f32.gmra.mxu0 %vm2095_vm1, %v1899_v6  ;;  %v1915_v15 = vrot.slane %v1901_v7, %v20795_v8  ;;  %v1370_v16 = vcombine.high %v928_v3, %v928_v3  ;;  %v1377_v17 = vrot.slane %v928_v3, %v20795_v8  ;;  %v629_v18 = vcombine.high %v263_v0, %v263_v0 }
  0x7e   : > { %v2660_v21 = vcombine.low %v2652_v11, %v2659_v60  ;;  %v2662_v22 = vcombine.low %v628_v13, %v636_v9  ;;  %v2669_v4 = vrot.slane %v2661_v14, %v20795_v8  ;;  %v644_v23 = vcombine.high %v636_v9, %v636_v9  ;;  %v18078_v9 = vld.sshfl [vmem:[%s20800_s17 + $0x101] sm:$0x3 pattern:$0x76325410] }
  0x7f   : > { %v1916_v24 = vcombine.low %v1908_v12, %v1915_v15  ;;  %v1384_v25 = vrot.slane %v1370_v16, %v20795_v8  ;;  %v1385_v26 = vcombine.high %v1377_v17, %v1377_v17  ;;  %v1917_v27 = vcombine.low %v1369_v10, %v1377_v17  ;;  %v933_v10 = vld [vmem:[%s20800_s17 + $0x109] sm:$0xff]  ;;  %v268_v12 = vld [vmem:[%s20800_s17 + $0xd8] sm:$0xff] }
  0x80   : > { %19562 = vmatmul.mubr.msk.f32.gmra.mxu1 %vm2095_vm1, %v2660_v21  ;;  %v2676_v28 = vrot.slane %v2662_v22, %v20795_v8  ;;  %v643_v29 = vrot.slane %v629_v18, %v20795_v8  ;;  %v1401_v31 = vrot.slane %v930_v19, %v20795_v8  ;;  %v653_v32 = vcombine.high %v265_v20, %v265_v20 }
  0x81   : > { %19520 = vmatprep.mubr.msk.f32.mxu0 %vm2095_vm1, %v1916_v24  ;;  %v1918_v5 = vcombine.low %v1385_v26, %v1384_v25  ;;  %v1925_v33 = vrot.slane %v1917_v27, %v20795_v8  ;;  %v1386_v35 = vcombine.high %v1384_v25, %v1384_v25  ;;  %v660_v36 = vrot.slane %v265_v20, %v20795_v8 }
  0x82   : > { %v2677_v37 = vcombine.low %v2669_v4, %v2676_v28  ;;  %v645_v38 = vcombine.high %v643_v29, %v643_v29  ;;  %v2678_v39 = vcombine.low %v644_v23, %v643_v29  ;;  %v1409_v40 = vcombine.high %v1401_v31, %v1401_v31  ;;  %v18062_v4 = vld.sshfl [vmem:[%s20800_s17 + $0xd0] sm:$0x3 pattern:$0x76325410] }
  0x83   : > { %v1932_v41 = vrot.slane %v1918_v5, %v20795_v8  ;;  %v1934_v42 = vcombine.low %v1386_v35, %v18077_v30  ;;  %v667_v43 = vrot.slane %v653_v32, %v20795_v8  ;;  %v668_v44 = vcombine.high %v660_v36, %v660_v36  ;;  %v934_v28 = vld [vmem:[%s20800_s17 + $0x111] sm:$0xff] }
  0x84   : > { %19564 = vmatprep.mubr.msk.f32.mxu1 %vm2095_vm1, %v2677_v37  ;;  %v2679_v46 = vcombine.low %v645_v38, %v18061_v34  ;;  %v2686_v47 = vrot.slane %v2678_v39, %v20795_v8  ;;  %v1935_v48 = vcombine.low %v1401_v31, %v1409_v40  ;;  %v1394_v49 = vcombine.high %v930_v19, %v930_v19 }
  0x85   : > { %v1933_v51 = vcombine.low %v1925_v33, %v1932_v41  ;;  %v1942_v52 = vrot.slane %v1934_v42, %v20795_v8  ;;  %v669_v53 = vcombine.high %v667_v43, %v667_v43  ;;  %v2695_v54 = vcombine.low %v660_v36, %v668_v44  ;;  %v269_v36 = vld [vmem:[%s20800_s17 + $0xe0] sm:$0xff] }
  0x86   : > { %v2693_v55 = vrot.slane %v2679_v46, %v20795_v8  ;;  %v1949_v56 = vrot.slane %v1935_v48, %v20795_v8  ;;  %v1408_v57 = vrot.slane %v1394_v49, %v20795_v8  ;;  %v1418_v58 = vrot.slane %v931_v45, %v20795_v8  ;;  %v271_v49 = vld [vmem:[%s20800_s17 + $0xf0] sm:$0xff] }
  0x87   : > { %19521 = vmatmul.mubr.msk.f32.gmra.mxu0 %vm2095_vm1, %v1933_v51  ;;  %v2696_v59 = vcombine.low %v667_v43, %v669_v53  ;;  %v2703_v60 = vrot.slane %v2695_v54, %v20795_v8  ;;  %v670_v61 = vcombine.high %v266_v50, %v266_v50  ;;  %v677_v62 = vrot.slane %v266_v50, %v20795_v8  ;;  %v936_v54 = vld [vmem:[%s20800_s17 + $0x121] sm:$0xff] }
  0x88   : > { %v2694_v63 = vcombine.low %v2686_v47, %v2693_v55  ;;  %v1950_v0 = vcombine.low %v1942_v52, %v1949_v56  ;;  %v1410_v1 = vcombine.high %v1408_v57, %v1408_v57  ;;  %v1426_v2 = vcombine.high %v1418_v58, %v1418_v58 }
  0x89   : > { %v2710_v3 = vrot.slane %v2696_v59, %v20795_v8  ;;  %v684_v6 = vrot.slane %v670_v61, %v20795_v8  ;;  %v685_v7 = vcombine.high %v677_v62, %v677_v62  ;;  %v1411_v11 = vcombine.high %v931_v45, %v931_v45 }
  0x8a   : > { %19565 = vmatmul.mubr.msk.f32.gmra.mxu1 %vm2095_vm1, %v2694_v63  ;;  %19523 = vmatprep.mubr.msk.f32.mxu0 %vm2095_vm1, %v1950_v0  ;;  %v1951_v13 = vcombine.low %v1408_v57, %v1410_v1  ;;  %v1952_v14 = vcombine.low %v1418_v58, %v1426_v2  ;;  %v1442_v15 = vrot.slane %v933_v10, %v20795_v8  ;;  %v18079_v2 = vld.sshfl [vmem:[%s20800_s17 + $0x119] sm:$0x3 pattern:$0x76325410] }
  0x8b   : > { %v2711_v16 = vcombine.low %v2703_v60, %v2710_v3  ;;  %v686_v17 = vcombine.high %v684_v6, %v684_v6  ;;  %v2712_v18 = vcombine.low %v677_v62, %v685_v7  ;;  %v1425_v19 = vrot.slane %v1411_v11, %v20795_v8  ;;  %v18063_v62 = vld.sshfl [vmem:[%s20800_s17 + $0xe8] sm:$0x3 pattern:$0x76325410] }
  0x8c   : > { %v1959_v20 = vrot.slane %v1951_v13, %v20795_v8  ;;  %v1966_v21 = vrot.slane %v1952_v14, %v20795_v8  ;;  %v1969_v22 = vcombine.low %v18078_v9, %v1442_v15  ;;  %v694_v23 = vcombine.high %v268_v12, %v268_v12 }
  0x8d   : > { %19567 = vmatprep.mubr.msk.f32.mxu1 %vm2095_vm1, %v2711_v16  ;;  %v2713_v24 = vcombine.low %v684_v6, %v686_v17  ;;  %v2720_v25 = vrot.slane %v2712_v18, %v20795_v8  ;;  %v1427_v26 = vcombine.high %v1425_v19, %v1425_v19  ;;  %v701_v27 = vrot.slane %v268_v12, %v20795_v8  ;;  %v272_v16 = vld [vmem:[%s20800_s17 + $0xf8] sm:$0xff] }
  0x8e   : > { %v1967_v29 = vcombine.low %v1959_v20, %v1966_v21  ;;  %v1983_v30 = vrot.slane %v1969_v22, %v20795_v8  ;;  %v708_v31 = vrot.slane %v694_v23, %v20795_v8  ;;  %v1435_v32 = vcombine.high %v933_v10, %v933_v10 }
  0x8f   : > { %v2727_v5 = vrot.slane %v2713_v24, %v20795_v8  ;;  %v1968_v33 = vcombine.low %v1425_v19, %v1427_v26  ;;  %v709_v34 = vcombine.high %v701_v27, %v701_v27  ;;  %v2729_v35 = vcombine.low %v18062_v4, %v701_v27 }
  0x90   : > { %19524 = vmatmul.mubr.msk.f32.gmra.mxu0 %vm2095_vm1, %v1967_v29  ;;  %v1449_v37 = vrot.slane %v1435_v32, %v20795_v8  ;;  %v1450_v38 = vcombine.high %v1442_v15, %v1442_v15  ;;  %v1459_v39 = vrot.slane %v934_v28, %v20795_v8  ;;  %v710_v40 = vcombine.high %v708_v31, %v708_v31  ;;  %v274_v29 = vld [vmem:[%s20800_s17 + $0x108] sm:$0xff] }
  0x91   : > { %v2728_v41 = vcombine.low %v2720_v25, %v2727_v5  ;;  %v1976_v42 = vrot.slane %v1968_v33, %v20795_v8  ;;  %v2730_v43 = vcombine.low %v709_v34, %v708_v31  ;;  %v2737_v44 = vrot.slane %v2729_v35, %v20795_v8  ;;  %v3216_v33 = vld [vmem:[%s20800_s17 + $0x2] sm:$0xff] }
  0x92   : > { %v1451_v45 = vcombine.high %v1449_v37, %v1449_v37  ;;  %v1985_v46 = vcombine.low %v1450_v38, %v1449_v37  ;;  %v711_v47 = vcombine.high %v269_v36, %v269_v36  ;;  %v718_v48 = vrot.slane %v269_v36, %v20795_v8 }
  0x93   : > { %19568 = vmatmul.mubr.msk.f32.gmra.mxu1 %vm2095_vm1, %v2728_v41  ;;  %v1984_v50 = vcombine.low %v1976_v42, %v1983_v30  ;;  %v2744_v51 = vrot.slane %v2730_v43, %v20795_v8  ;;  %v1452_v52 = vcombine.high %v934_v28, %v934_v28  ;;  %v1467_v53 = vcombine.high %v1459_v39, %v1459_v39  ;;  %v18064_v28 = vld.sshfl [vmem:[%s20800_s17 + $0x100] sm:$0x3 pattern:$0x76325410] }
  0x94   : > { %v1986_v55 = vcombine.low %v1451_v45, %v1459_v39  ;;  %v1993_v56 = vrot.slane %v1985_v46, %v20795_v8  ;;  %v725_v57 = vrot.slane %v711_v47, %v20795_v8  ;;  %v726_v58 = vcombine.high %v718_v48, %v718_v48 }
  0x95   : > { %19526 = vmatprep.mubr.msk.f32.mxu0 %vm2095_vm1, %v1984_v50  ;;  %v2745_v59 = vcombine.low %v2737_v44, %v2744_v51  ;;  %v2746_v60 = vcombine.low %v710_v40, %v718_v48  ;;  %v1466_v61 = vrot.slane %v1452_v52, %v20795_v8  ;;  %v742_v63 = vrot.slane %v271_v49, %v20795_v8  ;;  %v3217_v50 = vld [vmem:[%s20800_s17 + $0xa] sm:$0xff] }
  0x96   : > { %v2000_v0 = vrot.slane %v1986_v55, %v20795_v8  ;;  %v2747_v1 = vcombine.low %v726_v58, %v725_v57  ;;  %v727_v3 = vcombine.high %v725_v57, %v725_v57  ;;  %v1476_v6 = vcombine.high %v936_v54, %v936_v54 }
  0x97   : > { %19570 = vmatprep.mubr.msk.f32.mxu1 %vm2095_vm1, %v2745_v59  ;;  %v2754_v7 = vrot.slane %v2746_v60, %v20795_v8  ;;  %v1468_v9 = vcombine.high %v1466_v61, %v1466_v61  ;;  %v2002_v10 = vcombine.low %v1467_v53, %v1466_v61  ;;  %v750_v11 = vcombine.high %v742_v63, %v742_v63 }
  0x98   : > { %v2001_v12 = vcombine.low %v1993_v56, %v2000_v0  ;;  %v2761_v13 = vrot.slane %v2747_v1, %v20795_v8  ;;  %v2763_v14 = vcombine.low %v727_v3, %v18063_v62  ;;  %v1483_v15 = vrot.slane %v936_v54, %v20795_v8 }
  0x99   : > { %v2003_v17 = vcombine.low %v1468_v9, %v18079_v2  ;;  %v2010_v18 = vrot.slane %v2002_v10, %v20795_v8  ;;  %v2764_v19 = vcombine.low %v742_v63, %v750_v11  ;;  %v1490_v20 = vrot.slane %v1476_v6, %v20795_v8  ;;  %v3219_v10 = vld [vmem:[%s20800_s17 + $0x1a] sm:$0xff] }
  0x9a   : > { %19527 = vmatmul.mubr.msk.f32.gmra.mxu0 %vm2095_vm1, %v2001_v12  ;;  %v2762_v21 = vcombine.low %v2754_v7, %v2761_v13  ;;  %v2771_v22 = vrot.slane %v2763_v14, %v20795_v8  ;;  %v1491_v4 = vcombine.high %v1483_v15, %v1483_v15  ;;  %v735_v23 = vcombine.high %v271_v49, %v271_v49  ;;  %v275_v49 = vld [vmem:[%s20800_s17 + $0x110] sm:$0xff] }
  0x9b   : > { %v2017_v24 = vrot.slane %v2003_v17, %v20795_v8  ;;  %v2778_v25 = vrot.slane %v2764_v19, %v20795_v8  ;;  %v1492_v26 = vcombine.high %v1490_v20, %v1490_v20  ;;  %v759_v27 = vrot.slane %v272_v16, %v20795_v8 }
  0x9c   : > { %19571 = vmatmul.mubr.msk.f32.gmra.mxu1 %vm2095_vm1, %v2762_v21  ;;  %v2019_v30 = vcombine.low %v1483_v15, %v1491_v4  ;;  %v749_v31 = vrot.slane %v735_v23, %v20795_v8  ;;  %v752_v32 = vcombine.high %v272_v16, %v272_v16  ;;  %v783_v5 = vrot.slane %v274_v29, %v20795_v8 }
  0x9d   : > { %v2018_v34 = vcombine.low %v2010_v18, %v2017_v24  ;;  %v2779_v35 = vcombine.low %v2771_v22, %v2778_v25  ;;  %v2020_v36 = vcombine.low %v1490_v20, %v1492_v26  ;;  %v767_v37 = vcombine.high %v759_v27, %v759_v27  ;;  %v18149_v22 = vld.sshfl [vmem:[%s20800_s17 + $0x12] sm:$0x3 pattern:$0x76325410] }
  0x9e   : > { %v2027_v38 = vrot.slane %v2019_v30, %v20795_v8  ;;  %v751_v39 = vcombine.high %v749_v31, %v749_v31  ;;  %v766_v40 = vrot.slane %v752_v32, %v20795_v8  ;;  %v2798_v41 = vcombine.low %v18064_v28, %v783_v5  ;;  %v18065_v26 = vld.sshfl [vmem:[%s20800_s17 + $0x118] sm:$0x3 pattern:$0x76325410]  ;;  %v277_v28 = vld [vmem:[%s20800_s17 + $0x120] sm:$0xff] }
  0x9f   : > { %19529 = vmatprep.mubr.msk.f32.mxu0 %vm2095_vm1, %v2018_v34  ;;  %19573 = vmatprep.mubr.msk.f32.mxu1 %vm2095_vm1, %v2779_v35  ;;  %v2034_v42 = vrot.slane %v2020_v36, %v20795_v8  ;;  %v2781_v43 = vcombine.low %v759_v27, %v767_v37  ;;  %v3300_v44 = vcombine.high %v3216_v33, %v3216_v33  ;;  %v3220_v36 = vld [vmem:[%s20800_s17 + $0x22] sm:$0xff] }
  0xa0   : > { %v2780_v45 = vcombine.low %v749_v31, %v751_v39  ;;  %v768_v46 = vcombine.high %v766_v40, %v766_v40  ;;  %v2812_v47 = vrot.slane %v2798_v41, %v20795_v8  ;;  %v3307_v48 = vrot.slane %v3216_v33, %v20795_v8  ;;  %v278_v41 = vld [vmem:[%s20800_s17 + $0x128] sm:$0xff] }
  0xa1   : > { %v2035_v51 = vcombine.low %v2027_v38, %v2034_v42  ;;  %v2795_v52 = vrot.slane %v2781_v43, %v20795_v8  ;;  %v3314_v53 = vrot.slane %v3300_v44, %v20795_v8  ;;  %v776_v54 = vcombine.high %v274_v29, %v274_v29 }
  0xa2   : > { %v2788_v55 = vrot.slane %v2780_v45, %v20795_v8  ;;  %v2797_v56 = vcombine.low %v766_v40, %v768_v46  ;;  %v3315_v57 = vcombine.high %v3307_v48, %v3307_v48  ;;  %v791_v58 = vcombine.high %v783_v5, %v783_v5 }
  0xa3   : > { %19530 = vmatmul.mubr.msk.f32.gmra.mxu0 %vm2095_vm1, %v2035_v51  ;;  %v3316_v59 = vcombine.high %v3314_v53, %v3314_v53  ;;  %v790_v60 = vrot.slane %v776_v54, %v20795_v8  ;;  %v800_v61 = vrot.slane %v275_v49, %v20795_v8  ;;  %v3317_v62 = vcombine.high %v3217_v50, %v3217_v50  ;;  %v20595_v54 = vld [vmem:[%s24882_s1 + $0x10] sm:$0xf] }
  0xa4   : > { %v2796_v63 = vcombine.low %v2788_v55, %v2795_v52  ;;  %v2805_v0 = vrot.slane %v2797_v56, %v20795_v8  ;;  %v3876_v1 = vcombine.low %v3307_v48, %v3315_v57  ;;  %v3324_v2 = vrot.slane %v3217_v50, %v20795_v8 }
  0xa5   : > { %v3877_v3 = vcombine.low %v3314_v53, %v3316_v59  ;;  %v792_v6 = vcombine.high %v790_v60, %v790_v60  ;;  %v2814_v7 = vcombine.low %v791_v58, %v790_v60  ;;  %v3331_v9 = vrot.slane %v3317_v62, %v20795_v8  ;;  %v3222_v59 = vld [vmem:[%s20800_s17 + $0x32] sm:$0xff] }
  0xa6   : > { %19574 = vmatmul.mubr.msk.f32.gmra.mxu1 %vm2095_vm1, %v2796_v63  ;;  %v2813_v11 = vcombine.low %v2805_v0, %v2812_v47  ;;  %v3884_v12 = vrot.slane %v3876_v1, %v20795_v8  ;;  %v3332_v13 = vcombine.high %v3324_v2, %v3324_v2  ;;  %v793_v14 = vcombine.high %v275_v49, %v275_v49  ;;  %v18150_v0 = vld.sshfl [vmem:[%s20800_s17 + $0x2a] sm:$0x3 pattern:$0x76325410]  ;;  %v280_v1 = vld [vmem:[%s20800_s17 + $0x138] sm:$0xff] }
  0xa7   : > { %v3891_v15 = vrot.slane %v3877_v3, %v20795_v8  ;;  %v2815_v16 = vcombine.low %v792_v6, %v800_v61  ;;  %v2822_v17 = vrot.slane %v2814_v7, %v20795_v8  ;;  %v3333_v18 = vcombine.high %v3331_v9, %v3331_v9 }
  0xa8   : > { %19576 = vmatprep.mubr.msk.f32.mxu1 %vm2095_vm1, %v2813_v11  ;;  %v3893_v19 = vcombine.low %v3324_v2, %v3332_v13  ;;  %v807_v20 = vrot.slane %v793_v14, %v20795_v8  ;;  %v808_v21 = vcombine.high %v800_v61, %v800_v61  ;;  %v3341_v4 = vcombine.high %v3219_v10, %v3219_v10 }
  0xa9   : > { %v3892_v23 = vcombine.low %v3884_v12, %v3891_v15  ;;  %v2829_v24 = vrot.slane %v2815_v16, %v20795_v8  ;;  %v3894_v25 = vcombine.low %v3331_v9, %v3333_v18  ;;  %v3348_v27 = vrot.slane %v3219_v10, %v20795_v8 }
  0xaa   : > { %v3901_v29 = vrot.slane %v3893_v19, %v20795_v8  ;;  %v809_v30 = vcombine.high %v807_v20, %v807_v20  ;;  %v2831_v31 = vcombine.low %v808_v21, %v807_v20  ;;  %v3355_v32 = vrot.slane %v3341_v4, %v20795_v8  ;;  %v18066_v20 = vld.sshfl [vmem:[%s20800_s17 + $0x130] sm:$0x3 pattern:$0x76325410] }
  0xab   : > { %19590 = vmatprep.mubr.msk.f32.mxu0 %vm2095_vm1, %v3892_v23  ;;  %v2830_v5 = vcombine.low %v2822_v17, %v2829_v24  ;;  %v3908_v33 = vrot.slane %v3894_v25, %v20795_v8  ;;  %v3356_v34 = vcombine.high %v3348_v27, %v3348_v27  ;;  %v3910_v35 = vcombine.low %v18149_v22, %v3348_v27  ;;  %v3223_v22 = vld [vmem:[%s20800_s17 + $0x3a] sm:$0xff] }
  0xac   : > { %v2832_v37 = vcombine.low %v809_v30, %v18065_v26  ;;  %v2839_v38 = vrot.slane %v2831_v31, %v20795_v8  ;;  %v817_v39 = vcombine.high %v277_v28, %v277_v28  ;;  %v824_v40 = vrot.slane %v277_v28, %v20795_v8  ;;  %v281_v26 = vld [vmem:[%s20800_s17 + $0x140] sm:$0xff] }
  0xad   : > { %19577 = vmatmul.mubr.msk.f32.gmra.mxu1 %vm2095_vm1, %v2830_v5  ;;  %v3909_v42 = vcombine.low %v3901_v29, %v3908_v33  ;;  %v3911_v43 = vcombine.low %v3356_v34, %v3355_v32  ;;  %v3918_v44 = vrot.slane %v3910_v35, %v20795_v8  ;;  %v3357_v45 = vcombine.high %v3355_v32, %v3355_v32 }
  0xae   : > { %v2846_v46 = vrot.slane %v2832_v37, %v20795_v8  ;;  %v831_v47 = vrot.slane %v817_v39, %v20795_v8  ;;  %v832_v48 = vcombine.high %v824_v40, %v824_v40  ;;  %v3358_v49 = vcombine.high %v3220_v36, %v3220_v36 }
  0xaf   : > { %19591 = vmatmul.mubr.msk.f32.vlgmr.msra.gmra.mxu0 %vm2095_vm1, %v3909_v42  ;;  %v3925_v50 = vrot.slane %v3911_v43, %v20795_v8  ;;  %v3365_v51 = vrot.slane %v3220_v36, %v20795_v8  ;;  %v834_v52 = vcombine.high %v278_v41, %v278_v41  ;;  %v841_v53 = vrot.slane %v278_v41, %v20795_v8  ;;  %v21231_v42 = vld [vmem:[%s24882_s1 + $0x14] sm:$0xf] }
  0xb0   : > { %19689 = vmatpush3.msk.msra.mxu0 %vm2160_vm0, %v20595_v54  ;;  %v2847_v55 = vcombine.low %v2839_v38, %v2846_v46  ;;  %v833_v56 = vcombine.high %v831_v47, %v831_v47  ;;  %v2848_v57 = vcombine.low %v824_v40, %v832_v48  ;;  %v3372_v58 = vrot.slane %v3358_v49, %v20795_v8  ;;  %v18151_v46 = vld.sshfl [vmem:[%s20800_s17 + $0x42] sm:$0x3 pattern:$0x76325410] }
  0xb1   : > { %v3926_v60 = vcombine.low %v3918_v44, %v3925_v50  ;;  %v3373_v61 = vcombine.high %v3365_v51, %v3365_v51  ;;  %v3927_v62 = vcombine.low %v3357_v45, %v3365_v51  ;;  %v848_v63 = vrot.slane %v834_v52, %v20795_v8  ;;  %v3225_v52 = vld [vmem:[%s20800_s17 + $0x4a] sm:$0xff]  ;;  %19738 = vmatprep.subr.msk.mxu1 %vm2160_vm0, %v21231_v42 }
  0xb2   : > { %19579 = vmatprep.mubr.msk.f32.mxu1 %vm2095_vm1, %v2847_v55  ;;  %v2849_v2 = vcombine.low %v831_v47, %v833_v56  ;;  %v2856_v3 = vrot.slane %v2848_v57, %v20795_v8  ;;  %v849_v6 = vcombine.high %v841_v53, %v841_v53  ;;  %v3374_v7 = vcombine.high %v3372_v58, %v3372_v58 }
  0xb3   : > { %19593 = vmatprep.mubr.msk.f32.mxu0 %vm2095_vm1, %v3926_v60  ;;  %v3928_v9 = vcombine.low %v3373_v61, %v3372_v58  ;;  %v3935_v10 = vrot.slane %v3927_v62, %v20795_v8  ;;  %v850_v11 = vcombine.high %v848_v63, %v848_v63  ;;  %v3389_v12 = vrot.slane %v3222_v59, %v20795_v8  ;;  %v3226_v58 = vld [vmem:[%s20800_s17 + $0x52] sm:$0xff] }
  0xb4   : > { %v2863_v13 = vrot.slane %v2849_v2, %v20795_v8  ;;  %v2865_v14 = vcombine.low %v841_v53, %v849_v6  ;;  %v3944_v15 = vcombine.low %v3374_v7, %v18150_v0  ;;  %v858_v16 = vcombine.high %v280_v1, %v280_v1  ;;  %v18067_v53 = vld.sshfl [vmem:[%s20800_s17 + $0x148] sm:$0x3 pattern:$0x76325410] }
  0xb5   : > { %v3942_v17 = vrot.slane %v3928_v9, %v20795_v8  ;;  %v2866_v18 = vcombine.low %v848_v63, %v850_v11  ;;  %v3397_v19 = vcombine.high %v3389_v12, %v3389_v12  ;;  %v865_v21 = vrot.slane %v280_v1, %v20795_v8  ;;  %v18197_v11 = vld [vmem:[%s20800_s17 + $0x18] sm:$0xff] }
  0xb6   : > { %v2864_v4 = vcombine.low %v2856_v3, %v2863_v13  ;;  %v2873_v23 = vrot.slane %v2865_v14, %v20795_v8  ;;  %v3952_v24 = vrot.slane %v3944_v15, %v20795_v8  ;;  %v872_v25 = vrot.slane %v858_v16, %v20795_v8  ;;  %v18523_v3 = vld [vmem:[%s24882_s1 + $0x18] sm:$0xf]  ;;  %v3228_v16 = vld [vmem:[%s20800_s17 + $0x62] sm:$0xff] }
  0xb7   : > { %v3943_v27 = vcombine.low %v3935_v10, %v3942_v17  ;;  %v2880_v28 = vrot.slane %v2866_v18, %v20795_v8  ;;  %v3945_v29 = vcombine.low %v3389_v12, %v3397_v19  ;;  %v873_v30 = vcombine.high %v865_v21, %v865_v21  ;;  %19788 = vmatprep.subr.msk.mxu0 %vm2160_vm0, %v18523_v3 }
  0xb8   : > { %19580 = vmatmul.mubr.msk.f32.gmra.mxu1 %vm2095_vm1, %v2864_v4  ;;  %v2882_v31 = vcombine.low %v18066_v20, %v865_v21  ;;  %v3382_v32 = vcombine.high %v3222_v59, %v3222_v59  ;;  %v3406_v5 = vrot.slane %v3223_v22, %v20795_v8  ;;  %v874_v33 = vcombine.high %v872_v25, %v872_v25 }
  0xb9   : > { %19594 = vmatmul.mubr.msk.f32.gmra.mxu0 %vm2095_vm1, %v3943_v27  ;;  %v2881_v34 = vcombine.low %v2873_v23, %v2880_v28  ;;  %v3959_v35 = vrot.slane %v3945_v29, %v20795_v8  ;;  %v2883_v36 = vcombine.low %v873_v30, %v872_v25  ;;  %v875_v37 = vcombine.high %v281_v26, %v281_v26  ;;  %v18198_v27 = vld [vmem:[%s20800_s17 + $0x20] sm:$0xff] }
  0xba   : > { %v2890_v38 = vrot.slane %v2882_v31, %v20795_v8  ;;  %v3396_v39 = vrot.slane %v3382_v32, %v20795_v8  ;;  %v3414_v40 = vcombine.high %v3406_v5, %v3406_v5  ;;  %v882_v41 = vrot.slane %v281_v26, %v20795_v8  ;;  %v18152_v31 = vld.sshfl [vmem:[%s20800_s17 + $0x5a] sm:$0x3 pattern:$0x76325410] }
  0xbb   : > { %19582 = vmatprep.mubr.msk.f32.mxu1 %vm2095_vm1, %v2881_v34  ;;  %v3960_v43 = vcombine.low %v3952_v24, %v3959_v35  ;;  %v2897_v44 = vrot.slane %v2883_v36, %v20795_v8  ;;  %v889_v45 = vrot.slane %v875_v37, %v20795_v8  ;;  %v3399_v47 = vcombine.high %v3223_v22, %v3223_v22 }
  0xbc   : > { %v3398_v48 = vcombine.high %v3396_v39, %v3396_v39  ;;  %v3962_v49 = vcombine.low %v3406_v5, %v3414_v40  ;;  %v890_v50 = vcombine.high %v882_v41, %v882_v41  ;;  %v2899_v51 = vcombine.low %v874_v33, %v882_v41 }
  0xbd   : > { %19596 = vmatprep.mubr.msk.f32.mxu0 %vm2095_vm1, %v3960_v43  ;;  %v2898_v54 = vcombine.low %v2890_v38, %v2897_v44  ;;  %v3413_v55 = vrot.slane %v3399_v47, %v20795_v8  ;;  %v3430_v56 = vrot.slane %v3225_v52, %v20795_v8  ;;  %v891_v57 = vcombine.high %v889_v45, %v889_v45 }
  0xbe   : > { %v3961_v59 = vcombine.low %v3396_v39, %v3398_v48  ;;  %v3976_v60 = vrot.slane %v3962_v49, %v20795_v8  ;;  %v2900_v61 = vcombine.low %v890_v50, %v889_v45  ;;  %v2907_v62 = vrot.slane %v2899_v51, %v20795_v8  ;;  %v3229_v45 = vld [vmem:[%s20800_s17 + $0x6a] sm:$0xff] }
  0xbf   : > { %19583 = vmatmul.mubr.msk.f32.gmra.mxu1 %vm2095_vm1, %v2898_v54  ;;  %v3415_v63 = vcombine.high %v3413_v55, %v3413_v55  ;;  %v3979_v0 = vcombine.low %v18151_v46, %v3430_v56  ;;  %v2916_v1 = vcombine.low %v891_v57, %v18067_v53  ;;  %v3423_v2 = vcombine.high %v3225_v52, %v3225_v52 }
  0xc0   : > { %v3969_v6 = vrot.slane %v3961_v59, %v20795_v8  ;;  %v2914_v7 = vrot.slane %v2900_v61, %v20795_v8  ;;  %v3438_v9 = vcombine.high %v3430_v56, %v3430_v56  ;;  %v3447_v10 = vrot.slane %v3226_v58, %v20795_v8 }
  0xc1   : > { %v3978_v12 = vcombine.low %v3413_v55, %v3415_v63  ;;  %v3993_v13 = vrot.slane %v3979_v0, %v20795_v8  ;;  %v2923_v14 = vrot.slane %v2916_v1, %v20795_v8  ;;  %v3437_v15 = vrot.slane %v3423_v2, %v20795_v8  ;;  %v3231_v63 = vld [vmem:[%s20800_s17 + $0x7a] sm:$0xff] }
  0xc2   : > { %v3977_v17 = vcombine.low %v3969_v6, %v3976_v60  ;;  %v2915_v18 = vcombine.low %v2907_v62, %v2914_v7  ;;  %v3440_v19 = vcombine.high %v3226_v58, %v3226_v58  ;;  %v3455_v20 = vcombine.high %v3447_v10, %v3447_v10  ;;  %v18200_v58 = vld [vmem:[%s20800_s17 + $0x30] sm:$0xff] }
  0xc3   : > { %v3986_v21 = vrot.slane %v3978_v12, %v20795_v8  ;;  %v3439_v22 = vcombine.high %v3437_v15, %v3437_v15  ;;  %v3995_v4 = vcombine.low %v3438_v9, %v3437_v15  ;;  %v4822_v23 = vcombine.high %v18197_v11, %v18197_v11  ;;  %v18239_v9 = vld.sshfl [vmem:[%s20800_s17 + $0x28] sm:$0x3 pattern:$0x76325410] }
  0xc4   : > { %19597 = vmatmul.mubr.msk.f32.gmra.mxu0 %vm2095_vm1, %v3977_v17  ;;  %19585 = vmatprep.mubr.msk.f32.mxu1 %vm2095_vm1, %v2915_v18  ;;  %v3454_v24 = vrot.slane %v3440_v19, %v20795_v8  ;;  %v4829_v25 = vrot.slane %v18197_v11, %v20795_v8  ;;  %v3464_v26 = vcombine.high %v3228_v16, %v3228_v16 }
  0xc5   : > { %v3994_v28 = vcombine.low %v3986_v21, %v3993_v13  ;;  %19586 = vmatmul.mubr.msk.f32.gmra.mxu1 %vm2095_vm1, %v2923_v14  ;;  %v3996_v29 = vcombine.low %v3439_v22, %v3447_v10  ;;  %v4003_v30 = vrot.slane %v3995_v4, %v20795_v8  ;;  %v4836_v32 = vrot.slane %v4822_v23, %v20795_v8 }
  0xc6   : > { %v3456_v5 = vcombine.high %v3454_v24, %v3454_v24  ;;  %v4012_v33 = vcombine.low %v3455_v20, %v3454_v24  ;;  %v4837_v34 = vcombine.high %v4829_v25, %v4829_v25  ;;  %v3471_v35 = vrot.slane %v3228_v16, %v20795_v8  ;;  %v18153_v20 = vld.sshfl [vmem:[%s20800_s17 + $0x72] sm:$0x3 pattern:$0x76325410]  ;;  %v18201_v24 = vld [vmem:[%s20800_s17 + $0x38] sm:$0xff] }
  0xc7   : > { %19599 = vmatprep.mubr.msk.f32.mxu0 %vm2095_vm1, %v3994_v28  ;;  %v4010_v36 = vrot.slane %v3996_v29, %v20795_v8  ;;  %v4838_v37 = vcombine.high %v4836_v32, %v4836_v32  ;;  %v3478_v38 = vrot.slane %v3464_v26, %v20795_v8  ;;  %v4839_v39 = vcombine.high %v18198_v27, %v18198_v27  ;;  %v3232_v29 = vld [vmem:[%s20800_s17 + $0x82] sm:$0xff] }
  0xc8   : > { %v4013_v40 = vcombine.low %v3456_v5, %v18152_v31  ;;  %v4020_v41 = vrot.slane %v4012_v33, %v20795_v8  ;;  %v5398_v43 = vcombine.low %v4829_v25, %v4837_v34  ;;  %v3479_v44 = vcombine.high %v3471_v35, %v3471_v35 }
  0xc9   : > { %v4011_v46 = vcombine.low %v4003_v30, %v4010_v36  ;;  %v5399_v47 = vcombine.low %v4836_v32, %v4838_v37  ;;  %v3480_v48 = vcombine.high %v3478_v38, %v3478_v38  ;;  %v4846_v49 = vrot.slane %v18198_v27, %v20795_v8  ;;  %v18203_v37 = vld [vmem:[%s20800_s17 + $0x48] sm:$0xff] }
  0xca   : > { %v4027_v50 = vrot.slane %v4013_v40, %v20795_v8  ;;  %v5406_v51 = vrot.slane %v5398_v43, %v20795_v8  ;;  %v4029_v52 = vcombine.low %v3471_v35, %v3479_v44  ;;  %v4853_v53 = vrot.slane %v4839_v39, %v20795_v8  ;;  %v3234_v43 = vld [vmem:[%s20800_s17 + $0x92] sm:$0xff] }
  0xcb   : > { %19600 = vmatmul.mubr.msk.f32.gmra.mxu0 %vm2095_vm1, %v4011_v46  ;;  %v5413_v54 = vrot.slane %v5399_v47, %v20795_v8  ;;  %v4030_v55 = vcombine.low %v3478_v38, %v3480_v48  ;;  %v4854_v56 = vcombine.high %v4846_v49, %v4846_v49  ;;  %v3481_v57 = vcombine.high %v3229_v45, %v3229_v45 }
  0xcc   : > { %v4028_v59 = vcombine.low %v4020_v41, %v4027_v50  ;;  %v4037_v60 = vrot.slane %v4029_v52, %v20795_v8  ;;  %v4855_v61 = vcombine.high %v4853_v53, %v4853_v53  ;;  %v3488_v62 = vrot.slane %v3229_v45, %v20795_v8 }
  0xcd   : > { %v5414_v0 = vcombine.low %v5406_v51, %v5413_v54  ;;  %v4044_v1 = vrot.slane %v4030_v55, %v20795_v8  ;;  %v5415_v2 = vcombine.low %v4846_v49, %v4854_v56  ;;  %v3495_v3 = vrot.slane %v3481_v57, %v20795_v8  ;;  %v18240_v51 = vld.sshfl [vmem:[%s20800_s17 + $0x40] sm:$0x3 pattern:$0x76325410] }
  0xce   : > { %19602 = vmatprep.mubr.msk.f32.mxu0 %vm2095_vm1, %v4028_v59  ;;  %v5416_v6 = vcombine.low %v4853_v53, %v4855_v61  ;;  %v3496_v7 = vcombine.high %v3488_v62, %v3488_v62  ;;  %v4863_v10 = vcombine.high %v18200_v58, %v18200_v58  ;;  %v4870_v11 = vrot.slane %v18200_v58, %v20795_v8 }
  0xcf   : > { %19640 = vmatprep.mubr.msk.f32.mxu1 %vm2095_vm1, %v5414_v0  ;;  %v4045_v12 = vcombine.low %v4037_v60, %v4044_v1  ;;  %v5423_v13 = vrot.slane %v5415_v2, %v20795_v8  ;;  %v3497_v14 = vcombine.high %v3495_v3, %v3495_v3  ;;  %v3505_v15 = vcombine.high %v3231_v63, %v3231_v63  ;;  %v18154_v60 = vld.sshfl [vmem:[%s20800_s17 + $0x8a] sm:$0x3 pattern:$0x76325410]  ;;  %v18204_v1 = vld [vmem:[%s20800_s17 + $0x50] sm:$0xff] }
  0xd0   : > { %v5430_v16 = vrot.slane %v5416_v6, %v20795_v8  ;;  %v4046_v17 = vcombine.low %v3488_v62, %v3496_v7  ;;  %v4877_v18 = vrot.slane %v4863_v10, %v20795_v8  ;;  %v4878_v19 = vcombine.high %v4870_v11, %v4870_v11 }
  0xd1   : > { %19603 = vmatmul.mubr.msk.f32.gmra.mxu0 %vm2095_vm1, %v4045_v12  ;;  %v4047_v21 = vcombine.low %v3495_v3, %v3497_v14  ;;  %v5432_v22 = vcombine.low %v18239_v9, %v4870_v11  ;;  %v3512_v4 = vrot.slane %v3231_v63, %v20795_v8  ;;  %v3519_v23 = vrot.slane %v3505_v15, %v20795_v8  ;;  %v3235_v9 = vld [vmem:[%s20800_s17 + $0x9a] sm:$0xff] }
  0xd2   : > { %v5431_v25 = vcombine.low %v5423_v13, %v5430_v16  ;;  %v4054_v26 = vrot.slane %v4046_v17, %v20795_v8  ;;  %v5433_v27 = vcombine.low %v4878_v19, %v4877_v18  ;;  %v4879_v28 = vcombine.high %v4877_v18, %v4877_v18 }
  0xd3   : > { %v4061_v30 = vrot.slane %v4047_v21, %v20795_v8  ;;  %v5440_v31 = vrot.slane %v5432_v22, %v20795_v8  ;;  %v3520_v32 = vcombine.high %v3512_v4, %v3512_v4  ;;  %v4063_v5 = vcombine.low %v18153_v20, %v3512_v4 }
  0xd4   : > { %19641 = vmatmul.mubr.msk.f32.vlgmr.msra.gmra.mxu1 %vm2095_vm1, %v5431_v25  ;;  %v5447_v33 = vrot.slane %v5433_v27, %v20795_v8  ;;  %v4880_v34 = vcombine.high %v18201_v24, %v18201_v24  ;;  %v4887_v35 = vrot.slane %v18201_v24, %v20795_v8  ;;  %v3521_v36 = vcombine.high %v3519_v23, %v3519_v23 }
  0xd5   : > { %v4062_v38 = vcombine.low %v4054_v26, %v4061_v30  ;;  %v4064_v39 = vcombine.low %v3520_v32, %v3519_v23  ;;  %v4071_v40 = vrot.slane %v4063_v5, %v20795_v8  ;;  %v3522_v41 = vcombine.high %v3232_v29, %v3232_v29  ;;  %19739 = vmatpush3.msk.msra.mxu1 %vm2160_vm0, %v21231_v42 }
  0xd6   : > { %v5448_v44 = vcombine.low %v5440_v31, %v5447_v33  ;;  %v4894_v45 = vrot.slane %v4880_v34, %v20795_v8  ;;  %v4895_v46 = vcombine.high %v4887_v35, %v4887_v35  ;;  %v5449_v47 = vcombine.low %v4879_v28, %v4887_v35  ;;  %v18241_v28 = vld.sshfl [vmem:[%s20800_s17 + $0x58] sm:$0x3 pattern:$0x76325410]  ;;  %v3237_v31 = vld [vmem:[%s20800_s17 + $0xaa] sm:$0xff] }
  0xd7   : > { %19605 = vmatprep.mubr.msk.f32.mxu0 %vm2095_vm1, %v4062_v38  ;;  %v4078_v48 = vrot.slane %v4064_v39, %v20795_v8  ;;  %v3529_v49 = vrot.slane %v3232_v29, %v20795_v8  ;;  %v3536_v50 = vrot.slane %v3522_v41, %v20795_v8  ;;  %v4911_v52 = vrot.slane %v18203_v37, %v20795_v8  ;;  %v18206_v29 = vld [vmem:[%s20800_s17 + $0x60] sm:$0xff] }
  0xd8   : > { %19643 = vmatprep.mubr.msk.f32.mxu1 %vm2095_vm1, %v5448_v44  ;;  %v5450_v42 = vcombine.low %v4895_v46, %v4894_v45  ;;  %v5457_v53 = vrot.slane %v5449_v47, %v20795_v8  ;;  %v4896_v54 = vcombine.high %v4894_v45, %v4894_v45  ;;  %v3553_v55 = vrot.slane %v3234_v43, %v20795_v8 }
  0xd9   : > { %v4079_v56 = vcombine.low %v4071_v40, %v4078_v48  ;;  %v3537_v57 = vcombine.high %v3529_v49, %v3529_v49  ;;  %v4080_v58 = vcombine.low %v3521_v36, %v3529_v49  ;;  %v4919_v59 = vcombine.high %v4911_v52, %v4911_v52  ;;  %v18207_v48 = vld [vmem:[%s20800_s17 + $0x68] sm:$0xff] }
  0xda   : > { %v5464_v61 = vrot.slane %v5450_v42, %v20795_v8  ;;  %v5466_v62 = vcombine.low %v4896_v54, %v18240_v51  ;;  %v3538_v63 = vcombine.high %v3536_v50, %v3536_v50  ;;  %v3561_v0 = vcombine.high %v3553_v55, %v3553_v55 }
  0xdb   : > { %19606 = vmatmul.mubr.msk.f32.gmra.mxu0 %vm2095_vm1, %v4079_v56  ;;  %v4081_v2 = vcombine.low %v3537_v57, %v3536_v50  ;;  %v4088_v3 = vrot.slane %v4080_v58, %v20795_v8  ;;  %v5467_v6 = vcombine.low %v4911_v52, %v4919_v59  ;;  %v4904_v7 = vcombine.high %v18203_v37, %v18203_v37  ;;  %v18155_v37 = vld.sshfl [vmem:[%s20800_s17 + $0xa2] sm:$0x3 pattern:$0x76325410] }
  0xdc   : > { %v5465_v10 = vcombine.low %v5457_v53, %v5464_v61  ;;  %v5474_v11 = vrot.slane %v5466_v62, %v20795_v8  ;;  %v4097_v12 = vcombine.low %v3538_v63, %v18154_v60  ;;  %v4098_v13 = vcombine.low %v3553_v55, %v3561_v0  ;;  %v3238_v63 = vld [vmem:[%s20800_s17 + $0xb2] sm:$0xff] }
  0xdd   : > { %v4095_v14 = vrot.slane %v4081_v2, %v20795_v8  ;;  %v5481_v15 = vrot.slane %v5467_v6, %v20795_v8  ;;  %v4918_v16 = vrot.slane %v4904_v7, %v20795_v8  ;;  %v4928_v17 = vrot.slane %v18204_v1, %v20795_v8 }
  0xde   : > { %19644 = vmatmul.mubr.msk.f32.gmra.mxu1 %vm2095_vm1, %v5465_v10  ;;  %v4105_v18 = vrot.slane %v4097_v12, %v20795_v8  ;;  %v4112_v19 = vrot.slane %v4098_v13, %v20795_v8  ;;  %v3546_v20 = vcombine.high %v3234_v43, %v3234_v43  ;;  %v3570_v21 = vrot.slane %v3235_v9, %v20795_v8  ;;  %v18209_v12 = vld [vmem:[%s20800_s17 + $0x78] sm:$0xff] }
  0xdf   : > { %v4096_v22 = vcombine.low %v4088_v3, %v4095_v14  ;;  %v5482_v4 = vcombine.low %v5474_v11, %v5481_v15  ;;  %v4920_v23 = vcombine.high %v4918_v16, %v4918_v16  ;;  %v4936_v24 = vcombine.high %v4928_v17, %v4928_v17 }
  0xe0   : > { %v4113_v25 = vcombine.low %v4105_v18, %v4112_v19  ;;  %v3560_v26 = vrot.slane %v3546_v20, %v20795_v8  ;;  %v3578_v27 = vcombine.high %v3570_v21, %v3570_v21  ;;  %v4921_v30 = vcombine.high %v18204_v1, %v18204_v1 }
  0xe1   : > { %19608 = vmatprep.mubr.msk.f32.mxu0 %vm2095_vm1, %v4096_v22  ;;  %19646 = vmatprep.mubr.msk.f32.mxu1 %vm2095_vm1, %v5482_v4  ;;  %v5483_v32 = vcombine.low %v4918_v16, %v4920_v23  ;;  %v5484_v5 = vcombine.low %v4928_v17, %v4936_v24  ;;  %v4952_v33 = vrot.slane %v18206_v29, %v20795_v8  ;;  %v18242_v24 = vld.sshfl [vmem:[%s20800_s17 + $0x70] sm:$0x3 pattern:$0x76325410] }
  0xe2   : > { %19609 = vmatmul.mubr.msk.f32.gmra.mxu0 %vm2095_vm1, %v4113_v25  ;;  %v3562_v34 = vcombine.high %v3560_v26, %v3560_v26  ;;  %v4115_v35 = vcombine.low %v3570_v21, %v3578_v27  ;;  %v4935_v36 = vrot.slane %v4921_v30, %v20795_v8  ;;  %v3563_v38 = vcombine.high %v3235_v9, %v3235_v9  ;;  %v3240_v21 = vld [vmem:[%s20800_s17 + $0xc2] sm:$0xff] }
  0xe3   : > { %v5491_v39 = vrot.slane %v5483_v32, %v20795_v8  ;;  %v5498_v40 = vrot.slane %v5484_v5, %v20795_v8  ;;  %v5501_v41 = vcombine.low %v18241_v28, %v4952_v33  ;;  %v3594_v43 = vrot.slane %v3237_v31, %v20795_v8  ;;  %v18156_v32 = vld.sshfl [vmem:[%s20800_s17 + $0xba] sm:$0x3 pattern:$0x76325410] }
  0xe4   : > { %v4114_v44 = vcombine.low %v3560_v26, %v3562_v34  ;;  %v4129_v45 = vrot.slane %v4115_v35, %v20795_v8  ;;  %v4937_v46 = vcombine.high %v4935_v36, %v4935_v36  ;;  %v3577_v47 = vrot.slane %v3563_v38, %v20795_v8  ;;  %v18210_v38 = vld [vmem:[%s20800_s17 + $0x80] sm:$0xff] }
  0xe5   : > { %v5499_v49 = vcombine.low %v5491_v39, %v5498_v40  ;;  %v5515_v50 = vrot.slane %v5501_v41, %v20795_v8  ;;  %v4132_v51 = vcombine.low %v18155_v37, %v3594_v43  ;;  %v4945_v52 = vcombine.high %v18206_v29, %v18206_v29 }
  0xe6   : > { %v4122_v42 = vrot.slane %v4114_v44, %v20795_v8  ;;  %v5500_v53 = vcombine.low %v4935_v36, %v4937_v46  ;;  %v3579_v54 = vcombine.high %v3577_v47, %v3577_v47  ;;  %v4960_v55 = vcombine.high %v4952_v33, %v4952_v33 }
  0xe7   : > { %19647 = vmatmul.mubr.msk.f32.gmra.mxu1 %vm2095_vm1, %v5499_v49  ;;  %v4146_v56 = vrot.slane %v4132_v51, %v20795_v8  ;;  %v4959_v57 = vrot.slane %v4945_v52, %v20795_v8  ;;  %v4969_v58 = vrot.slane %v18207_v48, %v20795_v8  ;;  %v3587_v59 = vcombine.high %v3237_v31, %v3237_v31  ;;  %v3241_v52 = vld [vmem:[%s20800_s17 + $0xca] sm:$0xff] }
  0xe8   : > { %v4130_v60 = vcombine.low %v4122_v42, %v4129_v45  ;;  %v5508_v61 = vrot.slane %v5500_v53, %v20795_v8  ;;  %v4131_v62 = vcombine.low %v3577_v47, %v3579_v54  ;;  %v3602_v0 = vcombine.high %v3594_v43, %v3594_v43 }
  0xe9   : > { %v4961_v1 = vcombine.high %v4959_v57, %v4959_v57  ;;  %v5517_v2 = vcombine.low %v4960_v55, %v4959_v57  ;;  %v3601_v3 = vrot.slane %v3587_v59, %v20795_v8  ;;  %v3611_v6 = vrot.slane %v3238_v63, %v20795_v8 }
  0xea   : > { %19611 = vmatprep.mubr.msk.f32.mxu0 %vm2095_vm1, %v4130_v60  ;;  %v5516_v7 = vcombine.low %v5508_v61, %v5515_v50  ;;  %v4139_v9 = vrot.slane %v4131_v62, %v20795_v8  ;;  %v4962_v10 = vcombine.high %v18207_v48, %v18207_v48  ;;  %v4977_v11 = vcombine.high %v4969_v58, %v4969_v58  ;;  %v18212_v60 = vld [vmem:[%s20800_s17 + $0x90] sm:$0xff] }
  0xeb   : > { %v5518_v13 = vcombine.low %v4961_v1, %v4969_v58  ;;  %v5525_v14 = vrot.slane %v5517_v2, %v20795_v8  ;;  %v3603_v15 = vcombine.high %v3601_v3, %v3601_v3  ;;  %v4148_v16 = vcombine.low %v3602_v0, %v3601_v3  ;;  %v3243_v1 = vld [vmem:[%s20800_s17 + $0xda] sm:$0xff] }
  0xec   : > { %19649 = vmatprep.mubr.msk.f32.mxu1 %vm2095_vm1, %v5516_v7  ;;  %v4147_v17 = vcombine.low %v4139_v9, %v4146_v56  ;;  %v4976_v18 = vrot.slane %v4962_v10, %v20795_v8  ;;  %v3604_v19 = vcombine.high %v3238_v63, %v3238_v63  ;;  %v3619_v20 = vcombine.high %v3611_v6, %v3611_v6 }
  0xed   : > { %v5532_v22 = vrot.slane %v5518_v13, %v20795_v8  ;;  %v4149_v4 = vcombine.low %v3603_v15, %v3611_v6  ;;  %v4156_v23 = vrot.slane %v4148_v16, %v20795_v8  ;;  %v4986_v25 = vcombine.high %v18209_v12, %v18209_v12 }
  0xee   : > { %19612 = vmatmul.mubr.msk.f32.gmra.mxu0 %vm2095_vm1, %v4147_v17  ;;  %v4978_v26 = vcombine.high %v4976_v18, %v4976_v18  ;;  %v5534_v27 = vcombine.low %v4977_v11, %v4976_v18  ;;  %v3618_v28 = vrot.slane %v3604_v19, %v20795_v8  ;;  %v4993_v29 = vrot.slane %v18209_v12, %v20795_v8  ;;  %v18243_v12 = vld.sshfl [vmem:[%s20800_s17 + $0x88] sm:$0x3 pattern:$0x76325410] }
  0xef   : > { %v5533_v30 = vcombine.low %v5525_v14, %v5532_v22  ;;  %v4163_v31 = vrot.slane %v4149_v4, %v20795_v8  ;;  %v5000_v5 = vrot.slane %v4986_v25, %v20795_v8  ;;  %v3628_v33 = vcombine.high %v3240_v21, %v3240_v21  ;;  %v18157_v25 = vld.sshfl [vmem:[%s20800_s17 + $0xd2] sm:$0x3 pattern:$0x76325410] }
  0xf0   : > { %v5535_v34 = vcombine.low %v4978_v26, %v18242_v24  ;;  %v5542_v35 = vrot.slane %v5534_v27, %v20795_v8  ;;  %v3620_v36 = vcombine.high %v3618_v28, %v3618_v28  ;;  %v4165_v37 = vcombine.low %v3619_v20, %v3618_v28  ;;  %v18213_v26 = vld [vmem:[%s20800_s17 + $0x98] sm:$0xff] }
  0xf1   : > { %19650 = vmatmul.mubr.msk.f32.gmra.mxu1 %vm2095_vm1, %v5533_v30  ;;  %v4164_v39 = vcombine.low %v4156_v23, %v4163_v31  ;;  %v5001_v40 = vcombine.high %v4993_v29, %v4993_v29  ;;  %v5002_v41 = vcombine.high %v5000_v5, %v5000_v5  ;;  %v3635_v43 = vrot.slane %v3240_v21, %v20795_v8  ;;  %v3244_v31 = vld [vmem:[%s20800_s17 + $0xe2] sm:$0xff] }
  0xf2   : > { %v5549_v44 = vrot.slane %v5535_v34, %v20795_v8  ;;  %v4166_v45 = vcombine.low %v3620_v36, %v18156_v32  ;;  %v4173_v46 = vrot.slane %v4165_v37, %v20795_v8  ;;  %v3642_v47 = vrot.slane %v3628_v33, %v20795_v8 }
  0xf3   : > { %19614 = vmatprep.mubr.msk.f32.mxu0 %vm2095_vm1, %v4164_v39  ;;  %v5551_v48 = vcombine.low %v4993_v29, %v5001_v40  ;;  %v5552_v49 = vcombine.low %v5000_v5, %v5002_v41  ;;  %v3643_v50 = vcombine.high %v3635_v43, %v3635_v43  ;;  %v5003_v51 = vcombine.high %v18210_v38, %v18210_v38 }
  0xf4   : > { %v5550_v42 = vcombine.low %v5542_v35, %v5549_v44  ;;  %v4180_v53 = vrot.slane %v4166_v45, %v20795_v8  ;;  %v3644_v54 = vcombine.high %v3642_v47, %v3642_v47  ;;  %v5010_v55 = vrot.slane %v18210_v38, %v20795_v8  ;;  %v18215_v44 = vld [vmem:[%s20800_s17 + $0xa8] sm:$0xff] }
  0xf5   : > { %v5559_v56 = vrot.slane %v5551_v48, %v20795_v8  ;;  %v5566_v57 = vrot.slane %v5552_v49, %v20795_v8  ;;  %v4182_v58 = vcombine.low %v3635_v43, %v3643_v50  ;;  %v5017_v59 = vrot.slane %v5003_v51, %v20795_v8 }
  0xf6   : > { %19652 = vmatprep.mubr.msk.f32.mxu1 %vm2095_vm1, %v5550_v42  ;;  %v4181_v61 = vcombine.low %v4173_v46, %v4180_v53  ;;  %v4183_v62 = vcombine.low %v3642_v47, %v3644_v54  ;;  %v5018_v63 = vcombine.high %v5010_v55, %v5010_v55  ;;  %v3645_v0 = vcombine.high %v3241_v52, %v3241_v52  ;;  %v18244_v42 = vld.sshfl [vmem:[%s20800_s17 + $0xa0] sm:$0x3 pattern:$0x76325410] }
  0xf7   : > { %v5567_v2 = vcombine.low %v5559_v56, %v5566_v57  ;;  %v4190_v3 = vrot.slane %v4182_v58, %v20795_v8  ;;  %v5019_v6 = vcombine.high %v5017_v59, %v5017_v59  ;;  %v3652_v7 = vrot.slane %v3241_v52, %v20795_v8  ;;  %v3246_v57 = vld [vmem:[%s20800_s17 + $0xf2] sm:$0xff] }
  0xf8   : > { %19615 = vmatmul.mubr.msk.f32.gmra.mxu0 %vm2095_vm1, %v4181_v61  ;;  %v4197_v9 = vrot.slane %v4183_v62, %v20795_v8  ;;  %v5568_v10 = vcombine.low %v5010_v55, %v5018_v63  ;;  %v3659_v11 = vrot.slane %v3645_v0, %v20795_v8  ;;  %v5027_v13 = vcombine.high %v18212_v60, %v18212_v60  ;;  %v18158_v62 = vld.sshfl [vmem:[%s20800_s17 + $0xea] sm:$0x3 pattern:$0x76325410] }
  0xf9   : > { %19653 = vmatmul.mubr.msk.f32.gmra.mxu1 %vm2095_vm1, %v5567_v2  ;;  %v5569_v14 = vcombine.low %v5017_v59, %v5019_v6  ;;  %v3660_v15 = vcombine.high %v3652_v7, %v3652_v7  ;;  %v5034_v16 = vrot.slane %v18212_v60, %v20795_v8  ;;  %v3669_v17 = vcombine.high %v3243_v1, %v3243_v1 }
  0xfa   : > { %v4198_v18 = vcombine.low %v4190_v3, %v4197_v9  ;;  %v5576_v19 = vrot.slane %v5568_v10, %v20795_v8  ;;  %v3661_v20 = vcombine.high %v3659_v11, %v3659_v11  ;;  %v5041_v21 = vrot.slane %v5027_v13, %v20795_v8  ;;  %v18216_v3 = vld [vmem:[%s20800_s17 + $0xb0] sm:$0xff] }
  0xfb   : > { %v5583_v22 = vrot.slane %v5569_v14, %v20795_v8  ;;  %v4199_v4 = vcombine.low %v3652_v7, %v3660_v15  ;;  %v5042_v23 = vcombine.high %v5034_v16, %v5034_v16  ;;  %v5585_v24 = vcombine.low %v18243_v12, %v5034_v16  ;;  %v3247_v15 = vld [vmem:[%s20800_s17 + $0xfa] sm:$0xff] }
  0xfc   : > { %19617 = vmatprep.mubr.msk.f32.mxu0 %vm2095_vm1, %v4198_v18  ;;  %v4200_v27 = vcombine.low %v3659_v11, %v3661_v20  ;;  %v3676_v28 = vrot.slane %v3243_v1, %v20795_v8  ;;  %v3683_v29 = vrot.slane %v3669_v17, %v20795_v8  ;;  %v5043_v30 = vcombine.high %v5041_v21, %v5041_v21 }
  0xfd   : > { %v5584_v32 = vcombine.low %v5576_v19, %v5583_v22  ;;  %v4207_v5 = vrot.slane %v4199_v4, %v20795_v8  ;;  %v5586_v33 = vcombine.low %v5042_v23, %v5041_v21  ;;  %v5593_v34 = vrot.slane %v5585_v24, %v20795_v8  ;;  %v18218_v23 = vld [vmem:[%s20800_s17 + $0xc0] sm:$0xff] }
  0xfe   : > { %v4214_v35 = vrot.slane %v4200_v27, %v20795_v8  ;;  %v3684_v36 = vcombine.high %v3676_v28, %v3676_v28  ;;  %v4216_v37 = vcombine.low %v18157_v25, %v3676_v28  ;;  %v5044_v38 = vcombine.high %v18213_v26, %v18213_v26 }
  0xff   : > { %19655 = vmatprep.mubr.msk.f32.mxu1 %vm2095_vm1, %v5584_v32  ;;  %v5600_v39 = vrot.slane %v5586_v33, %v20795_v8  ;;  %v5051_v40 = vrot.slane %v18213_v26, %v20795_v8  ;;  %v3685_v41 = vcombine.high %v3683_v29, %v3683_v29  ;;  %v3686_v43 = vcombine.high %v3244_v31, %v3244_v31 }
 0x100   : > { %v4215_v45 = vcombine.low %v4207_v5, %v4214_v35  ;;  %v4217_v46 = vcombine.low %v3684_v36, %v3683_v29  ;;  %v4224_v47 = vrot.slane %v4216_v37, %v20795_v8  ;;  %v5058_v48 = vrot.slane %v5044_v38, %v20795_v8 }
 0x101   : > { %v5601_v49 = vcombine.low %v5593_v34, %v5600_v39  ;;  %v5059_v50 = vcombine.high %v5051_v40, %v5051_v40  ;;  %v5602_v51 = vcombine.low %v5043_v30, %v5051_v40  ;;  %v3693_v52 = vrot.slane %v3244_v31, %v20795_v8  ;;  %v18245_v31 = vld.sshfl [vmem:[%s20800_s17 + $0xb8] sm:$0x3 pattern:$0x76325410] }
 0x102   : > { %19618 = vmatmul.mubr.msk.f32.gmra.mxu0 %vm2095_vm1, %v4215_v45  ;;  %v4231_v53 = vrot.slane %v4217_v46, %v20795_v8  ;;  %v3700_v54 = vrot.slane %v3686_v43, %v20795_v8  ;;  %v5060_v55 = vcombine.high %v5058_v48, %v5058_v48  ;;  %v5075_v56 = vrot.slane %v18215_v44, %v20795_v8 }
 0x103   : > { %19656 = vmatmul.mubr.msk.f32.gmra.mxu1 %vm2095_vm1, %v5601_v49  ;;  %v5603_v58 = vcombine.low %v5059_v50, %v5058_v48  ;;  %v5610_v59 = vrot.slane %v5602_v51, %v20795_v8  ;;  %v3701_v60 = vcombine.high %v3693_v52, %v3693_v52  ;;  %v4233_v61 = vcombine.low %v3685_v41, %v3693_v52  ;;  %v18159_v48 = vld.sshfl [vmem:[%s20800_s17 + $0x102] sm:$0x3 pattern:$0x76325410]  ;;  %v3249_v49 = vld [vmem:[%s20800_s17 + $0x10a] sm:$0xff] }
 0x104   : > { %v4232_v63 = vcombine.low %v4224_v47, %v4231_v53  ;;  %v5083_v0 = vcombine.high %v5075_v56, %v5075_v56  ;;  %v5619_v1 = vcombine.low %v5060_v55, %v18244_v42  ;;  %v3702_v2 = vcombine.high %v3700_v54, %v3700_v54 }
 0x105   : > { %v5617_v6 = vrot.slane %v5603_v58, %v20795_v8  ;;  %v4234_v7 = vcombine.low %v3701_v60, %v3700_v54  ;;  %v4241_v9 = vrot.slane %v4233_v61, %v20795_v8  ;;  %v3717_v10 = vrot.slane %v3246_v57, %v20795_v8  ;;  %v18219_v58 = vld [vmem:[%s20800_s17 + $0xc8] sm:$0xff] }
 0x106   : > { %19620 = vmatprep.mubr.msk.f32.mxu0 %vm2095_vm1, %v4232_v63  ;;  %v5620_v11 = vcombine.low %v5075_v56, %v5083_v0  ;;  %v5627_v12 = vrot.slane %v5619_v1, %v20795_v8  ;;  %v4250_v13 = vcombine.low %v3702_v2, %v18158_v62  ;;  %v5068_v14 = vcombine.high %v18215_v44, %v18215_v44  ;;  %v3250_v63 = vld [vmem:[%s20800_s17 + $0x112] sm:$0xff] }
 0x107   : > { %v5618_v16 = vcombine.low %v5610_v59, %v5617_v6  ;;  %v4248_v17 = vrot.slane %v4234_v7, %v20795_v8  ;;  %v3725_v18 = vcombine.high %v3717_v10, %v3717_v10  ;;  %v5092_v19 = vrot.slane %v18216_v3, %v20795_v8 }
 0x108   : > { %v5634_v20 = vrot.slane %v5620_v11, %v20795_v8  ;;  %v4258_v21 = vrot.slane %v4250_v13, %v20795_v8  ;;  %v5082_v22 = vrot.slane %v5068_v14, %v20795_v8  ;;  %v3710_v4 = vcombine.high %v3246_v57, %v3246_v57 }
 0x109   : > { %19658 = vmatprep.mubr.msk.f32.mxu1 %vm2095_vm1, %v5618_v16  ;;  %v4249_v24 = vcombine.low %v4241_v9, %v4248_v17  ;;  %v4251_v25 = vcombine.low %v3717_v10, %v3725_v18  ;;  %v5100_v26 = vcombine.high %v5092_v19, %v5092_v19  ;;  %v3734_v27 = vrot.slane %v3247_v15, %v20795_v8 }
 0x10a   : > { %v5635_v28 = vcombine.low %v5627_v12, %v5634_v20  ;;  %v5084_v29 = vcombine.high %v5082_v22, %v5082_v22  ;;  %v3724_v30 = vrot.slane %v3710_v4, %v20795_v8  ;;  %v5085_v32 = vcombine.high %v18216_v3, %v18216_v3 }
 0x10b   : > { %19621 = vmatmul.mubr.msk.f32.gmra.mxu0 %vm2095_vm1, %v4249_v24  ;;  %v4265_v5 = vrot.slane %v4251_v25, %v20795_v8  ;;  %v5637_v33 = vcombine.low %v5092_v19, %v5100_v26  ;;  %v3742_v34 = vcombine.high %v3734_v27, %v3734_v27  ;;  %v5116_v35 = vrot.slane %v18218_v23, %v20795_v8 }
 0x10c   : > { %19659 = vmatmul.mubr.msk.f32.gmra.mxu1 %vm2095_vm1, %v5635_v28  ;;  %v5636_v36 = vcombine.low %v5082_v22, %v5084_v29  ;;  %v3726_v37 = vcombine.high %v3724_v30, %v3724_v30  ;;  %v5099_v38 = vrot.slane %v5085_v32, %v20795_v8  ;;  %v3727_v39 = vcombine.high %v3247_v15, %v3247_v15  ;;  %v18221_v15 = vld [vmem:[%s20800_s17 + $0xd8] sm:$0xff]  ;;  %v18246_v29 = vld.sshfl [vmem:[%s20800_s17 + $0xd0] sm:$0x3 pattern:$0x76325410]  ;;  %v3252_v32 = vld [vmem:[%s20800_s17 + $0x122] sm:$0xff] }
 0x10d   : > { %v4266_v40 = vcombine.low %v4258_v21, %v4265_v5  ;;  %v5651_v41 = vrot.slane %v5637_v33, %v20795_v8  ;;  %v4268_v43 = vcombine.low %v3734_v27, %v3742_v34  ;;  %v5654_v44 = vcombine.low %v18245_v31, %v5116_v35 }
 0x10e   : > { %v5644_v45 = vrot.slane %v5636_v36, %v20795_v8  ;;  %v4267_v46 = vcombine.low %v3724_v30, %v3726_v37  ;;  %v5101_v47 = vcombine.high %v5099_v38, %v5099_v38  ;;  %v3741_v50 = vrot.slane %v3727_v39, %v20795_v8 }
 0x10f   : > { %19623 = vmatprep.mubr.msk.f32.mxu0 %vm2095_vm1, %v4266_v40  ;;  %v4282_v51 = vrot.slane %v4268_v43, %v20795_v8  ;;  %v5668_v52 = vrot.slane %v5654_v44, %v20795_v8  ;;  %v3758_v42 = vrot.slane %v3249_v49, %v20795_v8  ;;  %v5109_v53 = vcombine.high %v18218_v23, %v18218_v23 }
 0x110   : > { %v5652_v54 = vcombine.low %v5644_v45, %v5651_v41  ;;  %v4275_v55 = vrot.slane %v4267_v46, %v20795_v8  ;;  %v5653_v56 = vcombine.low %v5099_v38, %v5101_v47  ;;  %v3743_v57 = vcombine.high %v3741_v50, %v3741_v50  ;;  %v18222_v46 = vld [vmem:[%s20800_s17 + $0xe0] sm:$0xff] }
 0x111   : > { %v4285_v59 = vcombine.low %v18159_v48, %v3758_v42  ;;  %v5123_v60 = vrot.slane %v5109_v53, %v20795_v8  ;;  %v5124_v61 = vcombine.high %v5116_v35, %v5116_v35  ;;  %v5133_v62 = vrot.slane %v18219_v58, %v20795_v8  ;;  %v18160_v35 = vld.sshfl [vmem:[%s20800_s17 + $0x11a] sm:$0x3 pattern:$0x76325410] }
 0x112   : > { %19661 = vmatprep.mubr.msk.f32.mxu1 %vm2095_vm1, %v5652_v54  ;;  %v4283_v0 = vcombine.low %v4275_v55, %v4282_v51  ;;  %v5661_v1 = vrot.slane %v5653_v56, %v20795_v8  ;;  %v4284_v2 = vcombine.low %v3741_v50, %v3743_v57  ;;  %v3751_v3 = vcombine.high %v3249_v49, %v3249_v49  ;;  %v3253_v54 = vld [vmem:[%s20800_s17 + $0x12a] sm:$0xff] }
 0x113   : > { %v4299_v6 = vrot.slane %v4285_v59, %v20795_v8  ;;  %v5125_v7 = vcombine.high %v5123_v60, %v5123_v60  ;;  %v5670_v9 = vcombine.low %v5124_v61, %v5123_v60  ;;  %v3766_v10 = vcombine.high %v3758_v42, %v3758_v42 }
 0x114   : > { %19624 = vmatmul.mubr.msk.f32.gmra.mxu0 %vm2095_vm1, %v4283_v0  ;;  %v5669_v11 = vcombine.low %v5661_v1, %v5668_v52  ;;  %v4292_v12 = vrot.slane %v4284_v2, %v20795_v8  ;;  %v3765_v13 = vrot.slane %v3751_v3, %v20795_v8  ;;  %v3775_v14 = vrot.slane %v3250_v63, %v20795_v8 }
 0x115   : > { %v5671_v16 = vcombine.low %v5125_v7, %v5133_v62  ;;  %v5678_v17 = vrot.slane %v5670_v9, %v20795_v8  ;;  %v5126_v18 = vcombine.high %v18219_v58, %v18219_v58  ;;  %v5141_v19 = vcombine.high %v5133_v62, %v5133_v62 }
 0x116   : > { %19662 = vmatmul.mubr.msk.f32.gmra.mxu1 %vm2095_vm1, %v5669_v11  ;;  %v4300_v20 = vcombine.low %v4292_v12, %v4299_v6  ;;  %v3767_v21 = vcombine.high %v3765_v13, %v3765_v13  ;;  %v4301_v22 = vcombine.low %v3766_v10, %v3765_v13  ;;  %v3768_v4 = vcombine.high %v3250_v63, %v3250_v63  ;;  %v18224_v63 = vld [vmem:[%s20800_s17 + $0xf0] sm:$0xff] }
 0x117   : > { %v5685_v23 = vrot.slane %v5671_v16, %v20795_v8  ;;  %v5140_v24 = vrot.slane %v5126_v18, %v20795_v8  ;;  %v3783_v25 = vcombine.high %v3775_v14, %v3775_v14  ;;  %v5150_v26 = vcombine.high %v18221_v15, %v18221_v15 }
 0x118   : > { %19626 = vmatprep.mubr.msk.f32.mxu0 %vm2095_vm1, %v4300_v20  ;;  %v4302_v27 = vcombine.low %v3767_v21, %v3775_v14  ;;  %v4309_v28 = vrot.slane %v4301_v22, %v20795_v8  ;;  %v3782_v30 = vrot.slane %v3768_v4, %v20795_v8  ;;  %v5157_v31 = vrot.slane %v18221_v15, %v20795_v8  ;;  %v18247_v14 = vld.sshfl [vmem:[%s20800_s17 + $0xe8] sm:$0x3 pattern:$0x76325410]  ;;  %v3255_v20 = vld [vmem:[%s20800_s17 + $0x13a] sm:$0xff] }
 0x119   : > { %v5686_v5 = vcombine.low %v5678_v17, %v5685_v23  ;;  %v5142_v33 = vcombine.high %v5140_v24, %v5140_v24  ;;  %v5687_v34 = vcombine.low %v5141_v19, %v5140_v24  ;;  %v5164_v36 = vrot.slane %v5150_v26, %v20795_v8 }
 0x11a   : > { %v4316_v37 = vrot.slane %v4302_v27, %v20795_v8  ;;  %v3784_v38 = vcombine.high %v3782_v30, %v3782_v30  ;;  %v4318_v39 = vcombine.low %v3783_v25, %v3782_v30  ;;  %v5165_v40 = vcombine.high %v5157_v31, %v5157_v31  ;;  %v18161_v30 = vld.sshfl [vmem:[%s20800_s17 + $0x132] sm:$0x3 pattern:$0x76325410] }
 0x11b   : > { %19664 = vmatprep.mubr.msk.f32.mxu1 %vm2095_vm1, %v5686_v5  ;;  %v5688_v41 = vcombine.low %v5142_v33, %v18246_v29  ;;  %v5695_v43 = vrot.slane %v5687_v34, %v20795_v8  ;;  %v5166_v44 = vcombine.high %v5164_v36, %v5164_v36  ;;  %v3792_v45 = vcombine.high %v3252_v32, %v3252_v32  ;;  %v18225_v5 = vld [vmem:[%s20800_s17 + $0xf8] sm:$0xff] }
 0x11c   : > { %v4317_v47 = vcombine.low %v4309_v28, %v4316_v37  ;;  %v4319_v48 = vcombine.low %v3784_v38, %v18160_v35  ;;  %v4326_v49 = vrot.slane %v4318_v39, %v20795_v8  ;;  %v5704_v50 = vcombine.low %v5157_v31, %v5165_v40  ;;  %v3256_v37 = vld [vmem:[%s20800_s17 + $0x142] sm:$0xff] }
 0x11d   : > { %v5702_v51 = vrot.slane %v5688_v41, %v20795_v8  ;;  %v5705_v52 = vcombine.low %v5164_v36, %v5166_v44  ;;  %v3799_v42 = vrot.slane %v3252_v32, %v20795_v8  ;;  %v3806_v53 = vrot.slane %v3792_v45, %v20795_v8 }
 0x11e   : > { %19627 = vmatmul.mubr.msk.f32.gmra.mxu0 %vm2095_vm1, %v4317_v47  ;;  %v4333_v55 = vrot.slane %v4319_v48, %v20795_v8  ;;  %v5712_v56 = vrot.slane %v5704_v50, %v20795_v8  ;;  %v5167_v57 = vcombine.high %v18222_v46, %v18222_v46  ;;  %v5174_v58 = vrot.slane %v18222_v46, %v20795_v8 }
 0x11f   : > { %v5703_v59 = vcombine.low %v5695_v43, %v5702_v51  ;;  %v5719_v60 = vrot.slane %v5705_v52, %v20795_v8  ;;  %v3807_v61 = vcombine.high %v3799_v42, %v3799_v42  ;;  %v3808_v62 = vcombine.high %v3806_v53, %v3806_v53  ;;  %v18227_v51 = vld [vmem:[%s20800_s17 + $0x108] sm:$0xff] }
 0x120   : > { %v4334_v0 = vcombine.low %v4326_v49, %v4333_v55  ;;  %v5181_v1 = vrot.slane %v5167_v57, %v20795_v8  ;;  %v5182_v2 = vcombine.high %v5174_v58, %v5174_v58  ;;  %v3809_v3 = vcombine.high %v3253_v54, %v3253_v54 }
 0x121   : > { %19665 = vmatmul.mubr.msk.f32.gmra.mxu1 %vm2095_vm1, %v5703_v59  ;;  %v5720_v6 = vcombine.low %v5712_v56, %v5719_v60  ;;  %v4335_v7 = vcombine.low %v3799_v42, %v3807_v61  ;;  %v4336_v9 = vcombine.low %v3806_v53, %v3808_v62  ;;  %v3816_v10 = vrot.slane %v3253_v54, %v20795_v8  ;;  %v18248_v59 = vld.sshfl [vmem:[%s20800_s17 + $0x100] sm:$0x3 pattern:$0x76325410] }
 0x122   : > { %19629 = vmatprep.mubr.msk.f32.mxu0 %vm2095_vm1, %v4334_v0  ;;  %v5183_v11 = vcombine.high %v5181_v1, %v5181_v1  ;;  %v5721_v12 = vcombine.low %v5174_v58, %v5182_v2  ;;  %v3823_v13 = vrot.slane %v3809_v3, %v20795_v8  ;;  %v5191_v15 = vcombine.high %v18224_v63, %v18224_v63 }
 0x123   : > { %19667 = vmatprep.mubr.msk.f32.mxu1 %vm2095_vm1, %v5720_v6  ;;  %v4343_v16 = vrot.slane %v4335_v7, %v20795_v8  ;;  %v4350_v17 = vrot.slane %v4336_v9, %v20795_v8  ;;  %v3824_v18 = vcombine.high %v3816_v10, %v3816_v10  ;;  %v5198_v19 = vrot.slane %v18224_v63, %v20795_v8  ;;  %v18228_v63 = vld [vmem:[%s20800_s17 + $0x110] sm:$0xff]  ;;  %v18162_v7 = vld.sshfl [vmem:[%s20800_s17 + $0x14a] sm:$0x3 pattern:$0x76325410] }
 0x124   : > { %v5722_v21 = vcombine.low %v5181_v1, %v5183_v11  ;;  %v5729_v22 = vrot.slane %v5721_v12, %v20795_v8  ;;  %v3825_v4 = vcombine.high %v3823_v13, %v3823_v13  ;;  %v5205_v23 = vrot.slane %v5191_v15, %v20795_v8 }
 0x125   : > { %v4351_v24 = vcombine.low %v4343_v16, %v4350_v17  ;;  %v4352_v25 = vcombine.low %v3816_v10, %v3824_v18  ;;  %v5206_v26 = vcombine.high %v5198_v19, %v5198_v19  ;;  %v5738_v27 = vcombine.low %v18247_v14, %v5198_v19  ;;  %v18287_v17 = vld [vmem:[%s20800_s17 + $0x19] sm:$0xff] }
 0x126   : > { %v5736_v28 = vrot.slane %v5722_v21, %v20795_v8  ;;  %v4353_v29 = vcombine.low %v3823_v13, %v3825_v4  ;;  %v3833_v31 = vcombine.high %v3255_v20, %v3255_v20  ;;  %v3840_v32 = vrot.slane %v3255_v20, %v20795_v8 }
 0x127   : > { %19630 = vmatmul.mubr.msk.f32.gmra.mxu0 %vm2095_vm1, %v4351_v24  ;;  %v4360_v33 = vrot.slane %v4352_v25, %v20795_v8  ;;  %v5739_v34 = vcombine.low %v5206_v26, %v5205_v23  ;;  %v5746_v35 = vrot.slane %v5738_v27, %v20795_v8  ;;  %v5207_v36 = vcombine.high %v5205_v23, %v5205_v23  ;;  %v18249_v24 = vld.sshfl [vmem:[%s20800_s17 + $0x118] sm:$0x3 pattern:$0x76325410]  ;;  %v18230_v25 = vld [vmem:[%s20800_s17 + $0x120] sm:$0xff] }
 0x128   : > { %v5737_v38 = vcombine.low %v5729_v22, %v5736_v28  ;;  %v4367_v39 = vrot.slane %v4353_v29, %v20795_v8  ;;  %v3847_v40 = vrot.slane %v3833_v31, %v20795_v8  ;;  %v3848_v41 = vcombine.high %v3840_v32, %v3840_v32 }
 0x129   : > { %v5753_v43 = vrot.slane %v5739_v34, %v20795_v8  ;;  %v4369_v44 = vcombine.low %v18161_v30, %v3840_v32  ;;  %v5208_v45 = vcombine.high %v18225_v5, %v18225_v5  ;;  %v5215_v46 = vrot.slane %v18225_v5, %v20795_v8 }
 0x12a   : > { %19668 = vmatmul.mubr.msk.f32.gmra.mxu1 %vm2095_vm1, %v5737_v38  ;;  %v4368_v47 = vcombine.low %v4360_v33, %v4367_v39  ;;  %v4370_v48 = vcombine.low %v3848_v41, %v3847_v40  ;;  %v3849_v49 = vcombine.high %v3847_v40, %v3847_v40  ;;  %v3850_v50 = vcombine.high %v3256_v37, %v3256_v37  ;;  %v18231_v41 = vld [vmem:[%s20800_s17 + $0x128] sm:$0xff] }
 0x12b   : > { %v5754_v52 = vcombine.low %v5746_v35, %v5753_v43  ;;  %v4377_v42 = vrot.slane %v4369_v44, %v20795_v8  ;;  %v5222_v53 = vrot.slane %v5208_v45, %v20795_v8  ;;  %v5223_v54 = vcombine.high %v5215_v46, %v5215_v46  ;;  %v18288_v44 = vld [vmem:[%s20800_s17 + $0x21] sm:$0xff] }
 0x12c   : > { %19632 = vmatprep.mubr.msk.f32.mxu0 %vm2095_vm1, %v4368_v47  ;;  %v4384_v55 = vrot.slane %v4370_v48, %v20795_v8  ;;  %v5755_v56 = vcombine.low %v5207_v36, %v5215_v46  ;;  %v3857_v57 = vrot.slane %v3256_v37, %v20795_v8  ;;  %v3864_v58 = vrot.slane %v3850_v50, %v20795_v8 }
 0x12d   : > { %19670 = vmatprep.mubr.msk.f32.mxu1 %vm2095_vm1, %v5754_v52  ;;  %v5756_v60 = vcombine.low %v5223_v54, %v5222_v53  ;;  %v5224_v61 = vcombine.high %v5222_v53, %v5222_v53  ;;  %v5239_v62 = vrot.slane %v18227_v51, %v20795_v8  ;;  %v5232_v0 = vcombine.high %v18227_v51, %v18227_v51 }
 0x12e   : > { %v4385_v1 = vcombine.low %v4377_v42, %v4384_v55  ;;  %v5763_v2 = vrot.slane %v5755_v56, %v20795_v8  ;;  %v3865_v3 = vcombine.high %v3857_v57, %v3857_v57  ;;  %v4386_v6 = vcombine.low %v3849_v49, %v3857_v57 }
 0x12f   : > { %v5770_v9 = vrot.slane %v5756_v60, %v20795_v8  ;;  %v5247_v10 = vcombine.high %v5239_v62, %v5239_v62  ;;  %v5772_v11 = vcombine.low %v5224_v61, %v18248_v59  ;;  %v3866_v12 = vcombine.high %v3864_v58, %v3864_v58 }
 0x130   : > { %19633 = vmatmul.mubr.msk.f32.gmra.mxu0 %vm2095_vm1, %v4385_v1  ;;  %v4387_v13 = vcombine.low %v3865_v3, %v3864_v58  ;;  %v4394_v14 = vrot.slane %v4386_v6, %v20795_v8  ;;  %v5246_v15 = vrot.slane %v5232_v0, %v20795_v8  ;;  %v5256_v16 = vrot.slane %v18228_v63, %v20795_v8  ;;  %v18233_v6 = vld [vmem:[%s20800_s17 + $0x138] sm:$0xff] }
 0x131   : > { %v5771_v18 = vcombine.low %v5763_v2, %v5770_v9  ;;  %v5773_v19 = vcombine.low %v5239_v62, %v5247_v10  ;;  %v5780_v20 = vrot.slane %v5772_v11, %v20795_v8  ;;  %v4403_v21 = vcombine.low %v3866_v12, %v18162_v7  ;;  %v18250_v10 = vld.sshfl [vmem:[%s20800_s17 + $0x130] sm:$0x3 pattern:$0x76325410] }
 0x132   : > { %v4401_v22 = vrot.slane %v4387_v13, %v20795_v8  ;;  %v5248_v4 = vcombine.high %v5246_v15, %v5246_v15  ;;  %v5264_v23 = vcombine.high %v5256_v16, %v5256_v16  ;;  %v5249_v26 = vcombine.high %v18228_v63, %v18228_v63  ;;  %v18290_v63 = vld [vmem:[%s20800_s17 + $0x31] sm:$0xff] }
 0x133   : > { %19671 = vmatmul.mubr.msk.f32.gmra.mxu1 %vm2095_vm1, %v5771_v18  ;;  %v5787_v27 = vrot.slane %v5773_v19, %v20795_v8  ;;  %v4410_v28 = vrot.slane %v4403_v21, %v20795_v8  ;;  %v5280_v29 = vrot.slane %v18230_v25, %v20795_v8  ;;  %v6341_v30 = vcombine.high %v18287_v17, %v18287_v17 }
 0x134   : > { %v4402_v31 = vcombine.low %v4394_v14, %v4401_v22  ;;  %v5789_v32 = vcombine.low %v5246_v15, %v5248_v4  ;;  %v5790_v5 = vcombine.low %v5256_v16, %v5264_v23  ;;  %v5263_v33 = vrot.slane %v5249_v26, %v20795_v8  ;;  %v18329_v15 = vld.sshfl [vmem:[%s20800_s17 + $0x29] sm:$0x3 pattern:$0x76325410] }
 0x135   : > { %v5788_v34 = vcombine.low %v5780_v20, %v5787_v27  ;;  %v5807_v35 = vcombine.low %v18249_v24, %v5280_v29  ;;  %v6348_v36 = vrot.slane %v18287_v17, %v20795_v8  ;;  %v6355_v37 = vrot.slane %v6341_v30, %v20795_v8 }
 0x136   : > { %19635 = vmatprep.mubr.msk.f32.mxu0 %vm2095_vm1, %v4402_v31  ;;  %v5797_v38 = vrot.slane %v5789_v32, %v20795_v8  ;;  %v5804_v39 = vrot.slane %v5790_v5, %v20795_v8  ;;  %v5265_v40 = vcombine.high %v5263_v33, %v5263_v33  ;;  %v5273_v43 = vcombine.high %v18230_v25, %v18230_v25  ;;  %v18291_v25 = vld [vmem:[%s20800_s17 + $0x39] sm:$0xff] }
 0x137   : > { %19673 = vmatprep.mubr.msk.f32.mxu1 %vm2095_vm1, %v5788_v34  ;;  %19636 = vmatmul.mubr.msk.f32.gmra.mxu0 %vm2095_vm1, %v4410_v28  ;;  %v5821_v45 = vrot.slane %v5807_v35, %v20795_v8  ;;  %v6356_v46 = vcombine.high %v6348_v36, %v6348_v36  ;;  %v6357_v47 = vcombine.high %v6355_v37, %v6355_v37 }
 0x138   : > { %v5805_v48 = vcombine.low %v5797_v38, %v5804_v39  ;;  %v5806_v49 = vcombine.low %v5263_v33, %v5265_v40  ;;  %v5287_v50 = vrot.slane %v5273_v43, %v20795_v8  ;;  %v5288_v51 = vcombine.high %v5280_v29, %v5280_v29  ;;  %v18234_v33 = vld [vmem:[%s20800_s17 + $0x140] sm:$0xff] }
 0x139   : > { %v6917_v52 = vcombine.low %v6348_v36, %v6356_v46  ;;  %v6918_v42 = vcombine.low %v6355_v37, %v6357_v47  ;;  %v5297_v53 = vrot.slane %v18231_v41, %v20795_v8  ;;  %v6358_v54 = vcombine.high %v18288_v44, %v18288_v44  ;;  %v18293_v47 = vld [vmem:[%s20800_s17 + $0x49] sm:$0xff] }
 0x13a   : > { %19674 = vmatmul.mubr.msk.f32.gmra.mxu1 %vm2095_vm1, %v5805_v48  ;;  %v5814_v55 = vrot.slane %v5806_v49, %v20795_v8  ;;  %v5289_v56 = vcombine.high %v5287_v50, %v5287_v50  ;;  %v5823_v57 = vcombine.low %v5288_v51, %v5287_v50  ;;  %v6365_v58 = vrot.slane %v18288_v44, %v20795_v8  ;;  %v20596_v48 = vld [vmem:[%s24882_s1 + $0x18] sm:$0xf] }
 0x13b   : > { %v6925_v59 = vrot.slane %v6917_v52, %v20795_v8  ;;  %v6932_v60 = vrot.slane %v6918_v42, %v20795_v8  ;;  %v6372_v61 = vrot.slane %v6358_v54, %v20795_v8  ;;  %v5290_v62 = vcombine.high %v18231_v41, %v18231_v41  ;;  %v18330_v42 = vld.sshfl [vmem:[%s20800_s17 + $0x41] sm:$0x3 pattern:$0x76325410] }
 0x13c   : > { %v5822_v0 = vcombine.low %v5814_v55, %v5821_v45  ;;  %v5824_v1 = vcombine.low %v5289_v56, %v5297_v53  ;;  %v5831_v2 = vrot.slane %v5823_v57, %v20795_v8  ;;  %v6373_v3 = vcombine.high %v6365_v58, %v6365_v58  ;;  %v18236_v57 = vld [vmem:[%s20800_s17 + $0x150] sm:$0xff] }
 0x13d   : > { %v6933_v7 = vcombine.low %v6925_v59, %v6932_v60  ;;  %v6374_v9 = vcombine.high %v6372_v61, %v6372_v61  ;;  %v5304_v11 = vrot.slane %v5290_v62, %v20795_v8  ;;  %v5305_v12 = vcombine.high %v5297_v53, %v5297_v53 }
 0x13e   : > { %19676 = vmatprep.mubr.msk.f32.mxu1 %vm2095_vm1, %v5822_v0  ;;  %v5838_v13 = vrot.slane %v5824_v1, %v20795_v8  ;;  %v6934_v14 = vcombine.low %v6365_v58, %v6373_v3  ;;  %v6382_v16 = vcombine.high %v18290_v63, %v18290_v63  ;;  %v6389_v17 = vrot.slane %v18290_v63, %v20795_v8 }
 0x13f   : > { %19690 = vmatprep.mubr.msk.f32.mxu0 %vm2095_vm1, %v6933_v7  ;;  %v6935_v18 = vcombine.low %v6372_v61, %v6374_v9  ;;  %v5306_v19 = vcombine.high %v5304_v11, %v5304_v11  ;;  %v5840_v20 = vcombine.low %v5305_v12, %v5304_v11  ;;  %v5314_v21 = vcombine.high %v18233_v6, %v18233_v6  ;;  %v18251_v7 = vld.sshfl [vmem:[%s20800_s17 + $0x148] sm:$0x3 pattern:$0x76325410] }
 0x140   : > { %v5839_v22 = vcombine.low %v5831_v2, %v5838_v13  ;;  %v6942_v4 = vrot.slane %v6934_v14, %v20795_v8  ;;  %v6396_v23 = vrot.slane %v6382_v16, %v20795_v8  ;;  %v6397_v24 = vcombine.high %v6389_v17, %v6389_v17 }
 0x141   : > { %v6949_v26 = vrot.slane %v6935_v18, %v20795_v8  ;;  %v5841_v27 = vcombine.low %v5306_v19, %v18250_v10  ;;  %v5848_v28 = vrot.slane %v5840_v20, %v20795_v8  ;;  %v6951_v29 = vcombine.low %v18329_v15, %v6389_v17  ;;  %v18294_v10 = vld [vmem:[%s20800_s17 + $0x51] sm:$0xff] }
 0x142   : > { %19677 = vmatmul.mubr.msk.f32.gmra.mxu1 %vm2095_vm1, %v5839_v22  ;;  %v6952_v30 = vcombine.low %v6397_v24, %v6396_v23  ;;  %v5321_v31 = vrot.slane %v18233_v6, %v20795_v8  ;;  %v5328_v32 = vrot.slane %v5314_v21, %v20795_v8  ;;  %v6398_v5 = vcombine.high %v6396_v23, %v6396_v23  ;;  %v18237_v15 = vld [vmem:[%s20800_s17 + $0x158] sm:$0xff] }
 0x143   : > { %v6950_v34 = vcombine.low %v6942_v4, %v6949_v26  ;;  %v5855_v35 = vrot.slane %v5841_v27, %v20795_v8  ;;  %v6959_v36 = vrot.slane %v6951_v29, %v20795_v8  ;;  %v6399_v37 = vcombine.high %v18291_v25, %v18291_v25 }
 0x144   : > { %v6966_v38 = vrot.slane %v6952_v30, %v20795_v8  ;;  %v5329_v39 = vcombine.high %v5321_v31, %v5321_v31  ;;  %v5330_v40 = vcombine.high %v5328_v32, %v5328_v32  ;;  %v6406_v41 = vrot.slane %v18291_v25, %v20795_v8 }
 0x145   : > { %19691 = vmatmul.mubr.msk.f32.vlgmr.msra.gmra.mxu0 %vm2095_vm1, %v6950_v34  ;;  %v5856_v43 = vcombine.low %v5848_v28, %v5855_v35  ;;  %v6413_v44 = vrot.slane %v6399_v37, %v20795_v8  ;;  %v5331_v45 = vcombine.high %v18234_v33, %v18234_v33  ;;  %v5338_v46 = vrot.slane %v18234_v33, %v20795_v8  ;;  %v18331_v35 = vld.sshfl [vmem:[%s20800_s17 + $0x59] sm:$0x3 pattern:$0x76325410] }
 0x146   : > { %19789 = vmatpush3.msk.msra.mxu0 %vm2160_vm0, %v20596_v48  ;;  %v6967_v49 = vcombine.low %v6959_v36, %v6966_v38  ;;  %v5857_v50 = vcombine.low %v5321_v31, %v5329_v39  ;;  %v5858_v51 = vcombine.low %v5328_v32, %v5330_v40  ;;  %v6414_v52 = vcombine.high %v6406_v41, %v6406_v41  ;;  %v21633_v31 = vld [vmem:[%s24882_s1 + $0x1c] sm:$0xf]  ;;  %v18296_v36 = vld [vmem:[%s20800_s17 + $0x61] sm:$0xff] }
 0x147   : > { %19679 = vmatprep.mubr.msk.f32.mxu1 %vm2095_vm1, %v5856_v43  ;;  %v6968_v53 = vcombine.low %v6398_v5, %v6406_v41  ;;  %v5345_v54 = vrot.slane %v5331_v45, %v20795_v8  ;;  %v5346_v55 = vcombine.high %v5338_v46, %v5338_v46  ;;  %v6415_v56 = vcombine.high %v6413_v44, %v6413_v44  ;;  %v18252_v41 = vld.sshfl [vmem:[%s20800_s17 + $0x160] sm:$0x3 pattern:$0x76325410] }
 0x148   : > { %19693 = vmatprep.mubr.msk.f32.mxu0 %vm2095_vm1, %v6967_v49  ;;  %v5865_v58 = vrot.slane %v5857_v50, %v20795_v8  ;;  %v5872_v59 = vrot.slane %v5858_v51, %v20795_v8  ;;  %v6969_v60 = vcombine.low %v6414_v52, %v6413_v44  ;;  %v6430_v61 = vrot.slane %v18293_v47, %v20795_v8  ;;  %v18297_v51 = vld [vmem:[%s20800_s17 + $0x69] sm:$0xff] }
 0x149   : > { %v6976_v62 = vrot.slane %v6968_v53, %v20795_v8  ;;  %v5347_v63 = vcombine.high %v5345_v54, %v5345_v54  ;;  %v5874_v0 = vcombine.low %v5338_v46, %v5346_v55  ;;  %v6985_v1 = vcombine.low %v6415_v56, %v18330_v42  ;;  %19838 = vmatprep.subr.msk.mxu1 %vm2160_vm0, %v21633_v31  ;;  %v18377_v55 = vld [vmem:[%s20800_s17 + $0x1a] sm:$0xff] }
 0x14a   : > { %v5873_v2 = vcombine.low %v5865_v58, %v5872_v59  ;;  %v6983_v3 = vrot.slane %v6969_v60, %v20795_v8  ;;  %v6438_v6 = vcombine.high %v6430_v61, %v6430_v61  ;;  %v5355_v9 = vcombine.high %v18236_v57, %v18236_v57  ;;  %v18703_v56 = vld [vmem:[%s24882_s1 + $0x20] sm:$0xf] }
 0x14b   : > { %v5875_v11 = vcombine.low %v5345_v54, %v5347_v63  ;;  %v5882_v12 = vrot.slane %v5874_v0, %v20795_v8  ;;  %v6993_v13 = vrot.slane %v6985_v1, %v20795_v8  ;;  %v5362_v14 = vrot.slane %v18236_v57, %v20795_v8  ;;  %19888 = vmatprep.subr.msk.mxu0 %vm2160_vm0, %v18703_v56  ;;  %v18419_v56 = vld.sshfl [vmem:[%s20800_s17 + $0x2a] sm:$0x3 pattern:$0x76325410] }
 0x14c   : > { %19680 = vmatmul.mubr.msk.f32.gmra.mxu1 %vm2095_vm1, %v5873_v2  ;;  %v6984_v16 = vcombine.low %v6976_v62, %v6983_v3  ;;  %v6986_v17 = vcombine.low %v6430_v61, %v6438_v6  ;;  %v5369_v18 = vrot.slane %v5355_v9, %v20795_v8  ;;  %v6423_v19 = vcombine.high %v18293_v47, %v18293_v47  ;;  %v18299_v61 = vld [vmem:[%s20800_s17 + $0x79] sm:$0xff] }
 0x14d   : > { %v5889_v20 = vrot.slane %v5875_v11, %v20795_v8  ;;  %v5370_v21 = vcombine.high %v5362_v14, %v5362_v14  ;;  %v5891_v22 = vcombine.low %v18251_v7, %v5362_v14  ;;  %v6447_v4 = vrot.slane %v18294_v10, %v20795_v8 }
 0x14e   : > { %19694 = vmatmul.mubr.msk.f32.gmra.mxu0 %vm2095_vm1, %v6984_v16  ;;  %v7000_v23 = vrot.slane %v6986_v17, %v20795_v8  ;;  %v6437_v24 = vrot.slane %v6423_v19, %v20795_v8  ;;  %v5371_v25 = vcombine.high %v5369_v18, %v5369_v18  ;;  %v5372_v26 = vcombine.high %v18237_v15, %v18237_v15  ;;  %v18332_v17 = vld.sshfl [vmem:[%s20800_s17 + $0x71] sm:$0x3 pattern:$0x76325410] }
 0x14f   : > { %v5890_v27 = vcombine.low %v5882_v12, %v5889_v20  ;;  %v5892_v28 = vcombine.low %v5370_v21, %v5369_v18  ;;  %v5899_v29 = vrot.slane %v5891_v22, %v20795_v8  ;;  %v6455_v30 = vcombine.high %v6447_v4, %v6447_v4  ;;  %v18378_v22 = vld [vmem:[%s20800_s17 + $0x22] sm:$0xff] }
 0x150   : > { %v7001_v32 = vcombine.low %v6993_v13, %v7000_v23  ;;  %v6439_v5 = vcombine.high %v6437_v24, %v6437_v24  ;;  %v5379_v33 = vrot.slane %v18237_v15, %v20795_v8  ;;  %v5386_v34 = vrot.slane %v5372_v26, %v20795_v8 }
 0x151   : > { %19682 = vmatprep.mubr.msk.f32.mxu1 %vm2095_vm1, %v5890_v27  ;;  %v5906_v37 = vrot.slane %v5892_v28, %v20795_v8  ;;  %v7003_v38 = vcombine.low %v6447_v4, %v6455_v30  ;;  %v6440_v39 = vcombine.high %v18294_v10, %v18294_v10  ;;  %v6471_v40 = vrot.slane %v18296_v36, %v20795_v8 }
 0x152   : > { %19696 = vmatprep.mubr.msk.f32.mxu0 %vm2095_vm1, %v7001_v32  ;;  %v7002_v43 = vcombine.low %v6437_v24, %v6439_v5  ;;  %v5387_v44 = vcombine.high %v5379_v33, %v5379_v33  ;;  %v5908_v45 = vcombine.low %v5371_v25, %v5379_v33  ;;  %v5388_v46 = vcombine.high %v5386_v34, %v5386_v34 }
 0x153   : > { %v5907_v47 = vcombine.low %v5899_v29, %v5906_v37  ;;  %v7017_v48 = vrot.slane %v7003_v38, %v20795_v8  ;;  %v6454_v49 = vrot.slane %v6440_v39, %v20795_v8  ;;  %v7020_v50 = vcombine.low %v18331_v35, %v6471_v40 }
 0x154   : > { %v7010_v52 = vrot.slane %v7002_v43, %v20795_v8  ;;  %v5909_v42 = vcombine.low %v5387_v44, %v5386_v34  ;;  %v5916_v53 = vrot.slane %v5908_v45, %v20795_v8  ;;  %v5925_v54 = vcombine.low %v5388_v46, %v18252_v41  ;;  %v18300_v34 = vld [vmem:[%s20800_s17 + $0x81] sm:$0xff]  ;;  %v18380_v44 = vld [vmem:[%s20800_s17 + $0x32] sm:$0xff] }
 0x155   : > { %19683 = vmatmul.mubr.msk.f32.gmra.mxu1 %vm2095_vm1, %v5907_v47  ;;  %v6456_v57 = vcombine.high %v6454_v49, %v6454_v49  ;;  %v7034_v58 = vrot.slane %v7020_v50, %v20795_v8  ;;  %v6464_v59 = vcombine.high %v18296_v36, %v18296_v36  ;;  %v6479_v60 = vcombine.high %v6471_v40, %v6471_v40 }
 0x156   : > { %v7018_v62 = vcombine.low %v7010_v52, %v7017_v48  ;;  %v5923_v63 = vrot.slane %v5909_v42, %v20795_v8  ;;  %v5932_v0 = vrot.slane %v5925_v54, %v20795_v8  ;;  %v6488_v1 = vrot.slane %v18297_v51, %v20795_v8  ;;  %v18302_v42 = vld [vmem:[%s20800_s17 + $0x91] sm:$0xff] }
 0x157   : > { %v7019_v2 = vcombine.low %v6454_v49, %v6456_v57  ;;  %v6478_v3 = vrot.slane %v6464_v59, %v20795_v8  ;;  %v6481_v6 = vcombine.high %v18297_v51, %v18297_v51  ;;  %v7860_v7 = vcombine.high %v18377_v55, %v18377_v55 }
 0x158   : > { %19697 = vmatmul.mubr.msk.f32.gmra.mxu0 %vm2095_vm1, %v7018_v62  ;;  %v5924_v9 = vcombine.low %v5916_v53, %v5923_v63  ;;  %v6496_v10 = vcombine.high %v6488_v1, %v6488_v1  ;;  %v7867_v11 = vrot.slane %v18377_v55, %v20795_v8  ;;  %v6505_v12 = vcombine.high %v18299_v61, %v18299_v61 }
 0x159   : > { %v7027_v13 = vrot.slane %v7019_v2, %v20795_v8  ;;  %v6480_v14 = vcombine.high %v6478_v3, %v6478_v3  ;;  %v7036_v15 = vcombine.low %v6479_v60, %v6478_v3  ;;  %v6495_v16 = vrot.slane %v6481_v6, %v20795_v8 }
 0x15a   : > { %19685 = vmatprep.mubr.msk.f32.mxu1 %vm2095_vm1, %v5924_v9  ;;  %v7874_v18 = vrot.slane %v7860_v7, %v20795_v8  ;;  %v7875_v19 = vcombine.high %v7867_v11, %v7867_v11  ;;  %v6512_v20 = vrot.slane %v18299_v61, %v20795_v8  ;;  %v6519_v21 = vrot.slane %v6505_v12, %v20795_v8  ;;  %v18333_v9 = vld.sshfl [vmem:[%s20800_s17 + $0x89] sm:$0x3 pattern:$0x76325410] }
 0x15b   : > { %v7035_v4 = vcombine.low %v7027_v13, %v7034_v58  ;;  %19686 = vmatmul.mubr.msk.f32.gmra.mxu1 %vm2095_vm1, %v5932_v0  ;;  %v7037_v23 = vcombine.low %v6480_v14, %v6488_v1  ;;  %v7044_v24 = vrot.slane %v7036_v15, %v20795_v8  ;;  %v6497_v25 = vcombine.high %v6495_v16, %v6495_v16  ;;  %v18381_v14 = vld [vmem:[%s20800_s17 + $0x3a] sm:$0xff] }
 0x15c   : > { %v7053_v26 = vcombine.low %v6496_v10, %v6495_v16  ;;  %v7876_v27 = vcombine.high %v7874_v18, %v7874_v18  ;;  %v8436_v28 = vcombine.low %v7867_v11, %v7875_v19  ;;  %v6520_v29 = vcombine.high %v6512_v20, %v6512_v20  ;;  %v18303_v19 = vld [vmem:[%s20800_s17 + $0x99] sm:$0xff] }
 0x15d   : > { %19699 = vmatprep.mubr.msk.f32.mxu0 %vm2095_vm1, %v7035_v4  ;;  %v7051_v30 = vrot.slane %v7037_v23, %v20795_v8  ;;  %v7054_v32 = vcombine.low %v6497_v25, %v18332_v17  ;;  %v6521_v5 = vcombine.high %v6519_v21, %v6519_v21  ;;  %v7877_v33 = vcombine.high %v18378_v22, %v18378_v22 }
 0x15e   : > { %v7061_v35 = vrot.slane %v7053_v26, %v20795_v8  ;;  %v8437_v36 = vcombine.low %v7874_v18, %v7876_v27  ;;  %v8444_v37 = vrot.slane %v8436_v28, %v20795_v8  ;;  %v7070_v38 = vcombine.low %v6512_v20, %v6520_v29  ;;  %v18383_v27 = vld [vmem:[%s20800_s17 + $0x4a] sm:$0xff] }
 0x15f   : > { %v7052_v39 = vcombine.low %v7044_v24, %v7051_v30  ;;  %v7068_v40 = vrot.slane %v7054_v32, %v20795_v8  ;;  %v7071_v41 = vcombine.low %v6519_v21, %v6521_v5  ;;  %v7884_v43 = vrot.slane %v18378_v22, %v20795_v8  ;;  %v18305_v5 = vld [vmem:[%s20800_s17 + $0xa9] sm:$0xff] }
 0x160   : > { %v8451_v45 = vrot.slane %v8437_v36, %v20795_v8  ;;  %v7078_v46 = vrot.slane %v7070_v38, %v20795_v8  ;;  %v7891_v47 = vrot.slane %v7877_v33, %v20795_v8  ;;  %v6522_v48 = vcombine.high %v18300_v34, %v18300_v34 }
 0x161   : > { %19700 = vmatmul.mubr.msk.f32.gmra.mxu0 %vm2095_vm1, %v7052_v39  ;;  %v7069_v49 = vcombine.low %v7061_v35, %v7068_v40  ;;  %v7085_v50 = vrot.slane %v7071_v41, %v20795_v8  ;;  %v7892_v51 = vcombine.high %v7884_v43, %v7884_v43  ;;  %v6529_v52 = vrot.slane %v18300_v34, %v20795_v8  ;;  %v18420_v40 = vld.sshfl [vmem:[%s20800_s17 + $0x42] sm:$0x3 pattern:$0x76325410] }
 0x162   : > { %v8452_v53 = vcombine.low %v8444_v37, %v8451_v45  ;;  %v7893_v54 = vcombine.high %v7891_v47, %v7891_v47  ;;  %v6536_v55 = vrot.slane %v6522_v48, %v20795_v8  ;;  %v7901_v57 = vcombine.high %v18380_v44, %v18380_v44 }
 0x163   : > { %19702 = vmatprep.mubr.msk.f32.mxu0 %vm2095_vm1, %v7069_v49  ;;  %v7086_v58 = vcombine.low %v7078_v46, %v7085_v50  ;;  %v8453_v59 = vcombine.low %v7884_v43, %v7892_v51  ;;  %v6537_v60 = vcombine.high %v6529_v52, %v6529_v52  ;;  %v7908_v61 = vrot.slane %v18380_v44, %v20795_v8  ;;  %v18334_v50 = vld.sshfl [vmem:[%s20800_s17 + $0xa1] sm:$0x3 pattern:$0x76325410] }
 0x164   : > { %19740 = vmatprep.mubr.msk.f32.mxu1 %vm2095_vm1, %v8452_v53  ;;  %v8454_v62 = vcombine.low %v7891_v47, %v7893_v54  ;;  %v6538_v63 = vcombine.high %v6536_v55, %v6536_v55  ;;  %v7915_v0 = vrot.slane %v7901_v57, %v20795_v8  ;;  %v6546_v1 = vcombine.high %v18302_v42, %v18302_v42  ;;  %v18384_v54 = vld [vmem:[%s20800_s17 + $0x52] sm:$0xff] }
 0x165   : > { %19703 = vmatmul.mubr.msk.f32.gmra.mxu0 %vm2095_vm1, %v7086_v58  ;;  %v8461_v2 = vrot.slane %v8453_v59, %v20795_v8  ;;  %v7087_v3 = vcombine.low %v6529_v52, %v6537_v60  ;;  %v7916_v6 = vcombine.high %v7908_v61, %v7908_v61  ;;  %v8470_v7 = vcombine.low %v18419_v56, %v7908_v61  ;;  %v18306_v59 = vld [vmem:[%s20800_s17 + $0xb1] sm:$0xff] }
 0x166   : > { %v8468_v10 = vrot.slane %v8454_v62, %v20795_v8  ;;  %v7088_v11 = vcombine.low %v6536_v55, %v6538_v63  ;;  %v6553_v12 = vrot.slane %v18302_v42, %v20795_v8  ;;  %v6560_v13 = vrot.slane %v6546_v1, %v20795_v8 }
 0x167   : > { %v7095_v15 = vrot.slane %v7087_v3, %v20795_v8  ;;  %v8471_v16 = vcombine.low %v7916_v6, %v7915_v0  ;;  %v8478_v17 = vrot.slane %v8470_v7, %v20795_v8  ;;  %v7917_v18 = vcombine.high %v7915_v0, %v7915_v0 }
 0x168   : > { %v8469_v20 = vcombine.low %v8461_v2, %v8468_v10  ;;  %v7102_v21 = vrot.slane %v7088_v11, %v20795_v8  ;;  %v6561_v22 = vcombine.high %v6553_v12, %v6553_v12  ;;  %v7104_v4 = vcombine.low %v18333_v9, %v6553_v12 }
 0x169   : > { %v8485_v23 = vrot.slane %v8471_v16, %v20795_v8  ;;  %v7918_v24 = vcombine.high %v18381_v14, %v18381_v14  ;;  %v7925_v25 = vrot.slane %v18381_v14, %v20795_v8  ;;  %v6562_v26 = vcombine.high %v6560_v13, %v6560_v13 }
 0x16a   : > { %19741 = vmatmul.mubr.msk.f32.vlgmr.msra.gmra.mxu1 %vm2095_vm1, %v8469_v20  ;;  %v7103_v28 = vcombine.low %v7095_v15, %v7102_v21  ;;  %v7105_v29 = vcombine.low %v6561_v22, %v6560_v13  ;;  %v7112_v30 = vrot.slane %v7104_v4, %v20795_v8  ;;  %v6563_v32 = vcombine.high %v18303_v19, %v18303_v19  ;;  %v18308_v21 = vld [vmem:[%s20800_s17 + $0xc1] sm:$0xff] }
 0x16b   : > { %v8486_v33 = vcombine.low %v8478_v17, %v8485_v23  ;;  %v7932_v34 = vrot.slane %v7918_v24, %v20795_v8  ;;  %v7933_v35 = vcombine.high %v7925_v25, %v7925_v25  ;;  %v8487_v36 = vcombine.low %v7917_v18, %v7925_v25  ;;  %19839 = vmatpush3.msk.msra.mxu1 %vm2160_vm0, %v21633_v31  ;;  %v18421_v18 = vld.sshfl [vmem:[%s20800_s17 + $0x5a] sm:$0x3 pattern:$0x76325410] }
 0x16c   : > { %19705 = vmatprep.mubr.msk.f32.mxu0 %vm2095_vm1, %v7103_v28  ;;  %v7119_v37 = vrot.slane %v7105_v29, %v20795_v8  ;;  %v6570_v38 = vrot.slane %v18303_v19, %v20795_v8  ;;  %v6577_v39 = vrot.slane %v6563_v32, %v20795_v8  ;;  %v7949_v41 = vrot.slane %v18383_v27, %v20795_v8  ;;  %v18386_v19 = vld [vmem:[%s20800_s17 + $0x62] sm:$0xff] }
 0x16d   : > { %19743 = vmatprep.mubr.msk.f32.mxu1 %vm2095_vm1, %v8486_v33  ;;  %v8488_v43 = vcombine.low %v7933_v35, %v7932_v34  ;;  %v8495_v44 = vrot.slane %v8487_v36, %v20795_v8  ;;  %v7934_v45 = vcombine.high %v7932_v34, %v7932_v34  ;;  %v6594_v31 = vrot.slane %v18305_v5, %v20795_v8 }
 0x16e   : > { %v7120_v46 = vcombine.low %v7112_v30, %v7119_v37  ;;  %v6578_v47 = vcombine.high %v6570_v38, %v6570_v38  ;;  %v7121_v48 = vcombine.low %v6562_v26, %v6570_v38  ;;  %v7957_v49 = vcombine.high %v7949_v41, %v7949_v41  ;;  %v18387_v37 = vld [vmem:[%s20800_s17 + $0x6a] sm:$0xff] }
 0x16f   : > { %v8502_v51 = vrot.slane %v8488_v43, %v20795_v8  ;;  %v8504_v52 = vcombine.low %v7934_v45, %v18420_v40  ;;  %v6579_v42 = vcombine.high %v6577_v39, %v6577_v39  ;;  %v6602_v53 = vcombine.high %v6594_v31, %v6594_v31 }
 0x170   : > { %19706 = vmatmul.mubr.msk.f32.gmra.mxu0 %vm2095_vm1, %v7120_v46  ;;  %v7122_v55 = vcombine.low %v6578_v47, %v6577_v39  ;;  %v7129_v56 = vrot.slane %v7121_v48, %v20795_v8  ;;  %v8505_v57 = vcombine.low %v7949_v41, %v7957_v49  ;;  %v7942_v58 = vcombine.high %v18383_v27, %v18383_v27  ;;  %v18335_v27 = vld.sshfl [vmem:[%s20800_s17 + $0xb9] sm:$0x3 pattern:$0x76325410] }
 0x171   : > { %v8503_v60 = vcombine.low %v8495_v44, %v8502_v51  ;;  %v8512_v61 = vrot.slane %v8504_v52, %v20795_v8  ;;  %v7138_v62 = vcombine.low %v6579_v42, %v18334_v50  ;;  %v7139_v63 = vcombine.low %v6594_v31, %v6602_v53  ;;  %v18309_v42 = vld [vmem:[%s20800_s17 + $0xc9] sm:$0xff] }
 0x172   : > { %v7136_v0 = vrot.slane %v7122_v55, %v20795_v8  ;;  %v8519_v1 = vrot.slane %v8505_v57, %v20795_v8  ;;  %v7956_v2 = vrot.slane %v7942_v58, %v20795_v8  ;;  %v7966_v3 = vrot.slane %v18384_v54, %v20795_v8 }
 0x173   : > { %19744 = vmatmul.mubr.msk.f32.gmra.mxu1 %vm2095_vm1, %v8503_v60  ;;  %v7146_v6 = vrot.slane %v7138_v62, %v20795_v8  ;;  %v7153_v7 = vrot.slane %v7139_v63, %v20795_v8  ;;  %v6587_v9 = vcombine.high %v18305_v5, %v18305_v5  ;;  %v6611_v10 = vrot.slane %v18306_v59, %v20795_v8  ;;  %v18389_v62 = vld [vmem:[%s20800_s17 + $0x7a] sm:$0xff] }
 0x174   : > { %v7137_v11 = vcombine.low %v7129_v56, %v7136_v0  ;;  %v8520_v12 = vcombine.low %v8512_v61, %v8519_v1  ;;  %v7958_v13 = vcombine.high %v7956_v2, %v7956_v2  ;;  %v7974_v14 = vcombine.high %v7966_v3, %v7966_v3 }
 0x175   : > { %v7154_v15 = vcombine.low %v7146_v6, %v7153_v7  ;;  %v6601_v16 = vrot.slane %v6587_v9, %v20795_v8  ;;  %v6619_v17 = vcombine.high %v6611_v10, %v6611_v10  ;;  %v7959_v20 = vcombine.high %v18384_v54, %v18384_v54 }
 0x176   : > { %19708 = vmatprep.mubr.msk.f32.mxu0 %vm2095_vm1, %v7137_v11  ;;  %19746 = vmatprep.mubr.msk.f32.mxu1 %vm2095_vm1, %v8520_v12  ;;  %v8521_v22 = vcombine.low %v7956_v2, %v7958_v13  ;;  %v8522_v4 = vcombine.low %v7966_v3, %v7974_v14  ;;  %v7990_v23 = vrot.slane %v18386_v19, %v20795_v8  ;;  %v18422_v14 = vld.sshfl [vmem:[%s20800_s17 + $0x72] sm:$0x3 pattern:$0x76325410] }
 0x177   : > { %19709 = vmatmul.mubr.msk.f32.gmra.mxu0 %vm2095_vm1, %v7154_v15  ;;  %v6603_v24 = vcombine.high %v6601_v16, %v6601_v16  ;;  %v7156_v25 = vcombine.low %v6611_v10, %v6619_v17  ;;  %v7973_v26 = vrot.slane %v7959_v20, %v20795_v8  ;;  %v6604_v28 = vcombine.high %v18306_v59, %v18306_v59  ;;  %v18311_v10 = vld [vmem:[%s20800_s17 + $0xd9] sm:$0xff] }
 0x178   : > { %v8529_v29 = vrot.slane %v8521_v22, %v20795_v8  ;;  %v8536_v30 = vrot.slane %v8522_v4, %v20795_v8  ;;  %v8539_v32 = vcombine.low %v18421_v18, %v7990_v23  ;;  %v6635_v5 = vrot.slane %v18308_v21, %v20795_v8  ;;  %v18336_v22 = vld.sshfl [vmem:[%s20800_s17 + $0xd1] sm:$0x3 pattern:$0x76325410] }
 0x179   : > { %v7155_v33 = vcombine.low %v6601_v16, %v6603_v24  ;;  %v7170_v34 = vrot.slane %v7156_v25, %v20795_v8  ;;  %v7975_v35 = vcombine.high %v7973_v26, %v7973_v26  ;;  %v6618_v36 = vrot.slane %v6604_v28, %v20795_v8  ;;  %v18390_v28 = vld [vmem:[%s20800_s17 + $0x82] sm:$0xff] }
 0x17a   : > { %v8537_v38 = vcombine.low %v8529_v29, %v8536_v30  ;;  %v8553_v39 = vrot.slane %v8539_v32, %v20795_v8  ;;  %v7173_v40 = vcombine.low %v18335_v27, %v6635_v5  ;;  %v7983_v41 = vcombine.high %v18386_v19, %v18386_v19 }
 0x17b   : > { %v7163_v43 = vrot.slane %v7155_v33, %v20795_v8  ;;  %v8538_v44 = vcombine.low %v7973_v26, %v7975_v35  ;;  %v6620_v45 = vcombine.high %v6618_v36, %v6618_v36  ;;  %v7998_v31 = vcombine.high %v7990_v23, %v7990_v23 }
 0x17c   : > { %19747 = vmatmul.mubr.msk.f32.gmra.mxu1 %vm2095_vm1, %v8537_v38  ;;  %v7187_v46 = vrot.slane %v7173_v40, %v20795_v8  ;;  %v7997_v47 = vrot.slane %v7983_v41, %v20795_v8  ;;  %v8007_v48 = vrot.slane %v18387_v37, %v20795_v8  ;;  %v6628_v49 = vcombine.high %v18308_v21, %v18308_v21  ;;  %v18312_v41 = vld [vmem:[%s20800_s17 + $0xe1] sm:$0xff] }
 0x17d   : > { %v7171_v50 = vcombine.low %v7163_v43, %v7170_v34  ;;  %v8546_v51 = vrot.slane %v8538_v44, %v20795_v8  ;;  %v7172_v52 = vcombine.low %v6618_v36, %v6620_v45  ;;  %v6643_v53 = vcombine.high %v6635_v5, %v6635_v5 }
 0x17e   : > { %v7999_v54 = vcombine.high %v7997_v47, %v7997_v47  ;;  %v8555_v55 = vcombine.low %v7998_v31, %v7997_v47  ;;  %v6642_v56 = vrot.slane %v6628_v49, %v20795_v8  ;;  %v6652_v57 = vrot.slane %v18309_v42, %v20795_v8  ;;  %v21795_v47 = vpop.f32.mrf.mxu1 }
 0x17f   : > { %19711 = vmatprep.mubr.msk.f32.mxu0 %vm2095_vm1, %v7171_v50  ;;  %v8554_v58 = vcombine.low %v8546_v51, %v8553_v39  ;;  %v7180_v59 = vrot.slane %v7172_v52, %v20795_v8  ;;  %v8000_v60 = vcombine.high %v18387_v37, %v18387_v37  ;;  %v8015_v61 = vcombine.high %v8007_v48, %v8007_v48  ;;  %v18392_v52 = vld [vmem:[%s20800_s17 + $0x92] sm:$0xff] }
 0x180   : > { %v8556_v63 = vcombine.low %v7999_v54, %v8007_v48  ;;  %v8563_v0 = vrot.slane %v8555_v55, %v20795_v8  ;;  %v6644_v1 = vcombine.high %v6642_v56, %v6642_v56  ;;  %v7189_v2 = vcombine.low %v6643_v53, %v6642_v56  ;;  %24893 = vst [vmem:[#allocation7_spill] sm:$0xff] %v21795_v47  ;;  %v18314_v56 = vld [vmem:[%s20800_s17 + $0xf1] sm:$0xff] }
 0x181   : > { %19749 = vmatprep.mubr.msk.f32.mxu1 %vm2095_vm1, %v8554_v58  ;;  %v7188_v3 = vcombine.low %v7180_v59, %v7187_v46  ;;  %v8014_v6 = vrot.slane %v8000_v60, %v20795_v8  ;;  %v6645_v7 = vcombine.high %v18309_v42, %v18309_v42  ;;  %v6660_v9 = vcombine.high %v6652_v57, %v6652_v57  ;;  %v21793_v46 = vpop.f32.mrf.mxu0 }
 0x182   : > { %v8570_v11 = vrot.slane %v8556_v63, %v20795_v8  ;;  %v7190_v12 = vcombine.low %v6644_v1, %v6652_v57  ;;  %v7197_v13 = vrot.slane %v7189_v2, %v20795_v8  ;;  %v8024_v15 = vcombine.high %v18389_v62, %v18389_v62 }
 0x183   : > { %19712 = vmatmul.mubr.msk.f32.gmra.mxu0 %vm2095_vm1, %v7188_v3  ;;  %v8016_v16 = vcombine.high %v8014_v6, %v8014_v6  ;;  %v8572_v17 = vcombine.low %v8015_v61, %v8014_v6  ;;  %v6659_v18 = vrot.slane %v6645_v7, %v20795_v8  ;;  %v8031_v19 = vrot.slane %v18389_v62, %v20795_v8  ;;  %v21809_v2 = vpop.f32.mrf.mxu0  ;;  %v21811_v3 = vpop.f32.mrf.mxu1 }
 0x184   : > { %v8571_v20 = vcombine.low %v8563_v0, %v8570_v11  ;;  %v7204_v21 = vrot.slane %v7190_v12, %v20795_v8  ;;  %v8038_v4 = vrot.slane %v8024_v15, %v20795_v8  ;;  %v6669_v23 = vcombine.high %v18311_v10, %v18311_v10  ;;  %v18423_v0 = vld.sshfl [vmem:[%s20800_s17 + $0x8a] sm:$0x3 pattern:$0x76325410]  ;;  %24894 = vst [vmem:[#allocation8_spill] sm:$0xff] %v21811_v3 }
 0x185   : > { %v8573_v24 = vcombine.low %v8016_v16, %v18422_v14  ;;  %v8580_v25 = vrot.slane %v8572_v17, %v20795_v8  ;;  %v6661_v26 = vcombine.high %v6659_v18, %v6659_v18  ;;  %v7206_v27 = vcombine.low %v6660_v9, %v6659_v18  ;;  %v18510_v3 = vld.sshfl [vmem:[%s20800_s17 + $0x58] sm:$0x3 pattern:$0x76325410] }
 0x186   : > { %19750 = vmatmul.mubr.msk.f32.gmra.mxu1 %vm2095_vm1, %v8571_v20  ;;  %v7205_v29 = vcombine.low %v7197_v13, %v7204_v21  ;;  %v8039_v30 = vcombine.high %v8031_v19, %v8031_v19  ;;  %v8040_v32 = vcombine.high %v8038_v4, %v8038_v4  ;;  %v6676_v5 = vrot.slane %v18311_v10, %v20795_v8  ;;  %v18393_v20 = vld [vmem:[%s20800_s17 + $0x9a] sm:$0xff] }
 0x187   : > { %v8587_v33 = vrot.slane %v8573_v24, %v20795_v8  ;;  %v7207_v34 = vcombine.low %v6661_v26, %v18336_v22  ;;  %v7214_v35 = vrot.slane %v7206_v27, %v20795_v8  ;;  %v6683_v36 = vrot.slane %v6669_v23, %v20795_v8  ;;  %v18315_v24 = vld [vmem:[%s20800_s17 + $0xf9] sm:$0xff]  ;;  %v21826_v26 = vpop.f32.mrf.mxu1 }
 0x188   : > { %19714 = vmatprep.mubr.msk.f32.mxu0 %vm2095_vm1, %v7205_v29  ;;  %v8589_v37 = vcombine.low %v8031_v19, %v8039_v30  ;;  %v8590_v38 = vcombine.low %v8038_v4, %v8040_v32  ;;  %v6684_v39 = vcombine.high %v6676_v5, %v6676_v5  ;;  %v8041_v40 = vcombine.high %v18390_v28, %v18390_v28  ;;  %v18337_v19 = vld.sshfl [vmem:[%s20800_s17 + $0xe9] sm:$0x3 pattern:$0x76325410] }
 0x189   : > { %v8588_v43 = vcombine.low %v8580_v25, %v8587_v33  ;;  %v7221_v44 = vrot.slane %v7207_v34, %v20795_v8  ;;  %v6685_v45 = vcombine.high %v6683_v36, %v6683_v36  ;;  %v8048_v31 = vrot.slane %v18390_v28, %v20795_v8  ;;  %v21824_v25 = vpop.f32.mrf.mxu0  ;;  %24895 = vst [vmem:[#allocation9_spill] sm:$0xff] %v21826_v26 }
 0x18a   : > { %v8597_v48 = vrot.slane %v8589_v37, %v20795_v8  ;;  %v8604_v49 = vrot.slane %v8590_v38, %v20795_v8  ;;  %v7223_v50 = vcombine.low %v6676_v5, %v6684_v39  ;;  %v8055_v51 = vrot.slane %v8041_v40, %v20795_v8  ;;  %v18395_v39 = vld [vmem:[%s20800_s17 + $0xaa] sm:$0xff] }
 0x18b   : > { %19752 = vmatprep.mubr.msk.f32.mxu1 %vm2095_vm1, %v8588_v43  ;;  %v7222_v42 = vcombine.low %v7214_v35, %v7221_v44  ;;  %v7224_v53 = vcombine.low %v6683_v36, %v6685_v45  ;;  %v8056_v54 = vcombine.high %v8048_v31, %v8048_v31  ;;  %v6686_v55 = vcombine.high %v18312_v41, %v18312_v41  ;;  %v21837_v45 = vpop.f32.mrf.mxu0 }
 0x18c   : > { %v8605_v57 = vcombine.low %v8597_v48, %v8604_v49  ;;  %v7231_v58 = vrot.slane %v7223_v50, %v20795_v8  ;;  %v8057_v59 = vcombine.high %v8055_v51, %v8055_v51  ;;  %v6693_v60 = vrot.slane %v18312_v41, %v20795_v8 }
 0x18d   : > { %19715 = vmatmul.mubr.msk.f32.gmra.mxu0 %vm2095_vm1, %v7222_v42  ;;  %v7238_v61 = vrot.slane %v7224_v53, %v20795_v8  ;;  %v8606_v62 = vcombine.low %v8048_v31, %v8056_v54  ;;  %v6700_v63 = vrot.slane %v6686_v55, %v20795_v8  ;;  %v8065_v1 = vcombine.high %v18392_v52, %v18392_v52  ;;  %v21839_v31 = vpop.f32.mrf.mxu1 }
 0x18e   : > { %19753 = vmatmul.mubr.msk.f32.gmra.mxu1 %vm2095_vm1, %v8605_v57  ;;  %v8607_v6 = vcombine.low %v8055_v51, %v8057_v59  ;;  %v6701_v7 = vcombine.high %v6693_v60, %v6693_v60  ;;  %v8072_v9 = vrot.slane %v18392_v52, %v20795_v8  ;;  %v6710_v10 = vcombine.high %v18314_v56, %v18314_v56  ;;  %v18424_v52 = vld.sshfl [vmem:[%s20800_s17 + $0xa2] sm:$0x3 pattern:$0x76325410] }
 0x18f   : > { %v7239_v11 = vcombine.low %v7231_v58, %v7238_v61  ;;  %v8614_v12 = vrot.slane %v8606_v62, %v20795_v8  ;;  %v6702_v13 = vcombine.high %v6700_v63, %v6700_v63  ;;  %v8079_v14 = vrot.slane %v8065_v1, %v20795_v8  ;;  %24896 = vst [vmem:[#allocation10_spill] sm:$0xff] %v21839_v31  ;;  %v18338_v61 = vld.sshfl [vmem:[%s20800_s17 + $0x101] sm:$0x3 pattern:$0x76325410]  ;;  %v18471_v31 = vld [vmem:[%s20800_s17 + $0x50] sm:$0xff] }
 0x190   : > { %v8621_v15 = vrot.slane %v8607_v6, %v20795_v8  ;;  %v7240_v16 = vcombine.low %v6693_v60, %v6701_v7  ;;  %v8080_v17 = vcombine.high %v8072_v9, %v8072_v9  ;;  %v8623_v18 = vcombine.low %v18423_v0, %v8072_v9  ;;  %v18396_v6 = vld [vmem:[%s20800_s17 + $0xb2] sm:$0xff]  ;;  %v21852_v7 = vpop.f32.mrf.mxu0  ;;  %v21854_v9 = vpop.f32.mrf.mxu1 }
 0x191   : > { %19717 = vmatprep.mubr.msk.f32.mxu0 %vm2095_vm1, %v7239_v11  ;;  %v7241_v21 = vcombine.low %v6700_v63, %v6702_v13  ;;  %v6717_v22 = vrot.slane %v18314_v56, %v20795_v8  ;;  %v6724_v4 = vrot.slane %v6710_v10, %v20795_v8  ;;  %v8081_v23 = vcombine.high %v8079_v14, %v8079_v14  ;;  %v18317_v56 = vld [vmem:[%s20800_s17 + $0x109] sm:$0xff] }
 0x192   : > { %v8622_v27 = vcombine.low %v8614_v12, %v8621_v15  ;;  %v7248_v28 = vrot.slane %v7240_v16, %v20795_v8  ;;  %v8624_v29 = vcombine.low %v8080_v17, %v8079_v14  ;;  %v8631_v30 = vrot.slane %v8623_v18, %v20795_v8  ;;  %v18318_v18 = vld [vmem:[%s20800_s17 + $0x111] sm:$0xff] }
 0x193   : > { %v7255_v32 = vrot.slane %v7241_v21, %v20795_v8  ;;  %v6725_v5 = vcombine.high %v6717_v22, %v6717_v22  ;;  %v7257_v33 = vcombine.low %v18337_v19, %v6717_v22  ;;  %v8082_v34 = vcombine.high %v18393_v20, %v18393_v20 }
 0x194   : > { %19755 = vmatprep.mubr.msk.f32.mxu1 %vm2095_vm1, %v8622_v27  ;;  %v8638_v35 = vrot.slane %v8624_v29, %v20795_v8  ;;  %v8089_v36 = vrot.slane %v18393_v20, %v20795_v8  ;;  %v6726_v37 = vcombine.high %v6724_v4, %v6724_v4  ;;  %v6727_v38 = vcombine.high %v18315_v24, %v18315_v24  ;;  %v21868_v29 = vpop.f32.mrf.mxu0 }
 0x195   : > { %v7256_v40 = vcombine.low %v7248_v28, %v7255_v32  ;;  %v7258_v41 = vcombine.low %v6725_v5, %v6724_v4  ;;  %v7265_v43 = vrot.slane %v7257_v33, %v20795_v8  ;;  %v8096_v44 = vrot.slane %v8082_v34, %v20795_v8  ;;  %v18398_v28 = vld [vmem:[%s20800_s17 + $0xc2] sm:$0xff] }
 0x196   : > { %v8639_v48 = vcombine.low %v8631_v30, %v8638_v35  ;;  %v8097_v49 = vcombine.high %v8089_v36, %v8089_v36  ;;  %v8640_v50 = vcombine.low %v8081_v23, %v8089_v36  ;;  %v6734_v51 = vrot.slane %v18315_v24, %v20795_v8  ;;  %v21870_v30 = vpop.f32.mrf.mxu1 }
 0x197   : > { %19718 = vmatmul.mubr.msk.f32.gmra.mxu0 %vm2095_vm1, %v7256_v40  ;;  %v7272_v42 = vrot.slane %v7258_v41, %v20795_v8  ;;  %v6741_v53 = vrot.slane %v6727_v38, %v20795_v8  ;;  %v8098_v54 = vcombine.high %v8096_v44, %v8096_v44  ;;  %v8113_v55 = vrot.slane %v18395_v39, %v20795_v8  ;;  %v18425_v38 = vld.sshfl [vmem:[%s20800_s17 + $0xba] sm:$0x3 pattern:$0x76325410] }
 0x198   : > { %19756 = vmatmul.mubr.msk.f32.gmra.mxu1 %vm2095_vm1, %v8639_v48  ;;  %v8641_v57 = vcombine.low %v8097_v49, %v8096_v44  ;;  %v8648_v58 = vrot.slane %v8640_v50, %v20795_v8  ;;  %v6742_v59 = vcombine.high %v6734_v51, %v6734_v51  ;;  %v7274_v60 = vcombine.low %v6726_v37, %v6734_v51 }
 0x199   : > { %v7273_v62 = vcombine.low %v7265_v43, %v7272_v42  ;;  %v8121_v63 = vcombine.high %v8113_v55, %v8113_v55  ;;  %v8657_v0 = vcombine.low %v8098_v54, %v18424_v52  ;;  %v6743_v1 = vcombine.high %v6741_v53, %v6741_v53  ;;  %v21881_v52 = vpop.f32.mrf.mxu0  ;;  %v21883_v42 = vpop.f32.mrf.mxu1 }
 0x19a   : > { %v8655_v10 = vrot.slane %v8641_v57, %v20795_v8  ;;  %v7275_v11 = vcombine.low %v6742_v59, %v6741_v53  ;;  %v7282_v12 = vrot.slane %v7274_v60, %v20795_v8  ;;  %v6758_v13 = vrot.slane %v18317_v56, %v20795_v8  ;;  %v18339_v60 = vld.sshfl [vmem:[%s20800_s17 + $0x119] sm:$0x3 pattern:$0x76325410] }
 0x19b   : > { %19720 = vmatprep.mubr.msk.f32.mxu0 %vm2095_vm1, %v7273_v62  ;;  %v8658_v14 = vcombine.low %v8113_v55, %v8121_v63  ;;  %v8665_v15 = vrot.slane %v8657_v0, %v20795_v8  ;;  %v7291_v16 = vcombine.low %v6743_v1, %v18338_v61  ;;  %v8106_v17 = vcombine.high %v18395_v39, %v18395_v39  ;;  %v18320_v61 = vld [vmem:[%s20800_s17 + $0x121] sm:$0xff] }
 0x19c   : > { %v8656_v19 = vcombine.low %v8648_v58, %v8655_v10  ;;  %v7289_v20 = vrot.slane %v7275_v11, %v20795_v8  ;;  %v6766_v21 = vcombine.high %v6758_v13, %v6758_v13  ;;  %v8130_v22 = vrot.slane %v18396_v6, %v20795_v8 }
 0x19d   : > { %v8672_v4 = vrot.slane %v8658_v14, %v20795_v8  ;;  %v7299_v23 = vrot.slane %v7291_v16, %v20795_v8  ;;  %v8120_v24 = vrot.slane %v8106_v17, %v20795_v8  ;;  %v6751_v27 = vcombine.high %v18317_v56, %v18317_v56  ;;  %v18399_v14 = vld [vmem:[%s20800_s17 + $0xca] sm:$0xff]  ;;  %v21898_v16 = vpop.f32.mrf.mxu1 }
 0x19e   : > { %19758 = vmatprep.mubr.msk.f32.mxu1 %vm2095_vm1, %v8656_v19  ;;  %v7290_v32 = vcombine.low %v7282_v12, %v7289_v20  ;;  %v7292_v5 = vcombine.low %v6758_v13, %v6766_v21  ;;  %v8138_v33 = vcombine.high %v8130_v22, %v8130_v22  ;;  %v6775_v34 = vrot.slane %v18318_v18, %v20795_v8  ;;  %v18321_v21 = vld [vmem:[%s20800_s17 + $0x129] sm:$0xff] }
 0x19f   : > { %v8673_v35 = vcombine.low %v8665_v15, %v8672_v4  ;;  %v8122_v36 = vcombine.high %v8120_v24, %v8120_v24  ;;  %v6765_v37 = vrot.slane %v6751_v27, %v20795_v8  ;;  %v8123_v39 = vcombine.high %v18396_v6, %v18396_v6  ;;  %v21896_v15 = vpop.f32.mrf.mxu0 }
 0x1a0   : > { %19721 = vmatmul.mubr.msk.f32.gmra.mxu0 %vm2095_vm1, %v7290_v32  ;;  %v7306_v40 = vrot.slane %v7292_v5, %v20795_v8  ;;  %v8675_v41 = vcombine.low %v8130_v22, %v8138_v33  ;;  %v6783_v43 = vcombine.high %v6775_v34, %v6775_v34  ;;  %v8154_v44 = vrot.slane %v18398_v28, %v20795_v8 }
 0x1a1   : > { %19759 = vmatmul.mubr.msk.f32.gmra.mxu1 %vm2095_vm1, %v8673_v35  ;;  %v8674_v48 = vcombine.low %v8120_v24, %v8122_v36  ;;  %v6767_v49 = vcombine.high %v6765_v37, %v6765_v37  ;;  %v8137_v50 = vrot.slane %v8123_v39, %v20795_v8  ;;  %v6768_v51 = vcombine.high %v18318_v18, %v18318_v18  ;;  %v21913_v39 = vpop.f32.mrf.mxu1 }
 0x1a2   : > { %v7307_v53 = vcombine.low %v7299_v23, %v7306_v40  ;;  %v8689_v54 = vrot.slane %v8675_v41, %v20795_v8  ;;  %v7309_v55 = vcombine.low %v6775_v34, %v6783_v43  ;;  %v8692_v56 = vcombine.low %v18425_v38, %v8154_v44  ;;  %v21911_v38 = vpop.f32.mrf.mxu0 }
 0x1a3   : > { %v8682_v57 = vrot.slane %v8674_v48, %v20795_v8  ;;  %v7308_v58 = vcombine.low %v6765_v37, %v6767_v49  ;;  %v8139_v59 = vcombine.high %v8137_v50, %v8137_v50  ;;  %v6782_v62 = vrot.slane %v6768_v51, %v20795_v8  ;;  %v18401_v37 = vld [vmem:[%s20800_s17 + $0xda] sm:$0xff] }
 0x1a4   : > { %19723 = vmatprep.mubr.msk.f32.mxu0 %vm2095_vm1, %v7307_v53  ;;  %v7323_v63 = vrot.slane %v7309_v55, %v20795_v8  ;;  %v8706_v0 = vrot.slane %v8692_v56, %v20795_v8  ;;  %v6799_v1 = vrot.slane %v18320_v61, %v20795_v8  ;;  %v8147_v6 = vcombine.high %v18398_v28, %v18398_v28 }
 0x1a5   : > { %v8690_v10 = vcombine.low %v8682_v57, %v8689_v54  ;;  %v7316_v11 = vrot.slane %v7308_v58, %v20795_v8  ;;  %v8691_v12 = vcombine.low %v8137_v50, %v8139_v59  ;;  %v6784_v13 = vcombine.high %v6782_v62, %v6782_v62  ;;  %v18426_v59 = vld.sshfl [vmem:[%s20800_s17 + $0xd2] sm:$0x3 pattern:$0x76325410] }
 0x1a6   : > { %v7326_v17 = vcombine.low %v18339_v60, %v6799_v1  ;;  %v8161_v18 = vrot.slane %v8147_v6, %v20795_v8  ;;  %v8162_v19 = vcombine.high %v8154_v44, %v8154_v44  ;;  %v8171_v20 = vrot.slane %v18399_v14, %v20795_v8 }
 0x1a7   : > { %19761 = vmatprep.mubr.msk.f32.mxu1 %vm2095_vm1, %v8690_v10  ;;  %v7324_v22 = vcombine.low %v7316_v11, %v7323_v63  ;;  %v8699_v4 = vrot.slane %v8691_v12, %v20795_v8  ;;  %v7325_v23 = vcombine.low %v6782_v62, %v6784_v13  ;;  %v6792_v24 = vcombine.high %v18320_v61, %v18320_v61  ;;  %v18323_v62 = vld [vmem:[%s20800_s17 + $0x139] sm:$0xff]  ;;  %v21925_v63 = vpop.f32.mrf.mxu0  ;;  %v18340_v11 = vld.sshfl [vmem:[%s20800_s17 + $0x131] sm:$0x3 pattern:$0x76325410] }
 0x1a8   : > { %v7340_v27 = vrot.slane %v7326_v17, %v20795_v8  ;;  %v8163_v28 = vcombine.high %v8161_v18, %v8161_v18  ;;  %v8708_v32 = vcombine.low %v8162_v19, %v8161_v18  ;;  %v6807_v5 = vcombine.high %v6799_v1, %v6799_v1 }
 0x1a9   : > { %19724 = vmatmul.mubr.msk.f32.gmra.mxu0 %vm2095_vm1, %v7324_v22  ;;  %v8707_v33 = vcombine.low %v8699_v4, %v8706_v0  ;;  %v7333_v34 = vrot.slane %v7325_v23, %v20795_v8  ;;  %v6806_v35 = vrot.slane %v6792_v24, %v20795_v8  ;;  %v6816_v36 = vrot.slane %v18321_v21, %v20795_v8  ;;  %v21927_v0 = vpop.f32.mrf.mxu1  ;;  %v18402_v4 = vld [vmem:[%s20800_s17 + $0xe2] sm:$0xff] }
 0x1aa   : > { %v8709_v40 = vcombine.low %v8163_v28, %v8171_v20  ;;  %v8716_v41 = vrot.slane %v8708_v32, %v20795_v8  ;;  %v8164_v43 = vcombine.high %v18399_v14, %v18399_v14  ;;  %v8179_v44 = vcombine.high %v8171_v20, %v8171_v20  ;;  %v21936_v32 = vpop.f32.mrf.mxu0 }
 0x1ab   : > { %19762 = vmatmul.mubr.msk.f32.gmra.mxu1 %vm2095_vm1, %v8707_v33  ;;  %v7341_v48 = vcombine.low %v7333_v34, %v7340_v27  ;;  %v6808_v49 = vcombine.high %v6806_v35, %v6806_v35  ;;  %v7342_v50 = vcombine.low %v6807_v5, %v6806_v35  ;;  %v6809_v51 = vcombine.high %v18321_v21, %v18321_v21  ;;  %v21938_v5 = vpop.f32.mrf.mxu1 }
 0x1ac   : > { %v8723_v53 = vrot.slane %v8709_v40, %v20795_v8  ;;  %v8178_v54 = vrot.slane %v8164_v43, %v20795_v8  ;;  %v6824_v55 = vcombine.high %v6816_v36, %v6816_v36  ;;  %v8188_v56 = vcombine.high %v18401_v37, %v18401_v37 }
 0x1ad   : > { %19726 = vmatprep.mubr.msk.f32.mxu0 %vm2095_vm1, %v7341_v48  ;;  %v7343_v57 = vcombine.low %v6808_v49, %v6816_v36  ;;  %v7350_v58 = vrot.slane %v7342_v50, %v20795_v8  ;;  %v6823_v60 = vrot.slane %v6809_v51, %v20795_v8  ;;  %v8195_v61 = vrot.slane %v18401_v37, %v20795_v8  ;;  %v18324_v37 = vld [vmem:[%s20800_s17 + $0x141] sm:$0xff] }
 0x1ae   : > { %v8724_v1 = vcombine.low %v8716_v41, %v8723_v53  ;;  %v8180_v6 = vcombine.high %v8178_v54, %v8178_v54  ;;  %v8725_v10 = vcombine.low %v8179_v44, %v8178_v54  ;;  %v8202_v12 = vrot.slane %v8188_v56, %v20795_v8  ;;  %v18404_v53 = vld [vmem:[%s20800_s17 + $0xf2] sm:$0xff] }
 0x1af   : > { %v7357_v13 = vrot.slane %v7343_v57, %v20795_v8  ;;  %v6825_v14 = vcombine.high %v6823_v60, %v6823_v60  ;;  %v7359_v17 = vcombine.low %v6824_v55, %v6823_v60  ;;  %v8203_v18 = vcombine.high %v8195_v61, %v8195_v61 }
 0x1b0   : > { %19764 = vmatprep.mubr.msk.f32.mxu1 %vm2095_vm1, %v8724_v1  ;;  %v8726_v19 = vcombine.low %v8180_v6, %v18426_v59  ;;  %v8733_v20 = vrot.slane %v8725_v10, %v20795_v8  ;;  %v8204_v21 = vcombine.high %v8202_v12, %v8202_v12  ;;  %v6833_v22 = vcombine.high %v18323_v62, %v18323_v62  ;;  %v21953_v59 = vpop.f32.mrf.mxu1 }
 0x1b1   : > { %v7358_v23 = vcombine.low %v7350_v58, %v7357_v13  ;;  %v7360_v24 = vcombine.low %v6825_v14, %v18340_v11  ;;  %v7367_v27 = vrot.slane %v7359_v17, %v20795_v8  ;;  %v8742_v28 = vcombine.low %v8195_v61, %v8203_v18  ;;  %v21951_v58 = vpop.f32.mrf.mxu0 }
 0x1b2   : > { %v8740_v33 = vrot.slane %v8726_v19, %v20795_v8  ;;  %v8743_v34 = vcombine.low %v8202_v12, %v8204_v21  ;;  %v6840_v35 = vrot.slane %v18323_v62, %v20795_v8  ;;  %v6847_v36 = vrot.slane %v6833_v22, %v20795_v8  ;;  %v18427_v12 = vld.sshfl [vmem:[%s20800_s17 + $0xea] sm:$0x3 pattern:$0x76325410] }
 0x1b3   : > { %19727 = vmatmul.mubr.msk.f32.gmra.mxu0 %vm2095_vm1, %v7358_v23  ;;  %v7374_v40 = vrot.slane %v7360_v24, %v20795_v8  ;;  %v8750_v41 = vrot.slane %v8742_v28, %v20795_v8  ;;  %v8205_v43 = vcombine.high %v18402_v4, %v18402_v4  ;;  %v8212_v44 = vrot.slane %v18402_v4, %v20795_v8  ;;  %v21967_v24 = vpop.f32.mrf.mxu0 }
 0x1b4   : > { %v8741_v48 = vcombine.low %v8733_v20, %v8740_v33  ;;  %v8757_v49 = vrot.slane %v8743_v34, %v20795_v8  ;;  %v6848_v50 = vcombine.high %v6840_v35, %v6840_v35  ;;  %v6849_v51 = vcombine.high %v6847_v36, %v6847_v36  ;;  %v18326_v20 = vld [vmem:[%s20800_s17 + $0x151] sm:$0xff] }
 0x1b5   : > { %v7375_v54 = vcombine.low %v7367_v27, %v7374_v40  ;;  %v8219_v55 = vrot.slane %v8205_v43, %v20795_v8  ;;  %v8220_v56 = vcombine.high %v8212_v44, %v8212_v44  ;;  %v6850_v57 = vcombine.high %v18324_v37, %v18324_v37  ;;  %v21969_v27 = vpop.f32.mrf.mxu1  ;;  %v18341_v40 = vld.sshfl [vmem:[%s20800_s17 + $0x149] sm:$0x3 pattern:$0x76325410] }
 0x1b6   : > { %19765 = vmatmul.mubr.msk.f32.gmra.mxu1 %vm2095_vm1, %v8741_v48  ;;  %v8758_v60 = vcombine.low %v8750_v41, %v8757_v49  ;;  %v7376_v61 = vcombine.low %v6840_v35, %v6848_v50  ;;  %v7377_v62 = vcombine.low %v6847_v36, %v6849_v51  ;;  %v6857_v1 = vrot.slane %v18324_v37, %v20795_v8 }
 0x1b7   : > { %19729 = vmatprep.mubr.msk.f32.mxu0 %vm2095_vm1, %v7375_v54  ;;  %v8221_v6 = vcombine.high %v8219_v55, %v8219_v55  ;;  %v8759_v10 = vcombine.low %v8212_v44, %v8220_v56  ;;  %v6864_v11 = vrot.slane %v6850_v57, %v20795_v8  ;;  %v8229_v13 = vcombine.high %v18404_v53, %v18404_v53  ;;  %v18405_v44 = vld [vmem:[%s20800_s17 + $0xfa] sm:$0xff] }
 0x1b8   : > { %19767 = vmatprep.mubr.msk.f32.mxu1 %vm2095_vm1, %v8758_v60  ;;  %v7384_v14 = vrot.slane %v7376_v61, %v20795_v8  ;;  %v7391_v17 = vrot.slane %v7377_v62, %v20795_v8  ;;  %v6865_v18 = vcombine.high %v6857_v1, %v6857_v1  ;;  %v8236_v19 = vrot.slane %v18404_v53, %v20795_v8  ;;  %v18327_v53 = vld [vmem:[%s20800_s17 + $0x159] sm:$0xff]  ;;  %v21981_v60 = vpop.f32.mrf.mxu0  ;;  %v21983_v61 = vpop.f32.mrf.mxu1 }
 0x1b9   : > { %v8760_v21 = vcombine.low %v8219_v55, %v8221_v6  ;;  %v8767_v22 = vrot.slane %v8759_v10, %v20795_v8  ;;  %v6866_v4 = vcombine.high %v6864_v11, %v6864_v11  ;;  %v8243_v23 = vrot.slane %v8229_v13, %v20795_v8 }
 0x1ba   : > { %v7392_v28 = vcombine.low %v7384_v14, %v7391_v17  ;;  %v7393_v33 = vcombine.low %v6857_v1, %v6865_v18  ;;  %v8244_v34 = vcombine.high %v8236_v19, %v8236_v19  ;;  %v8776_v35 = vcombine.low %v18427_v12, %v8236_v19  ;;  %v18407_v17 = vld [vmem:[%s20800_s17 + $0x10a] sm:$0xff] }
 0x1bb   : > { %v8774_v36 = vrot.slane %v8760_v21, %v20795_v8  ;;  %v7394_v37 = vcombine.low %v6864_v11, %v6866_v4  ;;  %v6874_v41 = vcombine.high %v18326_v20, %v18326_v20  ;;  %v6881_v43 = vrot.slane %v18326_v20, %v20795_v8 }
 0x1bc   : > { %19730 = vmatmul.mubr.msk.f32.gmra.mxu0 %vm2095_vm1, %v7392_v28  ;;  %v7401_v48 = vrot.slane %v7393_v33, %v20795_v8  ;;  %v8777_v49 = vcombine.low %v8244_v34, %v8243_v23  ;;  %v8784_v50 = vrot.slane %v8776_v35, %v20795_v8  ;;  %v8245_v51 = vcombine.high %v8243_v23, %v8243_v23  ;;  %v18428_v33 = vld.sshfl [vmem:[%s20800_s17 + $0x102] sm:$0x3 pattern:$0x76325410]  ;;  %v21996_v34 = vpop.f32.mrf.mxu0  ;;  %v21998_v35 = vpop.f32.mrf.mxu1 }
 0x1bd   : > { %v8775_v54 = vcombine.low %v8767_v22, %v8774_v36  ;;  %v7408_v55 = vrot.slane %v7394_v37, %v20795_v8  ;;  %v6888_v56 = vrot.slane %v6874_v41, %v20795_v8  ;;  %v6889_v57 = vcombine.high %v6881_v43, %v6881_v43  ;;  %v18408_v41 = vld [vmem:[%s20800_s17 + $0x112] sm:$0xff] }
 0x1be   : > { %v8791_v62 = vrot.slane %v8777_v49, %v20795_v8  ;;  %v7410_v1 = vcombine.low %v18341_v40, %v6881_v43  ;;  %v8246_v6 = vcombine.high %v18405_v44, %v18405_v44  ;;  %v8253_v10 = vrot.slane %v18405_v44, %v20795_v8 }
 0x1bf   : > { %19768 = vmatmul.mubr.msk.f32.gmra.mxu1 %vm2095_vm1, %v8775_v54  ;;  %v7409_v11 = vcombine.low %v7401_v48, %v7408_v55  ;;  %v7411_v12 = vcombine.low %v6889_v57, %v6888_v56  ;;  %v6890_v13 = vcombine.high %v6888_v56, %v6888_v56  ;;  %v6891_v14 = vcombine.high %v18327_v53, %v18327_v53 }
 0x1c0   : > { %v8792_v18 = vcombine.low %v8784_v50, %v8791_v62  ;;  %v7418_v19 = vrot.slane %v7410_v1, %v20795_v8  ;;  %v8260_v20 = vrot.slane %v8246_v6, %v20795_v8  ;;  %v8261_v21 = vcombine.high %v8253_v10, %v8253_v10 }
 0x1c1   : > { %19732 = vmatprep.mubr.msk.f32.mxu0 %vm2095_vm1, %v7409_v11  ;;  %v7425_v22 = vrot.slane %v7411_v12, %v20795_v8  ;;  %v8793_v4 = vcombine.low %v8245_v51, %v8253_v10  ;;  %v6898_v23 = vrot.slane %v18327_v53, %v20795_v8  ;;  %v6905_v28 = vrot.slane %v6891_v14, %v20795_v8  ;;  %v18342_v51 = vld.sshfl [vmem:[%s20800_s17 + $0x161] sm:$0x3 pattern:$0x76325410]  ;;  %v18467_v10 = vld [vmem:[%s20800_s17 + $0x30] sm:$0xff]  ;;  %v22011_v11 = vpop.f32.mrf.mxu0  ;;  %v22013_v12 = vpop.f32.mrf.mxu1 }
 0x1c2   : > { %19770 = vmatprep.mubr.msk.f32.mxu1 %vm2095_vm1, %v8792_v18  ;;  %v8794_v36 = vcombine.low %v8261_v21, %v8260_v20  ;;  %v8262_v37 = vcombine.high %v8260_v20, %v8260_v20  ;;  %v8277_v40 = vrot.slane %v18407_v17, %v20795_v8  ;;  %v8270_v43 = vcombine.high %v18407_v17, %v18407_v17 }
 0x1c3   : > { %v7426_v44 = vcombine.low %v7418_v19, %v7425_v22  ;;  %v8801_v48 = vrot.slane %v8793_v4, %v20795_v8  ;;  %v6906_v49 = vcombine.high %v6898_v23, %v6898_v23  ;;  %v7427_v50 = vcombine.low %v6890_v13, %v6898_v23  ;;  %v18429_v22 = vld.sshfl [vmem:[%s20800_s17 + $0x11a] sm:$0x3 pattern:$0x76325410]  ;;  %v18410_v4 = vld [vmem:[%s20800_s17 + $0x122] sm:$0xff] }
 0x1c4   : > { %v8808_v53 = vrot.slane %v8794_v36, %v20795_v8  ;;  %v8285_v54 = vcombine.high %v8277_v40, %v8277_v40  ;;  %v8810_v55 = vcombine.low %v8262_v37, %v18428_v33  ;;  %v6907_v56 = vcombine.high %v6905_v28, %v6905_v28 }
 0x1c5   : > { %19733 = vmatmul.mubr.msk.f32.gmra.mxu0 %vm2095_vm1, %v7426_v44  ;;  %v7428_v57 = vcombine.low %v6906_v49, %v6905_v28  ;;  %v7435_v62 = vrot.slane %v7427_v50, %v20795_v8  ;;  %v8284_v1 = vrot.slane %v8270_v43, %v20795_v8  ;;  %v8294_v6 = vrot.slane %v18408_v41, %v20795_v8  ;;  %v22024_v49 = vpop.f32.mrf.mxu0  ;;  %v22026_v50 = vpop.f32.mrf.mxu1 }
 0x1c6   : > { %v8809_v13 = vcombine.low %v8801_v48, %v8808_v53  ;;  %v8811_v14 = vcombine.low %v8277_v40, %v8285_v54  ;;  %v8818_v17 = vrot.slane %v8810_v55, %v20795_v8  ;;  %v7444_v18 = vcombine.low %v6907_v56, %v18342_v51  ;;  %24897 = vst [vmem:[#allocation11_spill] sm:$0xff] %v22024_v49 }
 0x1c7   : > { %v7442_v19 = vrot.slane %v7428_v57, %v20795_v8  ;;  %v8286_v20 = vcombine.high %v8284_v1, %v8284_v1  ;;  %v8302_v21 = vcombine.high %v8294_v6, %v8294_v6  ;;  %v8287_v23 = vcombine.high %v18408_v41, %v18408_v41 }
 0x1c8   : > { %19771 = vmatmul.mubr.msk.f32.gmra.mxu1 %vm2095_vm1, %v8809_v13  ;;  %v8825_v28 = vrot.slane %v8811_v14, %v20795_v8  ;;  %v7451_v33 = vrot.slane %v7444_v18, %v20795_v8  ;;  %v8318_v36 = vrot.slane %v18410_v4, %v20795_v8  ;;  %v9382_v37 = vcombine.high %v18467_v10, %v18467_v10 }
 0x1c9   : > { %v7443_v40 = vcombine.low %v7435_v62, %v7442_v19  ;;  %v8827_v43 = vcombine.low %v8284_v1, %v8286_v20  ;;  %v8828_v44 = vcombine.low %v8294_v6, %v8302_v21  ;;  %v8301_v48 = vrot.slane %v8287_v23, %v20795_v8  ;;  %v18411_v62 = vld [vmem:[%s20800_s17 + $0x12a] sm:$0xff]  ;;  %v18468_v6 = vld [vmem:[%s20800_s17 + $0x38] sm:$0xff]  ;;  %v22039_v21 = vpop.f32.mrf.mxu0 }
 0x1ca   : > { %v8826_v41 = vcombine.low %v8818_v17, %v8825_v28  ;;  %v8845_v51 = vcombine.low %v18429_v22, %v8318_v36  ;;  %v9389_v53 = vrot.slane %v18467_v10, %v20795_v8  ;;  %v9396_v54 = vrot.slane %v9382_v37, %v20795_v8  ;;  %24898 = vst [vmem:[#allocation12_spill] sm:$0xff] %v22039_v21  ;;  %v22041_v22 = vpop.f32.mrf.mxu1 }
 0x1cb   : > { %19735 = vmatprep.mubr.msk.f32.mxu0 %vm2095_vm1, %v7443_v40  ;;  %v8835_v55 = vrot.slane %v8827_v43, %v20795_v8  ;;  %v8842_v56 = vrot.slane %v8828_v44, %v20795_v8  ;;  %v8303_v57 = vcombine.high %v8301_v48, %v8301_v48  ;;  %v8311_v1 = vcombine.high %v18410_v4, %v18410_v4 }
 0x1cc   : > { %19773 = vmatprep.mubr.msk.f32.mxu1 %vm2095_vm1, %v8826_v41  ;;  %19736 = vmatmul.mubr.msk.f32.gmra.mxu0 %vm2095_vm1, %v7451_v33  ;;  %v8859_v13 = vrot.slane %v8845_v51, %v20795_v8  ;;  %v9397_v14 = vcombine.high %v9389_v53, %v9389_v53  ;;  %v9398_v10 = vcombine.high %v9396_v54, %v9396_v54 }
 0x1cd   : > { %v8843_v17 = vcombine.low %v8835_v55, %v8842_v56  ;;  %v8844_v18 = vcombine.low %v8301_v48, %v8303_v57  ;;  %v8325_v19 = vrot.slane %v8311_v1, %v20795_v8  ;;  %v8326_v20 = vcombine.high %v8318_v36, %v8318_v36  ;;  %v18413_v1 = vld [vmem:[%s20800_s17 + $0x13a] sm:$0xff] }
 0x1ce   : > { %v9958_v4 = vcombine.low %v9389_v53, %v9397_v14  ;;  %v9959_v23 = vcombine.low %v9396_v54, %v9398_v10  ;;  %v8335_v28 = vrot.slane %v18411_v62, %v20795_v8  ;;  %v9399_v33 = vcombine.high %v18468_v6, %v18468_v6  ;;  %v18470_v53 = vld [vmem:[%s20800_s17 + $0x48] sm:$0xff]  ;;  %v22053_v14 = vpop.f32.mrf.mxu0  ;;  %v22055_v10 = vpop.f32.mrf.mxu1 }
 0x1cf   : > { %19774 = vmatmul.mubr.msk.f32.gmra.mxu1 %vm2095_vm1, %v8843_v17  ;;  %v8852_v37 = vrot.slane %v8844_v18, %v20795_v8  ;;  %v8327_v40 = vcombine.high %v8325_v19, %v8325_v19  ;;  %v8861_v43 = vcombine.low %v8326_v20, %v8325_v19  ;;  %v9406_v36 = vrot.slane %v18468_v6, %v20795_v8  ;;  %v18430_v18 = vld.sshfl [vmem:[%s20800_s17 + $0x132] sm:$0x3 pattern:$0x76325410] }
 0x1d0   : > { %v9966_v44 = vrot.slane %v9958_v4, %v20795_v8  ;;  %v9973_v48 = vrot.slane %v9959_v23, %v20795_v8  ;;  %v9413_v41 = vrot.slane %v9399_v33, %v20795_v8  ;;  %v8328_v51 = vcombine.high %v18411_v62, %v18411_v62  ;;  %24899 = vst [vmem:[#allocation13_spill] sm:$0xff] %v22053_v14  ;;  %v18509_v4 = vld.sshfl [vmem:[%s20800_s17 + $0x40] sm:$0x3 pattern:$0x76325410] }
 0x1d1   : > { %v8860_v54 = vcombine.low %v8852_v37, %v8859_v13  ;;  %v8862_v55 = vcombine.low %v8327_v40, %v8335_v28  ;;  %v8869_v56 = vrot.slane %v8861_v43, %v20795_v8  ;;  %v9414_v57 = vcombine.high %v9406_v36, %v9406_v36  ;;  %v18417_v14 = vld [vmem:[%s20800_s17 + $0x15a] sm:$0xff] }
 0x1d2   : > { %v9974_v6 = vcombine.low %v9966_v44, %v9973_v48  ;;  %v9415_v17 = vcombine.high %v9413_v41, %v9413_v41  ;;  %v8342_v19 = vrot.slane %v8328_v51, %v20795_v8  ;;  %v8343_v20 = vcombine.high %v8335_v28, %v8335_v28 }
 0x1d3   : > { %19776 = vmatprep.mubr.msk.f32.mxu1 %vm2095_vm1, %v8860_v54  ;;  %v8876_v62 = vrot.slane %v8862_v55, %v20795_v8  ;;  %v9975_v13 = vcombine.low %v9406_v36, %v9414_v57  ;;  %v9423_v23 = vcombine.high %v18470_v53, %v18470_v53  ;;  %v9430_v33 = vrot.slane %v18470_v53, %v20795_v8  ;;  %v22067_v55 = vpop.f32.mrf.mxu0  ;;  %v22069_v36 = vpop.f32.mrf.mxu1 }
 0x1d4   : > { %19790 = vmatprep.mubr.msk.f32.mxu0 %vm2095_vm1, %v9974_v6  ;;  %v9976_v37 = vcombine.low %v9413_v41, %v9415_v17  ;;  %v8344_v40 = vcombine.high %v8342_v19, %v8342_v19  ;;  %v8878_v43 = vcombine.low %v8343_v20, %v8342_v19  ;;  %v8352_v44 = vcombine.high %v18413_v1, %v18413_v1 }
 0x1d5   : > { %v8877_v48 = vcombine.low %v8869_v56, %v8876_v62  ;;  %v9983_v28 = vrot.slane %v9975_v13, %v20795_v8  ;;  %v9437_v51 = vrot.slane %v9423_v23, %v20795_v8  ;;  %v9438_v54 = vcombine.high %v9430_v33, %v9430_v33  ;;  %24900 = vst [vmem:[#allocation14_spill] sm:$0xff] %v22067_v55  ;;  %v18414_v62 = vld [vmem:[%s20800_s17 + $0x142] sm:$0xff] }
 0x1d6   : > { %v9990_v53 = vrot.slane %v9976_v37, %v20795_v8  ;;  %v8879_v57 = vcombine.low %v8344_v40, %v18430_v18  ;;  %v8886_v41 = vrot.slane %v8878_v43, %v20795_v8  ;;  %v9992_v6 = vcombine.low %v18509_v4, %v9430_v33  ;;  %v22081_v43 = vpop.f32.mrf.mxu0 }
 0x1d7   : > { %19777 = vmatmul.mubr.msk.f32.gmra.mxu1 %vm2095_vm1, %v8877_v48  ;;  %v9993_v56 = vcombine.low %v9438_v54, %v9437_v51  ;;  %v8359_v17 = vrot.slane %v18413_v1, %v20795_v8  ;;  %v8366_v19 = vrot.slane %v8352_v44, %v20795_v8  ;;  %v9439_v20 = vcombine.high %v9437_v51, %v9437_v51  ;;  %v22083_v1 = vpop.f32.mrf.mxu1  ;;  %v18473_v54 = vld [vmem:[%s20800_s17 + $0x60] sm:$0xff] }
 0x1d8   : > { %v9991_v13 = vcombine.low %v9983_v28, %v9990_v53  ;;  %v8893_v23 = vrot.slane %v8879_v57, %v20795_v8  ;;  %v10000_v26 = vrot.slane %v9992_v6, %v20795_v8  ;;  %v9440_v37 = vcombine.high %v18471_v31, %v18471_v31  ;;  %24901 = vst [vmem:[#allocation15_spill] sm:$0xff] %v22081_v43  ;;  %v20597_v53 = vld [vmem:[%s24882_s1 + $0x20] sm:$0xf] }
 0x1d9   : > { %v10007_v18 = vrot.slane %v9993_v56, %v20795_v8  ;;  %v8367_v40 = vcombine.high %v8359_v17, %v8359_v17  ;;  %v8368_v4 = vcombine.high %v8366_v19, %v8366_v19  ;;  %v9447_v33 = vrot.slane %v18471_v31, %v20795_v8  ;;  %24902 = vst [vmem:[#allocation16_spill] sm:$0xff] %v22083_v1 }
 0x1da   : > { %19791 = vmatmul.mubr.msk.f32.vlgmr.msra.gmra.mxu0 %vm2095_vm1, %v9991_v13  ;;  %v8894_v44 = vcombine.low %v8886_v41, %v8893_v23  ;;  %v9454_v48 = vrot.slane %v9440_v37, %v20795_v8  ;;  %v8369_v28 = vcombine.high %v18414_v62, %v18414_v62  ;;  %v8376_v51 = vrot.slane %v18414_v62, %v20795_v8  ;;  %v18416_v62 = vld [vmem:[%s20800_s17 + $0x152] sm:$0xff] }
 0x1db   : > { %19889 = vmatpush3.msk.msra.mxu0 %vm2160_vm0, %v20597_v53  ;;  %v10008_v31 = vcombine.low %v10000_v26, %v10007_v18  ;;  %v8895_v57 = vcombine.low %v8359_v17, %v8367_v40  ;;  %v8896_v6 = vcombine.low %v8366_v19, %v8368_v4  ;;  %v9455_v56 = vcombine.high %v9447_v33, %v9447_v33  ;;  %v22101_v18 = vpop.f32.mrf.mxu0 }
 0x1dc   : > { %19779 = vmatprep.mubr.msk.f32.mxu1 %vm2095_vm1, %v8894_v44  ;;  %v10009_v41 = vcombine.low %v9439_v20, %v9447_v33  ;;  %v8383_v13 = vrot.slane %v8369_v28, %v20795_v8  ;;  %v8384_v23 = vcombine.high %v8376_v51, %v8376_v51  ;;  %v9456_v37 = vcombine.high %v9454_v48, %v9454_v48  ;;  %v22103_v20 = vpop.f32.mrf.mxu1 }
 0x1dd   : > { %19793 = vmatprep.mubr.msk.f32.mxu0 %vm2095_vm1, %v10008_v31  ;;  %v8903_v47 = vrot.slane %v8895_v57, %v20795_v8  ;;  %v8910_v26 = vrot.slane %v8896_v6, %v20795_v8  ;;  %v10010_v17 = vcombine.low %v9455_v56, %v9454_v48  ;;  %v9471_v19 = vrot.slane %v18473_v54, %v20795_v8  ;;  %v18431_v57 = vld.sshfl [vmem:[%s20800_s17 + $0x14a] sm:$0x3 pattern:$0x76325410] }
 0x1de   : > { %24903 = vst [vmem:[#allocation17_spill] sm:$0xff] %v22101_v18  ;;  %24904 = vst [vmem:[#allocation18_spill] sm:$0xff] %v22103_v20  ;;  %v10017_v40 = vrot.slane %v10009_v41, %v20795_v8  ;;  %v8385_v4 = vcombine.high %v8383_v13, %v8383_v13  ;;  %v8912_v33 = vcombine.low %v8376_v51, %v8384_v23  ;;  %v18474_v6 = vld [vmem:[%s20800_s17 + $0x68] sm:$0xff]  ;;  %v22115_v23 = vpop.f32.mrf.mxu0  ;;  %v18557_v20 = vld [vmem:[%s20800_s17 + $0x31] sm:$0xff] }
 0x1df   : > { %v10026_v44 = vcombine.low %v9456_v37, %v18510_v3  ;;  %v8911_v28 = vcombine.low %v8903_v47, %v8910_v26  ;;  %v10024_v53 = vrot.slane %v10010_v17, %v20795_v8  ;;  %v9479_v31 = vcombine.high %v9471_v19, %v9471_v19  ;;  %24905 = vst [vmem:[#allocation19_spill] sm:$0xff] %v22115_v23  ;;  %v22117_v37 = vpop.f32.mrf.mxu1 }
 0x1e0   : > { %v8393_v43 = vcombine.high %v18416_v62, %v18416_v62  ;;  %v8913_v48 = vcombine.low %v8383_v13, %v8385_v4  ;;  %v8920_v56 = vrot.slane %v8912_v33, %v20795_v8  ;;  %v8400_v55 = vrot.slane %v18416_v62, %v20795_v8  ;;  %24906 = vst [vmem:[#allocation20_spill] sm:$0xff] %v22117_v37  ;;  %v22129_v23 = vpop.f32.mrf.mxu0  ;;  %v18477_v37 = vld [vmem:[%s20800_s17 + $0x80] sm:$0xff] }
 0x1e1   : > { %v10034_v18 = vrot.slane %v10026_v44, %v20795_v8  ;;  %19780 = vmatmul.mubr.msk.f32.gmra.mxu1 %vm2095_vm1, %v8911_v28  ;;  %v10025_v41 = vcombine.low %v10017_v40, %v10024_v53  ;;  %v10027_v51 = vcombine.low %v9471_v19, %v9479_v31  ;;  %v9464_v3 = vcombine.high %v18473_v54, %v18473_v54 }
 0x1e2   : > { %v8407_v47 = vrot.slane %v8393_v43, %v20795_v8  ;;  %v8927_v13 = vrot.slane %v8913_v48, %v20795_v8  ;;  %v8408_v26 = vcombine.high %v8400_v55, %v8400_v55  ;;  %v8929_v17 = vcombine.low %v18431_v57, %v8400_v55  ;;  %v18511_v48 = vld.sshfl [vmem:[%s20800_s17 + $0x70] sm:$0x3 pattern:$0x76325410]  ;;  %24907 = vst [vmem:[#allocation21_spill] sm:$0xff] %v22129_v23 }
 0x1e3   : > { %v9488_v62 = vrot.slane %v18474_v6, %v20795_v8  ;;  %19794 = vmatmul.mubr.msk.f32.gmra.mxu0 %vm2095_vm1, %v10025_v41  ;;  %v10041_v40 = vrot.slane %v10027_v51, %v20795_v8  ;;  %v9478_v19 = vrot.slane %v9464_v3, %v20795_v8  ;;  %v8410_v54 = vcombine.high %v18417_v14, %v18417_v14  ;;  %v18476_v41 = vld [vmem:[%s20800_s17 + $0x78] sm:$0xff]  ;;  %v22131_v51 = vpop.f32.mrf.mxu1 }
 0x1e4   : > { %v8409_v43 = vcombine.high %v8407_v47, %v8407_v47  ;;  %v8928_v4 = vcombine.low %v8920_v56, %v8927_v13  ;;  %v8930_v33 = vcombine.low %v8408_v26, %v8407_v47  ;;  %v8937_v44 = vrot.slane %v8929_v17, %v20795_v8  ;;  %24908 = vst [vmem:[#allocation22_spill] sm:$0xff] %v22131_v51  ;;  %v18432_v13 = vld.sshfl [vmem:[%s20800_s17 + $0x162] sm:$0x3 pattern:$0x76325410] }
 0x1e5   : > { %v9496_v28 = vcombine.high %v9488_v62, %v9488_v62  ;;  %v10042_v53 = vcombine.low %v10034_v18, %v10041_v40  ;;  %v9480_v31 = vcombine.high %v9478_v19, %v9478_v19  ;;  %v8417_v55 = vrot.slane %v18417_v14, %v20795_v8 }
 0x1e6   : > { %v8424_v57 = vrot.slane %v8410_v54, %v20795_v8  ;;  %19782 = vmatprep.mubr.msk.f32.mxu1 %vm2095_vm1, %v8928_v4  ;;  %v8944_v56 = vrot.slane %v8930_v33, %v20795_v8  ;;  %v9481_v3 = vcombine.high %v18474_v6, %v18474_v6  ;;  %v9512_v18 = vrot.slane %v18476_v41, %v20795_v8 }
 0x1e7   : > { %v10044_v47 = vcombine.low %v9488_v62, %v9496_v28  ;;  %19796 = vmatprep.mubr.msk.f32.mxu0 %vm2095_vm1, %v10042_v53  ;;  %v10043_v14 = vcombine.low %v9478_v19, %v9480_v31  ;;  %v8425_v26 = vcombine.high %v8417_v55, %v8417_v55  ;;  %v8946_v17 = vcombine.low %v8409_v43, %v8417_v55  ;;  %v22144_v53 = vpop.f32.mrf.mxu0  ;;  %v22146_v19 = vpop.f32.mrf.mxu1 }
 0x1e8   : > { %v8426_v40 = vcombine.high %v8424_v57, %v8424_v57  ;;  %v8945_v54 = vcombine.low %v8937_v44, %v8944_v56  ;;  %v9495_v51 = vrot.slane %v9481_v3, %v20795_v8  ;;  %v10061_v4 = vcombine.low %v18511_v48, %v9512_v18  ;;  %24909 = vst [vmem:[#allocation23_spill] sm:$0xff] %v22144_v53 }
 0x1e9   : > { %v10058_v23 = vrot.slane %v10044_v47, %v20795_v8  ;;  %v10051_v62 = vrot.slane %v10043_v14, %v20795_v8  ;;  %v8947_v6 = vcombine.low %v8425_v26, %v8424_v57  ;;  %v8954_v33 = vrot.slane %v8946_v17, %v20795_v8  ;;  %24910 = vst [vmem:[#allocation24_spill] sm:$0xff] %v22146_v19  ;;  %v18479_v17 = vld [vmem:[%s20800_s17 + $0x90] sm:$0xff] }
 0x1ea   : > { %v8963_v28 = vcombine.low %v8426_v40, %v18432_v13  ;;  %19783 = vmatmul.mubr.msk.f32.gmra.mxu1 %vm2095_vm1, %v8945_v54  ;;  %v9497_v43 = vcombine.high %v9495_v51, %v9495_v51  ;;  %v10075_v44 = vrot.slane %v10061_v4, %v20795_v8  ;;  %v9505_v31 = vcombine.high %v18476_v41, %v18476_v41  ;;  %v22159_v54 = vpop.f32.mrf.mxu1 }
 0x1eb   : > { %v9520_v55 = vcombine.high %v9512_v18, %v9512_v18  ;;  %v10059_v48 = vcombine.low %v10051_v62, %v10058_v23  ;;  %v8961_v56 = vrot.slane %v8947_v6, %v20795_v8  ;;  %v9529_v47 = vrot.slane %v18477_v37, %v20795_v8  ;;  %v22157_v18 = vpop.f32.mrf.mxu0  ;;  %24912 = vst [vmem:[#allocation26_spill] sm:$0xff] %v22159_v54 }
 0x1ec   : > { %v8970_v57 = vrot.slane %v8963_v28, %v20795_v8  ;;  %v10060_v3 = vcombine.low %v9495_v51, %v9497_v43  ;;  %v9519_v13 = vrot.slane %v9505_v31, %v20795_v8  ;;  %v9522_v14 = vcombine.high %v18477_v37, %v18477_v37  ;;  %24911 = vst [vmem:[#allocation25_spill] sm:$0xff] %v22157_v18  ;;  %v18512_v37 = vld.sshfl [vmem:[%s20800_s17 + $0x88] sm:$0x3 pattern:$0x76325410] }
 0x1ed   : > { %v10901_v26 = vcombine.high %v18557_v20, %v18557_v20  ;;  %19797 = vmatmul.mubr.msk.f32.gmra.mxu0 %vm2095_vm1, %v10059_v48  ;;  %v8962_v40 = vcombine.low %v8954_v33, %v8961_v56  ;;  %v9537_v41 = vcombine.high %v9529_v47, %v9529_v47  ;;  %v10908_v23 = vrot.slane %v18557_v20, %v20795_v8  ;;  %v18558_v20 = vld [vmem:[%s20800_s17 + $0x39] sm:$0xff]  ;;  %v22171_v53 = vpop.f32.mrf.mxu0 }
 0x1ee   : > { %v10068_v4 = vrot.slane %v10060_v3, %v20795_v8  ;;  %v9521_v51 = vcombine.high %v9519_v13, %v9519_v13  ;;  %v10077_v62 = vcombine.low %v9520_v55, %v9519_v13  ;;  %v9536_v6 = vrot.slane %v9522_v14, %v20795_v8 }
 0x1ef   : > { %19785 = vmatprep.mubr.msk.f32.mxu1 %vm2095_vm1, %v8962_v40  ;;  %v10915_v28 = vrot.slane %v10901_v26, %v20795_v8  ;;  %v10916_v43 = vcombine.high %v10908_v23, %v10908_v23  ;;  %v9546_v33 = vcombine.high %v18479_v17, %v18479_v17  ;;  %v9553_v31 = vrot.slane %v18479_v17, %v20795_v8  ;;  %v22173_v26 = vpop.f32.mrf.mxu1  ;;  %v22185_v54 = vpop.f32.mrf.mxu0 }
 0x1f0   : > { %v10076_v48 = vcombine.low %v10068_v4, %v10075_v44  ;;  %19786 = vmatmul.mubr.msk.f32.gmra.mxu1 %vm2095_vm1, %v8970_v57  ;;  %v10078_v56 = vcombine.low %v9521_v51, %v9529_v47  ;;  %v10085_v3 = vrot.slane %v10077_v62, %v20795_v8  ;;  %v9538_v18 = vcombine.high %v9536_v6, %v9536_v6  ;;  %v18480_v62 = vld [vmem:[%s20800_s17 + $0x98] sm:$0xff] }
 0x1f1   : > { %v10094_v55 = vcombine.low %v9537_v41, %v9536_v6  ;;  %v10917_v13 = vcombine.high %v10915_v28, %v10915_v28  ;;  %v11477_v14 = vcombine.low %v10908_v23, %v10916_v43  ;;  %v9560_v40 = vrot.slane %v9546_v33, %v20795_v8  ;;  %24913 = vst [vmem:[#allocation27_spill] sm:$0xff] %v22173_v26 }
 0x1f2   : > { %19799 = vmatprep.mubr.msk.f32.mxu0 %vm2095_vm1, %v10076_v48  ;;  %v10092_v44 = vrot.slane %v10078_v56, %v20795_v8  ;;  %v10095_v57 = vcombine.low %v9538_v18, %v18512_v37  ;;  %v9561_v47 = vcombine.high %v9553_v31, %v9553_v31  ;;  %v10918_v17 = vcombine.high %v18558_v20, %v18558_v20  ;;  %v18560_v37 = vld [vmem:[%s20800_s17 + $0x49] sm:$0xff] }
 0x1f3   : > { %v10102_v4 = vrot.slane %v10094_v55, %v20795_v8  ;;  %v11478_v51 = vcombine.low %v10915_v28, %v10917_v13  ;;  %v11485_v41 = vrot.slane %v11477_v14, %v20795_v8  ;;  %v9562_v23 = vcombine.high %v9560_v40, %v9560_v40  ;;  %24914 = vst [vmem:[#allocation28_spill] sm:$0xff] %v22185_v54  ;;  %v22187_v28 = vpop.f32.mrf.mxu1  ;;  %v18561_v54 = vld [vmem:[%s20800_s17 + $0x51] sm:$0xff] }
 0x1f4   : > { %v10093_v6 = vcombine.low %v10085_v3, %v10092_v44  ;;  %v10109_v43 = vrot.slane %v10095_v57, %v20795_v8  ;;  %v10111_v33 = vcombine.low %v9553_v31, %v9561_v47  ;;  %v10925_v26 = vrot.slane %v18558_v20, %v20795_v8  ;;  %24915 = vst [vmem:[#allocation29_spill] sm:$0xff] %v22187_v28  ;;  %v18564_v28 = vld [vmem:[%s20800_s17 + $0x69] sm:$0xff] }
 0x1f5   : > { %v11492_v48 = vrot.slane %v11478_v51, %v20795_v8  ;;  %v10112_v56 = vcombine.low %v9560_v40, %v9562_v23  ;;  %v10932_v18 = vrot.slane %v10918_v17, %v20795_v8  ;;  %v9563_v13 = vcombine.high %v18480_v62, %v18480_v62  ;;  %v18599_v17 = vld.sshfl [vmem:[%s20800_s17 + $0x41] sm:$0x3 pattern:$0x76325410] }
 0x1f6   : > { %19800 = vmatmul.mubr.msk.f32.gmra.mxu0 %vm2095_vm1, %v10093_v6  ;;  %v10110_v3 = vcombine.low %v10102_v4, %v10109_v43  ;;  %v10119_v55 = vrot.slane %v10111_v33, %v20795_v8  ;;  %v10933_v31 = vcombine.high %v10925_v26, %v10925_v26  ;;  %v9570_v44 = vrot.slane %v18480_v62, %v20795_v8  ;;  %v18482_v4 = vld [vmem:[%s20800_s17 + $0xa8] sm:$0xff]  ;;  %v22199_v33 = vpop.f32.mrf.mxu1  ;;  %v22201_v62 = vpop.f32.mrf.mxu0 }
 0x1f7   : > { %v11493_v20 = vcombine.low %v11485_v41, %v11492_v48  ;;  %v10126_v14 = vrot.slane %v10112_v56, %v20795_v8  ;;  %v10934_v40 = vcombine.high %v10932_v18, %v10932_v18  ;;  %v9577_v47 = vrot.slane %v9563_v13, %v20795_v8  ;;  %24916 = vst [vmem:[#allocation30_spill] sm:$0xff] %v22199_v33 }
 0x1f8   : > { %19802 = vmatprep.mubr.msk.f32.mxu0 %vm2095_vm1, %v10110_v3  ;;  %v11494_v57 = vcombine.low %v10925_v26, %v10933_v31  ;;  %v10942_v51 = vcombine.high %v18560_v37, %v18560_v37  ;;  %v10949_v23 = vrot.slane %v18560_v37, %v20795_v8  ;;  %v9578_v43 = vcombine.high %v9570_v44, %v9570_v44 }
 0x1f9   : > { %19840 = vmatprep.mubr.msk.f32.mxu1 %vm2095_vm1, %v11493_v20  ;;  %v10127_v6 = vcombine.low %v10119_v55, %v10126_v14  ;;  %v11495_v41 = vcombine.low %v10932_v18, %v10934_v40  ;;  %24917 = vst [vmem:[#allocation31_spill] sm:$0xff] %v22201_v62  ;;  %v9579_v48 = vcombine.high %v9577_v47, %v9577_v47  ;;  %v18513_v55 = vld.sshfl [vmem:[%s20800_s17 + $0xa0] sm:$0x3 pattern:$0x76325410] }
 0x1fa   : > { %v11502_v26 = vrot.slane %v11494_v57, %v20795_v8  ;;  %v10956_v56 = vrot.slane %v10942_v51, %v20795_v8  ;;  %v10957_v3 = vcombine.high %v10949_v23, %v10949_v23  ;;  %v10128_v31 = vcombine.low %v9570_v44, %v9578_v43  ;;  %v22215_v44 = vpop.f32.mrf.mxu0  ;;  %v18483_v43 = vld [vmem:[%s20800_s17 + $0xb0] sm:$0xff] }
 0x1fb   : > { %19803 = vmatmul.mubr.msk.f32.gmra.mxu0 %vm2095_vm1, %v10127_v6  ;;  %v11509_v37 = vrot.slane %v11495_v41, %v20795_v8  ;;  %v11511_v13 = vcombine.low %v18599_v17, %v10949_v23  ;;  %v9587_v18 = vcombine.high %v18482_v4, %v18482_v4  ;;  %v10129_v20 = vcombine.low %v9577_v47, %v9579_v48  ;;  %v22213_v41 = vpop.f32.mrf.mxu1 }
 0x1fc   : > { %v11512_v14 = vcombine.low %v10957_v3, %v10956_v56  ;;  %v9594_v40 = vrot.slane %v18482_v4, %v20795_v8  ;;  %v10958_v62 = vcombine.high %v10956_v56, %v10956_v56  ;;  %v10136_v51 = vrot.slane %v10128_v31, %v20795_v8  ;;  %24918 = vst [vmem:[#allocation32_spill] sm:$0xff] %v22213_v41  ;;  %v18563_v3 = vld [vmem:[%s20800_s17 + $0x61] sm:$0xff] }
 0x1fd   : > { %v11510_v57 = vcombine.low %v11502_v26, %v11509_v37  ;;  %v11519_v33 = vrot.slane %v11511_v13, %v20795_v8  ;;  %v9601_v6 = vrot.slane %v9587_v18, %v20795_v8  ;;  %24919 = vst [vmem:[#allocation33_spill] sm:$0xff] %v22215_v44  ;;  %v10143_v17 = vrot.slane %v10129_v20, %v20795_v8 }
 0x1fe   : > { %v11526_v47 = vrot.slane %v11512_v14, %v20795_v8  ;;  %v9602_v23 = vcombine.high %v9594_v40, %v9594_v40  ;;  %v10145_v4 = vcombine.low %v18513_v55, %v9594_v40  ;;  %v10959_v26 = vcombine.high %v18561_v54, %v18561_v54  ;;  %v22225_v40 = vpop.f32.mrf.mxu1 }
 0x1ff   : > { %19841 = vmatmul.mubr.msk.f32.vlgmr.msra.gmra.mxu1 %vm2095_vm1, %v11510_v57  ;;  %v10966_v48 = vrot.slane %v18561_v54, %v20795_v8  ;;  %v9603_v56 = vcombine.high %v9601_v6, %v9601_v6  ;;  %v10144_v37 = vcombine.low %v10136_v51, %v10143_v17  ;;  %v9604_v55 = vcombine.high %v18483_v43, %v18483_v43  ;;  %v22227_v57 = vpop.f32.mrf.mxu0  ;;  %v18600_v51 = vld.sshfl [vmem:[%s20800_s17 + $0x59] sm:$0x3 pattern:$0x76325410] }
 0x200   : > { %v11527_v31 = vcombine.low %v11519_v33, %v11526_v47  ;;  %v10146_v13 = vcombine.low %v9602_v23, %v9601_v6  ;;  %v10153_v18 = vrot.slane %v10145_v4, %v20795_v8  ;;  %v10973_v20 = vrot.slane %v10959_v26, %v20795_v8  ;;  %24920 = vst [vmem:[#allocation34_spill] sm:$0xff] %v22227_v57  ;;  %v18485_v4 = vld [vmem:[%s20800_s17 + $0xc0] sm:$0xff]  ;;  %v22241_v19 = vpop.f32.mrf.mxu1 }
 0x201   : > { %v10974_v14 = vcombine.high %v10966_v48, %v10966_v48  ;;  %v11528_v44 = vcombine.low %v10958_v62, %v10966_v48  ;;  %19805 = vmatprep.mubr.msk.f32.mxu0 %vm2095_vm1, %v10144_v37  ;;  %v9611_v33 = vrot.slane %v18483_v43, %v20795_v8  ;;  %v10990_v6 = vrot.slane %v18563_v3, %v20795_v8 }
 0x202   : > { %19843 = vmatprep.mubr.msk.f32.mxu1 %vm2095_vm1, %v11527_v31  ;;  %v10160_v54 = vrot.slane %v10146_v13, %v20795_v8  ;;  %v9618_v47 = vrot.slane %v9604_v55, %v20795_v8  ;;  %v10975_v23 = vcombine.high %v10973_v20, %v10973_v20  ;;  %v18514_v31 = vld.sshfl [vmem:[%s20800_s17 + $0xb8] sm:$0x3 pattern:$0x76325410]  ;;  %24921 = vst [vmem:[#allocation35_spill] sm:$0xff] %v22241_v19 }
 0x203   : > { %v11529_v17 = vcombine.low %v10974_v14, %v10973_v20  ;;  %v11536_v62 = vrot.slane %v11528_v44, %v20795_v8  ;;  %v9619_v48 = vcombine.high %v9611_v33, %v9611_v33  ;;  %v10162_v37 = vcombine.low %v9603_v56, %v9611_v33  ;;  %v22243_v14 = vpop.f32.mrf.mxu0 }
 0x204   : > { %v10161_v26 = vcombine.low %v10153_v18, %v10160_v54  ;;  %v10998_v57 = vcombine.high %v10990_v6, %v10990_v6  ;;  %v11545_v41 = vcombine.low %v10975_v23, %v18600_v51  ;;  %v9620_v43 = vcombine.high %v9618_v47, %v9618_v47  ;;  %24922 = vst [vmem:[#allocation36_spill] sm:$0xff] %v22243_v14 }
 0x205   : > { %v11543_v13 = vrot.slane %v11529_v17, %v20795_v8  ;;  %v10163_v44 = vcombine.low %v9619_v48, %v9618_v47  ;;  %v10170_v20 = vrot.slane %v10162_v37, %v20795_v8  ;;  %v9635_v56 = vrot.slane %v18485_v4, %v20795_v8  ;;  %v18486_v47 = vld [vmem:[%s20800_s17 + $0xc8] sm:$0xff] }
 0x206   : > { %19806 = vmatmul.mubr.msk.f32.gmra.mxu0 %vm2095_vm1, %v10161_v26  ;;  %v11546_v18 = vcombine.low %v10990_v6, %v10998_v57  ;;  %v11553_v54 = vrot.slane %v11545_v41, %v20795_v8  ;;  %v10179_v33 = vcombine.low %v9620_v43, %v18514_v31  ;;  %v10983_v51 = vcombine.high %v18563_v3, %v18563_v3  ;;  %v22256_v41 = vpop.f32.mrf.mxu1  ;;  %v22258_v3 = vpop.f32.mrf.mxu0 }
 0x207   : > { %v11544_v55 = vcombine.low %v11536_v62, %v11543_v13  ;;  %v10177_v17 = vrot.slane %v10163_v44, %v20795_v8  ;;  %v9643_v19 = vcombine.high %v9635_v56, %v9635_v56  ;;  %v11007_v14 = vrot.slane %v18564_v28, %v20795_v8  ;;  %24923 = vst [vmem:[#allocation37_spill] sm:$0xff] %v22256_v41 }
 0x208   : > { %v11560_v23 = vrot.slane %v11546_v18, %v20795_v8  ;;  %v10187_v57 = vrot.slane %v10179_v33, %v20795_v8  ;;  %v10997_v6 = vrot.slane %v10983_v51, %v20795_v8  ;;  %v9628_v62 = vcombine.high %v18485_v4, %v18485_v4  ;;  %24924 = vst [vmem:[#allocation38_spill] sm:$0xff] %v22258_v3  ;;  %v18601_v18 = vld.sshfl [vmem:[%s20800_s17 + $0x71] sm:$0x3 pattern:$0x76325410] }
 0x209   : > { %19844 = vmatmul.mubr.msk.f32.gmra.mxu1 %vm2095_vm1, %v11544_v55  ;;  %v10178_v26 = vcombine.low %v10170_v20, %v10177_v17  ;;  %v10180_v37 = vcombine.low %v9635_v56, %v9643_v19  ;;  %v11015_v31 = vcombine.high %v11007_v14, %v11007_v14  ;;  %v9652_v44 = vrot.slane %v18486_v47, %v20795_v8  ;;  %v18566_v55 = vld [vmem:[%s20800_s17 + $0x79] sm:$0xff] }
 0x20a   : > { %v11561_v48 = vcombine.low %v11553_v54, %v11560_v23  ;;  %v10999_v13 = vcombine.high %v10997_v6, %v10997_v6  ;;  %v9642_v43 = vrot.slane %v9628_v62, %v20795_v8  ;;  %v11000_v33 = vcombine.high %v18564_v28, %v18564_v28  ;;  %v18488_v23 = vld [vmem:[%s20800_s17 + $0xd8] sm:$0xff]  ;;  %v22270_v62 = vpop.f32.mrf.mxu1  ;;  %v22272_v28 = vpop.f32.mrf.mxu0 }
 0x20b   : > { %19808 = vmatprep.mubr.msk.f32.mxu0 %vm2095_vm1, %v10178_v26  ;;  %v10194_v4 = vrot.slane %v10180_v37, %v20795_v8  ;;  %v11563_v51 = vcombine.low %v11007_v14, %v11015_v31  ;;  %v11031_v19 = vrot.slane %v18566_v55, %v20795_v8  ;;  %v9660_v54 = vcombine.high %v9652_v44, %v9652_v44 }
 0x20c   : > { %19846 = vmatprep.mubr.msk.f32.mxu1 %vm2095_vm1, %v11561_v48  ;;  %v11562_v20 = vcombine.low %v10997_v6, %v10999_v13  ;;  %v9644_v56 = vcombine.high %v9642_v43, %v9642_v43  ;;  %v11014_v17 = vrot.slane %v11000_v33, %v20795_v8  ;;  %24925 = vst [vmem:[#allocation39_spill] sm:$0xff] %v22270_v62  ;;  %24926 = vst [vmem:[#allocation40_spill] sm:$0xff] %v22272_v28  ;;  %v18515_v6 = vld.sshfl [vmem:[%s20800_s17 + $0xd0] sm:$0x3 pattern:$0x76325410] }
 0x20d   : > { %v10195_v26 = vcombine.low %v10187_v57, %v10194_v4  ;;  %v11577_v48 = vrot.slane %v11563_v51, %v20795_v8  ;;  %v11580_v3 = vcombine.low %v18601_v18, %v11031_v19  ;;  %v10197_v31 = vcombine.low %v9652_v44, %v9660_v54  ;;  %v18567_v62 = vld [vmem:[%s20800_s17 + $0x81] sm:$0xff]  ;;  %v22285_v44 = vpop.f32.mrf.mxu0 }
 0x20e   : > { %v11570_v14 = vrot.slane %v11562_v20, %v20795_v8  ;;  %v10196_v37 = vcombine.low %v9642_v43, %v9644_v56  ;;  %v11016_v41 = vcombine.high %v11014_v17, %v11014_v17  ;;  %v9645_v33 = vcombine.high %v18486_v47, %v18486_v47  ;;  %v22283_v43 = vpop.f32.mrf.mxu1  ;;  %24928 = vst [vmem:[#allocation42_spill] sm:$0xff] %v22285_v44 }
 0x20f   : > { %19809 = vmatmul.mubr.msk.f32.gmra.mxu0 %vm2095_vm1, %v10195_v26  ;;  %v11594_v13 = vrot.slane %v11580_v3, %v20795_v8  ;;  %v9676_v21 = vrot.slane %v18488_v23, %v20795_v8  ;;  %v11024_v1 = vcombine.high %v18566_v55, %v18566_v55  ;;  %v10211_v18 = vrot.slane %v10197_v31, %v20795_v8 }
 0x210   : > { %v11578_v28 = vcombine.low %v11570_v14, %v11577_v48  ;;  %v10204_v57 = vrot.slane %v10196_v37, %v20795_v8  ;;  %v11579_v4 = vcombine.low %v11014_v17, %v11016_v41  ;;  %24927 = vst [vmem:[#allocation41_spill] sm:$0xff] %v22283_v43  ;;  %v9659_v51 = vrot.slane %v9645_v33, %v20795_v8  ;;  %v18489_v14 = vld [vmem:[%s20800_s17 + $0xe0] sm:$0xff] }
 0x211   : > { %v10214_v20 = vcombine.low %v18515_v6, %v9676_v21  ;;  %v11038_v47 = vrot.slane %v11024_v1, %v20795_v8  ;;  %v11039_v3 = vcombine.high %v11031_v19, %v11031_v19  ;;  %v11048_v54 = vrot.slane %v18567_v62, %v20795_v8  ;;  %v22298_v6 = vpop.f32.mrf.mxu0 }
 0x212   : > { %19847 = vmatmul.mubr.msk.f32.gmra.mxu1 %vm2095_vm1, %v11578_v28  ;;  %v10212_v55 = vcombine.low %v10204_v57, %v10211_v18  ;;  %v11587_v56 = vrot.slane %v11579_v4, %v20795_v8  ;;  %v9661_v26 = vcombine.high %v9659_v51, %v9659_v51  ;;  %v9669_v31 = vcombine.high %v18488_v23, %v18488_v23  ;;  %v22296_v28 = vpop.f32.mrf.mxu1 }
 0x213   : > { %v10228_v41 = vrot.slane %v10214_v20, %v20795_v8  ;;  %v11040_v17 = vcombine.high %v11038_v47, %v11038_v47  ;;  %v11596_v48 = vcombine.low %v11039_v3, %v11038_v47  ;;  %v9684_v1 = vcombine.high %v9676_v21, %v9676_v21  ;;  %24929 = vst [vmem:[#allocation43_spill] sm:$0xff] %v22296_v28  ;;  %v18569_v20 = vld [vmem:[%s20800_s17 + $0x91] sm:$0xff]  ;;  %v18516_v28 = vld.sshfl [vmem:[%s20800_s17 + $0xe8] sm:$0x3 pattern:$0x76325410] }
 0x214   : > { %19811 = vmatprep.mubr.msk.f32.mxu0 %vm2095_vm1, %v10212_v55  ;;  %v11595_v37 = vcombine.low %v11587_v56, %v11594_v13  ;;  %v9693_v19 = vrot.slane %v18489_v14, %v20795_v8  ;;  %24930 = vst [vmem:[#allocation44_spill] sm:$0xff] %v22298_v6  ;;  %v10213_v33 = vcombine.low %v9659_v51, %v9661_v26 }
 0x215   : > { %v11597_v57 = vcombine.low %v11040_v17, %v11048_v54  ;;  %v11604_v18 = vrot.slane %v11596_v48, %v20795_v8  ;;  %v11041_v4 = vcombine.high %v18567_v62, %v18567_v62  ;;  %v9683_v47 = vrot.slane %v9669_v31, %v20795_v8  ;;  %v18602_v17 = vld.sshfl [vmem:[%s20800_s17 + $0x89] sm:$0x3 pattern:$0x76325410]  ;;  %v22311_v31 = vpop.f32.mrf.mxu1 }
 0x216   : > { %19849 = vmatprep.mubr.msk.f32.mxu1 %vm2095_vm1, %v11595_v37  ;;  %v11056_v13 = vcombine.high %v11048_v54, %v11048_v54  ;;  %v9686_v23 = vcombine.high %v18489_v14, %v18489_v14  ;;  %v10221_v21 = vrot.slane %v10213_v33, %v20795_v8  ;;  %v9701_v56 = vcombine.high %v9693_v19, %v9693_v19  ;;  %v22309_v37 = vpop.f32.mrf.mxu0 }
 0x217   : > { %v11611_v3 = vrot.slane %v11597_v57, %v20795_v8  ;;  %v11055_v55 = vrot.slane %v11041_v4, %v20795_v8  ;;  %v9685_v51 = vcombine.high %v9683_v47, %v9683_v47  ;;  %v10230_v26 = vcombine.low %v9684_v1, %v9683_v47  ;;  %24931 = vst [vmem:[#allocation45_spill] sm:$0xff] %v22309_v37  ;;  %v18491_v1 = vld [vmem:[%s20800_s17 + $0xf0] sm:$0xff] }
 0x218   : > { %v9700_v62 = vrot.slane %v9686_v23, %v20795_v8  ;;  %v11065_v48 = vcombine.high %v18569_v20, %v18569_v20  ;;  %24932 = vst [vmem:[#allocation46_spill] sm:$0xff] %v22311_v31  ;;  %v10229_v54 = vcombine.low %v10221_v21, %v10228_v41  ;;  %v22316_v47 = vpop.f32.mrf.mxu0  ;;  %v22318_v23 = vpop.f32.mrf.mxu1 }
 0x219   : > { %v11612_v14 = vcombine.low %v11604_v18, %v11611_v3  ;;  %v11057_v6 = vcombine.high %v11055_v55, %v11055_v55  ;;  %v11613_v33 = vcombine.low %v11056_v13, %v11055_v55  ;;  %v10231_v57 = vcombine.low %v9685_v51, %v9693_v19  ;;  %24933 = vst [vmem:[#allocation47_spill] sm:$0xff] %v22316_v47  ;;  %v18573_v47 = vld [vmem:[%s20800_s17 + $0xb1] sm:$0xff] }
 0x21a   : > { %v10238_v4 = vrot.slane %v10230_v26, %v20795_v8  ;;  %v9702_v44 = vcombine.high %v9700_v62, %v9700_v62  ;;  %v10247_v43 = vcombine.low %v9701_v56, %v9700_v62  ;;  %24934 = vst [vmem:[#allocation48_spill] sm:$0xff] %v22318_v23  ;;  %19812 = vmatmul.mubr.msk.f32.gmra.mxu0 %vm2095_vm1, %v10229_v54  ;;  %v18570_v56 = vld [vmem:[%s20800_s17 + $0x99] sm:$0xff]  ;;  %v22328_v51 = vpop.f32.mrf.mxu0  ;;  %v22330_v26 = vpop.f32.mrf.mxu1  ;;  %v18572_v23 = vld [vmem:[%s20800_s17 + $0xa9] sm:$0xff] }
 0x21b   : > { %19850 = vmatmul.mubr.msk.f32.gmra.mxu1 %vm2095_vm1, %v11612_v14  ;;  %v11614_v41 = vcombine.low %v11057_v6, %v18602_v17  ;;  %v11621_v18 = vrot.slane %v11613_v33, %v20795_v8  ;;  %v11072_v13 = vrot.slane %v18569_v20, %v20795_v8  ;;  %v10245_v19 = vrot.slane %v10231_v57, %v20795_v8 }
 0x21c   : > { %v10248_v21 = vcombine.low %v9702_v44, %v18516_v28  ;;  %v10255_v3 = vrot.slane %v10247_v43, %v20795_v8  ;;  %v11079_v55 = vrot.slane %v11065_v48, %v20795_v8  ;;  %24935 = vst [vmem:[#allocation49_spill] sm:$0xff] %v22328_v51  ;;  %24936 = vst [vmem:[#allocation50_spill] sm:$0xff] %v22330_v26  ;;  %v22335_v43 = vpop.f32.mrf.mxu0  ;;  %v22337_v28 = vpop.f32.mrf.mxu1  ;;  %v18492_v51 = vld [vmem:[%s20800_s17 + $0xf8] sm:$0xff] }
 0x21d   : > { %v11628_v62 = vrot.slane %v11614_v41, %v20795_v8  ;;  %v11080_v6 = vcombine.high %v11072_v13, %v11072_v13  ;;  %v9710_v17 = vcombine.high %v18491_v1, %v18491_v1  ;;  %v10246_v54 = vcombine.low %v10238_v4, %v10245_v19  ;;  %24937 = vst [vmem:[#allocation51_spill] sm:$0xff] %v22335_v43 }
 0x21e   : > { %v10262_v20 = vrot.slane %v10248_v21, %v20795_v8  ;;  %v11081_v14 = vcombine.high %v11079_v55, %v11079_v55  ;;  %v9717_v44 = vrot.slane %v18491_v1, %v20795_v8  ;;  %24938 = vst [vmem:[#allocation52_spill] sm:$0xff] %v22337_v28  ;;  %v11082_v26 = vcombine.high %v18570_v56, %v18570_v56 }
 0x21f   : > { %v11629_v48 = vcombine.low %v11621_v18, %v11628_v62  ;;  %v11630_v33 = vcombine.low %v11072_v13, %v11080_v6  ;;  %v9724_v57 = vrot.slane %v9710_v17, %v20795_v8  ;;  %19814 = vmatprep.mubr.msk.f32.mxu0 %vm2095_vm1, %v10246_v54  ;;  %v11089_v21 = vrot.slane %v18570_v56, %v20795_v8 }
 0x220   : > { %v10263_v41 = vcombine.low %v10255_v3, %v10262_v20  ;;  %v11631_v4 = vcombine.low %v11079_v55, %v11081_v14  ;;  %v9725_v19 = vcombine.high %v9717_v44, %v9717_v44  ;;  %v11096_v18 = vrot.slane %v11082_v26, %v20795_v8  ;;  %v22349_v3 = vpop.f32.mrf.mxu0  ;;  %v22351_v55 = vpop.f32.mrf.mxu1 }
 0x221   : > { %19852 = vmatprep.mubr.msk.f32.mxu1 %vm2095_vm1, %v11629_v48  ;;  %v11638_v1 = vrot.slane %v11630_v33, %v20795_v8  ;;  %v9726_v43 = vcombine.high %v9724_v57, %v9724_v57  ;;  %v11097_v6 = vcombine.high %v11089_v21, %v11089_v21  ;;  %v9727_v17 = vcombine.high %v18492_v51, %v18492_v51 }
 0x222   : > { %19815 = vmatmul.mubr.msk.f32.gmra.mxu0 %vm2095_vm1, %v10263_v41  ;;  %v11645_v13 = vrot.slane %v11631_v4, %v20795_v8  ;;  %v10264_v62 = vcombine.low %v9717_v44, %v9725_v19  ;;  %24939 = vst [vmem:[#allocation53_spill] sm:$0xff] %v22349_v3  ;;  %24940 = vst [vmem:[#allocation54_spill] sm:$0xff] %v22351_v55  ;;  %v11098_v54 = vcombine.high %v11096_v18, %v11096_v18  ;;  %v22356_v44 = vpop.f32.mrf.mxu0  ;;  %v22358_v4 = vpop.f32.mrf.mxu1 }
 0x223   : > { %v10265_v56 = vcombine.low %v9724_v57, %v9726_v43  ;;  %v9734_v20 = vrot.slane %v18492_v51, %v20795_v8  ;;  %v11106_v14 = vcombine.high %v18572_v23, %v18572_v23  ;;  %v11647_v33 = vcombine.low %v11089_v21, %v11097_v6  ;;  %24941 = vst [vmem:[#allocation55_spill] sm:$0xff] %v22356_v44  ;;  %v18603_v43 = vld.sshfl [vmem:[%s20800_s17 + $0xa1] sm:$0x3 pattern:$0x76325410]  ;;  %v18494_v51 = vld [vmem:[%s20800_s17 + $0x108] sm:$0xff] }
 0x224   : > { %v11646_v48 = vcombine.low %v11638_v1, %v11645_v13  ;;  %v10272_v26 = vrot.slane %v10264_v62, %v20795_v8  ;;  %v9741_v41 = vrot.slane %v9727_v17, %v20795_v8  ;;  %24942 = vst [vmem:[#allocation56_spill] sm:$0xff] %v22358_v4  ;;  %v11648_v3 = vcombine.low %v11096_v18, %v11098_v54  ;;  %v22368_v18 = vpop.f32.mrf.mxu0  ;;  %v22370_v54 = vpop.f32.mrf.mxu1  ;;  %v18517_v44 = vld.sshfl [vmem:[%s20800_s17 + $0x100] sm:$0x3 pattern:$0x76325410] }
 0x225   : > { %v10279_v19 = vrot.slane %v10265_v56, %v20795_v8  ;;  %v9742_v55 = vcombine.high %v9734_v20, %v9734_v20  ;;  %v11113_v57 = vrot.slane %v18572_v23, %v20795_v8  ;;  %v11655_v21 = vrot.slane %v11647_v33, %v20795_v8  ;;  %24943 = vst [vmem:[#allocation57_spill] sm:$0xff] %v22368_v18 }
 0x226   : > { %19853 = vmatmul.mubr.msk.f32.gmra.mxu1 %vm2095_vm1, %v11646_v48  ;;  %v9743_v1 = vcombine.high %v9741_v41, %v9741_v41  ;;  %v11120_v13 = vrot.slane %v11106_v14, %v20795_v8  ;;  %v11662_v6 = vrot.slane %v11648_v3, %v20795_v8  ;;  %24944 = vst [vmem:[#allocation58_spill] sm:$0xff] %v22370_v54  ;;  %v18576_v54 = vld [vmem:[%s20800_s17 + $0xc9] sm:$0xff] }
 0x227   : > { %v10280_v62 = vcombine.low %v10272_v26, %v10279_v19  ;;  %v10281_v17 = vcombine.low %v9734_v20, %v9742_v55  ;;  %v11121_v56 = vcombine.high %v11113_v57, %v11113_v57  ;;  %v11664_v23 = vcombine.low %v18603_v43, %v11113_v57  ;;  %v22380_v43 = vpop.f32.mrf.mxu0  ;;  %v22382_v57 = vpop.f32.mrf.mxu1 }
 0x228   : > { %v10282_v4 = vcombine.low %v9741_v41, %v9743_v1  ;;  %v9751_v28 = vcombine.high %v18494_v51, %v18494_v51  ;;  %v9758_v48 = vrot.slane %v18494_v51, %v20795_v8  ;;  %v11663_v14 = vcombine.low %v11655_v21, %v11662_v6  ;;  %24945 = vst [vmem:[#allocation59_spill] sm:$0xff] %v22380_v43 }
 0x229   : > { %19817 = vmatprep.mubr.msk.f32.mxu0 %vm2095_vm1, %v10280_v62  ;;  %v10289_v26 = vrot.slane %v10281_v17, %v20795_v8  ;;  %v11665_v3 = vcombine.low %v11121_v56, %v11120_v13  ;;  %v11122_v55 = vcombine.high %v11120_v13, %v11120_v13  ;;  %v11672_v33 = vrot.slane %v11664_v23, %v20795_v8  ;;  %v18495_v62 = vld [vmem:[%s20800_s17 + $0x110] sm:$0xff]  ;;  %v18575_v56 = vld [vmem:[%s20800_s17 + $0xc1] sm:$0xff] }
 0x22a   : > { %v10296_v20 = vrot.slane %v10282_v4, %v20795_v8  ;;  %v9765_v41 = vrot.slane %v9751_v28, %v20795_v8  ;;  %v9766_v19 = vcombine.high %v9758_v48, %v9758_v48  ;;  %24946 = vst [vmem:[#allocation60_spill] sm:$0xff] %v22382_v57  ;;  %19855 = vmatprep.mubr.msk.f32.mxu1 %vm2095_vm1, %v11663_v14 }
 0x22b   : > { %v11679_v51 = vrot.slane %v11665_v3, %v20795_v8  ;;  %v10298_v21 = vcombine.low %v18517_v44, %v9758_v48  ;;  %v11123_v1 = vcombine.high %v18573_v47, %v18573_v47  ;;  %v11130_v13 = vrot.slane %v18573_v47, %v20795_v8  ;;  %v18604_v3 = vld.sshfl [vmem:[%s20800_s17 + $0xb9] sm:$0x3 pattern:$0x76325410] }
 0x22c   : > { %v10297_v4 = vcombine.low %v10289_v26, %v10296_v20  ;;  %v9767_v6 = vcombine.high %v9765_v41, %v9765_v41  ;;  %v10299_v17 = vcombine.low %v9766_v19, %v9765_v41  ;;  %v9768_v14 = vcombine.high %v18495_v62, %v18495_v62  ;;  %v22395_v26 = vpop.f32.mrf.mxu0  ;;  %v22397_v20 = vpop.f32.mrf.mxu1 }
 0x22d   : > { %v11680_v28 = vcombine.low %v11672_v33, %v11679_v51  ;;  %v10306_v23 = vrot.slane %v10298_v21, %v20795_v8  ;;  %v11137_v57 = vrot.slane %v11123_v1, %v20795_v8  ;;  %v11138_v43 = vcombine.high %v11130_v13, %v11130_v13  ;;  %24947 = vst [vmem:[#allocation61_spill] sm:$0xff] %v22395_v26  ;;  %v18497_v51 = vld [vmem:[%s20800_s17 + $0x120] sm:$0xff] }
 0x22e   : > { %19818 = vmatmul.mubr.msk.f32.gmra.mxu0 %vm2095_vm1, %v10297_v4  ;;  %v10313_v44 = vrot.slane %v10299_v17, %v20795_v8  ;;  %v11681_v48 = vcombine.low %v11122_v55, %v11130_v13  ;;  %v9775_v47 = vrot.slane %v18495_v62, %v20795_v8  ;;  %24948 = vst [vmem:[#allocation62_spill] sm:$0xff] %v22397_v20  ;;  %v22404_v62 = vpop.f32.mrf.mxu0  ;;  %v22406_v4 = vpop.f32.mrf.mxu1 }
 0x22f   : > { %19856 = vmatmul.mubr.msk.f32.gmra.mxu1 %vm2095_vm1, %v11680_v28  ;;  %v11139_v33 = vcombine.high %v11137_v57, %v11137_v57  ;;  %v11682_v41 = vcombine.low %v11138_v43, %v11137_v57  ;;  %v11154_v19 = vrot.slane %v18575_v56, %v20795_v8  ;;  %v9782_v1 = vrot.slane %v9768_v14, %v20795_v8  ;;  %v18518_v43 = vld.sshfl [vmem:[%s20800_s17 + $0x118] sm:$0x3 pattern:$0x76325410] }
 0x230   : > { %v10314_v21 = vcombine.low %v10306_v23, %v10313_v44  ;;  %v11689_v55 = vrot.slane %v11681_v48, %v20795_v8  ;;  %v9783_v13 = vcombine.high %v9775_v47, %v9775_v47  ;;  %24949 = vst [vmem:[#allocation63_spill] sm:$0xff] %v22404_v62  ;;  %24950 = vst [vmem:[#allocation64_spill] sm:$0xff] %v22406_v4 }
 0x231   : > { %v11696_v17 = vrot.slane %v11682_v41, %v20795_v8  ;;  %v10315_v20 = vcombine.low %v9767_v6, %v9775_v47  ;;  %v11162_v28 = vcombine.high %v11154_v19, %v11154_v19  ;;  %v11698_v26 = vcombine.low %v11139_v33, %v18604_v3  ;;  %v22415_v6 = vpop.f32.mrf.mxu0  ;;  %v22417_v47 = vpop.f32.mrf.mxu1 }
 0x232   : > { %19820 = vmatprep.mubr.msk.f32.mxu0 %vm2095_vm1, %v10314_v21  ;;  %v10316_v57 = vcombine.low %v9783_v13, %v9782_v1  ;;  %v9784_v23 = vcombine.high %v9782_v1, %v9782_v1  ;;  %v9792_v44 = vcombine.high %v18497_v51, %v18497_v51  ;;  %v9799_v48 = vrot.slane %v18497_v51, %v20795_v8  ;;  %v18578_v13 = vld [vmem:[%s20800_s17 + $0xd9] sm:$0xff] }
 0x233   : > { %v11697_v14 = vcombine.low %v11689_v55, %v11696_v17  ;;  %v10323_v62 = vrot.slane %v10315_v20, %v20795_v8  ;;  %v11699_v4 = vcombine.low %v11154_v19, %v11162_v28  ;;  %v11706_v41 = vrot.slane %v11698_v26, %v20795_v8  ;;  %24951 = vst [vmem:[#allocation65_spill] sm:$0xff] %v22415_v6  ;;  %v18498_v26 = vld [vmem:[%s20800_s17 + $0x128] sm:$0xff] }
 0x234   : > { %24952 = vst [vmem:[#allocation66_spill] sm:$0xff] %v22417_v47  ;;  %v10330_v3 = vrot.slane %v10316_v57, %v20795_v8  ;;  %v9806_v33 = vrot.slane %v9792_v44, %v20795_v8  ;;  %v9807_v21 = vcombine.high %v9799_v48, %v9799_v48  ;;  %v10332_v1 = vcombine.low %v9784_v23, %v18518_v43  ;;  %v22427_v57 = vpop.f32.mrf.mxu0  ;;  %v22429_v44 = vpop.f32.mrf.mxu1 }
 0x235   : > { %19858 = vmatprep.mubr.msk.f32.mxu1 %vm2095_vm1, %v11697_v14  ;;  %v11713_v51 = vrot.slane %v11699_v4, %v20795_v8  ;;  %v11147_v55 = vcombine.high %v18575_v56, %v18575_v56  ;;  %v11164_v20 = vcombine.high %v18576_v54, %v18576_v54  ;;  %v11171_v19 = vrot.slane %v18576_v54, %v20795_v8  ;;  %v18605_v14 = vld.sshfl [vmem:[%s20800_s17 + $0xd1] sm:$0x3 pattern:$0x76325410] }
 0x236   : > { %v10331_v17 = vcombine.low %v10323_v62, %v10330_v3  ;;  %v10333_v28 = vcombine.low %v9799_v48, %v9807_v21  ;;  %v10340_v47 = vrot.slane %v10332_v1, %v20795_v8  ;;  %24953 = vst [vmem:[#allocation67_spill] sm:$0xff] %v22427_v57  ;;  %24954 = vst [vmem:[#allocation68_spill] sm:$0xff] %v22429_v44  ;;  %v22438_v21 = vpop.f32.mrf.mxu0  ;;  %v22440_v1 = vpop.f32.mrf.mxu1 }
 0x237   : > { %v11714_v43 = vcombine.low %v11706_v41, %v11713_v51  ;;  %v11161_v23 = vrot.slane %v11147_v55, %v20795_v8  ;;  %v11178_v4 = vrot.slane %v11164_v20, %v20795_v8  ;;  %v11179_v56 = vcombine.high %v11171_v19, %v11171_v19  ;;  %24955 = vst [vmem:[#allocation69_spill] sm:$0xff] %v22438_v21  ;;  %v18500_v20 = vld [vmem:[%s20800_s17 + $0x138] sm:$0xff] }
 0x238   : > { %19821 = vmatmul.mubr.msk.f32.gmra.mxu0 %vm2095_vm1, %v10331_v17  ;;  %v10347_v54 = vrot.slane %v10333_v28, %v20795_v8  ;;  %v9808_v62 = vcombine.high %v9806_v33, %v9806_v33  ;;  %v9816_v48 = vrot.slane %v18498_v26, %v20795_v8  ;;  %v11195_v3 = vrot.slane %v18578_v13, %v20795_v8  ;;  %v22445_v21 = vpop.f32.mrf.mxu0 }
 0x239   : > { %24956 = vst [vmem:[#allocation70_spill] sm:$0xff] %v22440_v1  ;;  %19859 = vmatmul.mubr.msk.f32.gmra.mxu1 %vm2095_vm1, %v11714_v43  ;;  %v11163_v41 = vcombine.high %v11161_v23, %v11161_v23  ;;  %v11716_v51 = vcombine.low %v11171_v19, %v11179_v56  ;;  %v11180_v55 = vcombine.high %v11178_v4, %v11178_v4  ;;  %24957 = vst [vmem:[#allocation71_spill] sm:$0xff] %v22445_v21  ;;  %v22447_v1 = vpop.f32.mrf.mxu1  ;;  %v18501_v21 = vld [vmem:[%s20800_s17 + $0x140] sm:$0xff] }
 0x23a   : > { %v10348_v44 = vcombine.low %v10340_v47, %v10347_v54  ;;  %v9824_v57 = vcombine.high %v9816_v48, %v9816_v48  ;;  %v10349_v17 = vcombine.low %v9806_v33, %v9808_v62  ;;  %v11733_v28 = vcombine.low %v18605_v14, %v11195_v3  ;;  %24958 = vst [vmem:[#allocation72_spill] sm:$0xff] %v22447_v1  ;;  %v18519_v14 = vld.sshfl [vmem:[%s20800_s17 + $0x130] sm:$0x3 pattern:$0x76325410]  ;;  %v18579_v54 = vld [vmem:[%s20800_s17 + $0xe1] sm:$0xff] }
 0x23b   : > { %v11715_v6 = vcombine.low %v11161_v23, %v11163_v41  ;;  %v11730_v18 = vrot.slane %v11716_v51, %v20795_v8  ;;  %v11732_v31 = vcombine.low %v11178_v4, %v11180_v55  ;;  %v9809_v37 = vcombine.high %v18498_v26, %v18498_v26 }
 0x23c   : > { %19823 = vmatprep.mubr.msk.f32.mxu0 %vm2095_vm1, %v10348_v44  ;;  %v10350_v19 = vcombine.low %v9816_v48, %v9824_v57  ;;  %v10357_v43 = vrot.slane %v10349_v17, %v20795_v8  ;;  %v11747_v47 = vrot.slane %v11733_v28, %v20795_v8  ;;  %v9833_v56 = vcombine.high %v18500_v20, %v18500_v20 }
 0x23d   : > { %v11723_v33 = vrot.slane %v11715_v6, %v20795_v8  ;;  %v11740_v23 = vrot.slane %v11732_v31, %v20795_v8  ;;  %v9823_v4 = vrot.slane %v9809_v37, %v20795_v8  ;;  %v9840_v26 = vrot.slane %v18500_v20, %v20795_v8  ;;  %v22460_v6 = vpop.f32.mrf.mxu0  ;;  %v22462_v31 = vpop.f32.mrf.mxu1 }
 0x23e   : > { %v10364_v62 = vrot.slane %v10350_v19, %v20795_v8  ;;  %v9847_v57 = vrot.slane %v9833_v56, %v20795_v8  ;;  %v11188_v44 = vcombine.high %v18578_v13, %v18578_v13  ;;  %v11203_v48 = vcombine.high %v11195_v3, %v11195_v3  ;;  %24959 = vst [vmem:[#allocation73_spill] sm:$0xff] %v22460_v6 }
 0x23f   : > { %v11731_v41 = vcombine.low %v11723_v33, %v11730_v18  ;;  %v11748_v51 = vcombine.low %v11740_v23, %v11747_v47  ;;  %v9825_v55 = vcombine.high %v9823_v4, %v9823_v4  ;;  %v9848_v17 = vcombine.high %v9840_v26, %v9840_v26  ;;  %24960 = vst [vmem:[#allocation74_spill] sm:$0xff] %v22462_v31  ;;  %v22468_v3 = vpop.f32.mrf.mxu0  ;;  %v22470_v47 = vpop.f32.mrf.mxu1 }
 0x240   : > { %v10365_v28 = vcombine.low %v10357_v43, %v10364_v62  ;;  %v10367_v37 = vcombine.low %v18519_v14, %v9840_v26  ;;  %v11202_v20 = vrot.slane %v11188_v44, %v20795_v8  ;;  %v11205_v1 = vcombine.high %v18579_v54, %v18579_v54  ;;  %24961 = vst [vmem:[#allocation75_spill] sm:$0xff] %v22468_v3 }
 0x241   : > { %19861 = vmatprep.mubr.msk.f32.mxu1 %vm2095_vm1, %v11731_v41  ;;  %v10366_v19 = vcombine.low %v9823_v4, %v9825_v55  ;;  %v11212_v13 = vrot.slane %v18579_v54, %v20795_v8  ;;  %v9849_v18 = vcombine.high %v9847_v57, %v9847_v57  ;;  %24962 = vst [vmem:[#allocation76_spill] sm:$0xff] %v22470_v47  ;;  %v18606_v54 = vld.sshfl [vmem:[%s20800_s17 + $0xe9] sm:$0x3 pattern:$0x76325410]  ;;  %v18581_v55 = vld [vmem:[%s20800_s17 + $0xf1] sm:$0xff] }
 0x242   : > { %19824 = vmatmul.mubr.msk.f32.gmra.mxu0 %vm2095_vm1, %v10365_v28  ;;  %19862 = vmatmul.mubr.msk.f32.gmra.mxu1 %vm2095_vm1, %v11748_v51  ;;  %v10381_v43 = vrot.slane %v10367_v37, %v20795_v8  ;;  %v11204_v56 = vcombine.high %v11202_v20, %v11202_v20  ;;  %v11219_v33 = vrot.slane %v11205_v1, %v20795_v8  ;;  %v22480_v28 = vpop.f32.mrf.mxu0  ;;  %v22482_v51 = vpop.f32.mrf.mxu1 }
 0x243   : > { %v10374_v23 = vrot.slane %v10366_v19, %v20795_v8  ;;  %v11220_v14 = vcombine.high %v11212_v13, %v11212_v13  ;;  %v11749_v4 = vcombine.low %v11203_v48, %v11202_v20  ;;  %v9857_v26 = vrot.slane %v18501_v21, %v20795_v8  ;;  %24963 = vst [vmem:[#allocation77_spill] sm:$0xff] %v22480_v28 }
 0x244   : > { %v11750_v62 = vcombine.low %v11204_v56, %v11212_v13  ;;  %v10383_v44 = vcombine.low %v9848_v17, %v9847_v57  ;;  %v11221_v41 = vcombine.high %v11219_v33, %v11219_v33  ;;  %24964 = vst [vmem:[#allocation78_spill] sm:$0xff] %v22482_v51  ;;  %v9850_v13 = vcombine.high %v18501_v21, %v18501_v21  ;;  %v18503_v57 = vld [vmem:[%s20800_s17 + $0x150] sm:$0xff] }
 0x245   : > { %v10382_v37 = vcombine.low %v10374_v23, %v10381_v43  ;;  %v11757_v47 = vrot.slane %v11749_v4, %v20795_v8  ;;  %v10384_v1 = vcombine.low %v9849_v18, %v9857_v26  ;;  %v11766_v3 = vcombine.low %v11220_v14, %v11219_v33  ;;  %v22491_v4 = vpop.f32.mrf.mxu0  ;;  %v22493_v18 = vpop.f32.mrf.mxu1 }
 0x246   : > { %v11764_v19 = vrot.slane %v11750_v62, %v20795_v8  ;;  %v10391_v48 = vrot.slane %v10383_v44, %v20795_v8  ;;  %v11767_v20 = vcombine.low %v11221_v41, %v18606_v54  ;;  %v9865_v43 = vcombine.high %v9857_v26, %v9857_v26  ;;  %24965 = vst [vmem:[#allocation79_spill] sm:$0xff] %v22491_v4  ;;  %v18582_v62 = vld [vmem:[%s20800_s17 + $0xf9] sm:$0xff]  ;;  %v18520_v41 = vld.sshfl [vmem:[%s20800_s17 + $0x148] sm:$0x3 pattern:$0x76325410] }
 0x247   : > { %19826 = vmatprep.mubr.msk.f32.mxu0 %vm2095_vm1, %v10382_v37  ;;  %v10398_v17 = vrot.slane %v10384_v1, %v20795_v8  ;;  %v11774_v56 = vrot.slane %v11766_v3, %v20795_v8  ;;  %v11229_v23 = vcombine.high %v18581_v55, %v18581_v55  ;;  %24966 = vst [vmem:[#allocation80_spill] sm:$0xff] %v22493_v18 }
 0x248   : > { %v11765_v33 = vcombine.low %v11757_v47, %v11764_v19  ;;  %v11781_v14 = vrot.slane %v11767_v20, %v20795_v8  ;;  %v9864_v54 = vrot.slane %v9850_v13, %v20795_v8  ;;  %v11236_v21 = vrot.slane %v18581_v55, %v20795_v8  ;;  %v22507_v13 = vpop.f32.mrf.mxu1 }
 0x249   : > { %v10399_v44 = vcombine.low %v10391_v48, %v10398_v17  ;;  %v11243_v37 = vrot.slane %v11229_v23, %v20795_v8  ;;  %v9874_v1 = vcombine.high %v18503_v57, %v18503_v57  ;;  %v9881_v19 = vrot.slane %v18503_v57, %v20795_v8  ;;  %v22505_v48 = vpop.f32.mrf.mxu0  ;;  %24967 = vst [vmem:[#allocation81_spill] sm:$0xff] %v22507_v13 }
 0x24a   : > { %19864 = vmatprep.mubr.msk.f32.mxu1 %vm2095_vm1, %v11765_v33  ;;  %v11782_v3 = vcombine.low %v11774_v56, %v11781_v14  ;;  %v9866_v26 = vcombine.high %v9864_v54, %v9864_v54  ;;  %v10400_v4 = vcombine.low %v9865_v43, %v9864_v54  ;;  %v11244_v51 = vcombine.high %v11236_v21, %v11236_v21  ;;  %v22516_v18 = vpop.f32.mrf.mxu1 }
 0x24b   : > { %19827 = vmatmul.mubr.msk.f32.gmra.mxu0 %vm2095_vm1, %v10399_v44  ;;  %v11245_v47 = vcombine.high %v11243_v37, %v11243_v37  ;;  %v9888_v55 = vrot.slane %v9874_v1, %v20795_v8  ;;  %v11246_v20 = vcombine.high %v18582_v62, %v18582_v62  ;;  %v11253_v23 = vrot.slane %v18582_v62, %v20795_v8  ;;  %v18504_v44 = vld [vmem:[%s20800_s17 + $0x158] sm:$0xff]  ;;  %v22514_v1 = vpop.f32.mrf.mxu0 }
 0x24c   : > { %19865 = vmatmul.mubr.msk.f32.gmra.mxu1 %vm2095_vm1, %v11782_v3  ;;  %v10401_v17 = vcombine.low %v9866_v26, %v18520_v41  ;;  %v10408_v56 = vrot.slane %v10400_v4, %v20795_v8  ;;  %v11783_v43 = vcombine.low %v11236_v21, %v11244_v51  ;;  %v9889_v14 = vcombine.high %v9881_v19, %v9881_v19 }
 0x24d   : > { %v11784_v33 = vcombine.low %v11243_v37, %v11245_v47  ;;  %v9890_v54 = vcombine.high %v9888_v55, %v9888_v55  ;;  %v11260_v57 = vrot.slane %v11246_v20, %v20795_v8  ;;  %24968 = vst [vmem:[#allocation82_spill] sm:$0xff] %v22514_v1  ;;  %24969 = vst [vmem:[#allocation83_spill] sm:$0xff] %v22516_v18  ;;  %v18584_v37 = vld [vmem:[%s20800_s17 + $0x109] sm:$0xff]  ;;  %v22523_v28 = vpop.f32.mrf.mxu0  ;;  %v22525_v18 = vpop.f32.mrf.mxu1 }
 0x24e   : > { %v10415_v13 = vrot.slane %v10401_v17, %v20795_v8  ;;  %v11791_v41 = vrot.slane %v11783_v43, %v20795_v8  ;;  %v11261_v3 = vcombine.high %v11253_v23, %v11253_v23  ;;  %v10417_v4 = vcombine.low %v9881_v19, %v9889_v14  ;;  %24970 = vst [vmem:[#allocation84_spill] sm:$0xff] %v22523_v28  ;;  %v18506_v19 = vld [vmem:[%s20800_s17 + $0x168] sm:$0xff]  ;;  %v18690_v28 = vld.sshfl [vmem:[%s20800_s17 + $0x5a] sm:$0x3 pattern:$0x76325410] }
 0x24f   : > { %v11798_v51 = vrot.slane %v11784_v33, %v20795_v8  ;;  %v10418_v21 = vcombine.low %v9888_v55, %v9890_v54  ;;  %v11262_v62 = vcombine.high %v11260_v57, %v11260_v57  ;;  %v9891_v20 = vcombine.high %v18504_v44, %v18504_v44  ;;  %24971 = vst [vmem:[#allocation85_spill] sm:$0xff] %v22525_v18  ;;  %v22534_v54 = vpop.f32.mrf.mxu0 }
 0x250   : > { %v10416_v26 = vcombine.low %v10408_v56, %v10415_v13  ;;  %v11800_v47 = vcombine.low %v11253_v23, %v11261_v3  ;;  %v9898_v1 = vrot.slane %v18504_v44, %v20795_v8  ;;  %v10425_v43 = vrot.slane %v10417_v4, %v20795_v8  ;;  %v18607_v23 = vld.sshfl [vmem:[%s20800_s17 + $0x101] sm:$0x3 pattern:$0x76325410]  ;;  %24972 = vst [vmem:[#allocation86_spill] sm:$0xff] %v22534_v54  ;;  %v22536_v44 = vpop.f32.mrf.mxu1 }
 0x251   : > { %v11799_v17 = vcombine.low %v11791_v41, %v11798_v51  ;;  %v10432_v31 = vrot.slane %v10418_v21, %v20795_v8  ;;  %v11801_v33 = vcombine.low %v11260_v57, %v11262_v62  ;;  %v9905_v13 = vrot.slane %v9891_v20, %v20795_v8  ;;  %24973 = vst [vmem:[#allocation87_spill] sm:$0xff] %v22536_v44  ;;  %v18521_v62 = vld.sshfl [vmem:[%s20800_s17 + $0x160] sm:$0x3 pattern:$0x76325410] }
 0x252   : > { %19829 = vmatprep.mubr.msk.f32.mxu0 %vm2095_vm1, %v10416_v26  ;;  %v11808_v55 = vrot.slane %v11800_v47, %v20795_v8  ;;  %v9906_v56 = vcombine.high %v9898_v1, %v9898_v1  ;;  %v11270_v14 = vcombine.high %v18584_v37, %v18584_v37  ;;  %v11277_v3 = vrot.slane %v18584_v37, %v20795_v8 }
 0x253   : > { %19867 = vmatprep.mubr.msk.f32.mxu1 %vm2095_vm1, %v11799_v17  ;;  %v10433_v41 = vcombine.low %v10425_v43, %v10432_v31  ;;  %v11815_v57 = vrot.slane %v11801_v33, %v20795_v8  ;;  %v9907_v51 = vcombine.high %v9905_v13, %v9905_v13  ;;  %v9915_v26 = vcombine.high %v18506_v19, %v18506_v19  ;;  %v18585_v17 = vld [vmem:[%s20800_s17 + $0x111] sm:$0xff] }
 0x254   : > { %v10434_v4 = vcombine.low %v9898_v1, %v9906_v56  ;;  %v11284_v21 = vrot.slane %v11270_v14, %v20795_v8  ;;  %v11285_v20 = vcombine.high %v11277_v3, %v11277_v3  ;;  %v11817_v54 = vcombine.low %v18607_v23, %v11277_v3  ;;  %v22548_v1 = vpop.f32.mrf.mxu0  ;;  %v22550_v56 = vpop.f32.mrf.mxu1  ;;  %v18507_v3 = vld [vmem:[%s20800_s17 + $0x170] sm:$0xff] }
 0x255   : > { %19830 = vmatmul.mubr.msk.f32.gmra.mxu0 %vm2095_vm1, %v10433_v41  ;;  %v11816_v47 = vcombine.low %v11808_v55, %v11815_v57  ;;  %v9922_v44 = vrot.slane %v18506_v19, %v20795_v8  ;;  %v10435_v31 = vcombine.low %v9905_v13, %v9907_v51  ;;  %v9929_v37 = vrot.slane %v9915_v26, %v20795_v8 }
 0x256   : > { %v10442_v43 = vrot.slane %v10434_v4, %v20795_v8  ;;  %v11286_v33 = vcombine.high %v11284_v21, %v11284_v21  ;;  %24974 = vst [vmem:[#allocation88_spill] sm:$0xff] %v22548_v1  ;;  %24975 = vst [vmem:[#allocation89_spill] sm:$0xff] %v22550_v56  ;;  %v11818_v55 = vcombine.low %v11285_v20, %v11284_v21  ;;  %v22557_v51 = vpop.f32.mrf.mxu0  ;;  %v22559_v4 = vpop.f32.mrf.mxu1 }
 0x257   : > { %19868 = vmatmul.mubr.msk.f32.gmra.mxu1 %vm2095_vm1, %v11816_v47  ;;  %v11825_v23 = vrot.slane %v11817_v54, %v20795_v8  ;;  %v9930_v14 = vcombine.high %v9922_v44, %v9922_v44  ;;  %v10451_v19 = vcombine.low %v18521_v62, %v9922_v44  ;;  %v10449_v41 = vrot.slane %v10435_v31, %v20795_v8  ;;  %v18587_v54 = vld [vmem:[%s20800_s17 + $0x121] sm:$0xff] }
 0x258   : > { %v11287_v13 = vcombine.high %v18585_v17, %v18585_v17  ;;  %v11294_v57 = vrot.slane %v18585_v17, %v20795_v8  ;;  %24976 = vst [vmem:[#allocation90_spill] sm:$0xff] %v22557_v51  ;;  %24977 = vst [vmem:[#allocation91_spill] sm:$0xff] %v22559_v4  ;;  %v11832_v26 = vrot.slane %v11818_v55, %v20795_v8  ;;  %v22565_v18 = vpop.f32.mrf.mxu1  ;;  %v22567_v17 = vpop.f32.mrf.mxu0 }
 0x259   : > { %v10452_v56 = vcombine.low %v9930_v14, %v9929_v37  ;;  %v10459_v21 = vrot.slane %v10451_v19, %v20795_v8  ;;  %v9931_v47 = vcombine.high %v9929_v37, %v9929_v37  ;;  %v10450_v20 = vcombine.low %v10442_v43, %v10449_v41  ;;  %24978 = vst [vmem:[#allocation92_spill] sm:$0xff] %v22565_v18  ;;  %v18608_v14 = vld.sshfl [vmem:[%s20800_s17 + $0x119] sm:$0x3 pattern:$0x76325410] }
 0x25a   : > { %v11301_v44 = vrot.slane %v11287_v13, %v20795_v8  ;;  %v11302_v62 = vcombine.high %v11294_v57, %v11294_v57  ;;  %v11834_v31 = vcombine.low %v11286_v33, %v11294_v57  ;;  %24979 = vst [vmem:[#allocation93_spill] sm:$0xff] %v22567_v17  ;;  %v11833_v51 = vcombine.low %v11825_v23, %v11832_v26  ;;  %v22574_v41 = vpop.f32.mrf.mxu1  ;;  %v22576_v13 = vpop.f32.mrf.mxu0  ;;  %v18588_v17 = vld [vmem:[%s20800_s17 + $0x129] sm:$0xff] }
 0x25b   : > { %v10466_v4 = vrot.slane %v10452_v56, %v20795_v8  ;;  %v9932_v6 = vcombine.high %v18507_v3, %v18507_v3  ;;  %v9939_v55 = vrot.slane %v18507_v3, %v20795_v8  ;;  %19832 = vmatprep.mubr.msk.f32.mxu0 %vm2095_vm1, %v10450_v20  ;;  %v11311_v33 = vcombine.high %v18587_v54, %v18587_v54 }
 0x25c   : > { %v11835_v37 = vcombine.low %v11302_v62, %v11301_v44  ;;  %v11842_v43 = vrot.slane %v11834_v31, %v20795_v8  ;;  %v11303_v19 = vcombine.high %v11301_v44, %v11301_v44  ;;  %24980 = vst [vmem:[#allocation94_spill] sm:$0xff] %v22574_v41  ;;  %24981 = vst [vmem:[#allocation95_spill] sm:$0xff] %v22576_v13  ;;  %19870 = vmatprep.mubr.msk.f32.mxu1 %vm2095_vm1, %v11833_v51  ;;  %v18522_v31 = vld.sshfl [vmem:[%s20800_s17 + $0x178] sm:$0x3 pattern:$0x76325410]  ;;  %v22585_v41 = vpop.f32.mrf.mxu1  ;;  %v22587_v13 = vpop.f32.mrf.mxu0 }
 0x25d   : > { %v10467_v56 = vcombine.low %v10459_v21, %v10466_v4  ;;  %v9946_v23 = vrot.slane %v9932_v6, %v20795_v8  ;;  %v9947_v57 = vcombine.high %v9939_v55, %v9939_v55  ;;  %v10468_v3 = vcombine.low %v9931_v47, %v9939_v55  ;;  %24982 = vst [vmem:[#allocation96_spill] sm:$0xff] %v22587_v13  ;;  %v18590_v21 = vld [vmem:[%s20800_s17 + $0x139] sm:$0xff] }
 0x25e   : > { %v11849_v26 = vrot.slane %v11835_v37, %v20795_v8  ;;  %v11318_v20 = vrot.slane %v18587_v54, %v20795_v8  ;;  %v11325_v62 = vrot.slane %v11311_v33, %v20795_v8  ;;  %v11851_v44 = vcombine.low %v11303_v19, %v18608_v14  ;;  %v22592_v37 = vpop.f32.mrf.mxu1  ;;  %v22594_v14 = vpop.f32.mrf.mxu0 }
 0x25f   : > { %19833 = vmatmul.mubr.msk.f32.gmra.mxu0 %vm2095_vm1, %v10467_v56  ;;  %v9948_v51 = vcombine.high %v9946_v23, %v9946_v23  ;;  %v10469_v6 = vcombine.low %v9947_v57, %v9946_v23  ;;  %v10476_v4 = vrot.slane %v10468_v3, %v20795_v8  ;;  %24983 = vst [vmem:[#allocation97_spill] sm:$0xff] %v22592_v37  ;;  %24984 = vst [vmem:[#allocation98_spill] sm:$0xff] %v22594_v14  ;;  %v18609_v3 = vld.sshfl [vmem:[%s20800_s17 + $0x131] sm:$0x3 pattern:$0x76325410] }
 0x260   : > { %v11850_v47 = vcombine.low %v11842_v43, %v11849_v26  ;;  %v11326_v54 = vcombine.high %v11318_v20, %v11318_v20  ;;  %v11327_v55 = vcombine.high %v11325_v62, %v11325_v62  ;;  %v11859_v33 = vrot.slane %v11851_v44, %v20795_v8  ;;  %v18647_v26 = vld [vmem:[%s20800_s17 + $0x32] sm:$0xff]  ;;  %v22602_v1 = vpop.f32.mrf.mxu1  ;;  %v22604_v37 = vpop.f32.mrf.mxu0 }
 0x261   : > { %v10483_v19 = vrot.slane %v10469_v6, %v20795_v8  ;;  %v10485_v13 = vcombine.low %v9948_v51, %v18522_v31  ;;  %v11335_v56 = vrot.slane %v18588_v17, %v20795_v8  ;;  %v11328_v18 = vcombine.high %v18588_v17, %v18588_v17  ;;  %24985 = vst [vmem:[#allocation99_spill] sm:$0xff] %v22602_v1 }
 0x262   : > { %19871 = vmatmul.mubr.msk.f32.gmra.mxu1 %vm2095_vm1, %v11850_v47  ;;  %v11852_v23 = vcombine.low %v11318_v20, %v11326_v54  ;;  %v11868_v57 = vcombine.low %v11325_v62, %v11327_v55  ;;  %v11352_v43 = vcombine.high %v18590_v21, %v18590_v21  ;;  %24986 = vst [vmem:[#allocation100_spill] sm:$0xff] %v22604_v37  ;;  %v22612_v47 = vpop.f32.mrf.mxu1  ;;  %v22614_v54 = vpop.f32.mrf.mxu0 }
 0x263   : > { %v10484_v14 = vcombine.low %v10476_v4, %v10483_v19  ;;  %v10492_v6 = vrot.slane %v10485_v13, %v20795_v8  ;;  %v11343_v44 = vcombine.high %v11335_v56, %v11335_v56  ;;  %v11359_v31 = vrot.slane %v18590_v21, %v20795_v8  ;;  %24987 = vst [vmem:[#allocation101_spill] sm:$0xff] %v22612_v47  ;;  %v18591_v21 = vld [vmem:[%s20800_s17 + $0x141] sm:$0xff] }
 0x264   : > { %v11866_v51 = vrot.slane %v11852_v23, %v20795_v8  ;;  %v11876_v20 = vrot.slane %v11868_v57, %v20795_v8  ;;  %v11342_v17 = vrot.slane %v11328_v18, %v20795_v8  ;;  %v11366_v62 = vrot.slane %v11352_v43, %v20795_v8  ;;  %24988 = vst [vmem:[#allocation102_spill] sm:$0xff] %v22614_v54  ;;  %v18648_v18 = vld [vmem:[%s20800_s17 + $0x3a] sm:$0xff]  ;;  %v22621_v1 = vpop.f32.mrf.mxu0 }
 0x265   : > { %19835 = vmatprep.mubr.msk.f32.mxu0 %vm2095_vm1, %v10484_v14  ;;  %v11869_v4 = vcombine.low %v11335_v56, %v11343_v44  ;;  %v11367_v13 = vcombine.high %v11359_v31, %v11359_v31  ;;  %v11886_v55 = vcombine.low %v18609_v3, %v11359_v31  ;;  %v12420_v19 = vcombine.high %v18647_v26, %v18647_v26  ;;  %v22626_v56 = vpop.f32.mrf.mxu1 }
 0x266   : > { %v11867_v37 = vcombine.low %v11859_v33, %v11866_v51  ;;  %19836 = vmatmul.mubr.msk.f32.gmra.mxu0 %vm2095_vm1, %v10492_v6  ;;  %v11344_v23 = vcombine.high %v11342_v17, %v11342_v17  ;;  %v12427_v57 = vrot.slane %v18647_v26, %v20795_v8  ;;  %24989 = vst [vmem:[#allocation103_spill] sm:$0xff] %v22621_v1  ;;  %24990 = vst [vmem:[#allocation104_spill] sm:$0xff] %v22626_v56  ;;  %v22630_v31 = vpop.f32.mrf.mxu0 }
 0x267   : > { %v11883_v43 = vrot.slane %v11869_v4, %v20795_v8  ;;  %v11900_v54 = vrot.slane %v11886_v55, %v20795_v8  ;;  %v12434_v14 = vrot.slane %v12420_v19, %v20795_v8  ;;  %v11368_v44 = vcombine.high %v11366_v62, %v11366_v62  ;;  %24991 = vst [vmem:[#allocation105_spill] sm:$0xff] %v22630_v31  ;;  %v18738_v55 = vld [vmem:[%s24884_s3 + $0x8] sm:$0xff] }
 0x268   : > { %19873 = vmatprep.mubr.msk.f32.mxu1 %vm2095_vm1, %v11867_v37  ;;  %v11885_v3 = vcombine.low %v11342_v17, %v11344_v23  ;;  %v12435_v33 = vcombine.high %v12427_v57, %v12427_v57  ;;  %v11376_v6 = vrot.slane %v18591_v21, %v20795_v8  ;;  %v11902_v1 = vcombine.low %v11367_v13, %v11366_v62  ;;  %v22637_v23 = vpop.f32.mrf.mxu0  ;;  %v18650_v13 = vld [vmem:[%s20800_s17 + $0x4a] sm:$0xff] }
 0x269   : > { %v11884_v26 = vcombine.low %v11876_v20, %v11883_v43  ;;  %v12436_v51 = vcombine.high %v12434_v14, %v12434_v14  ;;  %v12437_v4 = vcombine.high %v18648_v18, %v18648_v18  ;;  %v12444_v17 = vrot.slane %v18648_v18, %v20795_v8  ;;  %24992 = vst [vmem:[#allocation106_spill] sm:$0xff] %v22637_v23  ;;  %v22643_v43 = vpop.f32.mrf.mxu1  ;;  %v18689_v23 = vld.sshfl [vmem:[%s20800_s17 + $0x42] sm:$0x3 pattern:$0x76325410] }
 0x26a   : > { %v11893_v19 = vrot.slane %v11885_v3, %v20795_v8  ;;  %v12996_v47 = vcombine.low %v12427_v57, %v12435_v33  ;;  %v11903_v37 = vcombine.low %v11368_v44, %v11376_v6  ;;  %19938 = vmatprep.subr.mxu1 %v18738_v55  ;;  %v11910_v20 = vrot.slane %v11902_v1, %v20795_v8  ;;  %v22647_v33 = vpop.f32.mrf.mxu0 }
 0x26b   : > { %19874 = vmatmul.mubr.msk.f32.gmra.mxu1 %vm2095_vm1, %v11884_v26  ;;  %v12997_v31 = vcombine.low %v12434_v14, %v12436_v51  ;;  %v12451_v62 = vrot.slane %v12437_v4, %v20795_v8  ;;  %24993 = vst [vmem:[#allocation107_spill] sm:$0xff] %v22643_v43  ;;  %v12452_v18 = vcombine.high %v12444_v17, %v12444_v17  ;;  %24994 = vst [vmem:[#allocation108_spill] sm:$0xff] %v22647_v33  ;;  %v22657_v43 = vpop.f32.mrf.mxu1 }
 0x26c   : > { %v11901_v56 = vcombine.low %v11893_v19, %v11900_v54  ;;  %v13004_v3 = vrot.slane %v12996_v47, %v20795_v8  ;;  %v11917_v57 = vrot.slane %v11903_v37, %v20795_v8  ;;  %19939 = vmatpush3.msra.mxu1 %v18738_v55  ;;  %v11369_v1 = vcombine.high %v18591_v21, %v18591_v21  ;;  %v22651_v47 = vpop.f32.mrf.mxu0 }
 0x26d   : > { %v13011_v14 = vrot.slane %v12997_v31, %v20795_v8  ;;  %v12453_v44 = vcombine.high %v12451_v62, %v12451_v62  ;;  %v13013_v51 = vcombine.low %v12444_v17, %v12452_v18  ;;  %v11384_v54 = vcombine.high %v11376_v6, %v11376_v6  ;;  %24995 = vst [vmem:[#allocation109_spill] sm:$0xff] %v22651_v47  ;;  %v18593_v31 = vld [vmem:[%s20800_s17 + $0x151] sm:$0xff] }
 0x26e   : > { %19876 = vmatprep.mubr.msk.f32.mxu1 %vm2095_vm1, %v11901_v56  ;;  %v11918_v26 = vcombine.low %v11910_v20, %v11917_v57  ;;  %v12461_v4 = vcombine.high %v18650_v13, %v18650_v13  ;;  %v11383_v33 = vrot.slane %v11369_v1, %v20795_v8  ;;  %v12468_v55 = vrot.slane %v18650_v13, %v20795_v8  ;;  %v18610_v56 = vld.sshfl [vmem:[%s20800_s17 + $0x149] sm:$0x3 pattern:$0x76325410]  ;;  %v22663_v17 = vpop.f32.mrf.mxu0  ;;  %v18651_v13 = vld [vmem:[%s20800_s17 + $0x52] sm:$0xff] }
 0x26f   : > { %v13012_v19 = vcombine.low %v13004_v3, %v13011_v14  ;;  %v13014_v37 = vcombine.low %v12451_v62, %v12453_v44  ;;  %24996 = vst [vmem:[#allocation110_spill] sm:$0xff] %v22657_v43  ;;  %v13021_v21 = vrot.slane %v13013_v51, %v20795_v8  ;;  %24997 = vst [vmem:[#allocation111_spill] sm:$0xff] %v22663_v17 }
 0x270   : > { %19877 = vmatmul.mubr.msk.f32.gmra.mxu1 %vm2095_vm1, %v11918_v26  ;;  %v12475_v6 = vrot.slane %v12461_v4, %v20795_v8  ;;  %v11385_v62 = vcombine.high %v11383_v33, %v11383_v33  ;;  %v11919_v3 = vcombine.low %v11384_v54, %v11383_v33  ;;  %v12476_v57 = vcombine.high %v12468_v55, %v12468_v55  ;;  %v22669_v26 = vpop.f32.mrf.mxu0 }
 0x271   : > { %19890 = vmatprep.mubr.msk.f32.mxu0 %vm2095_vm1, %v13012_v19  ;;  %v13028_v20 = vrot.slane %v13014_v37, %v20795_v8  ;;  %v13030_v14 = vcombine.low %v18689_v23, %v12468_v55  ;;  %v11393_v44 = vcombine.high %v18593_v31, %v18593_v31  ;;  %v11400_v1 = vrot.slane %v18593_v31, %v20795_v8  ;;  %v22672_v19 = vpop.f32.mrf.mxu1 }
 0x272   : > { %v12477_v18 = vcombine.high %v12475_v6, %v12475_v6  ;;  %24998 = vst [vmem:[#allocation112_spill] sm:$0xff] %v22669_v26  ;;  %v11920_v4 = vcombine.low %v11385_v62, %v18610_v56  ;;  %v11927_v17 = vrot.slane %v11919_v3, %v20795_v8  ;;  %v13031_v47 = vcombine.low %v12476_v57, %v12475_v6  ;;  %v22676_v55 = vpop.f32.mrf.mxu0  ;;  %v18594_v6 = vld [vmem:[%s20800_s17 + $0x159] sm:$0xff] }
 0x273   : > { %v13029_v51 = vcombine.low %v13021_v21, %v13028_v20  ;;  %24999 = vst [vmem:[#allocation113_spill] sm:$0xff] %v22672_v19  ;;  %v13038_v37 = vrot.slane %v13030_v14, %v20795_v8  ;;  %v11407_v33 = vrot.slane %v11393_v44, %v20795_v8  ;;  %v11408_v54 = vcombine.high %v11400_v1, %v11400_v1  ;;  %v18653_v19 = vld [vmem:[%s20800_s17 + $0x62] sm:$0xff] }
 0x274   : > { %v12478_v23 = vcombine.high %v18651_v13, %v18651_v13  ;;  %25000 = vst [vmem:[#allocation114_spill] sm:$0xff] %v22676_v55  ;;  %v11934_v31 = vrot.slane %v11920_v4, %v20795_v8  ;;  %v13045_v21 = vrot.slane %v13031_v47, %v20795_v8  ;;  %v12485_v56 = vrot.slane %v18651_v13, %v20795_v8  ;;  %v22684_v57 = vpop.f32.mrf.mxu0 }
 0x275   : > { %19891 = vmatmul.mubr.msk.f32.vlgmr.msra.gmra.mxu0 %vm2095_vm1, %v13029_v51  ;;  %v11409_v20 = vcombine.high %v11407_v33, %v11407_v33  ;;  %v11936_v62 = vcombine.low %v11400_v1, %v11408_v54  ;;  %25001 = vst [vmem:[#allocation115_spill] sm:$0xff] %v22684_v57  ;;  %v22687_v51 = vpop.f32.mrf.mxu1  ;;  %v11410_v43 = vcombine.high %v18594_v6, %v18594_v6 }
 0x276   : > { %v12492_v3 = vrot.slane %v12478_v23, %v20795_v8  ;;  %v11935_v14 = vcombine.low %v11927_v17, %v11934_v31  ;;  %v13046_v44 = vcombine.low %v13038_v37, %v13045_v21  ;;  %v12493_v26 = vcombine.high %v12485_v56, %v12485_v56  ;;  %25002 = vst [vmem:[#allocation116_spill] sm:$0xff] %v22687_v51  ;;  %v22692_v1 = vpop.f32.mrf.mxu0  ;;  %v18611_v51 = vld.sshfl [vmem:[%s20800_s17 + $0x161] sm:$0x3 pattern:$0x76325410] }
 0x277   : > { %v13047_v55 = vcombine.low %v12477_v18, %v12485_v56  ;;  %v11937_v4 = vcombine.low %v11407_v33, %v11409_v20  ;;  %v11944_v47 = vrot.slane %v11936_v62, %v20795_v8  ;;  %v11417_v13 = vrot.slane %v18594_v6, %v20795_v8  ;;  %25003 = vst [vmem:[#allocation117_spill] sm:$0xff] %v22692_v1  ;;  %v18596_v62 = vld [vmem:[%s20800_s17 + $0x169] sm:$0xff] }
 0x278   : > { %19879 = vmatprep.mubr.msk.f32.mxu1 %vm2095_vm1, %v11935_v14  ;;  %19893 = vmatprep.mubr.msk.f32.mxu0 %vm2095_vm1, %v13046_v44  ;;  %v13048_v17 = vcombine.low %v12493_v26, %v12492_v3  ;;  %v12494_v37 = vcombine.high %v12492_v3, %v12492_v3  ;;  %v11424_v54 = vrot.slane %v11410_v43, %v20795_v8  ;;  %v22699_v21 = vpop.f32.mrf.mxu0  ;;  %v22704_v26 = vpop.f32.mrf.mxu1 }
 0x279   : > { %v13055_v18 = vrot.slane %v13047_v55, %v20795_v8  ;;  %v11951_v33 = vrot.slane %v11937_v4, %v20795_v8  ;;  %v11425_v23 = vcombine.high %v11417_v13, %v11417_v13  ;;  %v12502_v31 = vcombine.high %v18653_v19, %v18653_v19  ;;  %25004 = vst [vmem:[#allocation118_spill] sm:$0xff] %v22699_v21  ;;  %v18654_v4 = vld [vmem:[%s20800_s17 + $0x6a] sm:$0xff] }
 0x27a   : > { %v13062_v56 = vrot.slane %v13048_v17, %v20795_v8  ;;  %v12509_v6 = vrot.slane %v18653_v19, %v20795_v8  ;;  %v13064_v20 = vcombine.low %v12494_v37, %v18690_v28  ;;  %25005 = vst [vmem:[#allocation119_spill] sm:$0xff] %v22704_v26  ;;  %v11426_v14 = vcombine.high %v11424_v54, %v11424_v54  ;;  %v22708_v43 = vpop.f32.mrf.mxu0 }
 0x27b   : > { %v11952_v55 = vcombine.low %v11944_v47, %v11951_v33  ;;  %v11953_v3 = vcombine.low %v11417_v13, %v11425_v23  ;;  %v12516_v44 = vrot.slane %v12502_v31, %v20795_v8  ;;  %25006 = vst [vmem:[#allocation120_spill] sm:$0xff] %v22708_v43  ;;  %v11434_v19 = vcombine.high %v18596_v62, %v18596_v62  ;;  %v22719_v31 = vpop.f32.mrf.mxu1 }
 0x27c   : > { %v13063_v1 = vcombine.low %v13055_v18, %v13062_v56  ;;  %v12517_v57 = vcombine.high %v12509_v6, %v12509_v6  ;;  %v11954_v17 = vcombine.low %v11424_v54, %v11426_v14  ;;  %v11441_v37 = vrot.slane %v18596_v62, %v20795_v8  ;;  %v22714_v47 = vpop.f32.mrf.mxu0  ;;  %25008 = vst [vmem:[#allocation122_spill] sm:$0xff] %v22719_v31  ;;  %v18597_v62 = vld [vmem:[%s20800_s17 + $0x171] sm:$0xff] }
 0x27d   : > { %19880 = vmatmul.mubr.msk.f32.gmra.mxu1 %vm2095_vm1, %v11952_v55  ;;  %v11961_v28 = vrot.slane %v11953_v3, %v20795_v8  ;;  %25007 = vst [vmem:[#allocation121_spill] sm:$0xff] %v22714_v47  ;;  %v13072_v33 = vrot.slane %v13064_v20, %v20795_v8  ;;  %v12518_v18 = vcombine.high %v12516_v44, %v12516_v44  ;;  %v22732_v49 = vpop.f32.mrf.mxu1 }
 0x27e   : > { %19894 = vmatmul.mubr.msk.f32.gmra.mxu0 %vm2095_vm1, %v13063_v1  ;;  %v13065_v13 = vcombine.low %v12509_v6, %v12517_v57  ;;  %v12526_v23 = vrot.slane %v18654_v4, %v20795_v8  ;;  %v11968_v54 = vrot.slane %v11954_v17, %v20795_v8  ;;  %v11448_v56 = vrot.slane %v11434_v19, %v20795_v8  ;;  %v22724_v3 = vpop.f32.mrf.mxu0  ;;  %v18656_v6 = vld [vmem:[%s20800_s17 + $0x7a] sm:$0xff] }
 0x27f   : > { %v11449_v55 = vcombine.high %v11441_v37, %v11441_v37  ;;  %v11970_v14 = vcombine.low %v18611_v51, %v11441_v37  ;;  %25009 = vst [vmem:[#allocation123_spill] sm:$0xff] %v22724_v3  ;;  %v13081_v57 = vcombine.low %v12516_v44, %v12518_v18  ;;  %v11451_v37 = vcombine.high %v18597_v62, %v18597_v62 }
 0x280   : > { %v13079_v47 = vrot.slane %v13065_v13, %v20795_v8  ;;  %v12534_v1 = vcombine.high %v12526_v23, %v12526_v23  ;;  %v11969_v20 = vcombine.low %v11961_v28, %v11968_v54  ;;  %v11450_v26 = vcombine.high %v11448_v56, %v11448_v56  ;;  %v22729_v31 = vpop.f32.mrf.mxu0  ;;  %25011 = vst [vmem:[#allocation125_spill] sm:$0xff] %v22732_v49 }
 0x281   : > { %v11971_v43 = vcombine.low %v11449_v55, %v11448_v56  ;;  %v11978_v21 = vrot.slane %v11970_v14, %v20795_v8  ;;  %25010 = vst [vmem:[#allocation124_spill] sm:$0xff] %v22729_v31  ;;  %v13089_v51 = vrot.slane %v13081_v57, %v20795_v8  ;;  %v11458_v28 = vrot.slane %v18597_v62, %v20795_v8  ;;  %v18612_v57 = vld.sshfl [vmem:[%s20800_s17 + $0x179] sm:$0x3 pattern:$0x76325410]  ;;  %v18657_v62 = vld [vmem:[%s20800_s17 + $0x82] sm:$0xff] }
 0x282   : > { %v13080_v17 = vcombine.low %v13072_v33, %v13079_v47  ;;  %v13082_v19 = vcombine.low %v12526_v23, %v12534_v1  ;;  %19882 = vmatprep.mubr.msk.f32.mxu1 %vm2095_vm1, %v11969_v20  ;;  %v12519_v13 = vcombine.high %v18654_v4, %v18654_v4  ;;  %v12543_v18 = vcombine.high %v18656_v6, %v18656_v6  ;;  %v22737_v54 = vpop.f32.mrf.mxu0  ;;  %v18691_v23 = vld.sshfl [vmem:[%s20800_s17 + $0x72] sm:$0x3 pattern:$0x76325410] }
 0x283   : > { %v11985_v44 = vrot.slane %v11971_v43, %v20795_v8  ;;  %25012 = vst [vmem:[#allocation126_spill] sm:$0xff] %v22737_v54  ;;  %v11465_v33 = vrot.slane %v11451_v37, %v20795_v8  ;;  %v12550_v56 = vrot.slane %v18656_v6, %v20795_v8  ;;  %v11466_v14 = vcombine.high %v11458_v28, %v11458_v28 }
 0x284   : > { %19896 = vmatprep.mubr.msk.f32.mxu0 %vm2095_vm1, %v13080_v17  ;;  %v13096_v47 = vrot.slane %v13082_v19, %v20795_v8  ;;  %v11987_v1 = vcombine.low %v11450_v26, %v11458_v28  ;;  %v12533_v43 = vrot.slane %v12519_v13, %v20795_v8  ;;  %v22747_v4 = vpop.f32.mrf.mxu0  ;;  %v12557_v17 = vrot.slane %v12543_v18, %v20795_v8  ;;  %v22750_v19 = vpop.f32.mrf.mxu1 }
 0x285   : > { %v11986_v55 = vcombine.low %v11978_v21, %v11985_v44  ;;  %25013 = vst [vmem:[#allocation127_spill] sm:$0xff] %v22747_v4  ;;  %v11467_v54 = vcombine.high %v11465_v33, %v11465_v33  ;;  %v12558_v31 = vcombine.high %v12550_v56, %v12550_v56  ;;  %25014 = vst [vmem:[#allocation128_spill] sm:$0xff] %v22750_v19 }
 0x286   : > { %v13097_v20 = vcombine.low %v13089_v51, %v13096_v47  ;;  %v11988_v6 = vcombine.low %v11466_v14, %v11465_v33  ;;  %v11995_v21 = vrot.slane %v11987_v1, %v20795_v8  ;;  %v12535_v26 = vcombine.high %v12533_v43, %v12533_v43  ;;  %v22756_v13 = vpop.f32.mrf.mxu0  ;;  %v18659_v1 = vld [vmem:[%s20800_s17 + $0x92] sm:$0xff] }
 0x287   : > { %19883 = vmatmul.mubr.msk.f32.gmra.mxu1 %vm2095_vm1, %v11986_v55  ;;  %v13099_v37 = vcombine.low %v18691_v23, %v12550_v56  ;;  %v12004_v44 = vcombine.low %v11467_v54, %v18612_v57  ;;  %v12559_v28 = vcombine.high %v12557_v17, %v12557_v17  ;;  %v12567_v51 = vrot.slane %v18657_v62, %v20795_v8  ;;  %v22762_v23 = vpop.f32.mrf.mxu1 }
 0x288   : > { %19897 = vmatmul.mubr.msk.f32.gmra.mxu0 %vm2095_vm1, %v13097_v20  ;;  %25015 = vst [vmem:[#allocation129_spill] sm:$0xff] %v22756_v13  ;;  %v12002_v18 = vrot.slane %v11988_v6, %v20795_v8  ;;  %v13098_v47 = vcombine.low %v12533_v43, %v12535_v26  ;;  %v13115_v4 = vcombine.low %v12558_v31, %v12557_v17  ;;  %25016 = vst [vmem:[#allocation130_spill] sm:$0xff] %v22762_v23  ;;  %v18660_v13 = vld [vmem:[%s20800_s17 + $0x9a] sm:$0xff]  ;;  %v22768_v26 = vpop.f32.mrf.mxu0 }
 0x289   : > { %v13113_v55 = vrot.slane %v13099_v37, %v20795_v8  ;;  %v12011_v33 = vrot.slane %v12004_v44, %v20795_v8  ;;  %v13116_v14 = vcombine.low %v12559_v28, %v12567_v51  ;;  %v12560_v20 = vcombine.high %v18657_v62, %v18657_v62  ;;  %25017 = vst [vmem:[#allocation131_spill] sm:$0xff] %v22768_v26  ;;  %v22775_v28 = vpop.f32.mrf.mxu1 }
 0x28a   : > { %v12003_v54 = vcombine.low %v11995_v21, %v12002_v18  ;;  %v13106_v56 = vrot.slane %v13098_v47, %v20795_v8  ;;  %v13123_v57 = vrot.slane %v13115_v4, %v20795_v8  ;;  %v12575_v43 = vcombine.high %v12567_v51, %v12567_v51  ;;  %v18692_v4 = vld.sshfl [vmem:[%s20800_s17 + $0x8a] sm:$0x3 pattern:$0x76325410]  ;;  %25018 = vst [vmem:[#allocation132_spill] sm:$0xff] %v22775_v28 }
 0x28b   : > { %v13130_v6 = vrot.slane %v13116_v14, %v20795_v8  ;;  %v12574_v17 = vrot.slane %v12560_v20, %v20795_v8  ;;  %v12584_v37 = vcombine.high %v18659_v1, %v18659_v1  ;;  %v12591_v21 = vrot.slane %v18659_v1, %v20795_v8  ;;  %v18662_v14 = vld [vmem:[%s20800_s17 + $0xaa] sm:$0xff]  ;;  %v22788_v3 = vpop.f32.mrf.mxu1 }
 0x28c   : > { %19885 = vmatprep.mubr.msk.f32.mxu1 %vm2095_vm1, %v12003_v54  ;;  %v13114_v31 = vcombine.low %v13106_v56, %v13113_v55  ;;  %v12601_v62 = vcombine.high %v18660_v13, %v18660_v13  ;;  %v12608_v1 = vrot.slane %v18660_v13, %v20795_v8  ;;  %v22783_v54 = vpop.f32.mrf.mxu0  ;;  %v12632_v26 = vrot.slane %v18662_v14, %v20795_v8 }
 0x28d   : > { %19886 = vmatmul.mubr.msk.f32.gmra.mxu1 %vm2095_vm1, %v12011_v33  ;;  %v13131_v44 = vcombine.low %v13123_v57, %v13130_v6  ;;  %v12576_v51 = vcombine.high %v12574_v17, %v12574_v17  ;;  %v13132_v18 = vcombine.low %v12575_v43, %v12574_v17  ;;  %v12598_v47 = vrot.slane %v12584_v37, %v20795_v8  ;;  %v18693_v17 = vld.sshfl [vmem:[%s20800_s17 + $0xa2] sm:$0x3 pattern:$0x76325410] }
 0x28e   : > { %19899 = vmatprep.mubr.msk.f32.mxu0 %vm2095_vm1, %v13114_v31  ;;  %v12599_v55 = vcombine.high %v12591_v21, %v12591_v21  ;;  %v12615_v33 = vrot.slane %v12601_v62, %v20795_v8  ;;  %25019 = vst [vmem:[#allocation133_spill] sm:$0xff] %v22783_v54  ;;  %v12616_v31 = vcombine.high %v12608_v1, %v12608_v1  ;;  %25020 = vst [vmem:[#allocation134_spill] sm:$0xff] %v22788_v3 }
 0x28f   : > { %19900 = vmatmul.mubr.msk.f32.gmra.mxu0 %vm2095_vm1, %v13131_v44  ;;  %v13133_v56 = vcombine.low %v12576_v51, %v18692_v4  ;;  %v13140_v57 = vrot.slane %v13132_v18, %v20795_v8  ;;  %v12600_v20 = vcombine.high %v12598_v47, %v12598_v47  ;;  %v12625_v37 = vcombine.high %v18662_v14, %v18662_v14 }
 0x290   : > { %v13149_v6 = vcombine.low %v12591_v21, %v12599_v55  ;;  %v12617_v43 = vcombine.high %v12615_v33, %v12615_v33  ;;  %v13166_v4 = vcombine.low %v12608_v1, %v12616_v31  ;;  %v12640_v54 = vcombine.high %v12632_v26, %v12632_v26  ;;  %v18663_v21 = vld [vmem:[%s20800_s17 + $0xb2] sm:$0xff]  ;;  %v22794_v55 = vpop.f32.mrf.mxu0  ;;  %v22800_v1 = vpop.f32.mrf.mxu1 }
 0x291   : > { %v13147_v13 = vrot.slane %v13133_v56, %v20795_v8  ;;  %v13150_v44 = vcombine.low %v12598_v47, %v12600_v20  ;;  %v12639_v18 = vrot.slane %v12625_v37, %v20795_v8  ;;  %v13183_v14 = vcombine.low %v18693_v17, %v12632_v26  ;;  %v18665_v20 = vld [vmem:[%s20800_s17 + $0xc2] sm:$0xff]  ;;  %25021 = vst [vmem:[#allocation135_spill] sm:$0xff] %v22800_v1 }
 0x292   : > { %v13157_v62 = vrot.slane %v13149_v6, %v20795_v8  ;;  %v13167_v51 = vcombine.low %v12615_v33, %v12617_v43  ;;  %v13174_v3 = vrot.slane %v13166_v4, %v20795_v8  ;;  %v12649_v31 = vrot.slane %v18663_v21, %v20795_v8  ;;  %v22806_v17 = vpop.f32.mrf.mxu0  ;;  %v22814_v4 = vpop.f32.mrf.mxu1 }
 0x293   : > { %v13148_v28 = vcombine.low %v13140_v57, %v13147_v13  ;;  %v13164_v23 = vrot.slane %v13150_v44, %v20795_v8  ;;  %v13184_v19 = vcombine.low %v12640_v54, %v12639_v18  ;;  %v12641_v47 = vcombine.high %v12639_v18, %v12639_v18  ;;  %25022 = vst [vmem:[#allocation136_spill] sm:$0xff] %v22806_v17 }
 0x294   : > { %v13181_v56 = vrot.slane %v13167_v51, %v20795_v8  ;;  %v13191_v6 = vrot.slane %v13183_v14, %v20795_v8  ;;  %v12642_v57 = vcombine.high %v18663_v21, %v18663_v21  ;;  %v12657_v37 = vcombine.high %v12649_v31, %v12649_v31  ;;  %25023 = vst [vmem:[#allocation137_spill] sm:$0xff] %v22814_v4  ;;  %v18668_v14 = vld [vmem:[%s20800_s17 + $0xda] sm:$0xff] }
 0x295   : > { %19902 = vmatprep.mubr.msk.f32.mxu0 %vm2095_vm1, %v13148_v28  ;;  %v13165_v33 = vcombine.low %v13157_v62, %v13164_v23  ;;  %v13198_v43 = vrot.slane %v13184_v19, %v20795_v8  ;;  %v13200_v13 = vcombine.low %v12641_v47, %v12649_v31  ;;  %v12673_v28 = vrot.slane %v18665_v20, %v20795_v8  ;;  %v18666_v23 = vld [vmem:[%s20800_s17 + $0xca] sm:$0xff]  ;;  %v18694_v62 = vld.sshfl [vmem:[%s20800_s17 + $0xba] sm:$0x3 pattern:$0x76325410] }
 0x296   : > { %v13182_v26 = vcombine.low %v13174_v3, %v13181_v56  ;;  %v12656_v54 = vrot.slane %v12642_v57, %v20795_v8  ;;  %v12666_v3 = vcombine.high %v18665_v20, %v18665_v20  ;;  %v12683_v47 = vcombine.high %v18666_v23, %v18666_v23  ;;  %v22820_v57 = vpop.f32.mrf.mxu0 }
 0x297   : > { %19903 = vmatmul.mubr.msk.f32.gmra.mxu0 %vm2095_vm1, %v13165_v33  ;;  %v13199_v44 = vcombine.low %v13191_v6, %v13198_v43  ;;  %v13208_v18 = vrot.slane %v13200_v13, %v20795_v8  ;;  %v12681_v21 = vcombine.high %v12673_v28, %v12673_v28  ;;  %v12690_v33 = vrot.slane %v18666_v23, %v20795_v8 }
 0x298   : > { %19905 = vmatprep.mubr.msk.f32.mxu0 %vm2095_vm1, %v13182_v26  ;;  %v12658_v19 = vcombine.high %v12656_v54, %v12656_v54  ;;  %v13201_v51 = vcombine.low %v12657_v37, %v12656_v54  ;;  %v12680_v56 = vrot.slane %v12666_v3, %v20795_v8  ;;  %v18695_v26 = vld.sshfl [vmem:[%s20800_s17 + $0xd2] sm:$0x3 pattern:$0x76325410]  ;;  %v12697_v54 = vrot.slane %v12683_v47, %v20795_v8  ;;  %v22827_v3 = vpop.f32.mrf.mxu1 }
 0x299   : > { %v13218_v31 = vcombine.low %v12673_v28, %v12681_v21  ;;  %v12698_v37 = vcombine.high %v12690_v33, %v12690_v33  ;;  %v12714_v13 = vrot.slane %v18668_v14, %v20795_v8  ;;  %25024 = vst [vmem:[#allocation138_spill] sm:$0xff] %v22827_v3  ;;  %v18669_v28 = vld [vmem:[%s20800_s17 + $0xe2] sm:$0xff]  ;;  %v12707_v21 = vcombine.high %v18668_v14, %v18668_v14 }
 0x29a   : > { %v13215_v6 = vrot.slane %v13201_v51, %v20795_v8  ;;  %v13217_v20 = vcombine.low %v12658_v19, %v18694_v62  ;;  %v12682_v43 = vcombine.high %v12680_v56, %v12680_v56  ;;  %v12699_v51 = vcombine.high %v12697_v54, %v12697_v54  ;;  %v22832_v62 = vpop.f32.mrf.mxu0 }
 0x29b   : > { %19906 = vmatmul.mubr.msk.f32.gmra.mxu0 %vm2095_vm1, %v13199_v44  ;;  %v13232_v4 = vrot.slane %v13218_v31, %v20795_v8  ;;  %v13235_v1 = vcombine.low %v12690_v33, %v12698_v37  ;;  %v13252_v49 = vcombine.low %v18695_v26, %v12714_v13  ;;  %25025 = vst [vmem:[#allocation139_spill] sm:$0xff] %v22832_v62 }
 0x29c   : > { %v13216_v17 = vcombine.low %v13208_v18, %v13215_v6  ;;  %v13225_v23 = vrot.slane %v13217_v20, %v20795_v8  ;;  %v13234_v44 = vcombine.low %v12680_v56, %v12682_v43  ;;  %v12722_v47 = vcombine.high %v12714_v13, %v12714_v13  ;;  %v22838_v56 = vpop.f32.mrf.mxu1  ;;  %v22845_v43 = vpop.f32.mrf.mxu0 }
 0x29d   : > { %v13249_v18 = vrot.slane %v13235_v1, %v20795_v8  ;;  %v13251_v6 = vcombine.low %v12697_v54, %v12699_v51  ;;  %v13266_v20 = vrot.slane %v13252_v49, %v20795_v8  ;;  %25026 = vst [vmem:[#allocation140_spill] sm:$0xff] %v22838_v56  ;;  %v12721_v33 = vrot.slane %v12707_v21, %v20795_v8 }
 0x29e   : > { %19908 = vmatprep.mubr.msk.f32.mxu0 %vm2095_vm1, %v13216_v17  ;;  %v13233_v19 = vcombine.low %v13225_v23, %v13232_v4  ;;  %v13242_v3 = vrot.slane %v13234_v44, %v20795_v8  ;;  %v12724_v31 = vcombine.high %v18669_v28, %v18669_v28  ;;  %v12731_v17 = vrot.slane %v18669_v28, %v20795_v8  ;;  %v18671_v4 = vld [vmem:[%s20800_s17 + $0xf2] sm:$0xff]  ;;  %v18696_v23 = vld.sshfl [vmem:[%s20800_s17 + $0xea] sm:$0x3 pattern:$0x76325410]  ;;  %v18672_v28 = vld [vmem:[%s20800_s17 + $0xfa] sm:$0xff] }
 0x29f   : > { %v13259_v26 = vrot.slane %v13251_v6, %v20795_v8  ;;  %25027 = vst [vmem:[#allocation141_spill] sm:$0xff] %v22845_v43  ;;  %v12723_v1 = vcombine.high %v12721_v33, %v12721_v33  ;;  %v13268_v37 = vcombine.low %v12722_v47, %v12721_v33  ;;  %v12748_v44 = vcombine.high %v18671_v4, %v18671_v4 }
 0x2a0   : > { %19909 = vmatmul.mubr.msk.f32.gmra.mxu0 %vm2095_vm1, %v13233_v19  ;;  %v13250_v14 = vcombine.low %v13242_v3, %v13249_v18  ;;  %v12738_v49 = vrot.slane %v12724_v31, %v20795_v8  ;;  %v12739_v54 = vcombine.high %v12731_v17, %v12731_v17  ;;  %v12755_v51 = vrot.slane %v18671_v4, %v20795_v8  ;;  %v22852_v19 = vpop.f32.mrf.mxu1  ;;  %v22857_v31 = vpop.f32.mrf.mxu0 }
 0x2a1   : > { %v13267_v13 = vcombine.low %v13259_v26, %v13266_v20  ;;  %25028 = vst [vmem:[#allocation142_spill] sm:$0xff] %v22852_v19  ;;  %v13269_v3 = vcombine.low %v12723_v1, %v12731_v17  ;;  %v13276_v21 = vrot.slane %v13268_v37, %v20795_v8  ;;  %v12762_v47 = vrot.slane %v12748_v44, %v20795_v8  ;;  %v18674_v17 = vld [vmem:[%s20800_s17 + $0x10a] sm:$0xff] }
 0x2a2   : > { %19911 = vmatprep.mubr.msk.f32.mxu0 %vm2095_vm1, %v13250_v14  ;;  %v12740_v18 = vcombine.high %v12738_v49, %v12738_v49  ;;  %v13285_v6 = vcombine.low %v12739_v54, %v12738_v49  ;;  %v12763_v33 = vcombine.high %v12755_v51, %v12755_v51  ;;  %25029 = vst [vmem:[#allocation143_spill] sm:$0xff] %v22857_v31  ;;  %v22863_v54 = vpop.f32.mrf.mxu1  ;;  %v22870_v56 = vpop.f32.mrf.mxu0 }
 0x2a3   : > { %v13283_v20 = vrot.slane %v13269_v3, %v20795_v8  ;;  %v12765_v26 = vcombine.high %v18672_v28, %v18672_v28  ;;  %v12764_v1 = vcombine.high %v12762_v47, %v12762_v47  ;;  %v12772_v49 = vrot.slane %v18672_v28, %v20795_v8  ;;  %25030 = vst [vmem:[#allocation144_spill] sm:$0xff] %v22863_v54 }
 0x2a4   : > { %19912 = vmatmul.mubr.msk.f32.gmra.mxu0 %vm2095_vm1, %v13267_v13  ;;  %v13286_v14 = vcombine.low %v12740_v18, %v18696_v23  ;;  %v13293_v4 = vrot.slane %v13285_v6, %v20795_v8  ;;  %v13302_v37 = vcombine.low %v12755_v51, %v12763_v33  ;;  %v18697_v18 = vld.sshfl [vmem:[%s20800_s17 + $0x102] sm:$0x3 pattern:$0x76325410]  ;;  %v12789_v19 = vcombine.high %v18674_v17, %v18674_v17  ;;  %v18675_v6 = vld [vmem:[%s20800_s17 + $0x112] sm:$0xff] }
 0x2a5   : > { %v13284_v13 = vcombine.low %v13276_v21, %v13283_v20  ;;  %v12779_v31 = vrot.slane %v12765_v26, %v20795_v8  ;;  %v13303_v62 = vcombine.low %v12762_v47, %v12764_v1  ;;  %v12780_v23 = vcombine.high %v12772_v49, %v12772_v49  ;;  %25031 = vst [vmem:[#allocation145_spill] sm:$0xff] %v22870_v56  ;;  %v18681_v56 = vld [vmem:[%s20800_s17 + $0x142] sm:$0xff] }
 0x2a6   : > { %v13300_v44 = vrot.slane %v13286_v14, %v20795_v8  ;;  %v13310_v3 = vrot.slane %v13302_v37, %v20795_v8  ;;  %v12796_v21 = vrot.slane %v18674_v17, %v20795_v8  ;;  %v12803_v47 = vrot.slane %v12789_v19, %v20795_v8  ;;  %v22876_v14 = vpop.f32.mrf.mxu1 }
 0x2a7   : > { %19914 = vmatprep.mubr.msk.f32.mxu0 %vm2095_vm1, %v13284_v13  ;;  %v12781_v28 = vcombine.high %v12779_v31, %v12779_v31  ;;  %v13317_v33 = vrot.slane %v13303_v62, %v20795_v8  ;;  %v13319_v20 = vcombine.low %v12772_v49, %v12780_v23  ;;  %25032 = vst [vmem:[#allocation146_spill] sm:$0xff] %v22876_v14  ;;  %v18677_v62 = vld [vmem:[%s20800_s17 + $0x122] sm:$0xff]  ;;  %v22882_v49 = vpop.f32.mrf.mxu0 }
 0x2a8   : > { %v13301_v51 = vcombine.low %v13293_v4, %v13300_v44  ;;  %v12804_v1 = vcombine.high %v12796_v21, %v12796_v21  ;;  %v13336_v37 = vcombine.low %v18697_v18, %v12796_v21  ;;  %v12806_v54 = vcombine.high %v18675_v6, %v18675_v6  ;;  %25033 = vst [vmem:[#allocation147_spill] sm:$0xff] %v22882_v49  ;;  %v22889_v21 = vpop.f32.mrf.mxu1  ;;  %v18678_v49 = vld [vmem:[%s20800_s17 + $0x12a] sm:$0xff] }
 0x2a9   : > { %v13320_v26 = vcombine.low %v12779_v31, %v12781_v28  ;;  %v13318_v13 = vcombine.low %v13310_v3, %v13317_v33  ;;  %v13327_v4 = vrot.slane %v13319_v20, %v20795_v8  ;;  %v12805_v44 = vcombine.high %v12803_v47, %v12803_v47  ;;  %v18698_v28 = vld.sshfl [vmem:[%s20800_s17 + $0x11a] sm:$0x3 pattern:$0x76325410]  ;;  %25034 = vst [vmem:[#allocation148_spill] sm:$0xff] %v22889_v21 }
 0x2aa   : > { %19915 = vmatmul.mubr.msk.f32.gmra.mxu0 %vm2095_vm1, %v13301_v51  ;;  %v12813_v17 = vrot.slane %v18675_v6, %v20795_v8  ;;  %v13337_v23 = vcombine.low %v12804_v1, %v12803_v47  ;;  %v13344_v51 = vrot.slane %v13336_v37, %v20795_v8  ;;  %v12820_v31 = vrot.slane %v12806_v54, %v20795_v8  ;;  %v22895_v54 = vpop.f32.mrf.mxu0 }
 0x2ab   : > { %v13334_v19 = vrot.slane %v13320_v26, %v20795_v8  ;;  %19917 = vmatprep.mubr.msk.f32.mxu0 %vm2095_vm1, %v13318_v13  ;;  %v12830_v14 = vcombine.high %v18677_v62, %v18677_v62  ;;  %v12837_v1 = vrot.slane %v18677_v62, %v20795_v8  ;;  %25035 = vst [vmem:[#allocation149_spill] sm:$0xff] %v22895_v54 }
 0x2ac   : > { %v12821_v18 = vcombine.high %v12813_v17, %v12813_v17  ;;  %v13353_v3 = vcombine.low %v12805_v44, %v12813_v17  ;;  %v13351_v33 = vrot.slane %v13337_v23, %v20795_v8  ;;  %v12822_v20 = vcombine.high %v12820_v31, %v12820_v31 }
 0x2ad   : > { %v13335_v6 = vcombine.low %v13327_v4, %v13334_v19  ;;  %v12844_v13 = vrot.slane %v12830_v14, %v20795_v8  ;;  %v18680_v4 = vld [vmem:[%s20800_s17 + $0x13a] sm:$0xff]  ;;  %v12845_v19 = vcombine.high %v12837_v1, %v12837_v1  ;;  %v12854_v23 = vrot.slane %v18678_v49, %v20795_v8  ;;  %v18699_v14 = vld.sshfl [vmem:[%s20800_s17 + $0x132] sm:$0x3 pattern:$0x76325410] }
 0x2ae   : > { %v13354_v26 = vcombine.low %v12821_v18, %v12820_v31  ;;  %v13361_v47 = vrot.slane %v13353_v3, %v20795_v8  ;;  %v13352_v37 = vcombine.low %v13344_v51, %v13351_v33  ;;  %v13370_v44 = vcombine.low %v12822_v20, %v18698_v28  ;;  %v22902_v31 = vpop.f32.mrf.mxu1  ;;  %v22907_v20 = vpop.f32.mrf.mxu0 }
 0x2af   : > { %19918 = vmatmul.mubr.msk.f32.gmra.mxu0 %vm2095_vm1, %v13335_v6  ;;  %25036 = vst [vmem:[#allocation150_spill] sm:$0xff] %v22902_v31  ;;  %v12846_v18 = vcombine.high %v12844_v13, %v12844_v13  ;;  %v12847_v3 = vcombine.high %v18678_v49, %v18678_v49  ;;  %v13371_v51 = vcombine.low %v12837_v1, %v12845_v19  ;;  %25037 = vst [vmem:[#allocation151_spill] sm:$0xff] %v22907_v20 }
 0x2b0   : > { %v13368_v17 = vrot.slane %v13354_v26, %v20795_v8  ;;  %19920 = vmatprep.mubr.msk.f32.mxu0 %vm2095_vm1, %v13352_v37  ;;  %v13378_v62 = vrot.slane %v13370_v44, %v20795_v8  ;;  %v12862_v33 = vcombine.high %v12854_v23, %v12854_v23  ;;  %v12871_v28 = vcombine.high %v18680_v4, %v18680_v4 }
 0x2b1   : > { %v13387_v26 = vcombine.low %v12844_v13, %v12846_v18  ;;  %v12861_v54 = vrot.slane %v12847_v3, %v20795_v8  ;;  %v12878_v21 = vrot.slane %v18680_v4, %v20795_v8  ;;  %v13385_v37 = vrot.slane %v13371_v51, %v20795_v8 }
 0x2b2   : > { %v13369_v6 = vcombine.low %v13361_v47, %v13368_v17  ;;  %v13388_v44 = vcombine.low %v12854_v23, %v12862_v33  ;;  %v12885_v49 = vrot.slane %v12871_v28, %v20795_v8  ;;  %v22915_v47 = vpop.f32.mrf.mxu1  ;;  %v12895_v20 = vrot.slane %v18681_v56, %v20795_v8  ;;  %v18683_v28 = vld [vmem:[%s20800_s17 + $0x152] sm:$0xff] }
 0x2b3   : > { %25038 = vst [vmem:[#allocation152_spill] sm:$0xff] %v22915_v47  ;;  %v13395_v1 = vrot.slane %v13387_v26, %v20795_v8  ;;  %v12863_v17 = vcombine.high %v12861_v54, %v12861_v54  ;;  %v12886_v19 = vcombine.high %v12878_v21, %v12878_v21  ;;  %v13405_v13 = vcombine.low %v18699_v14, %v12878_v21 }
 0x2b4   : > { %19921 = vmatmul.mubr.msk.f32.gmra.mxu0 %vm2095_vm1, %v13369_v6  ;;  %v13386_v18 = vcombine.low %v13378_v62, %v13385_v37  ;;  %v13402_v3 = vrot.slane %v13388_v44, %v20795_v8  ;;  %v12887_v4 = vcombine.high %v12885_v49, %v12885_v49  ;;  %v22920_v6 = vpop.f32.mrf.mxu0  ;;  %v12888_v21 = vcombine.high %v18681_v56, %v18681_v56  ;;  %v22925_v62 = vpop.f32.mrf.mxu1  ;;  %v18700_v56 = vld.sshfl [vmem:[%s20800_s17 + $0x14a] sm:$0x3 pattern:$0x76325410] }
 0x2b5   : > { %25039 = vst [vmem:[#allocation153_spill] sm:$0xff] %v22920_v6  ;;  %v13404_v51 = vcombine.low %v12861_v54, %v12863_v17  ;;  %v13419_v23 = vrot.slane %v13405_v13, %v20795_v8  ;;  %v13421_v33 = vcombine.low %v12886_v19, %v12885_v49  ;;  %25040 = vst [vmem:[#allocation154_spill] sm:$0xff] %v22925_v62  ;;  %v18684_v19 = vld [vmem:[%s20800_s17 + $0x15a] sm:$0xff] }
 0x2b6   : > { %19923 = vmatprep.mubr.msk.f32.mxu0 %vm2095_vm1, %v13386_v18  ;;  %v13403_v26 = vcombine.low %v13395_v1, %v13402_v3  ;;  %v13422_v47 = vcombine.low %v12887_v4, %v12895_v20  ;;  %v12903_v44 = vcombine.high %v12895_v20, %v12895_v20  ;;  %v12902_v49 = vrot.slane %v12888_v21, %v20795_v8  ;;  %v22933_v13 = vpop.f32.mrf.mxu0 }
 0x2b7   : > { %v13412_v14 = vrot.slane %v13404_v51, %v20795_v8  ;;  %v13429_v37 = vrot.slane %v13421_v33, %v20795_v8  ;;  %v12912_v17 = vcombine.high %v18683_v28, %v18683_v28  ;;  %25041 = vst [vmem:[#allocation155_spill] sm:$0xff] %v22933_v13  ;;  %v12919_v18 = vrot.slane %v18683_v28, %v20795_v8  ;;  %v18686_v33 = vld [vmem:[%s20800_s17 + $0x16a] sm:$0xff] }
 0x2b8   : > { %19924 = vmatmul.mubr.msk.f32.gmra.mxu0 %vm2095_vm1, %v13403_v26  ;;  %v13436_v54 = vrot.slane %v13422_v47, %v20795_v8  ;;  %v12904_v4 = vcombine.high %v12902_v49, %v12902_v49  ;;  %v13438_v51 = vcombine.low %v12903_v44, %v12902_v49  ;;  %v22939_v26 = vpop.f32.mrf.mxu1  ;;  %v12929_v21 = vcombine.high %v18684_v19, %v18684_v19 }
 0x2b9   : > { %v13420_v1 = vcombine.low %v13412_v14, %v13419_v23  ;;  %v12926_v20 = vrot.slane %v12912_v17, %v20795_v8  ;;  %25042 = vst [vmem:[#allocation156_spill] sm:$0xff] %v22939_v26  ;;  %v12927_v47 = vcombine.high %v12919_v18, %v12919_v18  ;;  %v12936_v6 = vrot.slane %v18684_v19, %v20795_v8  ;;  %v18701_v17 = vld.sshfl [vmem:[%s20800_s17 + $0x162] sm:$0x3 pattern:$0x76325410] }
 0x2ba   : > { %v13437_v3 = vcombine.low %v13429_v37, %v13436_v54  ;;  %v13439_v23 = vcombine.low %v12904_v4, %v18700_v56  ;;  %v13446_v28 = vrot.slane %v13438_v51, %v20795_v8  ;;  %v22945_v37 = vpop.f32.mrf.mxu0  ;;  %v12943_v54 = vrot.slane %v12929_v21, %v20795_v8  ;;  %v22951_v62 = vpop.f32.mrf.mxu1 }
 0x2bb   : > { %19926 = vmatprep.mubr.msk.f32.mxu0 %vm2095_vm1, %v13420_v1  ;;  %v12928_v14 = vcombine.high %v12926_v20, %v12926_v20  ;;  %25043 = vst [vmem:[#allocation157_spill] sm:$0xff] %v22945_v37  ;;  %v13455_v44 = vcombine.low %v12919_v18, %v12927_v47  ;;  %v12944_v49 = vcombine.high %v12936_v6, %v12936_v6  ;;  %v18687_v37 = vld [vmem:[%s20800_s17 + $0x172] sm:$0xff] }
 0x2bc   : > { %19927 = vmatmul.mubr.msk.f32.gmra.mxu0 %vm2095_vm1, %v13437_v3  ;;  %v12953_v13 = vcombine.high %v18686_v33, %v18686_v33  ;;  %v13453_v1 = vrot.slane %v13439_v23, %v20795_v8  ;;  %v12960_v19 = vrot.slane %v18686_v33, %v20795_v8  ;;  %v12945_v3 = vcombine.high %v12943_v54, %v12943_v54  ;;  %v22957_v43 = vpop.f32.mrf.mxu0 }
 0x2bd   : > { %v13456_v26 = vcombine.low %v12926_v20, %v12928_v14  ;;  %v13463_v56 = vrot.slane %v13455_v44, %v20795_v8  ;;  %v13472_v4 = vcombine.low %v12936_v6, %v12944_v49  ;;  %v22962_v49 = vpop.f32.mrf.mxu1 }
 0x2be   : > { %v12967_v51 = vrot.slane %v12953_v13, %v20795_v8  ;;  %v13454_v18 = vcombine.low %v13446_v28, %v13453_v1  ;;  %v12968_v21 = vcombine.high %v12960_v19, %v12960_v19  ;;  %v13489_v31 = vcombine.low %v18701_v17, %v12960_v19  ;;  %v22969_v1 = vpop.f32.mrf.mxu0 }
 0x2bf   : > { %v13470_v47 = vrot.slane %v13456_v26, %v20795_v8  ;;  %v13473_v23 = vcombine.low %v12943_v54, %v12945_v3  ;;  %v13480_v20 = vrot.slane %v13472_v4, %v20795_v8  ;;  %v12970_v13 = vcombine.high %v18687_v37, %v18687_v37  ;;  %25044 = vst [vmem:[#allocation158_spill] sm:$0xff] %v22969_v1  ;;  %v18702_v4 = vld.sshfl [vmem:[%s20800_s17 + $0x17a] sm:$0x3 pattern:$0x76325410] }
 0x2c0   : > { %v12969_v33 = vcombine.high %v12967_v51, %v12967_v51  ;;  %19929 = vmatprep.mubr.msk.f32.mxu0 %vm2095_vm1, %v13454_v18  ;;  %v13490_v44 = vcombine.low %v12968_v21, %v12967_v51  ;;  %v13497_v6 = vrot.slane %v13489_v31, %v20795_v8  ;;  %v12977_v28 = vrot.slane %v18687_v37, %v20795_v8  ;;  %v22972_v18 = vpop.f32.mrf.mxu1 }
 0x2c1   : > { %v13471_v14 = vcombine.low %v13463_v56, %v13470_v47  ;;  %v13487_v26 = vrot.slane %v13473_v23, %v20795_v8  ;;  %v12984_v17 = vrot.slane %v12970_v13, %v20795_v8  ;;  %v22977_v23 = vpop.f32.mrf.mxu0 }
 0x2c2   : > { %v13504_v54 = vrot.slane %v13490_v44, %v20795_v8  ;;  %v12985_v56 = vcombine.high %v12977_v28, %v12977_v28  ;;  %v13506_v3 = vcombine.low %v12969_v33, %v12977_v28  ;;  %25045 = vst [vmem:[#allocation159_spill] sm:$0xff] %v22977_v23  ;;  %v22981_v33 = vpop.f32.mrf.mxu1 }
 0x2c3   : > { %19930 = vmatmul.mubr.msk.f32.gmra.mxu0 %vm2095_vm1, %v13471_v14  ;;  %v13488_v19 = vcombine.low %v13480_v20, %v13487_v26  ;;  %v12986_v51 = vcombine.high %v12984_v17, %v12984_v17 }
 0x2c4   : > { %v13505_v31 = vcombine.low %v13497_v6, %v13504_v54  ;;  %v13507_v47 = vcombine.low %v12985_v56, %v12984_v17  ;;  %v13514_v37 = vrot.slane %v13506_v3, %v20795_v8  ;;  %v19781_v13 = vpop.f32.mrf.mxu1 }
 0x2c5   : > { %19932 = vmatprep.mubr.msk.f32.mxu0 %vm2095_vm1, %v13488_v19  ;;  %v13523_v21 = vcombine.low %v12986_v51, %v18702_v4 }
 0x2c6   : > { %v13521_v14 = vrot.slane %v13507_v47, %v20795_v8  ;;  %v22983_v6 = vpop.f32.mrf.mxu0  ;;  %v22989_v28 = vpop.f32.mrf.mxu1 }
 0x2c7   : > { %19933 = vmatmul.mubr.msk.f32.gmra.mxu0 %vm2095_vm1, %v13505_v31  ;;  %v13530_v20 = vrot.slane %v13523_v21, %v20795_v8  ;;  %25046 = vst [vmem:[#allocation160_spill] sm:$0xff] %v22983_v6  ;;  %v25126_v8 = vld [vmem:[#allocation56_spill] sm:$0xff] }
 0x2c8   : > { %v13522_v44 = vcombine.low %v13514_v37, %v13521_v14  ;;  %v22987_v26 = vpop.f32.mrf.mxu0  ;;  %v22993_v17 = vpop.f32.mrf.mxu1  ;;  %v18787_v37 = vld [vmem:[%s24884_s3 + $0x10] sm:$0xff] }
 0x2c9   : > { %25047 = vst [vmem:[#allocation161_spill] sm:$0xff] %v22987_v26  ;;  %20014 = vmatprep.subr.mxu0 %v18787_v37 }
 0x2ca   : > { %19935 = vmatprep.mubr.msk.f32.mxu0 %vm2095_vm1, %v13522_v44  ;;  %v22997_v56 = vpop.f32.mrf.mxu1  ;;  %20015 = vmatpush3.msra.mxu0 %v18787_v37 }
 0x2cb   : > { %19936 = vmatmul.mubr.msk.f32.gmra.mxu0 %vm2095_vm1, %v13530_v20 }
 0x2cc   : > { %v23001_v4 = vpop.f32.mrf.mxu1 }
 0x2ce   : > { %v23005_v51 = vpop.f32.mrf.mxu1 }
 0x2cf   : > { %v22991_v54 = vpop.f32.mrf.mxu0 }
 0x2d0   : > { %25048 = vst [vmem:[#allocation162_spill] sm:$0xff] %v22991_v54  ;;  %v23012_v21 = vpop.f32.mrf.mxu1 }
 0x2d1   : > { %v22995_v19 = vpop.f32.mrf.mxu0 }
 0x2d2   : > { %25049 = vst [vmem:[#allocation163_spill] sm:$0xff] %v22995_v19  ;;  %v23016_v20 = vpop.f32.mrf.mxu1 }
 0x2da   : > { %v22999_v3 = vpop.f32.mrf.mxu0 }
 0x2db   : > { %25050 = vst [vmem:[#allocation164_spill] sm:$0xff] %v22999_v3  ;;  %v23020_v3 = vpop.f32.mrf.mxu1 }
 0x2dc   : > { %v23003_v31 = vpop.f32.mrf.mxu0  ;;  %25055 = vst [vmem:[#allocation169_spill] sm:$0xff] %v23020_v3 }
 0x2dd   : > { %25051 = vst [vmem:[#allocation165_spill] sm:$0xff] %v23003_v31  ;;  %v23024_v19 = vpop.f32.mrf.mxu1 }
 0x2de   : > { %25057 = vst [vmem:[#allocation171_spill] sm:$0xff] %v23024_v19  ;;  %v25106_v19 = vld [vmem:[#allocation9_spill] sm:$0xff] }
 0x2df   : > { %v23028_v54 = vpop.f32.mrf.mxu1 }
 0x2e0   : > { %25059 = vst [vmem:[#allocation173_spill] sm:$0xff] %v23028_v54 }
 0x2e1   : > { %v23032_v6 = vpop.f32.mrf.mxu1 }
 0x2e2   : > { %v23007_v47 = vpop.f32.mrf.mxu0  ;;  %25061 = vst [vmem:[#allocation175_spill] sm:$0xff] %v23032_v6 }
 0x2e3   : > { %25052 = vst [vmem:[#allocation166_spill] sm:$0xff] %v23007_v47 }
 0x2e4   : > { %v23014_v14 = vpop.f32.mrf.mxu0 }
 0x2e5   : > { %25053 = vst [vmem:[#allocation167_spill] sm:$0xff] %v23014_v14  ;;  %v23036_v14 = vpop.f32.mrf.mxu1 }
 0x2e6   : > { %25063 = vst [vmem:[#allocation177_spill] sm:$0xff] %v23036_v14  ;;  %v25102_v14 = vld [vmem:[#allocation38_spill] sm:$0xff] }
 0x2ee   : > { %v23018_v44 = vpop.f32.mrf.mxu0 }
 0x2ef   : > { %25054 = vst [vmem:[#allocation168_spill] sm:$0xff] %v23018_v44  ;;  %v23040_v44 = vpop.f32.mrf.mxu1 }
 0x2f0   : > { %v23022_v31 = vpop.f32.mrf.mxu0  ;;  %25065 = vst [vmem:[#allocation179_spill] sm:$0xff] %v23040_v44  ;;  %v3058_v44 = vadd.f32 %v21870_v30, %v21809_v2  ;;  %v3088_v2 = vadd.f32 %v21953_v59, %v21896_v15  ;;  %v3123_v30 = vadd.f32 %v22026_v50, %v21967_v24  ;;  %v3133_v15 = vadd.f32 %v22055_v10, %v21996_v34  ;;  %v25075_v59 = vld [vmem:[#allocation13_spill] sm:$0xff]  ;;  %v25076_v24 = vld [vmem:[#allocation20_spill] sm:$0xff]  ;;  %v25079_v50 = vld [vmem:[#allocation15_spill] sm:$0xff] }
 0x2f1   : > { %25056 = vst [vmem:[#allocation170_spill] sm:$0xff] %v23022_v31  ;;  %v3193_v31 = vadd.f32 %v22225_v40, %v22171_v53  ;;  %v3073_v40 = vadd.f32 %v21883_v42, %v21824_v25  ;;  %v3103_v25 = vadd.f32 %v21969_v27, %v21911_v38  ;;  %v3118_v42 = vadd.f32 %v22041_v22, %v21981_v60  ;;  %v25080_v22 = vld [vmem:[#allocation24_spill] sm:$0xff]  ;;  %v25081_v10 = vld [vmem:[#allocation17_spill] sm:$0xff] }
 0x2f2   : > { %v3153_v27 = vadd.f32 %v25076_v24, %v25075_v59  ;;  %v3163_v34 = vadd.f32 %v25080_v22, %v25079_v50  ;;  %v25090_v59 = vld [vmem:[#allocation23_spill] sm:$0xff]  ;;  %v25091_v24 = vld [vmem:[#allocation30_spill] sm:$0xff]  ;;  %v25094_v22 = vld [vmem:[#allocation25_spill] sm:$0xff] }
 0x2f8   : > { %v23026_v47 = vpop.f32.mrf.mxu0 }
 0x2f9   : > { %25058 = vst [vmem:[#allocation172_spill] sm:$0xff] %v23026_v47  ;;  %v23047_v47 = vld [vmem:[%s24884_s3] sm:$0xff] }
 0x2fa   : > { %v23030_v26 = vpop.f32.mrf.mxu0  ;;  %25066 = vst [vmem:[#allocation180_spill] sm:$0xff] %v23047_v47  ;;  %19976 = vmatprep.subr.mxu1 %v23047_v47  ;;  %v3083_v47 = vadd.f32 %v21913_v39, %v21852_v7  ;;  %v3113_v7 = vadd.f32 %v21998_v35, %v21936_v32  ;;  %v25071_v39 = vld [vmem:[#allocation11_spill] sm:$0xff]  ;;  %v25073_v32 = vld [vmem:[#allocation12_spill] sm:$0xff]  ;;  %v25078_v35 = vld [vmem:[#allocation22_spill] sm:$0xff] }
 0x2fb   : > { %25060 = vst [vmem:[#allocation174_spill] sm:$0xff] %v23030_v26  ;;  %v23053_v26 = vpop.f32.mrf.mxu1 }
 0x2fc   : > { %25068 = vst [vmem:[#allocation182_spill] sm:$0xff] %v23053_v26 }
 0x302   : > { %v23034_v37 = vpop.f32.mrf.mxu0 }
 0x303   : > { %25062 = vst [vmem:[#allocation176_spill] sm:$0xff] %v23034_v37  ;;  %v4730_v37 = vadd.f32 %v22505_v48, %v3193_v31  ;;  %v3078_v48 = vadd.f32 %v21927_v0, %v21868_v29  ;;  %v3108_v29 = vadd.f32 %v22013_v12, %v21951_v58 }
 0x304   : > { %v23038_v23 = vpop.f32.mrf.mxu0 }
 0x305   : > { %25064 = vst [vmem:[#allocation178_spill] sm:$0xff] %v23038_v23  ;;  %v3063_v23 = vadd.f32 %v21854_v9, %v21793_v46  ;;  %v6252_v53 = vadd.f32 %v22585_v41, %v4730_v37  ;;  %v3093_v46 = vadd.f32 %v21938_v5, %v21881_v52  ;;  %v23085_v52 = vpop.f32.mrf.mxu1  ;;  %v25074_v5 = vld [vmem:[#allocation18_spill] sm:$0xff] }
 0x306   : > { %25070 = vst [vmem:[#allocation184_spill] sm:$0xff] %v23085_v52  ;;  %v3138_v58 = vadd.f32 %v25074_v5, %v25073_v32  ;;  %v25082_v41 = vld [vmem:[#allocation26_spill] sm:$0xff]  ;;  %v25089_v32 = vld [vmem:[#allocation29_spill] sm:$0xff] }
 0x307   : > { %v7771_v9 = vadd.f32 %v22794_v55, %v6252_v53  ;;  %v25084_v55 = vld [vmem:[#allocation37_spill] sm:$0xff]  ;;  %v25086_v53 = vld [vmem:[#allocation19_spill] sm:$0xff]  ;;  %v23116_v50 = vpop.f32.mrf.mxu1 }
 0x308   : > { %v25096_v52 = vld [vmem:[#allocation33_spill] sm:$0xff] }
 0x309   : > { %v9290_v38 = vadd.f32 %v19781_v13, %v7771_v9  ;;  %v25087_v9 = vld [vmem:[#allocation27_spill] sm:$0xff]  ;;  %v23139_v1 = vpop.f32.mrf.mxu1 }
 0x30a   : > { %25115 = vst [vmem:[#allocation12_spill] sm:$0xff] %v23139_v1  ;;  %v25125_v1 = vld [vmem:[#allocation55_spill] sm:$0xff] }
 0x30b   : > { %v23049_v54 = vpop.f32.mrf.mxu0 }
 0x30c   : > { %25067 = vst [vmem:[#allocation181_spill] sm:$0xff] %v23049_v54  ;;  %v3068_v54 = vadd.f32 %v21898_v16, %v21837_v45  ;;  %v3098_v45 = vadd.f32 %v21983_v61, %v21925_v63  ;;  %v3128_v16 = vadd.f32 %v22069_v36, %v22011_v11  ;;  %v25072_v63 = vld [vmem:[#allocation16_spill] sm:$0xff]  ;;  %v25077_v61 = vld [vmem:[#allocation14_spill] sm:$0xff]  ;;  %v3158_v11 = vadd.f32 %v25082_v41, %v25081_v10  ;;  %v25083_v36 = vld [vmem:[#allocation7_spill] sm:$0xff] }
 0x30d   : > { %v23068_v31 = vpop.f32.mrf.mxu0  ;;  %v3143_v0 = vadd.f32 %v25072_v63, %v25071_v39  ;;  %v3148_v12 = vadd.f32 %v25078_v35, %v25077_v61  ;;  %v3203_v13 = vadd.f32 %v25084_v55, %v25083_v36  ;;  %v3173_v39 = vadd.f32 %v25087_v9, %v25086_v53  ;;  %v25088_v63 = vld [vmem:[#allocation21_spill] sm:$0xff]  ;;  %v25092_v35 = vld [vmem:[#allocation31_spill] sm:$0xff]  ;;  %25093 = vst [vmem:[#allocation16_spill] sm:$0xff] %v23116_v50  ;;  %v25095_v10 = vld [vmem:[#allocation32_spill] sm:$0xff] }
 0x30e   : > { %25069 = vst [vmem:[#allocation183_spill] sm:$0xff] %v23068_v31  ;;  %v3168_v5 = vadd.f32 %v25089_v32, %v25088_v63  ;;  %v3183_v61 = vadd.f32 %v25091_v24, %v25090_v59  ;;  %v4704_v31 = vadd.f32 %v25092_v35, %v3063_v23  ;;  %v3178_v41 = vadd.f32 %v25095_v10, %v25094_v22  ;;  %v25098_v55 = vld [vmem:[#allocation84_spill] sm:$0xff]  ;;  %v25100_v9 = vld [vmem:[#allocation35_spill] sm:$0xff]  ;;  %v25107_v22 = vld [vmem:[#allocation41_spill] sm:$0xff] }
 0x30f   : > { %v4703_v36 = vadd.f32 %v25096_v52, %v3058_v44  ;;  %v25099_v53 = vld [vmem:[#allocation28_spill] sm:$0xff]  ;;  %v4708_v59 = vadd.f32 %v25102_v14, %v3083_v47  ;;  %v25104_v23 = vld [vmem:[#allocation39_spill] sm:$0xff]  ;;  %v3213_v10 = vadd.f32 %v25107_v22, %v25106_v19  ;;  %v25108_v44 = vld [vmem:[#allocation42_spill] sm:$0xff] }
 0x310   : > { %v3188_v26 = vadd.f32 %v25100_v9, %v25099_v53  ;;  %v25101_v63 = vld [vmem:[#allocation36_spill] sm:$0xff]  ;;  %v4710_v52 = vadd.f32 %v25108_v44, %v3093_v46  ;;  %v25114_v47 = vld [vmem:[#allocation46_spill] sm:$0xff]  ;;  %v25119_v46 = vld [vmem:[#allocation49_spill] sm:$0xff] }
 0x311   : > { %v4705_v32 = vadd.f32 %v25101_v63, %v3068_v54  ;;  %v25103_v24 = vld [vmem:[#allocation8_spill] sm:$0xff]  ;;  %v25113_v54 = vld [vmem:[#allocation45_spill] sm:$0xff]  ;;  %v6226_v14 = vadd.f32 %v25114_v47, %v4704_v31  ;;  %v4714_v22 = vadd.f32 %v25119_v46, %v3113_v7  ;;  %v25120_v44 = vld [vmem:[#allocation50_spill] sm:$0xff] }
 0x312   : > { %v3198_v35 = vadd.f32 %v25104_v23, %v25103_v24  ;;  %v25105_v50 = vld [vmem:[#allocation40_spill] sm:$0xff]  ;;  %v4712_v63 = vadd.f32 %v25113_v54, %v3103_v25  ;;  %v25124_v54 = vld [vmem:[#allocation54_spill] sm:$0xff] }
 0x313   : > { %v4707_v6 = vadd.f32 %v25105_v50, %v3078_v48  ;;  %v25112_v53 = vld [vmem:[#allocation44_spill] sm:$0xff]  ;;  %v25117_v48 = vld [vmem:[#allocation47_spill] sm:$0xff]  ;;  %v6230_v47 = vadd.f32 %v25124_v54, %v4708_v59  ;;  %v25132_v59 = vld [vmem:[#allocation61_spill] sm:$0xff] }
 0x314   : > { %v4709_v9 = vadd.f32 %v25112_v53, %v3088_v2  ;;  %v4711_v50 = vadd.f32 %v25117_v48, %v3098_v45  ;;  %v25118_v19 = vld [vmem:[#allocation48_spill] sm:$0xff]  ;;  %v25123_v53 = vld [vmem:[#allocation53_spill] sm:$0xff] }
 0x315   : > { %v19831_v60 = vpop.f32.mrf.mxu0  ;;  %v6225_v23 = vadd.f32 %v25118_v19, %v4703_v36  ;;  %v4716_v31 = vadd.f32 %v25123_v53, %v3123_v30  ;;  %v6229_v45 = vadd.f32 %v25126_v8, %v4707_v6  ;;  %v25127_v48 = vld [vmem:[#allocation57_spill] sm:$0xff]  ;;  %v25128_v19 = vld [vmem:[#allocation58_spill] sm:$0xff]  ;;  %v25130_v46 = vld [vmem:[#allocation88_spill] sm:$0xff] }
 0x316   : > { %v23107_v37 = vadd.f32 %v19831_v60, %v9290_v38  ;;  %v25097_v38 = vld [vmem:[#allocation34_spill] sm:$0xff]  ;;  %v4718_v7 = vadd.f32 %v25127_v48, %v3133_v15  ;;  %v25131_v30 = vld [vmem:[#allocation60_spill] sm:$0xff]  ;;  %v25135_v6 = vld [vmem:[#allocation63_spill] sm:$0xff] }
 0x317   : > { %v4706_v60 = vadd.f32 %v25097_v38, %v3073_v40  ;;  %v25109_v40 = vld [vmem:[#allocation99_spill] sm:$0xff]  ;;  %v23141_v24 = vpop.f32.mrf.mxu0  ;;  %v25136_v15 = vld [vmem:[#allocation64_spill] sm:$0xff] }
 0x318   : > { %25085 = vst [vmem:[#allocation11_spill] sm:$0xff] %v23107_v37  ;;  %v4732_v37 = vadd.f32 %v25098_v55, %v3203_v13  ;;  %v25110_v13 = vld [vmem:[#allocation10_spill] sm:$0xff]  ;;  %v25111_v55 = vld [vmem:[#allocation43_spill] sm:$0xff]  ;;  %25116 = vst [vmem:[#allocation18_spill] sm:$0xff] %v23141_v24  ;;  %v4715_v24 = vadd.f32 %v25125_v1, %v3118_v42 }
 0x319   : > { %v3208_v3 = vadd.f32 %v25111_v55, %v25110_v13  ;;  %v25121_v13 = vld [vmem:[#allocation51_spill] sm:$0xff]  ;;  %v25122_v55 = vld [vmem:[#allocation52_spill] sm:$0xff]  ;;  %v25133_v1 = vld [vmem:[#allocation62_spill] sm:$0xff] }
 0x31a   : > { %v6254_v38 = vadd.f32 %v25109_v40, %v4732_v37  ;;  %v6228_v40 = vadd.f32 %v25120_v44, %v4706_v60  ;;  %v4713_v2 = vadd.f32 %v25121_v13, %v3108_v29  ;;  %v6227_v25 = vadd.f32 %v25122_v55, %v4705_v32  ;;  %v23159_v44 = vpop.f32.mrf.mxu1 }
 0x31b   : > { %v4734_v29 = vadd.f32 %v25130_v46, %v3213_v10  ;;  %v6231_v13 = vadd.f32 %v25131_v30, %v4709_v9  ;;  %v4720_v55 = vadd.f32 %v25132_v59, %v3143_v0  ;;  %v6234_v42 = vadd.f32 %v25133_v1, %v4712_v63  ;;  %v25139_v10 = vld [vmem:[#allocation66_spill] sm:$0xff]  ;;  %v25141_v46 = vld [vmem:[#allocation68_spill] sm:$0xff]  ;;  %v25142_v30 = vld [vmem:[#allocation69_spill] sm:$0xff] }
 0x31c   : > { %v7773_v37 = vadd.f32 %v22820_v57, %v6254_v38  ;;  %v6232_v57 = vadd.f32 %v25128_v19, %v4710_v52  ;;  %v25129_v38 = vld [vmem:[#allocation59_spill] sm:$0xff]  ;;  %v25137_v52 = vld [vmem:[#allocation65_spill] sm:$0xff]  ;;  %v6236_v48 = vadd.f32 %v25139_v10, %v4714_v22  ;;  %v6235_v9 = vadd.f32 %v25141_v46, %v4713_v2  ;;  %v25144_v63 = vld [vmem:[#allocation70_spill] sm:$0xff] }
 0x31d   : > { %v4717_v60 = vadd.f32 %v25129_v38, %v3128_v16  ;;  %v4722_v53 = vadd.f32 %v25137_v52, %v3153_v27  ;;  %v25138_v16 = vld [vmem:[#allocation104_spill] sm:$0xff]  ;;  %v25140_v19 = vld [vmem:[#allocation67_spill] sm:$0xff]  ;;  %v4724_v0 = vadd.f32 %v25142_v30, %v3163_v34  ;;  %v25149_v52 = vld [vmem:[#allocation74_spill] sm:$0xff] }
 0x31e   : > { %v9292_v36 = vadd.f32 %v22993_v17, %v7773_v37  ;;  %v4719_v17 = vadd.f32 %v25135_v6, %v3138_v58  ;;  %v6233_v37 = vadd.f32 %v25136_v15, %v4711_v50  ;;  %v6256_v54 = vadd.f32 %v25138_v16, %v4734_v29  ;;  %v25146_v1 = vld [vmem:[#allocation72_spill] sm:$0xff]  ;;  %v25147_v6 = vld [vmem:[#allocation141_spill] sm:$0xff]  ;;  %v23180_v15 = vpop.f32.mrf.mxu1  ;;  %v25150_v16 = vld [vmem:[#allocation75_spill] sm:$0xff] }
 0x31f   : > { %v19834_v32 = vpop.f32.mrf.mxu0  ;;  %v4721_v38 = vadd.f32 %v25140_v19, %v3148_v12  ;;  %v6237_v50 = vadd.f32 %v25146_v1, %v4715_v24  ;;  %v25148_v29 = vld [vmem:[#allocation73_spill] sm:$0xff]  ;;  %v6240_v12 = vadd.f32 %v25149_v52, %v4718_v7  ;;  %v4725_v2 = vadd.f32 %v25150_v16, %v3168_v5  ;;  %v25151_v10 = vld [vmem:[#allocation76_spill] sm:$0xff]  ;;  %v25153_v30 = vld [vmem:[#allocation78_spill] sm:$0xff] }
 0x320   : > { %v23164_v8 = vadd.f32 %v19834_v32, %v9292_v36  ;;  %v6238_v36 = vadd.f32 %v25144_v63, %v4716_v31  ;;  %v25145_v32 = vld [vmem:[#allocation71_spill] sm:$0xff]  ;;  %v7775_v27 = vadd.f32 %v25147_v6, %v6256_v54  ;;  %v4726_v22 = vadd.f32 %v25148_v29, %v3173_v39  ;;  %v25152_v19 = vld [vmem:[#allocation77_spill] sm:$0xff] }
 0x321   : > { %v23174_v59 = vpop.f32.mrf.mxu0  ;;  %v4723_v58 = vadd.f32 %v25145_v32, %v3158_v11  ;;  %v6239_v34 = vadd.f32 %v25151_v10, %v4717_v60  ;;  %v4728_v46 = vadd.f32 %v25152_v19, %v3183_v61  ;;  %v6242_v31 = vadd.f32 %v25153_v30, %v4720_v55  ;;  %v25154_v63 = vld [vmem:[#allocation79_spill] sm:$0xff]  ;;  %v25155_v32 = vld [vmem:[#allocation80_spill] sm:$0xff]  ;;  %v25156_v1 = vld [vmem:[#allocation81_spill] sm:$0xff]  ;;  %v23197_v55 = vpop.f32.mrf.mxu1 }
 0x322   : > { %25134 = vst [vmem:[#allocation13_spill] sm:$0xff] %v23164_v8  ;;  %25143 = vst [vmem:[#allocation20_spill] sm:$0xff] %v23174_v59  ;;  %v4727_v11 = vadd.f32 %v25154_v63, %v3178_v41  ;;  %v9294_v24 = vadd.f32 %v23001_v4, %v7775_v27  ;;  %v6241_v54 = vadd.f32 %v25155_v32, %v4719_v17  ;;  %v25157_v8 = vld [vmem:[#allocation82_spill] sm:$0xff]  ;;  %v25158_v29 = vld [vmem:[#allocation83_spill] sm:$0xff] }
 0x323   : > { %v6244_v6 = vadd.f32 %v25156_v1, %v4722_v53  ;;  %v4729_v39 = vadd.f32 %v25157_v8, %v3188_v26  ;;  %v6243_v7 = vadd.f32 %v25158_v29, %v4721_v38  ;;  %v25159_v5 = vld [vmem:[#allocation85_spill] sm:$0xff]  ;;  %v25160_v60 = vld [vmem:[#allocation86_spill] sm:$0xff]  ;;  %v25161_v61 = vld [vmem:[#allocation87_spill] sm:$0xff] }
 0x324   : > { %v6246_v16 = vadd.f32 %v25159_v5, %v4724_v0  ;;  %v4731_v10 = vadd.f32 %v25160_v60, %v3198_v35  ;;  %v6245_v19 = vadd.f32 %v25161_v61, %v4723_v58  ;;  %v25163_v4 = vld [vmem:[#allocation89_spill] sm:$0xff]  ;;  %v25164_v17 = vld [vmem:[#allocation90_spill] sm:$0xff]  ;;  %v25165_v53 = vld [vmem:[#allocation91_spill] sm:$0xff] }
 0x325   : > { %v6248_v27 = vadd.f32 %v25163_v4, %v4726_v22  ;;  %v4733_v30 = vadd.f32 %v25164_v17, %v3208_v3  ;;  %v6247_v63 = vadd.f32 %v25165_v53, %v4725_v2  ;;  %v25166_v26 = vld [vmem:[#allocation92_spill] sm:$0xff]  ;;  %v25167_v38 = vld [vmem:[#allocation93_spill] sm:$0xff]  ;;  %v25168_v1 = vld [vmem:[#allocation94_spill] sm:$0xff] }
 0x326   : > { %v19837_v52 = vpop.f32.mrf.mxu0  ;;  %v6250_v8 = vadd.f32 %v25166_v26, %v4728_v46  ;;  %v7745_v32 = vadd.f32 %v25167_v38, %v6226_v14  ;;  %v6249_v0 = vadd.f32 %v25168_v1, %v4727_v11  ;;  %v25169_v29 = vld [vmem:[#allocation95_spill] sm:$0xff]  ;;  %v25170_v5 = vld [vmem:[#allocation96_spill] sm:$0xff]  ;;  %v25171_v60 = vld [vmem:[#allocation97_spill] sm:$0xff]  ;;  %v23217_v1 = vpop.f32.mrf.mxu1 }
 0x327   : > { %v23199_v41 = vadd.f32 %v19837_v52, %v9294_v24  ;;  %v7744_v35 = vadd.f32 %v25169_v29, %v6225_v23  ;;  %v7747_v58 = vadd.f32 %v25170_v5, %v6228_v40  ;;  %v6251_v61 = vadd.f32 %v25171_v60, %v4729_v39  ;;  %v25172_v24 = vld [vmem:[#allocation98_spill] sm:$0xff]  ;;  %v25174_v4 = vld [vmem:[#allocation101_spill] sm:$0xff]  ;;  %v25176_v53 = vld [vmem:[#allocation103_spill] sm:$0xff] }
 0x328   : > { %v7746_v52 = vadd.f32 %v25172_v24, %v6227_v25  ;;  %v6253_v3 = vadd.f32 %v25174_v4, %v4731_v10  ;;  %v25175_v17 = vld [vmem:[#allocation102_spill] sm:$0xff]  ;;  %v7751_v46 = vadd.f32 %v25176_v53, %v6232_v57  ;;  %v25177_v26 = vld [vmem:[#allocation107_spill] sm:$0xff]  ;;  %v25178_v38 = vld [vmem:[#allocation105_spill] sm:$0xff] }
 0x329   : > { %25162 = vst [vmem:[#allocation14_spill] sm:$0xff] %v23199_v41  ;;  %v25173_v41 = vld [vmem:[#allocation100_spill] sm:$0xff]  ;;  %v7748_v2 = vadd.f32 %v25175_v17, %v6229_v45  ;;  %v6255_v14 = vadd.f32 %v25177_v26, %v4733_v30  ;;  %v7750_v11 = vadd.f32 %v25178_v38, %v6231_v13  ;;  %v25179_v23 = vld [vmem:[#allocation106_spill] sm:$0xff]  ;;  %v25182_v60 = vld [vmem:[#allocation113_spill] sm:$0xff] }
 0x32a   : > { %v7749_v22 = vadd.f32 %v25173_v41, %v6230_v47  ;;  %v7753_v40 = vadd.f32 %v25179_v23, %v6234_v42  ;;  %v25180_v29 = vld [vmem:[#allocation110_spill] sm:$0xff]  ;;  %v25181_v5 = vld [vmem:[#allocation108_spill] sm:$0xff]  ;;  %v9263_v47 = vadd.f32 %v25182_v60, %v7744_v35  ;;  %v25183_v41 = vld [vmem:[#allocation109_spill] sm:$0xff] }
 0x32b   : > { %v9264_v39 = vadd.f32 %v25180_v29, %v7745_v32  ;;  %v7752_v25 = vadd.f32 %v25181_v5, %v6233_v37  ;;  %v7755_v10 = vadd.f32 %v25183_v41, %v6236_v48  ;;  %v25184_v24 = vld [vmem:[#allocation116_spill] sm:$0xff]  ;;  %v25185_v4 = vld [vmem:[#allocation111_spill] sm:$0xff]  ;;  %v25188_v26 = vld [vmem:[#allocation122_spill] sm:$0xff] }
 0x32c   : > { %v9266_v45 = vadd.f32 %v25184_v24, %v7747_v58  ;;  %v7754_v57 = vadd.f32 %v25185_v4, %v6235_v9  ;;  %v25186_v17 = vld [vmem:[#allocation119_spill] sm:$0xff]  ;;  %v25187_v53 = vld [vmem:[#allocation112_spill] sm:$0xff]  ;;  %v9268_v38 = vadd.f32 %v25188_v26, %v7749_v22  ;;  %v25189_v59 = vld [vmem:[#allocation114_spill] sm:$0xff]  ;;  %v23235_v24 = vpop.f32.mrf.mxu1 }
 0x32d   : > { %v9265_v30 = vadd.f32 %v25186_v17, %v7746_v52  ;;  %v7757_v13 = vadd.f32 %v25187_v53, %v6238_v36  ;;  %v7756_v42 = vadd.f32 %v25189_v59, %v6237_v50  ;;  %v25190_v23 = vld [vmem:[#allocation125_spill] sm:$0xff]  ;;  %v25191_v29 = vld [vmem:[#allocation115_spill] sm:$0xff]  ;;  %v25192_v5 = vld [vmem:[#allocation128_spill] sm:$0xff] }
 0x32e   : > { %v9267_v32 = vadd.f32 %v25190_v23, %v7748_v2  ;;  %v7759_v37 = vadd.f32 %v25191_v29, %v6240_v12  ;;  %v9270_v35 = vadd.f32 %v25192_v5, %v7751_v46  ;;  %v25193_v60 = vld [vmem:[#allocation117_spill] sm:$0xff]  ;;  %v25194_v41 = vld [vmem:[#allocation130_spill] sm:$0xff]  ;;  %v25196_v4 = vld [vmem:[#allocation132_spill] sm:$0xff]  ;;  %v23245_v5 = vpop.f32.mrf.mxu0 }
 0x32f   : > { %v7758_v48 = vadd.f32 %v25193_v60, %v6239_v34  ;;  %v9269_v58 = vadd.f32 %v25194_v41, %v7750_v11  ;;  %v25195_v9 = vld [vmem:[#allocation118_spill] sm:$0xff]  ;;  %v9272_v36 = vadd.f32 %v25196_v4, %v7753_v40  ;;  %v25197_v17 = vld [vmem:[#allocation120_spill] sm:$0xff]  ;;  %v25199_v50 = vld [vmem:[#allocation121_spill] sm:$0xff] }
 0x330   : > { %v7761_v52 = vadd.f32 %v25195_v9, %v6242_v31  ;;  %v7760_v22 = vadd.f32 %v25197_v17, %v6241_v54  ;;  %v25198_v53 = vld [vmem:[#allocation134_spill] sm:$0xff]  ;;  %v7763_v2 = vadd.f32 %v25199_v50, %v6244_v6  ;;  %v25200_v26 = vld [vmem:[#allocation135_spill] sm:$0xff]  ;;  %v25202_v29 = vld [vmem:[#allocation137_spill] sm:$0xff] }
 0x331   : > { %v9271_v59 = vadd.f32 %v25198_v53, %v7752_v25  ;;  %v9274_v12 = vadd.f32 %v25200_v26, %v7755_v10  ;;  %v25201_v23 = vld [vmem:[#allocation123_spill] sm:$0xff]  ;;  %v9273_v34 = vadd.f32 %v25202_v29, %v7754_v57  ;;  %v25203_v11 = vld [vmem:[#allocation124_spill] sm:$0xff]  ;;  %v25204_v41 = vld [vmem:[#allocation138_spill] sm:$0xff]  ;;  %v23259_v26 = vpop.f32.mrf.mxu1 }
 0x332   : > { %v7762_v46 = vadd.f32 %v25201_v23, %v6243_v7  ;;  %v7765_v60 = vadd.f32 %v25203_v11, %v6246_v16  ;;  %v9276_v31 = vadd.f32 %v25204_v41, %v7757_v13  ;;  %v25205_v9 = vld [vmem:[#allocation126_spill] sm:$0xff]  ;;  %v25206_v4 = vld [vmem:[#allocation145_spill] sm:$0xff]  ;;  %v25207_v17 = vld [vmem:[#allocation140_spill] sm:$0xff] }
 0x333   : > { %v7764_v40 = vadd.f32 %v25205_v9, %v6245_v19  ;;  %v10786_v54 = vadd.f32 %v25206_v4, %v9264_v39  ;;  %v23252_v25 = vadd.f32 %v25207_v17, %v7756_v42  ;;  %v25208_v6 = vld [vmem:[#allocation127_spill] sm:$0xff]  ;;  %v25209_v10 = vld [vmem:[#allocation142_spill] sm:$0xff]  ;;  %v25210_v7 = vld [vmem:[#allocation129_spill] sm:$0xff] }
 0x334   : > { %v7767_v53 = vadd.f32 %v25208_v6, %v6248_v27  ;;  %v23256_v50 = vadd.f32 %v25209_v10, %v7759_v37  ;;  %v7766_v57 = vadd.f32 %v25210_v7, %v6247_v63  ;;  %v25211_v23 = vld [vmem:[#allocation144_spill] sm:$0xff]  ;;  %v25212_v13 = vld [vmem:[#allocation131_spill] sm:$0xff]  ;;  %v25214_v42 = vld [vmem:[#allocation146_spill] sm:$0xff] }
 0x335   : > { %v23262_v16 = vadd.f32 %v25211_v23, %v7758_v48  ;;  %v7769_v29 = vadd.f32 %v25212_v13, %v6250_v8  ;;  %v25213_v19 = vld [vmem:[#allocation147_spill] sm:$0xff]  ;;  %v12305_v39 = vadd.f32 %v23012_v21, %v10786_v54  ;;  %v23268_v41 = vadd.f32 %v25214_v42, %v7761_v52  ;;  %v25215_v27 = vld [vmem:[#allocation133_spill] sm:$0xff]  ;;  %v25216_v37 = vld [vmem:[#allocation148_spill] sm:$0xff]  ;;  %v19892_v6 = vpop.f32.mrf.mxu0  ;;  %v23297_v42 = vpop.f32.mrf.mxu1 }
 0x336   : > { %v10785_v11 = vadd.f32 %v25213_v19, %v9263_v47  ;;  %v7768_v9 = vadd.f32 %v25215_v27, %v6249_v0  ;;  %v23272_v4 = vadd.f32 %v25216_v37, %v7760_v22  ;;  %v25217_v63 = vld [vmem:[#allocation150_spill] sm:$0xff]  ;;  %v23280_v8 = vld [vmem:[%s24883_s2] ss:$0 sm:$0xff]  ;;  %v25221_v7 = vld [vmem:[#allocation139_spill] sm:$0xff]  ;;  %v23295_v19 = vadd.f32 %v22951_v62, %v7767_v53 }
 0x337   : > { %v23275_v17 = vadd.f32 %v25217_v63, %v7763_v2  ;;  %v25218_v47 = vld [vmem:[#allocation136_spill] sm:$0xff]  ;;  %v13824_v0 = vadd.f32 %v19892_v6, %v12305_v39  ;;  %v25220_v10 = vld [vmem:[#allocation154_spill] sm:$0xff]  ;;  %v7772_v2 = vadd.f32 %v25221_v7, %v6253_v3  ;;  %v23311_v62 = vadd.f32 %v22972_v18, %v7769_v29  ;;  %v25224_v39 = vld [vmem:[#allocation149_spill] sm:$0xff] }
 0x338   : > { %v7770_v48 = vadd.f32 %v25218_v47, %v6251_v61  ;;  %v25219_v21 = vld [vmem:[#allocation152_spill] sm:$0xff]  ;;  %v12304_v52 = vadd.f32 %v23016_v20, %v10785_v11  ;;  %v23288_v22 = vadd.f32 %v25220_v10, %v7765_v60  ;;  %v13664_v61 = vpop.f32.mrf.mxu0  ;;  %v25223_v20 = vld [vmem:[#allocation143_spill] sm:$0xff]  ;;  %v23306_v60 = vadd.f32 %v22962_v49, %v7766_v57  ;;  %v25226_v49 = vld [vmem:[#allocation153_spill] sm:$0xff] }
 0x339   : > { %v23284_v54 = vadd.f32 %v25219_v21, %v7762_v46  ;;  %v25222_v23 = vld [vmem:[#allocation156_spill] sm:$0xff]  ;;  %v7774_v11 = vadd.f32 %v25223_v20, %v6255_v14  ;;  %v13863_v3 = vadd.f32 %v23280_v8, %v13824_v0  ;;  %v23314_v53 = vadd.f32 %v22981_v33, %v7768_v9  ;;  %v25225_v14 = vld [vmem:[#allocation151_spill] sm:$0xff]  ;;  %v25230_v10 = vld [vmem:[#allocation158_spill] sm:$0xff] }
 0x33a   : > { %v23292_v13 = vadd.f32 %v25222_v23, %v7764_v40  ;;  %v23302_v46 = vld [vmem:[%s24884_s3 + $0x20] sm:$0xff]  ;;  %v13823_v40 = vadd.f32 %v13664_v61, %v12304_v52  ;;  %v10788_v27 = vadd.f32 %v25224_v39, %v9266_v45  ;;  %v23318_v37 = vadd.f32 %v22989_v28, %v7770_v48  ;;  %v25227_v18 = vld [vmem:[#allocation155_spill] sm:$0xff]  ;;  %v25228_v52 = vld [vmem:[#allocation157_spill] sm:$0xff]  ;;  %v23331_v45 = vpop.f32.mrf.mxu1 }
 0x33b   : > { %20090 = vmatprep.subr.mxu0 %v23302_v46  ;;  %v10787_v63 = vadd.f32 %v25225_v14, %v9265_v30  ;;  %v10790_v57 = vadd.f32 %v25226_v49, %v9268_v38  ;;  %v13895_v6 = vmax.f32 %v13863_v3, 0.0  ;;  %v23324_v21 = vadd.f32 %v22997_v56, %v7772_v2  ;;  %v25229_v48 = vld [vmem:[#allocation6_spill] sm:$0xff]  ;;  %v25231_v23 = vld [vmem:[#allocation159_spill] sm:$0xff]  ;;  %v25232_v2 = vld [vmem:[#allocation160_spill] sm:$0xff] }
 0x33c   : > { %v13862_v47 = vadd.f32 %v23280_v8, %v13823_v40  ;;  %v10789_v29 = vadd.f32 %v25227_v18, %v9267_v32  ;;  %v10792_v33 = vadd.f32 %v25228_v52, %v9270_v35  ;;  %v23329_v9 = vadd.f32 %v23005_v51, %v7774_v11  ;;  %v25233_v32 = vld [vmem:[#allocation169_spill] sm:$0xff]  ;;  %v25236_v14 = vld [vmem:[#allocation162_spill] sm:$0xff] }
 0x33d   : > { %v10791_v28 = vadd.f32 %v22957_v43, %v9269_v58  ;;  %v13975_v30 = vcombine.high %v13895_v6, %v13895_v6  ;;  %v13982_v38 = vrot.slane %v13895_v6, %v25229_v48  ;;  %v10794_v7 = vadd.f32 %v25230_v10, %v9272_v36  ;;  %v25234_v40 = vld [vmem:[#allocation161_spill] sm:$0xff]  ;;  %v25235_v58 = vld [vmem:[#allocation171_spill] sm:$0xff] }
 0x33e   : > { %v13894_v0 = vmax.f32 %v13862_v47, 0.0  ;;  %v10793_v56 = vadd.f32 %v25231_v23, %v9271_v59  ;;  %v10796_v61 = vadd.f32 %v25232_v2, %v9274_v12  ;;  %v12307_v20 = vadd.f32 %v25233_v32, %v10788_v27  ;;  %v25237_v6 = vld [vmem:[#allocation173_spill] sm:$0xff]  ;;  %v23345_v47 = vpop.f32.mrf.mxu1  ;;  %v19895_v59 = vpop.f32.mrf.mxu0 }
 0x33f   : > { %v13989_v35 = vrot.slane %v13975_v30, %v25229_v48  ;;  %v13990_v51 = vcombine.high %v13982_v38, %v13982_v38  ;;  %v10795_v43 = vadd.f32 %v25234_v40, %v9273_v34  ;;  %v12306_v39 = vadd.f32 %v25235_v58, %v10787_v63  ;;  %v25238_v30 = vld [vmem:[#allocation163_spill] sm:$0xff]  ;;  %v25240_v34 = vld [vmem:[#allocation164_spill] sm:$0xff]  ;;  %v25241_v32 = vld [vmem:[#allocation177_spill] sm:$0xff] }
 0x340   : > { %v13958_v11 = vcombine.high %v13894_v0, %v13894_v0  ;;  %v13965_v3 = vrot.slane %v13894_v0, %v25229_v48  ;;  %v10798_v49 = vadd.f32 %v25236_v14, %v9276_v31  ;;  %v12309_v36 = vadd.f32 %v25237_v6, %v10790_v57  ;;  %v25239_v0 = vld [vmem:[#allocation175_spill] sm:$0xff]  ;;  %v13674_v31 = vpop.f32.mrf.mxu0 }
 0x341   : > { %v13991_v12 = vcombine.high %v13989_v35, %v13989_v35  ;;  %v14510_v18 = vcombine.low %v13982_v38, %v13990_v51  ;;  %v10797_v10 = vadd.f32 %v25238_v30, %v23252_v25  ;;  %v12308_v23 = vadd.f32 %v25239_v0, %v10789_v29  ;;  %v25242_v38 = vld [vmem:[#allocation165_spill] sm:$0xff]  ;;  %v23361_v25 = vpop.f32.mrf.mxu1  ;;  %v25247_v0 = vld [vmem:[#allocation184_spill] sm:$0xff] }
 0x342   : > { %v13972_v27 = vrot.slane %v13958_v11, %v25229_v48  ;;  %v13973_v52 = vcombine.high %v13965_v3, %v13965_v3  ;;  %v10800_v63 = vadd.f32 %v25240_v34, %v23256_v50  ;;  %v13826_v2 = vadd.f32 %v19895_v59, %v12307_v20  ;;  %v25243_v11 = vld [vmem:[#allocation179_spill] sm:$0xff]  ;;  %v25244_v50 = vld [vmem:[#allocation166_spill] sm:$0xff] }
 0x343   : > { %v23354_v57 = vadd.f32 %v25241_v32, %v10792_v33  ;;  %v14511_v40 = vcombine.low %v13989_v35, %v13991_v12  ;;  %v10799_v51 = vadd.f32 %v25242_v38, %v23262_v16  ;;  %v23359_v6 = vadd.f32 %v25243_v11, %v10791_v28  ;;  %v25246_v16 = vld [vmem:[#allocation167_spill] sm:$0xff]  ;;  %v25251_v38 = vld [vmem:[#allocation12_spill] sm:$0xff] }
 0x344   : > { %v13974_v58 = vcombine.high %v13972_v27, %v13972_v27  ;;  %v14493_v14 = vcombine.low %v13965_v3, %v13973_v52  ;;  %v13865_v29 = vadd.f32 %v23280_v8, %v13826_v2  ;;  %v13825_v30 = vadd.f32 %v13674_v31, %v12306_v39  ;;  %v25245_v3 = vld [vmem:[#allocation182_spill] sm:$0xff]  ;;  %v25248_v2 = vld [vmem:[#allocation168_spill] sm:$0xff]  ;;  %v23381_v31 = vpop.f32.mrf.mxu1 }
 0x345   : > { %v10802_v20 = vadd.f32 %v25244_v50, %v23268_v41  ;;  %v14518_v33 = vrot.slane %v14510_v18, %v25229_v48  ;;  %v14525_v35 = vrot.slane %v14511_v40, %v25229_v48  ;;  %v23369_v12 = vadd.f32 %v25245_v3, %v10794_v7 }
 0x346   : > { %v14494_v59 = vcombine.low %v13972_v27, %v13974_v58  ;;  %v10801_v28 = vadd.f32 %v25246_v16, %v23272_v4  ;;  %v13864_v52 = vadd.f32 %v23280_v8, %v13825_v30  ;;  %v23375_v34 = vadd.f32 %v25247_v0, %v10793_v56  ;;  %v25249_v4 = vld [vmem:[#allocation16_spill] sm:$0xff]  ;;  %v25250_v58 = vld [vmem:[#allocation170_spill] sm:$0xff] }
 0x347   : > { %v14526_v39 = vcombine.low %v14518_v33, %v14525_v35  ;;  %v14501_v41 = vrot.slane %v14493_v14, %v25229_v48  ;;  %v10804_v27 = vadd.f32 %v25248_v2, %v23275_v17  ;;  %v13897_v7 = vmax.f32 %v13865_v29, 0.0  ;;  %v25252_v30 = vld [vmem:[#allocation172_spill] sm:$0xff]  ;;  %v25253_v35 = vld [vmem:[#allocation174_spill] sm:$0xff] }
 0x348   : > { %v14508_v18 = vrot.slane %v14494_v59, %v25229_v48  ;;  %v13896_v32 = vmax.f32 %v13864_v52, 0.0  ;;  %v23384_v40 = vadd.f32 %v25249_v4, %v10796_v61  ;;  %v10803_v56 = vadd.f32 %v25250_v58, %v23284_v54  ;;  %v19898_v61 = vpop.f32.mrf.mxu0 }
 0x349   : > { %v23389_v11 = vadd.f32 %v25251_v38, %v10795_v43  ;;  %15111 = vst.msk [vmem:[#allocation2 + $0x8] sm:$0xff] %vm15109_vm2, %v14526_v39  ;;  %v10806_v17 = vadd.f32 %v25252_v30, %v23288_v22  ;;  %v23395_v50 = vadd.f32 %v23159_v44, %v10798_v49  ;;  %v23400_v59 = vadd.f32 %v25253_v35, %v23292_v13  ;;  %v25254_v43 = vld [vmem:[#allocation176_spill] sm:$0xff]  ;;  %v23410_v44 = vpop.f32.mrf.mxu1 }
 0x34a   : > { %v14509_v14 = vcombine.low %v14501_v41, %v14508_v18  ;;  %v13992_v29 = vcombine.high %v13896_v32, %v13896_v32  ;;  %v13999_v33 = vrot.slane %v13896_v32, %v25229_v48  ;;  %v23403_v54 = vadd.f32 %v23180_v15, %v10797_v10  ;;  %v13684_v13 = vpop.f32.mrf.mxu0  ;;  %v25255_v41 = vld [vmem:[#allocation178_spill] sm:$0xff]  ;;  %v25256_v32 = vld [vmem:[#allocation181_spill] sm:$0xff] }
 0x34b   : > { %v23407_v3 = vadd.f32 %v25254_v43, %v23295_v19  ;;  %v13828_v22 = vadd.f32 %v19898_v61, %v12309_v36  ;;  %v14009_v49 = vcombine.high %v13897_v7, %v13897_v7  ;;  %v14016_v16 = vrot.slane %v13897_v7, %v25229_v48 }
 0x34c   : > { %15110 = vst.msk [vmem:[#allocation2] sm:$0xff] %vm15109_vm2, %v14509_v14  ;;  %v14006_v52 = vrot.slane %v13992_v29, %v25229_v48  ;;  %v14007_v0 = vcombine.high %v13999_v33, %v13999_v33  ;;  %v23415_v39 = vadd.f32 %v23197_v55, %v10800_v63  ;;  %v14533_v15 = vrot.slane %v13999_v33, %v25229_v48  ;;  %v25258_v33 = vld [vmem:[#allocation18_spill] sm:$0xff] }
 0x34d   : > { %v13867_v19 = vadd.f32 %v23280_v8, %v13828_v22  ;;  %v13827_v10 = vadd.f32 %v13684_v13, %v12308_v23  ;;  %v23421_v36 = vadd.f32 %v25255_v41, %v23306_v60  ;;  %v23424_v18 = vadd.f32 %v23217_v1, %v10799_v51  ;;  %v25257_v60 = vld [vmem:[#allocation183_spill] sm:$0xff]  ;;  %v23439_v1 = vpop.f32.mrf.mxu1 }
 0x34e   : > { %v14008_v2 = vcombine.high %v14006_v52, %v14006_v52  ;;  %v14534_v7 = vcombine.low %v14007_v0, %v14006_v52  ;;  %v23428_v4 = vadd.f32 %v25256_v32, %v23311_v62  ;;  %v23431_v55 = vadd.f32 %v23235_v24, %v10802_v20  ;;  %15113 = vst.msk [vmem:[#allocation2 + $0x10] sm:$0x3] %vm15112_vm3, %v14533_v15 }
 0x34f   : > { %v13899_v63 = vmax.f32 %v13867_v19, 0.0  ;;  %v13866_v23 = vadd.f32 %v23280_v8, %v13827_v10  ;;  %v23437_v58 = vadd.f32 %v25257_v60, %v23314_v53  ;;  %v14023_v51 = vrot.slane %v14009_v49, %v25229_v48  ;;  %v19901_v43 = vpop.f32.mrf.mxu0  ;;  %v25259_v10 = vld [vmem:[#allocation20_spill] sm:$0xff] }
 0x350   : > { %v14024_v38 = vcombine.high %v14016_v16, %v14016_v16  ;;  %v14535_v14 = vcombine.low %v14008_v2, %v14016_v16  ;;  %v23443_v62 = vadd.f32 %v23259_v26, %v10801_v28  ;;  %v23447_v29 = vadd.f32 %v23297_v42, %v10804_v27  ;;  %v12265_v42 = vpop.f32.mrf.mxu1 }
 0x351   : > { %v14043_v24 = vcombine.high %v13899_v63, %v13899_v63  ;;  %v14050_v20 = vrot.slane %v13899_v63, %v25229_v48  ;;  %v13898_v30 = vmax.f32 %v13866_v23, 0.0  ;;  %v23451_v53 = vadd.f32 %v25258_v33, %v23318_v37  ;;  %v13694_v15 = vpop.f32.mrf.mxu0  ;;  %v25260_v33 = vld [vmem:[#allocation180_spill] sm:$0xff] }
 0x352   : > { %v14542_v61 = vrot.slane %v14534_v7, %v25229_v48  ;;  %v14549_v35 = vrot.slane %v14535_v14, %v25229_v48  ;;  %v14025_v27 = vcombine.high %v14023_v51, %v14023_v51  ;;  %v14551_v0 = vcombine.low %v14024_v38, %v14023_v51 }
 0x353   : > { %v15178_v22 = vld [vmem:[#allocation2 + $0x1] sm:$0xff]  ;;  %v14057_v26 = vrot.slane %v14043_v24, %v25229_v48  ;;  %v14058_v28 = vcombine.high %v14050_v20, %v14050_v20  ;;  %v14026_v16 = vcombine.high %v13898_v30, %v13898_v30  ;;  %v14033_v52 = vrot.slane %v13898_v30, %v25229_v48 }
 0x354   : > { %v15718_v49 = vld [vmem:[#allocation2 + $0x2] sm:$0xff]  ;;  %19940 = vmatprep.mubr.msk.f32.mxu1 %vm15109_vm2, %v15178_v22  ;;  %v14550_v37 = vcombine.low %v14542_v61, %v14549_v35  ;;  %v13830_v13 = vadd.f32 %v19901_v43, %v23354_v57  ;;  %v23461_v19 = vadd.f32 %v23331_v45, %v10803_v56  ;;  %v23465_v41 = vadd.f32 %v25259_v10, %v23324_v21  ;;  %v18812_v45 = vld [vmem:[%s24884_s3 + $0x18] sm:$0xff] }
 0x355   : > { %20016 = vmatprep.mubr.msk.f32.mxu0 %vm15109_vm2, %v15718_v49  ;;  %v14040_v2 = vrot.slane %v14026_v16, %v25229_v48  ;;  %v14041_v7 = vcombine.high %v14033_v52, %v14033_v52  ;;  %v23469_v32 = vadd.f32 %v23345_v47, %v10806_v17  ;;  %v14552_v63 = vcombine.low %v14025_v27, %v14033_v52  ;;  %v15179_v60 = vld [vmem:[#allocation2 + $0x9] sm:$0xff]  ;;  %v19881_v17 = vpop.f32.mrf.mxu1 }
 0x356   : > { %15114 = vst.msk [vmem:[#allocation2 + $0x18] sm:$0xff] %vm15109_vm2, %v14550_v37  ;;  %v13869_v57 = vadd.f32 %v23280_v8, %v13830_v13  ;;  %v13829_v23 = vadd.f32 %v13694_v15, %v23359_v6  ;;  %v14059_v21 = vcombine.high %v14057_v26, %v14057_v26  ;;  %v14576_v56 = vcombine.low %v14050_v20, %v14058_v28  ;;  %v15719_v47 = vld [vmem:[#allocation2 + $0xa] sm:$0xff] }
 0x357   : > { %v14042_v51 = vcombine.high %v14040_v2, %v14040_v2  ;;  %v14574_v38 = vrot.slane %v14041_v7, %v25229_v48  ;;  %19941 = vmatmul.mubr.msk.f32.vlgmr.msra.gmra.mxu1 %vm15109_vm2, %v15179_v60  ;;  %v14559_v14 = vrot.slane %v14551_v0, %v25229_v48  ;;  %v14566_v24 = vrot.slane %v14552_v63, %v25229_v48  ;;  %v12275_v52 = vpop.f32.mrf.mxu1 }
 0x358   : > { %v13901_v30 = vmax.f32 %v13869_v57, 0.0  ;;  %v13868_v6 = vadd.f32 %v23280_v8, %v13829_v23  ;;  %20017 = vmatmul.mubr.msk.f32.vlgmr.msra.gmra.mxu0 %vm15109_vm2, %v15719_v47  ;;  %19977 = vmatpush3.msra.mxu1 %v25260_v33  ;;  %v23486_v20 = vadd.f32 %v23361_v25, %v23400_v59  ;;  %v23490_v61 = vadd.f32 %v23245_v5, %v23329_v9  ;;  %v19904_v9 = vpop.f32.mrf.mxu0  ;;  %v25261_v57 = vld [vmem:[#allocation11_spill] sm:$0xff] }
 0x359   : > { %v14575_v35 = vcombine.low %v14040_v2, %v14042_v51  ;;  %15116 = vst.msk [vmem:[#allocation2 + $0x28] sm:$0x3] %vm15112_vm3, %v14574_v38  ;;  %20052 = vmatprep.subr.mxu1 %v18812_v45  ;;  %20091 = vmatpush3.msra.mxu0 %v23302_v46  ;;  %v14567_v43 = vcombine.low %v14559_v14, %v14566_v24 }
 0x35a   : > { %v14077_v22 = vcombine.high %v13901_v30, %v13901_v30  ;;  %v14084_v49 = vrot.slane %v13901_v30, %v25229_v48  ;;  %v13900_v28 = vmax.f32 %v13868_v6, 0.0  ;;  %v23497_v16 = vadd.f32 %v23381_v31, %v23407_v3  ;;  %v13704_v15 = vpop.f32.mrf.mxu0 }
 0x35b   : > { %v14590_v25 = vrot.slane %v14576_v56, %v25229_v48  ;;  %v14592_v59 = vcombine.low %v14057_v26, %v14059_v21  ;;  %v14583_v5 = vrot.slane %v14575_v35, %v25229_v48  ;;  %15115 = vst.msk [vmem:[#allocation2 + $0x20] sm:$0xff] %vm15109_vm2, %v14567_v43  ;;  %v23508_v31 = vadd.f32 %v23410_v44, %v23421_v36 }
 0x35c   : > { %v23503_v46 = vrot.slane %v14077_v22, %v25229_v48  ;;  %v14092_v27 = vcombine.high %v14084_v49, %v14084_v49  ;;  %v14060_v0 = vcombine.high %v13900_v28, %v13900_v28  ;;  %v14067_v37 = vrot.slane %v13900_v28, %v25229_v48  ;;  %v23553_v28 = vld [vmem:[%s24884_s3 + $0x30] sm:$0xff] }
 0x35d   : > { %v23512_v3 = vadd.f32 %v23439_v1, %v23428_v4  ;;  %v14591_v26 = vcombine.low %v14583_v5, %v14590_v25  ;;  %v13832_v13 = vadd.f32 %v19904_v9, %v23369_v12  ;;  %v23516_v10 = vadd.f32 %v12265_v42, %v23437_v58  ;;  %v19907_v4 = vpop.f32.mrf.mxu0  ;;  %20166 = vmatprep.subr.mxu0 %v23553_v28 }
 0x35e   : > { %v14617_v2 = vcombine.low %v14092_v27, %v23503_v46  ;;  %v14074_v7 = vrot.slane %v14060_v0, %v25229_v48  ;;  %v14075_v63 = vcombine.high %v14067_v37, %v14067_v37  ;;  %v23521_v23 = vadd.f32 %v19881_v17, %v25261_v57 }
 0x35f   : > { %v23524_v44 = vadd.f32 %v12275_v52, %v23451_v53  ;;  %15117 = vst.msk [vmem:[#allocation2 + $0x30] sm:$0xff] %vm15109_vm2, %v14591_v26  ;;  %v13871_v36 = vadd.f32 %v23280_v8, %v13832_v13  ;;  %v13831_v12 = vadd.f32 %v13704_v15, %v23375_v34  ;;  %v14600_v58 = vrot.slane %v14592_v59, %v25229_v48  ;;  %v13714_v51 = vpop.f32.mrf.mxu0 }
 0x360   : > { %v14076_v1 = vcombine.high %v14074_v7, %v14074_v7  ;;  %v14593_v42 = vcombine.low %v14067_v37, %v14075_v63  ;;  %v14615_v60 = vrot.slane %v14074_v7, %v25229_v48  ;;  %v14093_v45 = vcombine.high %v23503_v46, %v23503_v46 }
 0x361   : > { %v13903_v21 = vmax.f32 %v13871_v36, 0.0  ;;  %v13870_v53 = vadd.f32 %v23280_v8, %v13831_v12  ;;  %v13834_v56 = vadd.f32 %v19907_v4, %v23384_v40  ;;  %v14631_v38 = vrot.slane %v14617_v2, %v25229_v48  ;;  %v19910_v52 = vpop.f32.mrf.mxu0  ;;  %v19884_v4 = vpop.f32.mrf.mxu1 }
 0x362   : > { %v14607_v34 = vrot.slane %v14593_v42, %v25229_v48  ;;  %v14616_v47 = vcombine.low %v14076_v1, %v14084_v49  ;;  %15119 = vst.msk [vmem:[#allocation2 + $0x40] sm:$0x3] %vm15112_vm3, %v14615_v60  ;;  %v13833_v17 = vadd.f32 %v13714_v51, %v23389_v11  ;;  %v23541_v33 = vld [vmem:[#allocation2 + $0x19] sm:$0xff]  ;;  %v23543_v40 = vld [vmem:[#allocation2 + $0x21] sm:$0xff]  ;;  %v13836_v37 = vadd.f32 %v19910_v52, %v23395_v50 }
 0x363   : > { %v14111_v14 = vcombine.high %v13903_v21, %v13903_v21  ;;  %v14118_v24 = vrot.slane %v13903_v21, %v25229_v48  ;;  %v13902_v30 = vmax.f32 %v13870_v53, 0.0  ;;  %v13873_v6 = vadd.f32 %v23280_v8, %v13834_v56  ;;  %v15720_v35 = vld [vmem:[#allocation2 + $0x1a] sm:$0xff]  ;;  %19943 = vmatprep.mubr.msk.f32.mxu1 %vm15109_vm2, %v23541_v33  ;;  %v15721_v11 = vld [vmem:[#allocation2 + $0x22] sm:$0xff]  ;;  %v13724_v7 = vpop.f32.mrf.mxu0 }
 0x364   : > { %v14608_v43 = vcombine.low %v14600_v58, %v14607_v34  ;;  %v14624_v22 = vrot.slane %v14616_v47, %v25229_v48  ;;  %v13872_v49 = vadd.f32 %v23280_v8, %v13833_v17  ;;  %20019 = vmatprep.mubr.msk.f32.mxu0 %vm15109_vm2, %v15720_v35  ;;  %19944 = vmatmul.mubr.msk.f32.gmra.mxu1 %vm15109_vm2, %v23543_v40  ;;  %v25262_v17 = vld [vmem:[#allocation13_spill] sm:$0xff] }
 0x365   : > { %v14125_v25 = vrot.slane %v14111_v14, %v25229_v48  ;;  %v14126_v59 = vcombine.high %v14118_v24, %v14118_v24  ;;  %v14094_v5 = vcombine.high %v13902_v30, %v13902_v30  ;;  %v14101_v9 = vrot.slane %v13902_v30, %v25229_v48  ;;  %20020 = vmatmul.mubr.msk.f32.gmra.mxu0 %vm15109_vm2, %v15721_v11  ;;  %v19913_v51 = vpop.f32.mrf.mxu0 }
 0x366   : > { %v14632_v46 = vcombine.low %v14624_v22, %v14631_v38  ;;  %15118 = vst.msk [vmem:[#allocation2 + $0x38] sm:$0xff] %vm15109_vm2, %v14608_v43  ;;  %v13905_v27 = vmax.f32 %v13873_v6, 0.0  ;;  %v13904_v0 = vmax.f32 %v13872_v49, 0.0  ;;  %v23575_v14 = vadd.f32 %v19884_v4, %v25262_v17 }
 0x367   : > { %v14127_v26 = vcombine.high %v14125_v25, %v14125_v25  ;;  %v14657_v13 = vcombine.low %v14118_v24, %v14126_v59  ;;  %v14108_v15 = vrot.slane %v14094_v5, %v25229_v48  ;;  %v14109_v2 = vcombine.high %v14101_v9, %v14101_v9  ;;  %v13734_v35 = vpop.f32.mrf.mxu0 }
 0x368   : > { %15120 = vst.msk [vmem:[#allocation2 + $0x48] sm:$0xff] %vm15109_vm2, %v14632_v46  ;;  %v14633_v63 = vcombine.low %v14093_v45, %v14101_v9  ;;  %v14145_v57 = vcombine.high %v13905_v27, %v13905_v27  ;;  %v14152_v36 = vrot.slane %v13905_v27, %v25229_v48  ;;  %v14128_v12 = vcombine.high %v13904_v0, %v13904_v0 }
 0x369   : > { %v14658_v58 = vcombine.low %v14125_v25, %v14127_v26  ;;  %v14665_v50 = vrot.slane %v14657_v13, %v25229_v48  ;;  %v14110_v1 = vcombine.high %v14108_v15, %v14108_v15  ;;  %v14634_v42 = vcombine.low %v14109_v2, %v14108_v15 }
 0x36a   : > { %v14641_v60 = vrot.slane %v14633_v63, %v25229_v48  ;;  %v14159_v21 = vrot.slane %v14145_v57, %v25229_v48  ;;  %v14160_v53 = vcombine.high %v14152_v36, %v14152_v36  ;;  %v14697_v56 = vrot.slane %v14152_v36, %v25229_v48 }
 0x36b   : > { %v14672_v45 = vrot.slane %v14658_v58, %v25229_v48  ;;  %v14648_v38 = vrot.slane %v14634_v42, %v25229_v48  ;;  %v14656_v34 = vrot.slane %v14110_v1, %v25229_v48  ;;  %v14135_v47 = vrot.slane %v13904_v0, %v25229_v48 }
 0x36c   : > { %v23577_v24 = vcombine.low %v14160_v53, %v14159_v21  ;;  %15125 = vst.msk [vmem:[#allocation2 + $0x70] sm:$0x3] %vm15112_vm3, %v14697_v56  ;;  %v14142_v30 = vrot.slane %v14128_v12, %v25229_v48  ;;  %v13875_v6 = vadd.f32 %v23280_v8, %v13836_v37  ;;  %v13835_v11 = vadd.f32 %v13724_v7, %v23403_v54 }
 0x36d   : > { %v14673_v43 = vcombine.low %v14665_v50, %v14672_v45  ;;  %v14649_v22 = vcombine.low %v14641_v60, %v14648_v38  ;;  %15122 = vst.msk [vmem:[#allocation2 + $0x58] sm:$0x3] %vm15112_vm3, %v14656_v34  ;;  %v14143_v49 = vcombine.high %v14135_v47, %v14135_v47  ;;  %v23584_v25 = vld [vmem:[#allocation2 + $0x31] sm:$0xff]  ;;  %v23586_v5 = vld [vmem:[#allocation2 + $0x39] sm:$0xff]  ;;  %v14161_v9 = vcombine.high %v14159_v21, %v14159_v21 }
 0x36e   : > { %v15722_v59 = vld [vmem:[#allocation2 + $0x32] sm:$0xff]  ;;  %v14144_v52 = vcombine.high %v14142_v30, %v14142_v30  ;;  %v13907_v46 = vmax.f32 %v13875_v6, 0.0  ;;  %v13838_v27 = vadd.f32 %v19913_v51, %v23415_v39  ;;  %19946 = vmatprep.mubr.msk.f32.mxu1 %vm15109_vm2, %v23584_v25  ;;  %v15723_v0 = vld [vmem:[#allocation2 + $0x3a] sm:$0xff]  ;;  %v13874_v37 = vadd.f32 %v23280_v8, %v13835_v11 }
 0x36f   : > { %20022 = vmatprep.mubr.msk.f32.mxu0 %vm15109_vm2, %v15722_v59  ;;  %15123 = vst.msk [vmem:[#allocation2 + $0x60] sm:$0xff] %vm15109_vm2, %v14673_v43  ;;  %15121 = vst.msk [vmem:[#allocation2 + $0x50] sm:$0xff] %vm15109_vm2, %v14649_v22  ;;  %v14674_v54 = vcombine.low %v14135_v47, %v14143_v49  ;;  %v13837_v26 = vadd.f32 %v13734_v35, %v23424_v18  ;;  %19947 = vmatmul.mubr.msk.f32.gmra.mxu1 %vm15109_vm2, %v23586_v5  ;;  %v19916_v18 = vpop.f32.mrf.mxu0 }
 0x370   : > { %20023 = vmatmul.mubr.msk.f32.gmra.mxu0 %vm15109_vm2, %v15723_v0  ;;  %v14675_v39 = vcombine.low %v14142_v30, %v14144_v52  ;;  %v14179_v13 = vcombine.high %v13907_v46, %v13907_v46  ;;  %v14186_v15 = vrot.slane %v13907_v46, %v25229_v48  ;;  %v13877_v2 = vadd.f32 %v23280_v8, %v13838_v27 }
 0x371   : > { %v14706_v7 = vrot.slane %v23577_v24, %v25229_v48  ;;  %v14682_v63 = vrot.slane %v14674_v54, %v25229_v48  ;;  %v13906_v57 = vmax.f32 %v13874_v37, 0.0  ;;  %v13876_v36 = vadd.f32 %v23280_v8, %v13837_v26  ;;  %v13744_v53 = vpop.f32.mrf.mxu0 }
 0x372   : > { %v14689_v12 = vrot.slane %v14675_v39, %v25229_v48  ;;  %v14193_v4 = vrot.slane %v14179_v13, %v25229_v48  ;;  %v14194_v58 = vcombine.high %v14186_v15, %v14186_v15  ;;  %v13909_v50 = vmax.f32 %v13877_v2, 0.0 }
 0x373   : > { %v14162_v1 = vcombine.high %v13906_v57, %v13906_v57  ;;  %v14169_v42 = vrot.slane %v13906_v57, %v25229_v48  ;;  %v13908_v60 = vmax.f32 %v13876_v36, 0.0  ;;  %v13840_v21 = vadd.f32 %v19916_v18, %v23431_v55  ;;  %v19919_v46 = vpop.f32.mrf.mxu0 }
 0x374   : > { %v14690_v56 = vcombine.low %v14682_v63, %v14689_v12  ;;  %v14195_v51 = vcombine.high %v14193_v4, %v14193_v4  ;;  %v14738_v45 = vrot.slane %v14194_v58, %v25229_v48  ;;  %v14213_v38 = vcombine.high %v13909_v50, %v13909_v50 }
 0x375   : > { %v14176_v34 = vrot.slane %v14162_v1, %v25229_v48  ;;  %v14177_v47 = vcombine.high %v14169_v42, %v14169_v42  ;;  %v14699_v17 = vcombine.low %v14161_v9, %v14169_v42  ;;  %v14220_v24 = vrot.slane %v13909_v50, %v25229_v48  ;;  %v13754_v57 = vpop.f32.mrf.mxu0 }
 0x376   : > { %15124 = vst.msk [vmem:[#allocation2 + $0x68] sm:$0xff] %vm15109_vm2, %v14690_v56  ;;  %v14739_v30 = vcombine.low %v14193_v4, %v14195_v51  ;;  %v23615_v6 = vrot.slane %v14213_v38, %v25229_v48  ;;  %v14196_v55 = vcombine.high %v13908_v60, %v13908_v60  ;;  %v14203_v35 = vrot.slane %v13908_v60, %v25229_v48  ;;  %v23618_v43 = vld [vmem:[#allocation2 + $0x49] sm:$0xff]  ;;  %v23622_v49 = vld [vmem:[#allocation2 + $0x51] sm:$0xff] }
 0x377   : > { %15128 = vst.msk [vmem:[#allocation2 + $0x88] sm:$0x3] %vm15112_vm3, %v14738_v45  ;;  %v23620_v22 = vld [vmem:[#allocation2 + $0x4a] sm:$0xff]  ;;  %v14178_v11 = vcombine.high %v14176_v34, %v14176_v34  ;;  %v14713_v59 = vrot.slane %v14699_v17, %v25229_v48  ;;  %v14715_v9 = vcombine.low %v14177_v47, %v14176_v34  ;;  %v14228_v52 = vcombine.high %v14220_v24, %v14220_v24  ;;  %v23627_v27 = vld [vmem:[#allocation2 + $0x52] sm:$0xff] }
 0x378   : > { %19949 = vmatprep.mubr.msk.f32.mxu1 %vm15109_vm2, %v23618_v43  ;;  %v14747_v0 = vrot.slane %v14739_v30, %v25229_v48  ;;  %v14779_v54 = vrot.slane %v23615_v6, %v25229_v48  ;;  %v14210_v37 = vrot.slane %v14196_v55, %v25229_v48  ;;  %v14211_v26 = vcombine.high %v14203_v35, %v14203_v35 }
 0x379   : > { %20025 = vmatprep.mubr.msk.f32.mxu0 %vm15109_vm2, %v23620_v22  ;;  %v14714_v39 = vcombine.low %v14706_v7, %v14713_v59  ;;  %v14716_v13 = vcombine.low %v14178_v11, %v14186_v15  ;;  %v14723_v2 = vrot.slane %v14715_v9, %v25229_v48  ;;  %v14757_v63 = vcombine.low %v14220_v24, %v14228_v52 }
 0x37a   : > { %19950 = vmatmul.mubr.msk.f32.gmra.mxu1 %vm15109_vm2, %v23622_v49  ;;  %15131 = vst.msk [vmem:[#allocation2 + $0xa0] sm:$0x3] %vm15112_vm3, %v14779_v54  ;;  %v14212_v36 = vcombine.high %v14210_v37, %v14210_v37  ;;  %v14740_v18 = vcombine.low %v14203_v35, %v14211_v26  ;;  %v13879_v12 = vadd.f32 %v23280_v8, %v13840_v21  ;;  %v19922_v21 = vpop.f32.mrf.mxu0 }
 0x37b   : > { %v13839_v4 = vadd.f32 %v13744_v53, %v23443_v62  ;;  %20026 = vmatmul.mubr.msk.f32.gmra.mxu0 %vm15109_vm2, %v23627_v27  ;;  %v14730_v15 = vrot.slane %v14716_v13, %v25229_v48  ;;  %15126 = vst.msk [vmem:[#allocation2 + $0x78] sm:$0xff] %vm15109_vm2, %v14714_v39  ;;  %v14771_v7 = vrot.slane %v14757_v63, %v25229_v48 }
 0x37c   : > { %v14229_v58 = vcombine.high %v23615_v6, %v23615_v6  ;;  %v13842_v50 = vadd.f32 %v19919_v46, %v23447_v29  ;;  %v14754_v1 = vrot.slane %v14740_v18, %v25229_v48  ;;  %v14756_v42 = vcombine.low %v14210_v37, %v14212_v36  ;;  %v13764_v6 = vpop.f32.mrf.mxu0 }
 0x37d   : > { %v13911_v60 = vmax.f32 %v13879_v12, 0.0  ;;  %v13878_v62 = vadd.f32 %v23280_v8, %v13839_v4  ;;  %v14731_v53 = vcombine.low %v14723_v2, %v14730_v15  ;;  %v13841_v51 = vadd.f32 %v13754_v57, %v23461_v19  ;;  %v23654_v38 = vld [vmem:[#allocation2 + $0x61] sm:$0xff]  ;;  %v23658_v47 = vld [vmem:[#allocation2 + $0x69] sm:$0xff] }
 0x37e   : > { %v13881_v56 = vadd.f32 %v23280_v8, %v13842_v50  ;;  %v13844_v45 = vadd.f32 %v19922_v21, %v23469_v32  ;;  %v23656_v34 = vld [vmem:[#allocation2 + $0x62] sm:$0xff]  ;;  %v14755_v29 = vcombine.low %v14747_v0, %v14754_v1  ;;  %v14764_v17 = vrot.slane %v14756_v42, %v25229_v48  ;;  %19952 = vmatprep.mubr.msk.f32.mxu1 %vm15109_vm2, %v23654_v38  ;;  %v23664_v55 = vld [vmem:[#allocation2 + $0x6a] sm:$0xff]  ;;  %v19925_v57 = vpop.f32.mrf.mxu0 }
 0x37f   : > { %v14247_v24 = vcombine.high %v13911_v60, %v13911_v60  ;;  %v14254_v30 = vrot.slane %v13911_v60, %v25229_v48  ;;  %15127 = vst.msk [vmem:[#allocation2 + $0x80] sm:$0xff] %vm15109_vm2, %v14731_v53  ;;  %v13910_v19 = vmax.f32 %v13878_v62, 0.0  ;;  %v13880_v35 = vadd.f32 %v23280_v8, %v13841_v51  ;;  %20028 = vmatprep.mubr.msk.f32.mxu0 %vm15109_vm2, %v23656_v34 }
 0x380   : > { %v13913_v32 = vmax.f32 %v13881_v56, 0.0  ;;  %v13883_v11 = vadd.f32 %v23280_v8, %v13844_v45  ;;  %19953 = vmatmul.mubr.msk.f32.gmra.mxu1 %vm15109_vm2, %v23658_v47  ;;  %v14772_v59 = vcombine.low %v14764_v17, %v14771_v7  ;;  %15129 = vst.msk [vmem:[#allocation2 + $0x90] sm:$0xff] %vm15109_vm2, %v14755_v29  ;;  %v13843_v46 = vadd.f32 %v13764_v6, %v23486_v20  ;;  %v13774_v1 = vpop.f32.mrf.mxu0 }
 0x381   : > { %v14261_v9 = vrot.slane %v14247_v24, %v25229_v48  ;;  %v14262_v52 = vcombine.high %v14254_v30, %v14254_v30  ;;  %20029 = vmatmul.mubr.msk.f32.gmra.mxu0 %vm15109_vm2, %v23664_v55  ;;  %v14230_v0 = vcombine.high %v13910_v19, %v13910_v19  ;;  %v14237_v54 = vrot.slane %v13910_v19, %v25229_v48 }
 0x382   : > { %v14281_v37 = vcombine.high %v13913_v32, %v13913_v32  ;;  %v14288_v26 = vrot.slane %v13913_v32, %v25229_v48  ;;  %15130 = vst.msk [vmem:[#allocation2 + $0x98] sm:$0xff] %vm15109_vm2, %v14772_v59  ;;  %v13912_v2 = vmax.f32 %v13880_v35, 0.0  ;;  %v13915_v63 = vmax.f32 %v13883_v11, 0.0  ;;  %v19928_v45 = vpop.f32.mrf.mxu0 }
 0x383   : > { %v14263_v39 = vcombine.high %v14261_v9, %v14261_v9  ;;  %v14798_v13 = vcombine.low %v14262_v52, %v14261_v9  ;;  %v14244_v36 = vrot.slane %v14230_v0, %v25229_v48  ;;  %v14245_v18 = vcombine.high %v14237_v54, %v14237_v54 }
 0x384   : > { %v14780_v20 = vcombine.low %v14229_v58, %v14237_v54  ;;  %v14295_v12 = vrot.slane %v14281_v37, %v25229_v48  ;;  %v14296_v7 = vcombine.high %v14288_v26, %v14288_v26  ;;  %v14264_v50 = vcombine.high %v13912_v2, %v13912_v2 }
 0x385   : > { %v14812_v4 = vrot.slane %v14798_v13, %v25229_v48  ;;  %v14820_v15 = vrot.slane %v14263_v39, %v25229_v48  ;;  %v14246_v42 = vcombine.high %v14244_v36, %v14244_v36  ;;  %v14781_v60 = vcombine.low %v14245_v18, %v14244_v36 }
 0x386   : > { %v14788_v62 = vrot.slane %v14780_v20, %v25229_v48  ;;  %v14297_v21 = vcombine.high %v14295_v12, %v14295_v12  ;;  %v14838_v53 = vcombine.low %v14288_v26, %v14296_v7  ;;  %v14271_v56 = vrot.slane %v13912_v2, %v25229_v48  ;;  %v23689_v29 = vld [vmem:[#allocation2 + $0x79] sm:$0xff]  ;;  %v23693_v24 = vld [vmem:[#allocation2 + $0x81] sm:$0xff]  ;;  %v13784_v20 = vpop.f32.mrf.mxu0 }
 0x387   : > { %15134 = vst.msk [vmem:[#allocation2 + $0xb8] sm:$0x3] %vm15112_vm3, %v14820_v15  ;;  %v14278_v58 = vrot.slane %v14264_v50, %v25229_v48  ;;  %v14315_v51 = vcombine.high %v13915_v63, %v13915_v63  ;;  %v23691_v17 = vld [vmem:[#allocation2 + $0x7a] sm:$0xff]  ;;  %v14795_v6 = vrot.slane %v14781_v60, %v25229_v48  ;;  %v14797_v19 = vcombine.low %v14246_v42, %v14254_v30  ;;  %v23701_v11 = vld [vmem:[#allocation2 + $0x82] sm:$0xff] }
 0x388   : > { %v14839_v32 = vcombine.low %v14295_v12, %v14297_v21  ;;  %v23697_v35 = vrot.slane %v13915_v63, %v25229_v48  ;;  %19955 = vmatprep.mubr.msk.f32.mxu1 %vm15109_vm2, %v23689_v29  ;;  %v14846_v59 = vrot.slane %v14838_v53, %v25229_v48  ;;  %v14279_v9 = vcombine.high %v14271_v56, %v14271_v56 }
 0x389   : > { %v14280_v52 = vcombine.high %v14278_v58, %v14278_v58  ;;  %v23705_v0 = vrot.slane %v14315_v51, %v25229_v48  ;;  %20031 = vmatprep.mubr.msk.f32.mxu0 %vm15109_vm2, %v23691_v17  ;;  %v14796_v30 = vcombine.low %v14788_v62, %v14795_v6  ;;  %v14805_v54 = vrot.slane %v14797_v19, %v25229_v48  ;;  %v23715_v39 = vld [vmem:[#allocation2 + $0x91] sm:$0xff]  ;;  %v23723_v12 = vld [vmem:[#allocation2 + $0x99] sm:$0xff]  ;;  %v19931_v6 = vpop.f32.mrf.mxu0 }
 0x38a   : > { %v14853_v37 = vrot.slane %v14839_v32, %v25229_v48  ;;  %v14330_v26 = vcombine.high %v23697_v35, %v23697_v35  ;;  %19956 = vmatmul.mubr.msk.f32.gmra.mxu1 %vm15109_vm2, %v23693_v24  ;;  %v23717_v13 = vld [vmem:[#allocation2 + $0x92] sm:$0xff]  ;;  %v14821_v2 = vcombine.low %v14271_v56, %v14279_v9  ;;  %v13882_v36 = vadd.f32 %v23280_v8, %v13843_v46  ;;  %v23732_v46 = vld [vmem:[#allocation2 + $0x9a] sm:$0xff] }
 0x38b   : > { %v14822_v63 = vcombine.low %v14278_v58, %v14280_v52  ;;  %v13846_v18 = vadd.f32 %v19925_v57, %v23497_v16  ;;  %20032 = vmatmul.mubr.msk.f32.gmra.mxu0 %vm15109_vm2, %v23701_v11  ;;  %v14813_v15 = vcombine.low %v14805_v54, %v14812_v4  ;;  %15132 = vst.msk [vmem:[#allocation2 + $0xa8] sm:$0xff] %vm15109_vm2, %v14796_v30 }
 0x38c   : > { %v14854_v7 = vcombine.low %v14846_v59, %v14853_v37  ;;  %v23727_v50 = vcombine.low %v14330_v26, %v23705_v0  ;;  %v13845_v42 = vadd.f32 %v13774_v1, %v23508_v31  ;;  %19958 = vmatprep.mubr.msk.f32.mxu1 %vm15109_vm2, %v23715_v39  ;;  %v14829_v16 = vrot.slane %v14821_v2, %v25229_v48 }
 0x38d   : > { %v14836_v57 = vrot.slane %v14822_v63, %v25229_v48  ;;  %v13914_v60 = vmax.f32 %v13882_v36, 0.0  ;;  %v13885_v4 = vadd.f32 %v23280_v8, %v13846_v18  ;;  %20034 = vmatprep.mubr.msk.f32.mxu0 %vm15109_vm2, %v23717_v13  ;;  %15133 = vst.msk [vmem:[#allocation2 + $0xb0] sm:$0xff] %vm15109_vm2, %v14813_v15  ;;  %v14331_v62 = vcombine.high %v23705_v0, %v23705_v0 }
 0x38e   : > { %15136 = vst.msk [vmem:[#allocation2 + $0xc8] sm:$0xff] %vm15109_vm2, %v14854_v7  ;;  %v14887_v31 = vrot.slane %v23727_v50, %v25229_v48  ;;  %v13884_v1 = vadd.f32 %v23280_v8, %v13845_v42  ;;  %v13848_v21 = vadd.f32 %v19928_v45, %v23512_v3  ;;  %19959 = vmatmul.mubr.msk.f32.gmra.mxu1 %vm15109_vm2, %v23723_v12  ;;  %v13794_v7 = vpop.f32.mrf.mxu0  ;;  %v12285_v50 = vpop.f32.mrf.mxu1 }
 0x38f   : > { %v14837_v53 = vcombine.low %v14829_v16, %v14836_v57  ;;  %v14298_v56 = vcombine.high %v13914_v60, %v13914_v60  ;;  %v14305_v58 = vrot.slane %v13914_v60, %v25229_v48  ;;  %v13917_v51 = vmax.f32 %v13885_v4, 0.0  ;;  %20035 = vmatmul.mubr.msk.f32.gmra.mxu0 %vm15109_vm2, %v23732_v46 }
 0x390   : > { %v13916_v19 = vmax.f32 %v13884_v1, 0.0  ;;  %v13887_v32 = vadd.f32 %v23280_v8, %v13848_v21  ;;  %v13847_v59 = vadd.f32 %v13784_v20, %v23516_v10  ;;  %v13850_v9 = vadd.f32 %v19931_v6, %v23521_v23 }
 0x391   : > { %15135 = vst.msk [vmem:[#allocation2 + $0xc0] sm:$0xff] %vm15109_vm2, %v14837_v53  ;;  %v14312_v3 = vrot.slane %v14298_v56, %v25229_v48  ;;  %v14313_v45 = vcombine.high %v14305_v58, %v14305_v58  ;;  %v14861_v52 = vrot.slane %v14305_v58, %v25229_v48  ;;  %v14349_v0 = vcombine.high %v13917_v51, %v13917_v51 }
 0x392   : > { %v14356_v30 = vrot.slane %v13917_v51, %v25229_v48  ;;  %v14332_v54 = vcombine.high %v13916_v19, %v13916_v19  ;;  %v14339_v37 = vrot.slane %v13916_v19, %v25229_v48  ;;  %v13919_v26 = vmax.f32 %v13887_v32, 0.0 }
 0x393   : > { %v14314_v2 = vcombine.high %v14312_v3, %v14312_v3  ;;  %v14862_v63 = vcombine.low %v14313_v45, %v14312_v3  ;;  %15137 = vst.msk [vmem:[#allocation2 + $0xd0] sm:$0x3] %vm15112_vm3, %v14861_v52  ;;  %v14363_v10 = vrot.slane %v14349_v0, %v25229_v48  ;;  %v13886_v23 = vadd.f32 %v23280_v8, %v13847_v59  ;;  %v19934_v52 = vpop.f32.mrf.mxu0 }
 0x394   : > { %v14364_v36 = vcombine.high %v14356_v30, %v14356_v30  ;;  %v14346_v18 = vrot.slane %v14332_v54, %v25229_v48  ;;  %v14347_v20 = vcombine.high %v14339_v37, %v14339_v37  ;;  %v14880_v15 = vcombine.low %v14331_v62, %v14339_v37  ;;  %v23766_v4 = vld [vmem:[#allocation2 + $0xa9] sm:$0xff]  ;;  %v23770_v21 = vld [vmem:[#allocation2 + $0xb1] sm:$0xff] }
 0x395   : > { %v14863_v42 = vcombine.low %v14314_v2, %v23697_v35  ;;  %v14870_v16 = vrot.slane %v14862_v63, %v25229_v48  ;;  %v14365_v57 = vcombine.high %v14363_v10, %v14363_v10  ;;  %v14383_v60 = vcombine.high %v13919_v26, %v13919_v26  ;;  %v23768_v1 = vld [vmem:[#allocation2 + $0xaa] sm:$0xff]  ;;  %19961 = vmatprep.mubr.msk.f32.mxu1 %vm15109_vm2, %v23766_v4  ;;  %v23776_v35 = vld [vmem:[#allocation2 + $0xb2] sm:$0xff] }
 0x396   : > { %v14904_v8 = vcombine.low %v14356_v30, %v14364_v36  ;;  %v14348_v53 = vcombine.high %v14346_v18, %v14346_v18  ;;  %v14894_v56 = vrot.slane %v14880_v15, %v25229_v48  ;;  %v14902_v62 = vrot.slane %v14347_v20, %v25229_v48  ;;  %20037 = vmatprep.mubr.msk.f32.mxu0 %vm15109_vm2, %v23768_v1 }
 0x397   : > { %v14877_v58 = vrot.slane %v14863_v42, %v25229_v48  ;;  %v23779_v51 = vcombine.low %v14363_v10, %v14365_v57  ;;  %v14390_v6 = vrot.slane %v13919_v26, %v25229_v48  ;;  %v23783_v19 = vrot.slane %v14383_v60, %v25229_v48  ;;  %19962 = vmatmul.mubr.msk.f32.gmra.mxu1 %vm15109_vm2, %v23770_v21  ;;  %v13804_v57 = vpop.f32.mrf.mxu0 }
 0x398   : > { %v12332_v32 = vadd.f32 %v12285_v50, %v23465_v41  ;;  %v14895_v59 = vcombine.low %v14887_v31, %v14894_v56  ;;  %v14903_v3 = vcombine.low %v14346_v18, %v14348_v53  ;;  %15140 = vst.msk [vmem:[#allocation2 + $0xe8] sm:$0x3] %vm15112_vm3, %v14902_v62  ;;  %v13918_v45 = vmax.f32 %v13886_v23, 0.0  ;;  %20038 = vmatmul.mubr.msk.f32.gmra.mxu0 %vm15109_vm2, %v23776_v35  ;;  %v23793_v0 = vld [vmem:[#allocation2 + $0xc1] sm:$0xff]  ;;  %v23801_v31 = vld [vmem:[%s24883_s2] ss:$0 sm:$0xff]  ;;  %v19887_v50 = vpop.f32.mrf.mxu1 }
 0x399   : > { %v23795_v30 = vld [vmem:[#allocation2 + $0xc2] sm:$0xff]  ;;  %v14878_v54 = vcombine.low %v14870_v16, %v14877_v58  ;;  %v14918_v37 = vrot.slane %v14904_v8, %v25229_v48  ;;  %v14398_v41 = vcombine.high %v14390_v6, %v14390_v6  ;;  %v13889_v26 = vadd.f32 %v23801_v31, %v13850_v9  ;;  %19964 = vmatprep.mubr.msk.f32.mxu1 %vm15109_vm2, %v23793_v0 }
 0x39a   : > { %v14911_v2 = vrot.slane %v14903_v3, %v25229_v48  ;;  %15139 = vst.msk [vmem:[#allocation2 + $0xe0] sm:$0xff] %vm15109_vm2, %v14895_v59  ;;  %v14366_v63 = vcombine.high %v13918_v45, %v13918_v45  ;;  %v14373_v10 = vrot.slane %v13918_v45, %v25229_v48  ;;  %v13849_v23 = vadd.f32 %v13794_v7, %v23524_v44  ;;  %v23817_v15 = vld [vmem:[#allocation2 + $0xc9] sm:$0xff] }
 0x39b   : > { %20040 = vmatprep.mubr.msk.f32.mxu0 %vm15109_vm2, %v23795_v30  ;;  %15138 = vst.msk [vmem:[#allocation2 + $0xd8] sm:$0xff] %vm15109_vm2, %v14878_v54  ;;  %v14928_v9 = vrot.slane %v23779_v51, %v25229_v48  ;;  %v14945_v36 = vcombine.low %v14398_v41, %v23783_v19  ;;  %v13921_v18 = vmax.f32 %v13889_v26, 0.0  ;;  %v13852_v20 = vadd.f32 %v19934_v52, %v23575_v14  ;;  %v23823_v60 = vld [vmem:[#allocation2 + $0xca] sm:$0xff] }
 0x39c   : > { %v14919_v42 = vcombine.low %v14911_v2, %v14918_v37  ;;  %v14380_v16 = vrot.slane %v14366_v63, %v25229_v48  ;;  %v14381_v44 = vcombine.high %v14373_v10, %v14373_v10  ;;  %v13888_v7 = vadd.f32 %v23801_v31, %v13849_v23  ;;  %19965 = vmatmul.mubr.msk.f32.gmra.mxu1 %vm15109_vm2, %v23817_v15  ;;  %v12295_v37 = vpop.f32.mrf.mxu1  ;;  %v19937_v63 = vpop.f32.mrf.mxu0 }
 0x39d   : > { %v14417_v8 = vcombine.high %v13921_v18, %v13921_v18  ;;  %v14424_v53 = vrot.slane %v13921_v18, %v25229_v48  ;;  %v14399_v14 = vcombine.high %v23783_v19, %v23783_v19  ;;  %v13891_v56 = vadd.f32 %v23801_v31, %v13852_v20  ;;  %20041 = vmatmul.mubr.msk.f32.gmra.mxu0 %vm15109_vm2, %v23823_v60 }
 0x39e   : > { %15141 = vst.msk [vmem:[#allocation2 + $0xf0] sm:$0xff] %vm15109_vm2, %v14919_v42  ;;  %v14382_v62 = vcombine.high %v14380_v16, %v14380_v16  ;;  %v14921_v58 = vcombine.low %v14373_v10, %v14381_v44  ;;  %v14943_v51 = vrot.slane %v14380_v16, %v25229_v48  ;;  %v13920_v59 = vmax.f32 %v13888_v7, 0.0 }
 0x39f   : > { %v14959_v3 = vrot.slane %v14945_v36, %v25229_v48  ;;  %v14431_v45 = vrot.slane %v14417_v8, %v25229_v48  ;;  %v14432_v52 = vcombine.high %v14424_v53, %v14424_v53  ;;  %v13923_v54 = vmax.f32 %v13891_v56, 0.0  ;;  %v25263_v56 = vld [vmem:[#allocation14_spill] sm:$0xff] }
 0x3a0   : > { %v14935_v19 = vrot.slane %v14921_v58, %v25229_v48  ;;  %v14944_v41 = vcombine.low %v14382_v62, %v14390_v6  ;;  %15143 = vst.msk [vmem:[#allocation2 + $0x100] sm:$0x3] %vm15112_vm3, %v14943_v51  ;;  %v14400_v26 = vcombine.high %v13920_v59, %v13920_v59  ;;  %v14407_v2 = vrot.slane %v13920_v59, %v25229_v48 }
 0x3a1   : > { %v14433_v10 = vcombine.high %v14431_v45, %v14431_v45  ;;  %v14985_v23 = vcombine.low %v14424_v53, %v14432_v52  ;;  %v23839_v18 = vrot.slane %v13923_v54, %v25229_v48  ;;  %v13851_v36 = vadd.f32 %v13804_v57, %v12332_v32  ;;  %v23847_v8 = vld [vmem:[#allocation2 + $0xe1] sm:$0xff] }
 0x3a2   : > { %v14936_v20 = vcombine.low %v14928_v9, %v14935_v19  ;;  %v14952_v42 = vrot.slane %v14944_v41, %v25229_v48  ;;  %v14414_v16 = vrot.slane %v14400_v26, %v25229_v48  ;;  %v14415_v44 = vcombine.high %v14407_v2, %v14407_v2  ;;  %v23843_v7 = vld [vmem:[#allocation2 + $0xd9] sm:$0xff]  ;;  %v23853_v32 = vld [vmem:[#allocation2 + $0xe2] sm:$0xff]  ;;  %v13814_v19 = vpop.f32.mrf.mxu0 }
 0x3a3   : > { %v23845_v6 = vld [vmem:[#allocation2 + $0xda] sm:$0xff]  ;;  %v12335_v62 = vadd.f32 %v19887_v50, %v25263_v56  ;;  %v12334_v53 = vadd.f32 %v12295_v37, %v23490_v61  ;;  %v14986_v58 = vcombine.low %v14431_v45, %v14433_v10  ;;  %v14961_v51 = vcombine.low %v14399_v14, %v14407_v2  ;;  %19967 = vmatprep.mubr.msk.f32.mxu1 %vm15109_vm2, %v23843_v7 }
 0x3a4   : > { %v14960_v9 = vcombine.low %v14952_v42, %v14959_v3  ;;  %15142 = vst.msk [vmem:[#allocation2 + $0xf8] sm:$0xff] %vm15109_vm2, %v14936_v20  ;;  %v14416_v57 = vcombine.high %v14414_v16, %v14414_v16  ;;  %v14962_v59 = vcombine.low %v14415_v44, %v14414_v16  ;;  %v14451_v52 = vcombine.high %v13923_v54, %v13923_v54 }
 0x3a5   : > { %20043 = vmatprep.mubr.msk.f32.mxu0 %vm15109_vm2, %v23845_v6  ;;  %v14993_v50 = vrot.slane %v14985_v23, %v25229_v48  ;;  %v15000_v61 = vrot.slane %v14986_v58, %v25229_v48  ;;  %v15025_v14 = vrot.slane %v23839_v18, %v25229_v48  ;;  %v13890_v45 = vadd.f32 %v23801_v31, %v13851_v36 }
 0x3a6   : > { %19968 = vmatmul.mubr.msk.f32.gmra.mxu1 %vm15109_vm2, %v23847_v8  ;;  %15144 = vst.msk [vmem:[#allocation2 + $0x108] sm:$0xff] %vm15109_vm2, %v14960_v9  ;;  %v14969_v3 = vrot.slane %v14961_v51, %v25229_v48  ;;  %v14976_v54 = vrot.slane %v14962_v59, %v25229_v48  ;;  %v14984_v37 = vrot.slane %v14416_v57, %v25229_v48 }
 0x3a7   : > { %v13854_v41 = vadd.f32 %v19937_v63, %v12335_v62  ;;  %20044 = vmatmul.mubr.msk.f32.gmra.mxu0 %vm15109_vm2, %v23853_v32  ;;  %v15001_v26 = vcombine.low %v14993_v50, %v15000_v61  ;;  %15149 = vst.msk [vmem:[#allocation2 + $0x130] sm:$0x3] %vm15112_vm3, %v15025_v14  ;;  %v13922_v2 = vmax.f32 %v13890_v45, 0.0  ;;  %v13853_v10 = vadd.f32 %v13814_v19, %v12334_v53 }
 0x3a8   : > { %v14977_v23 = vcombine.low %v14969_v3, %v14976_v54  ;;  %15146 = vst.msk [vmem:[#allocation2 + $0x118] sm:$0x3] %vm15112_vm3, %v14984_v37  ;;  %v14465_v16 = vrot.slane %v14451_v52, %v25229_v48  ;;  %v14466_v44 = vcombine.high %v23839_v18, %v23839_v18 }
 0x3a9   : > { %v13893_v36 = vadd.f32 %v23801_v31, %v13854_v41  ;;  %15147 = vst.msk [vmem:[#allocation2 + $0x120] sm:$0xff] %vm15109_vm2, %v15001_v26  ;;  %v14434_v20 = vcombine.high %v13922_v2, %v13922_v2  ;;  %v14441_v42 = vrot.slane %v13922_v2, %v25229_v48  ;;  %v13892_v63 = vadd.f32 %v23801_v31, %v13853_v10 }
 0x3aa   : > { %15145 = vst.msk [vmem:[#allocation2 + $0x110] sm:$0xff] %vm15109_vm2, %v14977_v23  ;;  %v15026_v61 = vcombine.low %v14466_v44, %v14465_v16  ;;  %v14467_v45 = vcombine.high %v14465_v16, %v14465_v16 }
 0x3ab   : > { %v13925_v56 = vmax.f32 %v13893_v36, 0.0  ;;  %v14448_v62 = vrot.slane %v14434_v20, %v25229_v48  ;;  %v14449_v53 = vcombine.high %v14441_v42, %v14441_v42  ;;  %v13924_v58 = vmax.f32 %v13892_v63, 0.0  ;;  %v23882_v51 = vld [vmem:[#allocation2 + $0xf1] sm:$0xff]  ;;  %v23886_v57 = vld [vmem:[#allocation2 + $0xf9] sm:$0xff] }
 0x3ac   : > { %v23884_v9 = vld [vmem:[#allocation2 + $0xf2] sm:$0xff]  ;;  %19970 = vmatprep.mubr.msk.f32.mxu1 %vm15109_vm2, %v23882_v51  ;;  %v23893_v18 = vld [vmem:[#allocation2 + $0xfa] sm:$0xff]  ;;  %v15034_v16 = vrot.slane %v15026_v61, %v25229_v48 }
 0x3ad   : > { %v14491_v31 = vrot.slane %v13925_v56, %v25229_v48  ;;  %20046 = vmatprep.mubr.msk.f32.mxu0 %vm15109_vm2, %v23884_v9  ;;  %v14450_v59 = vcombine.high %v14448_v62, %v14448_v62  ;;  %v15002_v52 = vcombine.low %v14441_v42, %v14449_v53  ;;  %v14468_v19 = vcombine.high %v13924_v58, %v13924_v58 }
 0x3ae   : > { %v14475_v50 = vrot.slane %v13924_v58, %v25229_v48  ;;  %19971 = vmatmul.mubr.msk.f32.gmra.mxu1 %vm15109_vm2, %v23886_v57  ;;  %20047 = vmatmul.mubr.msk.f32.gmra.mxu0 %vm15109_vm2, %v23893_v18  ;;  %v15153_v58 = vld [vmem:[#allocation2] sm:$0xff] }
 0x3af   : > { %v14492_v14 = vcombine.high %v14491_v31, %v14491_v31  ;;  %v15003_v3 = vcombine.low %v14448_v62, %v14450_v59  ;;  %v14482_v54 = vrot.slane %v14468_v19, %v25229_v48  ;;  %v15010_v2 = vrot.slane %v15002_v52, %v25229_v48 }
 0x3b0   : > { %v14483_v37 = vcombine.high %v14475_v50, %v14475_v50  ;;  %v15027_v26 = vcombine.low %v14467_v45, %v14475_v50  ;;  %v23933_v50 = vld [vmem:[%s24884_s3 + $0x28] sm:$0xff]  ;;  %v23961_v45 = vld [vmem:[#allocation2 + $0x30] sm:$0xff] }
 0x3b1   : > { %v15066_v41 = vrot.slane %v14492_v14, %v25229_v48  ;;  %v15017_v10 = vrot.slane %v15003_v3, %v25229_v48  ;;  %v14484_v23 = vcombine.high %v14482_v54, %v14482_v54  ;;  %v23904_v20 = vld [vmem:[#allocation2 + $0x109] sm:$0xff]  ;;  %v23908_v63 = vld [vmem:[#allocation2 + $0x111] sm:$0xff]  ;;  %v23949_v14 = vld [vmem:[#allocation2 + $0x20] sm:$0xff] }
 0x3b2   : > { %v15043_v36 = vcombine.low %v14483_v37, %v14482_v54  ;;  %v23906_v42 = vld [vmem:[#allocation2 + $0x10a] sm:$0xff]  ;;  %v15041_v44 = vrot.slane %v15027_v26, %v25229_v48  ;;  %19973 = vmatprep.mubr.msk.f32.mxu1 %vm15109_vm2, %v23904_v20  ;;  %v23917_v56 = vld [vmem:[#allocation2 + $0x112] sm:$0xff]  ;;  %v15169_v26 = vld [vmem:[#allocation2 + $0xc0] sm:$0xff] }
 0x3b3   : > { %15152 = vst.msk [vmem:[#allocation2 + $0x148] sm:$0x3] %vm15112_vm3, %v15066_v41  ;;  %20049 = vmatprep.mubr.msk.f32.mxu0 %vm15109_vm2, %v23906_v42  ;;  %v15018_v62 = vcombine.low %v15010_v2, %v15017_v10  ;;  %v15044_v53 = vcombine.low %v14484_v23, %v14491_v31  ;;  %19974 = vmatmul.mubr.msk.f32.gmra.mxu1 %vm15109_vm2, %v23908_v63  ;;  %v15154_v31 = vld [vmem:[#allocation2 + $0x8] sm:$0xff]  ;;  %v15165_v3 = vld [vmem:[#allocation2 + $0x90] sm:$0xff]  ;;  %v15166_v54 = vld [vmem:[#allocation2 + $0x98] sm:$0xff] }
 0x3b4   : > { %20050 = vmatmul.mubr.msk.f32.gmra.mxu0 %vm15109_vm2, %v23917_v56  ;;  %v15042_v59 = vcombine.low %v15034_v16, %v15041_v44  ;;  %19978 = vmatprep.mubr.msk.f32.mxu1 %vm15109_vm2, %v15153_v58  ;;  %v15051_v52 = vrot.slane %v15043_v36, %v25229_v48  ;;  %v15167_v37 = vld [vmem:[#allocation2 + $0xa8] sm:$0xff]  ;;  %v15168_v41 = vld [vmem:[#allocation2 + $0xb0] sm:$0xff]  ;;  %v15171_v10 = vld [vmem:[#allocation2 + $0xd8] sm:$0xff] }
 0x3b5   : > { %20092 = vmatprep.mubr.msk.f32.mxu0 %vm15109_vm2, %v23541_v33  ;;  %15148 = vst.msk [vmem:[#allocation2 + $0x128] sm:$0xff] %vm15109_vm2, %v15018_v62  ;;  %v15058_v19 = vrot.slane %v15044_v53, %v25229_v48  ;;  %v23938_v33 = vld [vmem:[#allocation2 + $0x18] sm:$0xff]  ;;  %v15170_v2 = vld [vmem:[#allocation2 + $0xc8] sm:$0xff]  ;;  %v15172_v23 = vld [vmem:[#allocation2 + $0xe0] sm:$0xff] }
 0x3b6   : > { %15150 = vst.msk [vmem:[#allocation2 + $0x138] sm:$0xff] %vm15109_vm2, %v15042_v59  ;;  %v20599_v48 = vld [vmem:[%s24884_s3 + $0x18] sm:$0xff]  ;;  %v15173_v36 = vld [vmem:[#allocation2 + $0xf0] sm:$0xff]  ;;  %v15175_v44 = vld [vmem:[#allocation2 + $0x108] sm:$0xff] }
 0x3b7   : > { %v15059_v61 = vcombine.low %v15051_v52, %v15058_v19  ;;  %19979 = vmatmul.mubr.msk.f32.vlgmr.msra.gmra.mxu1 %vm15109_vm2, %v15154_v31  ;;  %v15174_v16 = vld [vmem:[#allocation2 + $0xf8] sm:$0xff]  ;;  %v15176_v53 = vld [vmem:[#allocation2 + $0x110] sm:$0xff]  ;;  %v16968_v52 = vld [vmem:[#allocation2 + $0x120] sm:$0xff] }
 0x3b8   : > { %20093 = vmatmul.mubr.msk.f32.vlgmr.msra.gmra.mxu0 %vm15109_vm2, %v23543_v40  ;;  %20053 = vmatpush3.msra.mxu1 %v20599_v48  ;;  %v23955_v40 = vld [vmem:[%s24884_s3 + $0x40] sm:$0xff]  ;;  %v18912_v59 = vld [vmem:[%s24884_s3 + $0x38] sm:$0xff] }
 0x3b9   : > { %19981 = vmatprep.mubr.msk.f32.mxu1 %vm15109_vm2, %v23938_v33  ;;  %15151 = vst.msk [vmem:[#allocation2 + $0x140] sm:$0xff] %vm15109_vm2, %v15059_v61  ;;  %20095 = vmatprep.mubr.msk.f32.mxu0 %vm15109_vm2, %v23584_v25  ;;  %v23974_v25 = vld [vmem:[#allocation2 + $0x48] sm:$0xff]  ;;  %v16640_v61 = vld [vmem:[#allocation2 + $0x1a] sm:$0xff] }
 0x3ba   : > { %20128 = vmatprep.subr.mxu1 %v23933_v50  ;;  %20167 = vmatpush3.msra.mxu0 %v23553_v28  ;;  %v23968_v28 = vld [vmem:[#allocation2 + $0x38] sm:$0xff]  ;;  %v20601_v48 = vld [vmem:[#allocation2 + $0x22] sm:$0xff] }
 0x3bb   : > { %19982 = vmatmul.mubr.msk.f32.gmra.mxu1 %vm15109_vm2, %v23949_v14  ;;  %20242 = vmatprep.subr.mxu0 %v23955_v40 }
 0x3bc   : > { %20096 = vmatmul.mubr.msk.f32.gmra.mxu0 %vm15109_vm2, %v23586_v5  ;;  %19984 = vmatprep.mubr.msk.f32.mxu1 %vm15109_vm2, %v23961_v45  ;;  %v23980_v5 = vld [vmem:[#allocation2 + $0x50] sm:$0xff]  ;;  %v24040_v62 = vld [vmem:[#allocation2 + $0x121] sm:$0xff] }
 0x3bd   : > { %20098 = vmatprep.mubr.msk.f32.mxu0 %vm15109_vm2, %v23618_v43  ;;  %v23986_v43 = vld [vmem:[#allocation2 + $0x60] sm:$0xff]  ;;  %v24045_v58 = vld [vmem:[#allocation2 + $0x129] sm:$0xff]  ;;  %v16970_v31 = vld [vmem:[#allocation2 + $0x138] sm:$0xff] }
 0x3be   : > { %v16969_v19 = vld [vmem:[#allocation2 + $0x128] sm:$0xff] }
 0x3bf   : > { %19985 = vmatmul.mubr.msk.f32.gmra.mxu1 %vm15109_vm2, %v23968_v28 }
 0x3c0   : > { %20099 = vmatmul.mubr.msk.f32.gmra.mxu0 %vm15109_vm2, %v23622_v49  ;;  %19987 = vmatprep.mubr.msk.f32.mxu1 %vm15109_vm2, %v23974_v25  ;;  %v23992_v49 = vld [vmem:[#allocation2 + $0x68] sm:$0xff] }
 0x3c1   : > { %20101 = vmatprep.mubr.msk.f32.mxu0 %vm15109_vm2, %v23654_v38  ;;  %v23998_v38 = vld [vmem:[#allocation2 + $0x78] sm:$0xff] }
 0x3c3   : > { %19988 = vmatmul.mubr.msk.f32.gmra.mxu1 %vm15109_vm2, %v23980_v5 }
 0x3c4   : > { %20102 = vmatmul.mubr.msk.f32.gmra.mxu0 %vm15109_vm2, %v23658_v47  ;;  %19990 = vmatprep.mubr.msk.f32.mxu1 %vm15109_vm2, %v23986_v43  ;;  %v24004_v47 = vld [vmem:[#allocation2 + $0x80] sm:$0xff] }
 0x3c5   : > { %20104 = vmatprep.mubr.msk.f32.mxu0 %vm15109_vm2, %v23689_v29 }
 0x3c7   : > { %19991 = vmatmul.mubr.msk.f32.gmra.mxu1 %vm15109_vm2, %v23992_v49 }
 0x3c8   : > { %20105 = vmatmul.mubr.msk.f32.gmra.mxu0 %vm15109_vm2, %v23693_v24  ;;  %19993 = vmatprep.mubr.msk.f32.mxu1 %vm15109_vm2, %v23998_v38 }
 0x3c9   : > { %20107 = vmatprep.mubr.msk.f32.mxu0 %vm15109_vm2, %v23715_v39 }
 0x3cb   : > { %19994 = vmatmul.mubr.msk.f32.gmra.mxu1 %vm15109_vm2, %v24004_v47 }
 0x3cc   : > { %20108 = vmatmul.mubr.msk.f32.gmra.mxu0 %vm15109_vm2, %v23723_v12  ;;  %19996 = vmatprep.mubr.msk.f32.mxu1 %vm15109_vm2, %v15165_v3 }
 0x3cd   : > { %20110 = vmatprep.mubr.msk.f32.mxu0 %vm15109_vm2, %v23766_v4 }
 0x3cf   : > { %19997 = vmatmul.mubr.msk.f32.gmra.mxu1 %vm15109_vm2, %v15166_v54 }
 0x3d0   : > { %20111 = vmatmul.mubr.msk.f32.gmra.mxu0 %vm15109_vm2, %v23770_v21  ;;  %19999 = vmatprep.mubr.msk.f32.mxu1 %vm15109_vm2, %v15167_v37 }
 0x3d1   : > { %20113 = vmatprep.mubr.msk.f32.mxu0 %vm15109_vm2, %v23793_v0 }
 0x3d3   : > { %20000 = vmatmul.mubr.msk.f32.gmra.mxu1 %vm15109_vm2, %v15168_v41 }
 0x3d4   : > { %20114 = vmatmul.mubr.msk.f32.gmra.mxu0 %vm15109_vm2, %v23817_v15  ;;  %20002 = vmatprep.mubr.msk.f32.mxu1 %vm15109_vm2, %v15169_v26 }
 0x3d5   : > { %20116 = vmatprep.mubr.msk.f32.mxu0 %vm15109_vm2, %v23843_v7 }
 0x3d7   : > { %20003 = vmatmul.mubr.msk.f32.gmra.mxu1 %vm15109_vm2, %v15170_v2 }
 0x3d8   : > { %20117 = vmatmul.mubr.msk.f32.gmra.mxu0 %vm15109_vm2, %v23847_v8  ;;  %20005 = vmatprep.mubr.msk.f32.mxu1 %vm15109_vm2, %v15171_v10 }
 0x3d9   : > { %20119 = vmatprep.mubr.msk.f32.mxu0 %vm15109_vm2, %v23882_v51 }
 0x3db   : > { %20006 = vmatmul.mubr.msk.f32.gmra.mxu1 %vm15109_vm2, %v15172_v23 }
 0x3dc   : > { %20120 = vmatmul.mubr.msk.f32.gmra.mxu0 %vm15109_vm2, %v23886_v57  ;;  %20008 = vmatprep.mubr.msk.f32.mxu1 %vm15109_vm2, %v15173_v36 }
 0x3dd   : > { %20122 = vmatprep.mubr.msk.f32.mxu0 %vm15109_vm2, %v23904_v20 }
 0x3df   : > { %20009 = vmatmul.mubr.msk.f32.gmra.mxu1 %vm15109_vm2, %v15174_v16 }
 0x3e0   : > { %20123 = vmatmul.mubr.msk.f32.gmra.mxu0 %vm15109_vm2, %v23908_v63  ;;  %20011 = vmatprep.mubr.msk.f32.mxu1 %vm15109_vm2, %v15175_v44 }
 0x3e1   : > { %20125 = vmatprep.mubr.msk.f32.mxu0 %vm15109_vm2, %v24040_v62 }
 0x3e3   : > { %20012 = vmatmul.mubr.msk.f32.gmra.mxu1 %vm15109_vm2, %v15176_v53 }
 0x3e4   : > { %20126 = vmatmul.mubr.msk.f32.gmra.mxu0 %vm15109_vm2, %v24045_v58  ;;  %20054 = vmatprep.mubr.msk.f32.mxu1 %vm15109_vm2, %v23938_v33  ;;  %v20600_v33 = vld [vmem:[#allocation2 + $0x32] sm:$0xff] }
 0x3e5   : > { %20168 = vmatprep.mubr.msk.f32.mxu0 %vm15109_vm2, %v23961_v45 }
 0x3e7   : > { %20055 = vmatmul.mubr.msk.f32.vlgmr.msra.gmra.mxu1 %vm15109_vm2, %v23949_v14  ;;  %v20602_v14 = vld [vmem:[#allocation2 + $0x3a] sm:$0xff] }
 0x3e8   : > { %20169 = vmatmul.mubr.msk.f32.vlgmr.msra.gmra.mxu0 %vm15109_vm2, %v23968_v28  ;;  %20129 = vmatpush3.msra.mxu1 %v23933_v50  ;;  %v16971_v50 = vld [vmem:[#allocation2 + $0x140] sm:$0xff] }
 0x3e9   : > { %20057 = vmatprep.mubr.msk.f32.mxu1 %vm15109_vm2, %v23961_v45  ;;  %20171 = vmatprep.mubr.msk.f32.mxu0 %vm15109_vm2, %v23974_v25 }
 0x3ea   : > { %20204 = vmatprep.subr.mxu1 %v18912_v59  ;;  %20243 = vmatpush3.msra.mxu0 %v23955_v40  ;;  %v17583_v40 = vld [vmem:[#allocation2 + $0x12a] sm:$0xff] }
 0x3eb   : > { %20058 = vmatmul.mubr.msk.f32.gmra.mxu1 %vm15109_vm2, %v23968_v28  ;;  %v17585_v28 = vld [vmem:[#allocation2 + $0x142] sm:$0xff] }
 0x3ec   : > { %20172 = vmatmul.mubr.msk.f32.gmra.mxu0 %vm15109_vm2, %v23980_v5  ;;  %20060 = vmatprep.mubr.msk.f32.mxu1 %vm15109_vm2, %v23974_v25 }
 0x3ed   : > { %20174 = vmatprep.mubr.msk.f32.mxu0 %vm15109_vm2, %v23986_v43 }
 0x3ef   : > { %20061 = vmatmul.mubr.msk.f32.gmra.mxu1 %vm15109_vm2, %v23980_v5  ;;  %v17255_v5 = vld [vmem:[#allocation2 + $0x31] sm:$0xff] }
 0x3f0   : > { %20175 = vmatmul.mubr.msk.f32.gmra.mxu0 %vm15109_vm2, %v23992_v49  ;;  %20063 = vmatprep.mubr.msk.f32.mxu1 %vm15109_vm2, %v23986_v43  ;;  %v17256_v43 = vld [vmem:[#allocation2 + $0x39] sm:$0xff] }
 0x3f1   : > { %20177 = vmatprep.mubr.msk.f32.mxu0 %vm15109_vm2, %v23998_v38 }
 0x3f3   : > { %20064 = vmatmul.mubr.msk.f32.gmra.mxu1 %vm15109_vm2, %v23992_v49 }
 0x3f4   : > { %20178 = vmatmul.mubr.msk.f32.gmra.mxu0 %vm15109_vm2, %v24004_v47  ;;  %20066 = vmatprep.mubr.msk.f32.mxu1 %vm15109_vm2, %v23998_v38  ;;  %v17257_v38 = vld [vmem:[#allocation2 + $0x49] sm:$0xff] }
 0x3f5   : > { %20180 = vmatprep.mubr.msk.f32.mxu0 %vm15109_vm2, %v15165_v3 }
 0x3f7   : > { %20067 = vmatmul.mubr.msk.f32.gmra.mxu1 %vm15109_vm2, %v24004_v47 }
 0x3f8   : > { %20181 = vmatmul.mubr.msk.f32.gmra.mxu0 %vm15109_vm2, %v15166_v54  ;;  %20069 = vmatprep.mubr.msk.f32.mxu1 %vm15109_vm2, %v15165_v3  ;;  %v17258_v3 = vld [vmem:[#allocation2 + $0x51] sm:$0xff] }
 0x3f9   : > { %20183 = vmatprep.mubr.msk.f32.mxu0 %vm15109_vm2, %v15167_v37 }
 0x3fb   : > { %20070 = vmatmul.mubr.msk.f32.gmra.mxu1 %vm15109_vm2, %v15166_v54 }
 0x3fc   : > { %20184 = vmatmul.mubr.msk.f32.gmra.mxu0 %vm15109_vm2, %v15168_v41  ;;  %20072 = vmatprep.mubr.msk.f32.mxu1 %vm15109_vm2, %v15167_v37 }
 0x3fd   : > { %20186 = vmatprep.mubr.msk.f32.mxu0 %vm15109_vm2, %v15169_v26 }
 0x3ff   : > { %20073 = vmatmul.mubr.msk.f32.gmra.mxu1 %vm15109_vm2, %v15168_v41  ;;  %v20603_v41 = vld [vmem:[#allocation2 + $0x61] sm:$0xff] }
 0x400   : > { %20187 = vmatmul.mubr.msk.f32.gmra.mxu0 %vm15109_vm2, %v15170_v2  ;;  %20075 = vmatprep.mubr.msk.f32.mxu1 %vm15109_vm2, %v15169_v26 }
 0x401   : > { %20189 = vmatprep.mubr.msk.f32.mxu0 %vm15109_vm2, %v15171_v10 }
 0x403   : > { %20076 = vmatmul.mubr.msk.f32.gmra.mxu1 %vm15109_vm2, %v15170_v2 }
 0x404   : > { %20190 = vmatmul.mubr.msk.f32.gmra.mxu0 %vm15109_vm2, %v15172_v23  ;;  %20078 = vmatprep.mubr.msk.f32.mxu1 %vm15109_vm2, %v15171_v10  ;;  %v20604_v10 = vld [vmem:[#allocation2 + $0x69] sm:$0xff] }
 0x405   : > { %20192 = vmatprep.mubr.msk.f32.mxu0 %vm15109_vm2, %v15173_v36 }
 0x407   : > { %20079 = vmatmul.mubr.msk.f32.gmra.mxu1 %vm15109_vm2, %v15172_v23 }
 0x408   : > { %20193 = vmatmul.mubr.msk.f32.gmra.mxu0 %vm15109_vm2, %v15174_v16  ;;  %20081 = vmatprep.mubr.msk.f32.mxu1 %vm15109_vm2, %v15173_v36 }
 0x409   : > { %20195 = vmatprep.mubr.msk.f32.mxu0 %vm15109_vm2, %v15175_v44 }
 0x40b   : > { %20082 = vmatmul.mubr.msk.f32.gmra.mxu1 %vm15109_vm2, %v15174_v16 }
 0x40c   : > { %20196 = vmatmul.mubr.msk.f32.gmra.mxu0 %vm15109_vm2, %v15176_v53  ;;  %20084 = vmatprep.mubr.msk.f32.mxu1 %vm15109_vm2, %v15175_v44 }
 0x40d   : > { %20198 = vmatprep.mubr.msk.f32.mxu0 %vm15109_vm2, %v16968_v52 }
 0x40f   : > { %20085 = vmatmul.mubr.msk.f32.gmra.mxu1 %vm15109_vm2, %v15176_v53 }
 0x410   : > { %20199 = vmatmul.mubr.msk.f32.gmra.mxu0 %vm15109_vm2, %v16969_v19  ;;  %20087 = vmatprep.mubr.msk.f32.mxu1 %vm15109_vm2, %v16968_v52 }
 0x411   : > { %20201 = vmatprep.mubr.msk.f32.mxu0 %vm15109_vm2, %v16970_v31 }
 0x413   : > { %20088 = vmatmul.mubr.msk.f32.gmra.mxu1 %vm15109_vm2, %v16969_v19 }
 0x414   : > { %20202 = vmatmul.mubr.msk.f32.gmra.mxu0 %vm15109_vm2, %v16971_v50  ;;  %20130 = vmatprep.mubr.msk.f32.mxu1 %vm15109_vm2, %v16640_v61 }
 0x415   : > { %20244 = vmatprep.mubr.msk.f32.mxu0 %vm15109_vm2, %v20600_v33 }
 0x417   : > { %20131 = vmatmul.mubr.msk.f32.vlgmr.msra.gmra.mxu1 %vm15109_vm2, %v20601_v48 }
 0x418   : > { %20245 = vmatmul.mubr.msk.f32.vlgmr.msra.gmra.mxu0 %vm15109_vm2, %v20602_v14  ;;  %20205 = vmatpush3.msra.mxu1 %v18912_v59 }
 0x419   : > { %20133 = vmatprep.mubr.msk.f32.mxu1 %vm15109_vm2, %v20600_v33  ;;  %20247 = vmatprep.mubr.msk.f32.mxu0 %vm15109_vm2, %v23620_v22 }
 0x41b   : > { %20134 = vmatmul.mubr.msk.f32.gmra.mxu1 %vm15109_vm2, %v20602_v14 }
 0x41c   : > { %20248 = vmatmul.mubr.msk.f32.gmra.mxu0 %vm15109_vm2, %v23627_v27  ;;  %20136 = vmatprep.mubr.msk.f32.mxu1 %vm15109_vm2, %v23620_v22  ;;  %v24151_v22 = vpop.f32.mrf.mxu1 }
 0x41d   : > { %20250 = vmatprep.mubr.msk.f32.mxu0 %vm15109_vm2, %v23656_v34 }
 0x41f   : > { %20137 = vmatmul.mubr.msk.f32.gmra.mxu1 %vm15109_vm2, %v23627_v27  ;;  %v24157_v27 = vpop.f32.mrf.mxu0 }
 0x420   : > { %20251 = vmatmul.mubr.msk.f32.gmra.mxu0 %vm15109_vm2, %v23664_v55  ;;  %20139 = vmatprep.mubr.msk.f32.mxu1 %vm15109_vm2, %v23656_v34  ;;  %v24163_v34 = vpop.f32.mrf.mxu1 }
 0x421   : > { %20253 = vmatprep.mubr.msk.f32.mxu0 %vm15109_vm2, %v23691_v17 }
 0x423   : > { %20140 = vmatmul.mubr.msk.f32.gmra.mxu1 %vm15109_vm2, %v23664_v55  ;;  %v24169_v55 = vpop.f32.mrf.mxu0 }
 0x424   : > { %20254 = vmatmul.mubr.msk.f32.gmra.mxu0 %vm15109_vm2, %v23701_v11  ;;  %20142 = vmatprep.mubr.msk.f32.mxu1 %vm15109_vm2, %v23691_v17  ;;  %v24175_v17 = vpop.f32.mrf.mxu1 }
 0x425   : > { %20256 = vmatprep.mubr.msk.f32.mxu0 %vm15109_vm2, %v23717_v13 }
 0x427   : > { %20143 = vmatmul.mubr.msk.f32.gmra.mxu1 %vm15109_vm2, %v23701_v11  ;;  %v24181_v11 = vpop.f32.mrf.mxu0 }
 0x428   : > { %20257 = vmatmul.mubr.msk.f32.gmra.mxu0 %vm15109_vm2, %v23732_v46  ;;  %20145 = vmatprep.mubr.msk.f32.mxu1 %vm15109_vm2, %v23717_v13  ;;  %v24187_v13 = vpop.f32.mrf.mxu1 }
 0x429   : > { %20259 = vmatprep.mubr.msk.f32.mxu0 %vm15109_vm2, %v23768_v1 }
 0x42b   : > { %20146 = vmatmul.mubr.msk.f32.gmra.mxu1 %vm15109_vm2, %v23732_v46  ;;  %v24193_v46 = vpop.f32.mrf.mxu0 }
 0x42c   : > { %20260 = vmatmul.mubr.msk.f32.gmra.mxu0 %vm15109_vm2, %v23776_v35  ;;  %20148 = vmatprep.mubr.msk.f32.mxu1 %vm15109_vm2, %v23768_v1 }
 0x42d   : > { %20262 = vmatprep.mubr.msk.f32.mxu0 %vm15109_vm2, %v23795_v30 }
 0x42f   : > { %20149 = vmatmul.mubr.msk.f32.gmra.mxu1 %vm15109_vm2, %v23776_v35  ;;  %v24199_v1 = vpop.f32.mrf.mxu1 }
 0x430   : > { %20263 = vmatmul.mubr.msk.f32.gmra.mxu0 %vm15109_vm2, %v23823_v60  ;;  %20151 = vmatprep.mubr.msk.f32.mxu1 %vm15109_vm2, %v23795_v30  ;;  %v24201_v35 = vpop.f32.mrf.mxu0 }
 0x431   : > { %20265 = vmatprep.mubr.msk.f32.mxu0 %vm15109_vm2, %v23845_v6  ;;  %v24211_v30 = vpop.f32.mrf.mxu1 }
 0x433   : > { %20152 = vmatmul.mubr.msk.f32.gmra.mxu1 %vm15109_vm2, %v23823_v60  ;;  %v24213_v60 = vpop.f32.mrf.mxu0 }
 0x434   : > { %20266 = vmatmul.mubr.msk.f32.gmra.mxu0 %vm15109_vm2, %v23853_v32  ;;  %20154 = vmatprep.mubr.msk.f32.mxu1 %vm15109_vm2, %v23845_v6  ;;  %v17582_v6 = vld [vmem:[#allocation2 + $0x122] sm:$0xff] }
 0x435   : > { %20268 = vmatprep.mubr.msk.f32.mxu0 %vm15109_vm2, %v23884_v9 }
 0x437   : > { %20155 = vmatmul.mubr.msk.f32.gmra.mxu1 %vm15109_vm2, %v23853_v32 }
 0x438   : > { %20269 = vmatmul.mubr.msk.f32.gmra.mxu0 %vm15109_vm2, %v23893_v18  ;;  %20157 = vmatprep.mubr.msk.f32.mxu1 %vm15109_vm2, %v23884_v9 }
 0x439   : > { %20271 = vmatprep.mubr.msk.f32.mxu0 %vm15109_vm2, %v23906_v42 }
 0x43a   : > { %v24222_v32 = vpop.f32.mrf.mxu1 }
 0x43b   : > { %20158 = vmatmul.mubr.msk.f32.gmra.mxu1 %vm15109_vm2, %v23893_v18  ;;  %v24224_v9 = vpop.f32.mrf.mxu0  ;;  %v17584_v18 = vld [vmem:[#allocation2 + $0x13a] sm:$0xff] }
 0x43c   : > { %20272 = vmatmul.mubr.msk.f32.gmra.mxu0 %vm15109_vm2, %v23917_v56  ;;  %20160 = vmatprep.mubr.msk.f32.mxu1 %vm15109_vm2, %v23906_v42  ;;  %25264 = vst [vmem:[#allocation22_spill] sm:$0xff] %v24224_v9  ;;  %v24231_v45 = vpop.f32.mrf.mxu1 }
 0x43d   : > { %20274 = vmatprep.mubr.msk.f32.mxu0 %vm15109_vm2, %v17582_v6  ;;  %v24233_v42 = vpop.f32.mrf.mxu0 }
 0x43e   : > { %25265 = vst [vmem:[#allocation15_spill] sm:$0xff] %v24233_v42 }
 0x43f   : > { %20161 = vmatmul.mubr.msk.f32.gmra.mxu1 %vm15109_vm2, %v23917_v56 }
 0x440   : > { %20275 = vmatmul.mubr.msk.f32.gmra.mxu0 %vm15109_vm2, %v17583_v40  ;;  %20163 = vmatprep.mubr.msk.f32.mxu1 %vm15109_vm2, %v17582_v6  ;;  %v24235_v25 = vpop.f32.mrf.mxu1 }
 0x441   : > { %20277 = vmatprep.mubr.msk.f32.mxu0 %vm15109_vm2, %v17584_v18  ;;  %v24239_v56 = vpop.f32.mrf.mxu0 }
 0x442   : > { %25266 = vst [vmem:[#allocation24_spill] sm:$0xff] %v24239_v56  ;;  %v24242_v49 = vpop.f32.mrf.mxu1 }
 0x443   : > { %20164 = vmatmul.mubr.msk.f32.gmra.mxu1 %vm15109_vm2, %v17583_v40  ;;  %v24245_v47 = vpop.f32.mrf.mxu0 }
 0x444   : > { %20278 = vmatmul.mubr.msk.f32.gmra.mxu0 %vm15109_vm2, %v17585_v28  ;;  %20206 = vmatprep.mubr.msk.f32.mxu1 %vm15109_vm2, %v17255_v5  ;;  %25267 = vst [vmem:[#allocation17_spill] sm:$0xff] %v24245_v47 }
 0x447   : > { %20207 = vmatmul.mubr.msk.f32.vlgmr.msra.gmra.mxu1 %vm15109_vm2, %v17256_v43 }
 0x448   : > { %20209 = vmatprep.mubr.msk.f32.mxu1 %vm15109_vm2, %v17257_v38 }
 0x44a   : > { %v24248_v54 = vpop.f32.mrf.mxu1 }
 0x44b   : > { %20210 = vmatmul.mubr.msk.f32.gmra.mxu1 %vm15109_vm2, %v17258_v3  ;;  %v24251_v37 = vpop.f32.mrf.mxu0 }
 0x44c   : > { %25268 = vst [vmem:[#allocation26_spill] sm:$0xff] %v24251_v37  ;;  %20212 = vmatprep.mubr.msk.f32.mxu1 %vm15109_vm2, %v20603_v41  ;;  %v24254_v26 = vpop.f32.mrf.mxu1 }
 0x44d   : > { %v24256_v2 = vpop.f32.mrf.mxu0 }
 0x44e   : > { %25269 = vst [vmem:[#allocation7_spill] sm:$0xff] %v24256_v2  ;;  %v24261_v23 = vpop.f32.mrf.mxu1 }
 0x44f   : > { %20213 = vmatmul.mubr.msk.f32.gmra.mxu1 %vm15109_vm2, %v20604_v10  ;;  %v24263_v36 = vpop.f32.mrf.mxu0 }
 0x450   : > { %20215 = vmatprep.mubr.msk.f32.mxu1 %vm15109_vm2, %v23689_v29  ;;  %25270 = vst [vmem:[#allocation37_spill] sm:$0xff] %v24263_v36  ;;  %v24269_v16 = vpop.f32.mrf.mxu1 }
 0x451   : > { %v24271_v44 = vpop.f32.mrf.mxu0 }
 0x453   : > { %20216 = vmatmul.mubr.msk.f32.gmra.mxu1 %vm15109_vm2, %v23693_v24 }
 0x454   : > { %20218 = vmatprep.mubr.msk.f32.mxu1 %vm15109_vm2, %v23715_v39 }
 0x457   : > { %20219 = vmatmul.mubr.msk.f32.gmra.mxu1 %vm15109_vm2, %v23723_v12  ;;  %v24277_v29 = vpop.f32.mrf.mxu1 }
 0x458   : > { %20221 = vmatprep.mubr.msk.f32.mxu1 %vm15109_vm2, %v23766_v4  ;;  %v24279_v53 = vpop.f32.mrf.mxu0 }
 0x459   : > { %v24283_v24 = vpop.f32.mrf.mxu1 }
 0x45a   : > { %v24287_v39 = vpop.f32.mrf.mxu0 }
 0x45b   : > { %20222 = vmatmul.mubr.msk.f32.gmra.mxu1 %vm15109_vm2, %v23770_v21 }
 0x45c   : > { %20224 = vmatprep.mubr.msk.f32.mxu1 %vm15109_vm2, %v23793_v0  ;;  %v24291_v12 = vpop.f32.mrf.mxu1 }
 0x45d   : > { %v24295_v4 = vpop.f32.mrf.mxu0 }
 0x45e   : > { %v24299_v21 = vpop.f32.mrf.mxu1 }
 0x45f   : > { %20225 = vmatmul.mubr.msk.f32.gmra.mxu1 %vm15109_vm2, %v23817_v15  ;;  %v24303_v0 = vpop.f32.mrf.mxu0 }
 0x460   : > { %20227 = vmatprep.mubr.msk.f32.mxu1 %vm15109_vm2, %v23843_v7 }
 0x463   : > { %20228 = vmatmul.mubr.msk.f32.gmra.mxu1 %vm15109_vm2, %v23847_v8 }
 0x464   : > { %20230 = vmatprep.mubr.msk.f32.mxu1 %vm15109_vm2, %v23882_v51 }
 0x466   : > { %v24307_v15 = vpop.f32.mrf.mxu1 }
 0x467   : > { %20231 = vmatmul.mubr.msk.f32.gmra.mxu1 %vm15109_vm2, %v23886_v57  ;;  %v24311_v7 = vpop.f32.mrf.mxu0 }
 0x468   : > { %20233 = vmatprep.mubr.msk.f32.mxu1 %vm15109_vm2, %v23904_v20  ;;  %v24313_v59 = vpop.f32.mrf.mxu1  ;;  %v17277_v20 = vld [vmem:[#allocation2 + $0x139] sm:$0xff] }
 0x469   : > { %v24317_v8 = vpop.f32.mrf.mxu0 }
 0x46b   : > { %20234 = vmatmul.mubr.msk.f32.gmra.mxu1 %vm15109_vm2, %v23908_v63  ;;  %v17278_v63 = vld [vmem:[#allocation2 + $0x141] sm:$0xff] }
 0x46c   : > { %20236 = vmatprep.mubr.msk.f32.mxu1 %vm15109_vm2, %v24040_v62 }
 0x46e   : > { %v24321_v51 = vpop.f32.mrf.mxu1  ;;  %v24323_v57 = vpop.f32.mrf.mxu0 }
 0x46f   : > { %20237 = vmatmul.mubr.msk.f32.gmra.mxu1 %vm15109_vm2, %v24045_v58 }
 0x470   : > { %v24327_v52 = vpop.f32.mrf.mxu1  ;;  %20239 = vmatprep.mubr.msk.f32.mxu1 %vm15109_vm2, %v17277_v20  ;;  %v24330_v19 = vpop.f32.mrf.mxu0 }
 0x473   : > { %v24332_v31 = vpop.f32.mrf.mxu1  ;;  %20240 = vmatmul.mubr.msk.f32.gmra.mxu1 %vm15109_vm2, %v17278_v63 }
 0x474   : > { %v24334_v50 = vpop.f32.mrf.mxu0 }
 0x475   : > { %v24337_v62 = vpop.f32.mrf.mxu1 }
 0x476   : > { %v24339_v61 = vpop.f32.mrf.mxu0 }
 0x477   : > { %v24341_v33 = vpop.f32.mrf.mxu1 }
 0x478   : > { %v24343_v58 = vpop.f32.mrf.mxu0 }
 0x479   : > { %v24345_v48 = vpop.f32.mrf.mxu1 }
 0x47a   : > { %v24347_v14 = vpop.f32.mrf.mxu0 }
 0x47b   : > { %v24349_v6 = vpop.f32.mrf.mxu1 }
 0x47c   : > { %v24351_v40 = vpop.f32.mrf.mxu0 }
 0x47d   : > { %v24353_v18 = vpop.f32.mrf.mxu1 }
 0x47e   : > { %v24355_v28 = vpop.f32.mrf.mxu0 }
 0x47f   : > { %v24357_v5 = vpop.f32.mrf.mxu1 }
 0x480   : > { %v24359_v43 = vpop.f32.mrf.mxu0 }
 0x481   : > { %25271 = vst [vmem:[#allocation19_spill] sm:$0xff] %v24359_v43  ;;  %v24361_v38 = vpop.f32.mrf.mxu1 }
 0x482   : > { %v24363_v3 = vpop.f32.mrf.mxu0 }
 0x483   : > { %25272 = vst [vmem:[#allocation27_spill] sm:$0xff] %v24363_v3  ;;  %v24365_v41 = vpop.f32.mrf.mxu1 }
 0x484   : > { %v24367_v10 = vpop.f32.mrf.mxu0 }
 0x485   : > { %25273 = vst [vmem:[#allocation21_spill] sm:$0xff] %v24367_v10  ;;  %v24369_v20 = vpop.f32.mrf.mxu1 }
 0x486   : > { %v24371_v63 = vpop.f32.mrf.mxu0 }
 0x487   : > { %25274 = vst [vmem:[#allocation29_spill] sm:$0xff] %v24371_v63  ;;  %v24373_v36 = vpop.f32.mrf.mxu1 }
 0x488   : > { %25275 = vst [vmem:[#allocation23_spill] sm:$0xff] %v24373_v36  ;;  %v24375_v2 = vpop.f32.mrf.mxu0 }
 0x489   : > { %25276 = vst [vmem:[#allocation30_spill] sm:$0xff] %v24375_v2  ;;  %v15639_v37 = vpop.f32.mrf.mxu1 }
 0x48a   : > { %v24377_v47 = vpop.f32.mrf.mxu0  ;;  %v24380_v56 = vadd.f32 %v15639_v37, %v24242_v49 }
 0x48b   : > { %25277 = vst [vmem:[#allocation31_spill] sm:$0xff] %v24377_v47  ;;  %v19995_v42 = vpop.f32.mrf.mxu1 }
 0x48c   : > { %25278 = vst [vmem:[#allocation25_spill] sm:$0xff] %v24380_v56  ;;  %v24382_v3 = vpop.f32.mrf.mxu0  ;;  %v24385_v43 = vadd.f32 %v19995_v42, %v24248_v54 }
 0x48d   : > { %25279 = vst [vmem:[#allocation32_spill] sm:$0xff] %v24382_v3  ;;  %v15649_v10 = vpop.f32.mrf.mxu1 }
 0x48e   : > { %v24387_v9 = vpop.f32.mrf.mxu0  ;;  %v24390_v63 = vadd.f32 %v15649_v10, %v24254_v26 }
 0x48f   : > { %25280 = vst [vmem:[#allocation33_spill] sm:$0xff] %v24387_v9  ;;  %v19998_v36 = vpop.f32.mrf.mxu1 }
 0x490   : > { %v24392_v2 = vpop.f32.mrf.mxu0  ;;  %v24395_v47 = vadd.f32 %v19998_v36, %v24261_v23 }
 0x491   : > { %25281 = vst [vmem:[#allocation34_spill] sm:$0xff] %v24392_v2  ;;  %v15659_v49 = vpop.f32.mrf.mxu1 }
 0x492   : > { %v24397_v37 = vpop.f32.mrf.mxu0  ;;  %v15660_v3 = vadd.f32 %v15659_v49, %v24269_v16 }
 0x493   : > { %25282 = vst [vmem:[#allocation84_spill] sm:$0xff] %v24397_v37  ;;  %v20001_v56 = vpop.f32.mrf.mxu1 }
 0x494   : > { %v24400_v42 = vpop.f32.mrf.mxu0  ;;  %v15675_v54 = vadd.f32 %v20001_v56, %v24277_v29  ;;  %v24404_v9 = vadd.f32 %v24271_v44, %v15660_v3 }
 0x495   : > { %v15669_v26 = vpop.f32.mrf.mxu1 }
 0x496   : > { %v24406_v10 = vpop.f32.mrf.mxu0  ;;  %v15670_v2 = vadd.f32 %v15669_v26, %v24283_v24  ;;  %v24410_v23 = vadd.f32 %v24279_v53, %v15675_v54 }
 0x497   : > { %v20004_v36 = vpop.f32.mrf.mxu1 }
 0x498   : > { %v24412_v37 = vpop.f32.mrf.mxu0  ;;  %v15685_v16 = vadd.f32 %v20004_v36, %v24291_v12  ;;  %v24416_v49 = vadd.f32 %v24287_v39, %v15670_v2 }
 0x499   : > { %v15679_v56 = vpop.f32.mrf.mxu1 }
 0x49a   : > { %v24418_v29 = vpop.f32.mrf.mxu0  ;;  %v15680_v44 = vadd.f32 %v15679_v56, %v24299_v21  ;;  %v24422_v3 = vadd.f32 %v24295_v4, %v15685_v16 }
 0x49b   : > { %v20007_v24 = vpop.f32.mrf.mxu1 }
 0x49c   : > { %v24424_v26 = vpop.f32.mrf.mxu0  ;;  %v15695_v53 = vadd.f32 %v20007_v24, %v24307_v15  ;;  %v24428_v54 = vadd.f32 %v24303_v0, %v15680_v44  ;;  %v15605_v0 = vadd.f32 %v24341_v33, %v24151_v22  ;;  %v15615_v22 = vadd.f32 %v24349_v6, %v24175_v17 }
 0x49d   : > { %v15689_v12 = vpop.f32.mrf.mxu1 }
 0x49e   : > { %v24430_v36 = vpop.f32.mrf.mxu0  ;;  %v15690_v2 = vadd.f32 %v15689_v12, %v24313_v59  ;;  %v24434_v39 = vadd.f32 %v24311_v7, %v15695_v53 }
 0x49f   : > { %v20010_v21 = vpop.f32.mrf.mxu1 }
 0x4a0   : > { %v24436_v56 = vpop.f32.mrf.mxu0  ;;  %v15705_v4 = vadd.f32 %v20010_v21, %v24321_v51  ;;  %v24440_v16 = vadd.f32 %v24317_v8, %v15690_v2  ;;  %v15600_v51 = vadd.f32 %v24345_v48, %v24163_v34 }
 0x4a1   : > { %v15699_v15 = vpop.f32.mrf.mxu1 }
 0x4a2   : > { %v24442_v24 = vpop.f32.mrf.mxu0  ;;  %v15700_v44 = vadd.f32 %v15699_v15, %v24327_v52  ;;  %v24448_v59 = vadd.f32 %v24323_v57, %v15705_v4  ;;  %v16002_v52 = vadd.f32 %v24157_v27, %v15605_v0  ;;  %v16001_v48 = vadd.f32 %v24169_v55, %v15600_v51 }
 0x4a3   : > { %v20013_v7 = vpop.f32.mrf.mxu1  ;;  %v15625_v27 = vadd.f32 %v24357_v5, %v24199_v1  ;;  %v15620_v55 = vadd.f32 %v24361_v38, %v24211_v30 }
 0x4a4   : > { %v24450_v53 = vpop.f32.mrf.mxu0  ;;  %v15715_v8 = vadd.f32 %v20013_v7, %v24332_v31  ;;  %v24456_v12 = vadd.f32 %v24330_v19, %v15700_v44  ;;  %v15610_v19 = vadd.f32 %v24353_v18, %v24187_v13 }
 0x4a5   : > { %v15709_v2 = vpop.f32.mrf.mxu1  ;;  %v16006_v5 = vadd.f32 %v24201_v35, %v15625_v27  ;;  %v16005_v38 = vadd.f32 %v24213_v60, %v15620_v55  ;;  %v25283_v35 = vld [vmem:[#allocation23_spill] sm:$0xff] }
 0x4a6   : > { %v24458_v21 = vpop.f32.mrf.mxu0  ;;  %v15710_v57 = vadd.f32 %v15709_v2, %v24337_v62  ;;  %v24465_v33 = vadd.f32 %v24334_v50, %v15715_v8  ;;  %v16004_v62 = vadd.f32 %v24181_v11, %v15615_v22  ;;  %v16003_v18 = vadd.f32 %v24193_v46, %v15610_v19  ;;  %v25285_v19 = vld [vmem:[#allocation19_spill] sm:$0xff] }
 0x4a7   : > { %v20056_v4 = vpop.f32.mrf.mxu1  ;;  %v15635_v11 = vadd.f32 %v24365_v41, %v24222_v32  ;;  %v15630_v46 = vadd.f32 %v24369_v20, %v24231_v45  ;;  %v15645_v41 = vadd.f32 %v25283_v35, %v24235_v25  ;;  %v25286_v60 = vld [vmem:[#allocation15_spill] sm:$0xff]  ;;  %v25288_v25 = vld [vmem:[#allocation24_spill] sm:$0xff] }
 0x4a8   : > { %v24467_v34 = vpop.f32.mrf.mxu0  ;;  %v16310_v31 = vadd.f32 %v20056_v4, %v16002_v52  ;;  %v24473_v15 = vadd.f32 %v24339_v61, %v15710_v57  ;;  %v25284_v52 = vld [vmem:[#allocation22_spill] sm:$0xff] }
 0x4a9   : > { %v16190_v17 = vpop.f32.mrf.mxu1  ;;  %v16008_v4 = vadd.f32 %v25284_v52, %v15635_v11  ;;  %v16010_v55 = vadd.f32 %v25288_v25, %v15645_v41  ;;  %v25293_v52 = vld [vmem:[#allocation26_spill] sm:$0xff] }
 0x4aa   : > { %v24475_v6 = vpop.f32.mrf.mxu0  ;;  %v16309_v50 = vadd.f32 %v16190_v17, %v16001_v48  ;;  %v24481_v0 = vadd.f32 %v24343_v58, %v16310_v31  ;;  %v16007_v17 = vadd.f32 %v25286_v60, %v15630_v46  ;;  %v25292_v46 = vld [vmem:[#allocation29_spill] sm:$0xff]  ;;  %v16012_v41 = vadd.f32 %v25293_v52, %v24385_v43 }
 0x4ab   : > { %v20059_v44 = vpop.f32.mrf.mxu1 }
 0x4ac   : > { %v24483_v13 = vpop.f32.mrf.mxu0  ;;  %v16312_v61 = vadd.f32 %v20059_v44, %v16004_v62  ;;  %v24489_v7 = vadd.f32 %v24347_v14, %v16309_v50 }
 0x4ad   : > { %v16200_v51 = vpop.f32.mrf.mxu1 }
 0x4ae   : > { %v24491_v1 = vpop.f32.mrf.mxu0  ;;  %v16311_v58 = vadd.f32 %v16200_v51, %v16003_v18  ;;  %v24497_v8 = vadd.f32 %v24351_v40, %v16312_v61  ;;  %v25289_v61 = vld [vmem:[#allocation21_spill] sm:$0xff] }
 0x4af   : > { %v20062_v2 = vpop.f32.mrf.mxu1 }
 0x4b0   : > { %v24499_v30 = vpop.f32.mrf.mxu0  ;;  %v16314_v14 = vadd.f32 %v20062_v2, %v16006_v5  ;;  %v24505_v22 = vadd.f32 %v24355_v28, %v16311_v58  ;;  %v25287_v28 = vld [vmem:[#allocation27_spill] sm:$0xff]  ;;  %v25290_v5 = vld [vmem:[#allocation25_spill] sm:$0xff] }
 0x4b1   : > { %v16210_v57 = vpop.f32.mrf.mxu1  ;;  %v25291_v2 = vld [vmem:[#allocation17_spill] sm:$0xff] }
 0x4b2   : > { %v24507_v32 = vpop.f32.mrf.mxu0  ;;  %v16313_v40 = vadd.f32 %v16210_v57, %v16005_v38  ;;  %v24513_v31 = vadd.f32 %v25285_v19, %v16314_v14  ;;  %v16009_v14 = vadd.f32 %v25291_v2, %v25290_v5  ;;  %v25298_v5 = vld [vmem:[#allocation32_spill] sm:$0xff] }
 0x4b3   : > { %v20065_v48 = vpop.f32.mrf.mxu1 }
 0x4b4   : > { %v24515_v45 = vpop.f32.mrf.mxu0  ;;  %v16316_v20 = vadd.f32 %v20065_v48, %v16008_v4  ;;  %v24519_v27 = vadd.f32 %v25287_v28, %v16313_v40  ;;  %v25294_v4 = vld [vmem:[#allocation30_spill] sm:$0xff] }
 0x4b5   : > { %v16220_v50 = vpop.f32.mrf.mxu1 }
 0x4b6   : > { %v24521_v62 = vpop.f32.mrf.mxu0  ;;  %v16315_v44 = vadd.f32 %v16220_v50, %v16007_v17  ;;  %v24525_v18 = vadd.f32 %v25289_v61, %v16316_v20  ;;  %v25295_v17 = vld [vmem:[#allocation7_spill] sm:$0xff] }
 0x4b7   : > { %v20068_v51 = vpop.f32.mrf.mxu1  ;;  %v16011_v28 = vadd.f32 %v25295_v17, %v24390_v63  ;;  %v25296_v50 = vld [vmem:[#allocation31_spill] sm:$0xff] }
 0x4b8   : > { %v24527_v11 = vpop.f32.mrf.mxu0  ;;  %v16318_v58 = vadd.f32 %v20068_v51, %v16010_v55  ;;  %v24532_v38 = vadd.f32 %v25292_v46, %v16315_v44  ;;  %v25297_v51 = vld [vmem:[#allocation37_spill] sm:$0xff] }
 0x4b9   : > { %v16230_v57 = vpop.f32.mrf.mxu1  ;;  %v16014_v43 = vadd.f32 %v25297_v51, %v24395_v47 }
 0x4ba   : > { %v24534_v35 = vpop.f32.mrf.mxu0  ;;  %v16317_v40 = vadd.f32 %v16230_v57, %v16009_v14  ;;  %v24539_v19 = vadd.f32 %v25294_v4, %v16318_v58  ;;  %v25299_v57 = vld [vmem:[#allocation33_spill] sm:$0xff]  ;;  %v25301_v4 = vld [vmem:[#allocation34_spill] sm:$0xff] }
 0x4bb   : > { %v20071_v48 = vpop.f32.mrf.mxu1 }
 0x4bc   : > { %v24541_v20 = vpop.f32.mrf.mxu0  ;;  %v16320_v60 = vadd.f32 %v20071_v48, %v16012_v41  ;;  %v24546_v44 = vadd.f32 %v25296_v50, %v16317_v40 }
 0x4bd   : > { %v16240_v25 = vpop.f32.mrf.mxu1 }
 0x4be   : > { %v24548_v55 = vpop.f32.mrf.mxu0  ;;  %v16319_v61 = vadd.f32 %v16240_v25, %v16011_v28  ;;  %v24553_v58 = vadd.f32 %v25298_v5, %v16320_v60  ;;  %v25303_v28 = vld [vmem:[#allocation84_spill] sm:$0xff] }
 0x4bf   : > { %v20074_v2 = vpop.f32.mrf.mxu1 }
 0x4c0   : > { %v24555_v14 = vpop.f32.mrf.mxu0  ;;  %v16322_v46 = vadd.f32 %v20074_v2, %v16014_v43  ;;  %v24558_v52 = vadd.f32 %v25299_v57, %v16319_v61 }
 0x4c1   : > { %v16250_v63 = vpop.f32.mrf.mxu1 }
 0x4c2   : > { %v24560_v40 = vpop.f32.mrf.mxu0  ;;  %v16321_v41 = vadd.f32 %v16250_v63, %v24404_v9  ;;  %v24564_v48 = vadd.f32 %v25301_v4, %v16322_v46 }
 0x4c3   : > { %25300 = vst [vmem:[#allocation28_spill] sm:$0xff] %v24560_v40  ;;  %v20077_v17 = vpop.f32.mrf.mxu1 }
 0x4c4   : > { %v24566_v47 = vpop.f32.mrf.mxu0  ;;  %v16324_v60 = vadd.f32 %v20077_v17, %v24410_v23  ;;  %v24570_v50 = vadd.f32 %v25303_v28, %v16321_v41 }
 0x4c5   : > { %25302 = vst [vmem:[#allocation35_spill] sm:$0xff] %v24566_v47  ;;  %v16260_v25 = vpop.f32.mrf.mxu1 }
 0x4c6   : > { %v24572_v51 = vpop.f32.mrf.mxu0  ;;  %v16323_v61 = vadd.f32 %v16260_v25, %v24416_v49  ;;  %v24576_v43 = vadd.f32 %v24400_v42, %v16324_v60 }
 0x4c7   : > { %25304 = vst [vmem:[#allocation36_spill] sm:$0xff] %v24572_v51  ;;  %v20080_v9 = vpop.f32.mrf.mxu1 }
 0x4c8   : > { %v24578_v5 = vpop.f32.mrf.mxu0  ;;  %v16326_v2 = vadd.f32 %v20080_v9, %v24422_v3  ;;  %v24582_v46 = vadd.f32 %v24406_v10, %v16323_v61 }
 0x4c9   : > { %25305 = vst [vmem:[#allocation38_spill] sm:$0xff] %v24578_v5  ;;  %v16270_v23 = vpop.f32.mrf.mxu1 }
 0x4ca   : > { %25306 = vst [vmem:[#allocation8_spill] sm:$0xff] %v24582_v46  ;;  %v24584_v57 = vpop.f32.mrf.mxu0  ;;  %v16325_v63 = vadd.f32 %v16270_v23, %v24428_v54  ;;  %v24588_v41 = vadd.f32 %v24412_v37, %v16326_v2 }
 0x4cb   : > { %25307 = vst [vmem:[#allocation39_spill] sm:$0xff] %v24584_v57  ;;  %v20083_v49 = vpop.f32.mrf.mxu1 }
 0x4cc   : > { %25308 = vst [vmem:[#allocation40_spill] sm:$0xff] %v24588_v41  ;;  %v24590_v4 = vpop.f32.mrf.mxu0  ;;  %v16328_v42 = vadd.f32 %v20083_v49, %v24434_v39  ;;  %v24594_v17 = vadd.f32 %v24418_v29, %v16325_v63 }
 0x4cd   : > { %25309 = vst [vmem:[#allocation9_spill] sm:$0xff] %v24590_v4  ;;  %v16280_v3 = vpop.f32.mrf.mxu1 }
 0x4ce   : > { %25310 = vst [vmem:[#allocation41_spill] sm:$0xff] %v24594_v17  ;;  %v24596_v60 = vpop.f32.mrf.mxu0  ;;  %v16327_v10 = vadd.f32 %v16280_v3, %v24440_v16  ;;  %v24600_v28 = vadd.f32 %v24424_v26, %v16328_v42 }
 0x4cf   : > { %25311 = vst [vmem:[#allocation42_spill] sm:$0xff] %v24596_v60  ;;  %v20086_v54 = vpop.f32.mrf.mxu1 }
 0x4d0   : > { %25312 = vst [vmem:[#allocation99_spill] sm:$0xff] %v24600_v28  ;;  %v24602_v25 = vpop.f32.mrf.mxu0  ;;  %v16330_v37 = vadd.f32 %v20086_v54, %v24448_v59  ;;  %v24606_v61 = vadd.f32 %v24430_v36, %v16327_v10 }
 0x4d1   : > { %25313 = vst [vmem:[#allocation10_spill] sm:$0xff] %v24602_v25  ;;  %v16290_v39 = vpop.f32.mrf.mxu1 }
 0x4d2   : > { %25314 = vst [vmem:[#allocation43_spill] sm:$0xff] %v24606_v61  ;;  %v24608_v9 = vpop.f32.mrf.mxu0  ;;  %v16329_v29 = vadd.f32 %v16290_v39, %v24456_v12  ;;  %v24612_v2 = vadd.f32 %v24436_v56, %v16330_v37 }
 0x4d3   : > { %25315 = vst [vmem:[#allocation44_spill] sm:$0xff] %v24608_v9  ;;  %v20089_v16 = vpop.f32.mrf.mxu1 }
 0x4d4   : > { %25316 = vst [vmem:[#allocation45_spill] sm:$0xff] %v24612_v2  ;;  %v24614_v23 = vpop.f32.mrf.mxu0  ;;  %v16332_v26 = vadd.f32 %v20089_v16, %v24465_v33  ;;  %v24618_v63 = vadd.f32 %v24442_v24, %v16329_v29 }
 0x4d5   : > { %25317 = vst [vmem:[#allocation46_spill] sm:$0xff] %v24614_v23  ;;  %v16300_v59 = vpop.f32.mrf.mxu1 }
 0x4d6   : > { %25318 = vst [vmem:[#allocation47_spill] sm:$0xff] %v24618_v63  ;;  %v16331_v36 = vadd.f32 %v16300_v59, %v24473_v15  ;;  %v24622_v49 = vadd.f32 %v24450_v53, %v16332_v26  ;;  %v24624_v42 = vpop.f32.mrf.mxu0 }
 0x4d7   : > { %25320 = vst [vmem:[#allocation49_spill] sm:$0xff] %v24624_v42  ;;  %v20132_v12 = vpop.f32.mrf.mxu1 }
 0x4d8   : > { %25319 = vst [vmem:[#allocation48_spill] sm:$0xff] %v24622_v49  ;;  %v24627_v56 = vadd.f32 %v24458_v21, %v16331_v36  ;;  %v20246_v10 = vpop.f32.mrf.mxu0  ;;  %v16924_v47 = vadd.f32 %v20132_v12, %v24481_v0 }
 0x4d9   : > { %v16804_v3 = vpop.f32.mrf.mxu1 }
 0x4da   : > { %25321 = vst [vmem:[#allocation50_spill] sm:$0xff] %v24627_v56  ;;  %v17726_v33 = vpop.f32.mrf.mxu0 }
 0x4db   : > { %v20135_v54 = vpop.f32.mrf.mxu1 }
 0x4dc   : > { %v20249_v29 = vpop.f32.mrf.mxu0 }
 0x4dd   : > { %v16814_v37 = vpop.f32.mrf.mxu1 }
 0x4de   : > { %v24629_v15 = vpop.f32.mrf.mxu0 }
 0x4df   : > { %v20138_v39 = vpop.f32.mrf.mxu1 }
 0x4e0   : > { %v24635_v59 = vpop.f32.mrf.mxu0  ;;  %v16928_v12 = vadd.f32 %v20138_v39, %v24513_v31 }
 0x4e1   : > { %v16824_v24 = vpop.f32.mrf.mxu1 }
 0x4e2   : > { %v24641_v42 = vpop.f32.mrf.mxu0 }
 0x4e3   : > { %v20141_v16 = vpop.f32.mrf.mxu1 }
 0x4e4   : > { %v24647_v25 = vpop.f32.mrf.mxu0 }
 0x4e5   : > { %v16834_v23 = vpop.f32.mrf.mxu1 }
 0x4e6   : > { %v24653_v63 = vpop.f32.mrf.mxu0 }
 0x4e7   : > { %v24631_v53 = vpop.f32.mrf.mxu1 }
 0x4e8   : > { %v24659_v57 = vpop.f32.mrf.mxu0 }
 0x4e9   : > { %v24633_v26 = vpop.f32.mrf.mxu1 }
 0x4ea   : > { %v24665_v28 = vpop.f32.mrf.mxu0 }
 0x4eb   : > { %v24637_v21 = vpop.f32.mrf.mxu1 }
 0x4ec   : > { %v24672_v41 = vpop.f32.mrf.mxu0 }
 0x4ed   : > { %v24639_v36 = vpop.f32.mrf.mxu1 }
 0x4ef   : > { %v24643_v9 = vpop.f32.mrf.mxu1 }
 0x4f1   : > { %v24645_v56 = vpop.f32.mrf.mxu1 }
 0x4f3   : > { %v24649_v49 = vpop.f32.mrf.mxu1 }
 0x4f5   : > { %v24651_v60 = vpop.f32.mrf.mxu1 }
 0x4f6   : > { %25322 = vst [vmem:[#allocation51_spill] sm:$0xff] %v24651_v60  ;;  %v24682_v60 = vpop.f32.mrf.mxu0 }
 0x4f7   : > { %v24655_v4 = vpop.f32.mrf.mxu1 }
 0x4f8   : > { %25323 = vst [vmem:[#allocation52_spill] sm:$0xff] %v24655_v4 }
 0x4f9   : > { %v24657_v2 = vpop.f32.mrf.mxu1 }
 0x4fa   : > { %25324 = vst [vmem:[#allocation53_spill] sm:$0xff] %v24657_v2  ;;  %v16923_v2 = vadd.f32 %v16804_v3, %v24489_v7  ;;  %v24692_v7 = vld [vmem:[%s24885_s4] ss:$0 sm:$0xff] }
 0x4fb   : > { %v24661_v61 = vpop.f32.mrf.mxu1 }
 0x4fc   : > { %25325 = vst [vmem:[#allocation54_spill] sm:$0xff] %v24661_v61  ;;  %v16926_v61 = vadd.f32 %v20135_v54, %v24497_v8  ;;  %v17231_v0 = vadd.f32 %v24475_v6, %v16923_v2  ;;  %v16927_v54 = vadd.f32 %v16824_v24, %v24519_v27  ;;  %v16929_v27 = vadd.f32 %v16834_v23, %v24532_v38 }
 0x4fd   : > { %v24663_v5 = vpop.f32.mrf.mxu1  ;;  %v16932_v38 = vadd.f32 %v24631_v53, %v24539_v19 }
 0x4fe   : > { %25326 = vst [vmem:[#allocation55_spill] sm:$0xff] %v24663_v5  ;;  %v17232_v5 = vadd.f32 %v24467_v34, %v16924_v47  ;;  %v17234_v47 = vadd.f32 %v24483_v13, %v16926_v61 }
 0x4ff   : > { %v24667_v51 = vpop.f32.mrf.mxu1 }
 0x500   : > { %25327 = vst [vmem:[#allocation56_spill] sm:$0xff] %v24667_v51 }
 0x501   : > { %v24669_v17 = vpop.f32.mrf.mxu1 }
 0x502   : > { %25328 = vst [vmem:[#allocation57_spill] sm:$0xff] %v24669_v17  ;;  %v16925_v17 = vadd.f32 %v16814_v37, %v24505_v22  ;;  %v24696_v22 = vpop.f32.mrf.mxu0  ;;  %v16930_v37 = vadd.f32 %v20141_v16, %v24525_v18 }
 0x503   : > { %v24674_v4 = vpop.f32.mrf.mxu1 }
 0x504   : > { %v17233_v2 = vadd.f32 %v24491_v1, %v16925_v17  ;;  %v24704_v24 = vpop.f32.mrf.mxu0 }
 0x505   : > { %v24677_v40 = vpop.f32.mrf.mxu1 }
 0x506   : > { %25329 = vst [vmem:[#allocation58_spill] sm:$0xff] %v24677_v40  ;;  %v17236_v40 = vadd.f32 %v24499_v30, %v16928_v12 }
 0x507   : > { %v20208_v51 = vpop.f32.mrf.mxu1 }
 0x508   : > { %v17539_v46 = vadd.f32 %v20208_v51, %v17232_v5 }
 0x509   : > { %v17419_v8 = vpop.f32.mrf.mxu1 }
 0x50a   : > { %v17846_v3 = vadd.f32 %v20246_v10, %v17539_v46  ;;  %v17538_v34 = vadd.f32 %v17419_v8, %v17231_v0 }
 0x50b   : > { %v20211_v51 = vpop.f32.mrf.mxu1 }
 0x50c   : > { %v17877_v6 = vadd.f32 %v24692_v7, %v17846_v3  ;;  %v17845_v31 = vadd.f32 %v17726_v33, %v17538_v34  ;;  %v17541_v5 = vadd.f32 %v20211_v51, %v17234_v47  ;;  %v17235_v33 = vadd.f32 %v24507_v32, %v16927_v54  ;;  %v24720_v34 = vpop.f32.mrf.mxu0 }
 0x50d   : > { %v17429_v39 = vpop.f32.mrf.mxu1  ;;  %v16931_v3 = vadd.f32 %v24633_v26, %v24546_v44  ;;  %v17240_v51 = vadd.f32 %v24527_v11, %v16932_v38 }
 0x50e   : > { %v17901_v46 = vmax.f32 %v17877_v6, 0.0  ;;  %v17876_v10 = vadd.f32 %v24692_v7, %v17845_v31  ;;  %v17848_v13 = vadd.f32 %v20249_v29, %v17541_v5  ;;  %v17540_v61 = vadd.f32 %v17429_v39, %v17233_v2  ;;  %v24734_v5 = vpop.f32.mrf.mxu0 }
 0x50f   : > { %v20214_v0 = vpop.f32.mrf.mxu1  ;;  %v17238_v29 = vadd.f32 %v24515_v45, %v16930_v37  ;;  %v16933_v31 = vadd.f32 %v24639_v36, %v24558_v52  ;;  %v17239_v2 = vadd.f32 %v24534_v35, %v16931_v3 }
 0x510   : > { %17925 = vst [vmem:[%s24707_s27 + $0x8] sm:$0xff] %v17901_v46  ;;  %v17900_v1 = vmax.f32 %v17876_v10, 0.0  ;;  %v17879_v30 = vadd.f32 %v24692_v7, %v17848_v13  ;;  %v17847_v18 = vadd.f32 %v24629_v15, %v17540_v61  ;;  %v17543_v17 = vadd.f32 %v20214_v0, %v17236_v40  ;;  %v24748_v61 = vpop.f32.mrf.mxu0 }
 0x511   : > { %v17439_v23 = vpop.f32.mrf.mxu1  ;;  %v17237_v15 = vadd.f32 %v24521_v62, %v16929_v27  ;;  %v16935_v13 = vadd.f32 %v24645_v56, %v24570_v50  ;;  %v17241_v27 = vadd.f32 %v24548_v55, %v16933_v31 }
 0x512   : > { %17924 = vst [vmem:[%s24707_s27] sm:$0xff] %v17900_v1  ;;  %v17903_v32 = vmax.f32 %v17879_v30, 0.0  ;;  %v17878_v16 = vadd.f32 %v24692_v7, %v17847_v18  ;;  %v17850_v12 = vadd.f32 %v24635_v59, %v17543_v17  ;;  %v17542_v8 = vadd.f32 %v17439_v23, %v17235_v33  ;;  %v25330_v18 = vld [vmem:[#allocation8_spill] sm:$0xff]  ;;  %v25331_v17 = vld [vmem:[#allocation51_spill] sm:$0xff]  ;;  %v17806_v23 = vpop.f32.mrf.mxu0 }
 0x513   : > { %v20217_v40 = vpop.f32.mrf.mxu1  ;;  %v16934_v59 = vadd.f32 %v24637_v21, %v24553_v58  ;;  %v16937_v38 = vadd.f32 %v25331_v17, %v25330_v18 }
 0x514   : > { %17927 = vst [vmem:[%s24707_s27 + $0x18] sm:$0xff] %v17903_v32  ;;  %v17902_v19 = vmax.f32 %v17878_v16, 0.0  ;;  %v17881_v45 = vadd.f32 %v24692_v7, %v17850_v12  ;;  %v17849_v53 = vadd.f32 %v24641_v42, %v17542_v8  ;;  %v17545_v47 = vadd.f32 %v20217_v40, %v17238_v29  ;;  %v25332_v29 = vld [vmem:[#allocation28_spill] sm:$0xff]  ;;  %v25335_v40 = vld [vmem:[#allocation35_spill] sm:$0xff] }
 0x515   : > { %v17449_v54 = vpop.f32.mrf.mxu1  ;;  %v17242_v46 = vadd.f32 %v24541_v20, %v16934_v59  ;;  %v17243_v32 = vadd.f32 %v25332_v29, %v16935_v13  ;;  %v25333_v12 = vld [vmem:[#allocation40_spill] sm:$0xff]  ;;  %v25336_v59 = vld [vmem:[#allocation41_spill] sm:$0xff]  ;;  %v25348_v29 = vld [vmem:[#allocation47_spill] sm:$0xff] }
 0x516   : > { %17926 = vst [vmem:[%s24707_s27 + $0x10] sm:$0xff] %v17902_v19  ;;  %v17905_v44 = vmax.f32 %v17881_v45, 0.0  ;;  %v17880_v26 = vadd.f32 %v24692_v7, %v17849_v53  ;;  %v17852_v62 = vadd.f32 %v24647_v25, %v17545_v47  ;;  %v17544_v6 = vadd.f32 %v17449_v54, %v17237_v15  ;;  %v25334_v8 = vld [vmem:[#allocation52_spill] sm:$0xff]  ;;  %v25337_v54 = vld [vmem:[#allocation53_spill] sm:$0xff] }
 0x517   : > { %v20220_v42 = vpop.f32.mrf.mxu1  ;;  %v16936_v25 = vadd.f32 %v24643_v9, %v24564_v48  ;;  %v16940_v3 = vadd.f32 %v25334_v8, %v25333_v12 }
 0x518   : > { %17929 = vst [vmem:[%s24707_s27 + $0x28] sm:$0xff] %v17905_v44  ;;  %v17904_v58 = vmax.f32 %v17880_v26, 0.0  ;;  %v17883_v11 = vadd.f32 %v24692_v7, %v17852_v62  ;;  %v17851_v21 = vadd.f32 %v24653_v63, %v17544_v6  ;;  %v17547_v37 = vadd.f32 %v20220_v42, %v17240_v51  ;;  %v20273_v44 = vpop.f32.mrf.mxu0  ;;  %v25338_v26 = vld [vmem:[#allocation36_spill] sm:$0xff] }
 0x519   : > { %v17459_v39 = vpop.f32.mrf.mxu1  ;;  %v17244_v1 = vadd.f32 %v24555_v14, %v16936_v25  ;;  %v16939_v51 = vadd.f32 %v25337_v54, %v25336_v59  ;;  %v17245_v62 = vadd.f32 %v25338_v26, %v16937_v38 }
 0x51a   : > { %17928 = vst [vmem:[%s24707_s27 + $0x20] sm:$0xff] %v17904_v58  ;;  %v17907_v52 = vmax.f32 %v17883_v11, 0.0  ;;  %v17882_v36 = vadd.f32 %v24692_v7, %v17851_v21  ;;  %v17854_v35 = vadd.f32 %v24659_v57, %v17547_v37  ;;  %v17546_v10 = vadd.f32 %v17459_v39, %v17239_v2  ;;  %v25339_v58 = vld [vmem:[#allocation99_spill] sm:$0xff]  ;;  %v25340_v11 = vld [vmem:[#allocation54_spill] sm:$0xff] }
 0x51b   : > { %v20223_v63 = vpop.f32.mrf.mxu1  ;;  %v16938_v57 = vadd.f32 %v24649_v49, %v24576_v43  ;;  %v16942_v21 = vadd.f32 %v25340_v11, %v25339_v58  ;;  %v25341_v37 = vld [vmem:[#allocation38_spill] sm:$0xff] }
 0x51c   : > { %17931 = vst [vmem:[%s24707_s27 + $0x38] sm:$0xff] %v17907_v52  ;;  %v17906_v48 = vmax.f32 %v17882_v36, 0.0  ;;  %v17885_v20 = vadd.f32 %v24692_v7, %v17854_v35  ;;  %v17853_v9 = vadd.f32 %v24665_v28, %v17546_v10  ;;  %v17549_v0 = vadd.f32 %v20223_v63, %v17242_v46  ;;  %v25342_v35 = vld [vmem:[#allocation43_spill] sm:$0xff]  ;;  %v17816_v63 = vpop.f32.mrf.mxu0  ;;  %v25356_v11 = vld [vmem:[#allocation46_spill] sm:$0xff] }
 0x51d   : > { %v17469_v33 = vpop.f32.mrf.mxu1  ;;  %v17246_v15 = vadd.f32 %v25335_v40, %v16938_v57  ;;  %v17248_v25 = vadd.f32 %v25341_v37, %v16940_v3  ;;  %v25343_v10 = vld [vmem:[#allocation55_spill] sm:$0xff] }
 0x51e   : > { %17930 = vst [vmem:[%s24707_s27 + $0x30] sm:$0xff] %v17906_v48  ;;  %v17909_v50 = vmax.f32 %v17885_v20, 0.0  ;;  %v17884_v56 = vadd.f32 %v24692_v7, %v17853_v9  ;;  %v17856_v55 = vadd.f32 %v24672_v41, %v17549_v0  ;;  %v17548_v30 = vadd.f32 %v17469_v33, %v17241_v27  ;;  %v25344_v27 = vld [vmem:[#allocation39_spill] sm:$0xff]  ;;  %v25345_v33 = vld [vmem:[#allocation45_spill] sm:$0xff] }
 0x51f   : > { %v20226_v28 = vpop.f32.mrf.mxu1  ;;  %v16941_v13 = vadd.f32 %v25343_v10, %v25342_v35  ;;  %v17247_v48 = vadd.f32 %v25344_v27, %v16939_v51  ;;  %v25353_v51 = vld [vmem:[#allocation50_spill] sm:$0xff] }
 0x520   : > { %17933 = vst [vmem:[%s24707_s27 + $0x48] sm:$0xff] %v17909_v50  ;;  %v17908_v43 = vmax.f32 %v17884_v56, 0.0  ;;  %v17887_v14 = vadd.f32 %v24692_v7, %v17856_v55  ;;  %v17855_v49 = vadd.f32 %v24682_v60, %v17548_v30  ;;  %v17551_v16 = vadd.f32 %v20226_v28, %v17244_v1  ;;  %v25346_v1 = vld [vmem:[#allocation56_spill] sm:$0xff]  ;;  %v25347_v56 = vld [vmem:[#allocation9_spill] sm:$0xff]  ;;  %v20276_v28 = vpop.f32.mrf.mxu0 }
 0x521   : > { %v17479_v41 = vpop.f32.mrf.mxu1  ;;  %v16944_v50 = vadd.f32 %v25346_v1, %v25345_v33  ;;  %v17250_v55 = vadd.f32 %v25347_v56, %v16942_v21 }
 0x522   : > { %17932 = vst [vmem:[%s24707_s27 + $0x40] sm:$0xff] %v17908_v43  ;;  %v17911_v19 = vmax.f32 %v17887_v14, 0.0  ;;  %v17886_v45 = vadd.f32 %v24692_v7, %v17855_v49  ;;  %v17858_v53 = vadd.f32 %v24696_v22, %v17551_v16  ;;  %v17550_v47 = vadd.f32 %v17479_v41, %v17243_v32  ;;  %v25349_v32 = vld [vmem:[#allocation57_spill] sm:$0xff]  ;;  %v25350_v14 = vld [vmem:[#allocation42_spill] sm:$0xff]  ;;  %v25351_v41 = vld [vmem:[#allocation48_spill] sm:$0xff]  ;;  %v17826_v54 = vpop.f32.mrf.mxu0 }
 0x523   : > { %v20229_v60 = vpop.f32.mrf.mxu1  ;;  %v16943_v43 = vadd.f32 %v25349_v32, %v25348_v29  ;;  %v17249_v49 = vadd.f32 %v25350_v14, %v16941_v13  ;;  %v16946_v40 = vadd.f32 %v24674_v4, %v25351_v41 }
 0x524   : > { %17935 = vst [vmem:[%s24707_s27 + $0x58] sm:$0xff] %v17911_v19  ;;  %v17910_v6 = vmax.f32 %v17886_v45, 0.0  ;;  %v17889_v31 = vadd.f32 %v24692_v7, %v17858_v53  ;;  %v17857_v42 = vadd.f32 %v24704_v24, %v17550_v47  ;;  %v17553_v2 = vadd.f32 %v20229_v60, %v17246_v15  ;;  %v25354_v60 = vld [vmem:[#allocation58_spill] sm:$0xff] }
 0x525   : > { %v17489_v22 = vpop.f32.mrf.mxu1  ;;  %v16945_v26 = vadd.f32 %v25354_v60, %v25353_v51  ;;  %v17254_v21 = vadd.f32 %v25356_v11, %v16946_v40 }
 0x526   : > { %17934 = vst [vmem:[%s24707_s27 + $0x50] sm:$0xff] %v17910_v6  ;;  %v17913_v39 = vmax.f32 %v17889_v31, 0.0  ;;  %v17888_v46 = vadd.f32 %v24692_v7, %v17857_v42  ;;  %v17860_v52 = vadd.f32 %v24720_v34, %v17553_v2  ;;  %v17552_v36 = vadd.f32 %v17489_v22, %v17245_v62 }
 0x527   : > { %v20232_v24 = vpop.f32.mrf.mxu1 }
 0x528   : > { %17937 = vst [vmem:[%s24707_s27 + $0x68] sm:$0xff] %v17913_v39  ;;  %v17912_v20 = vmax.f32 %v17888_v46, 0.0  ;;  %v17891_v9 = vadd.f32 %v24692_v7, %v17860_v52  ;;  %v17859_v0 = vadd.f32 %v24734_v5, %v17552_v36  ;;  %v17555_v57 = vadd.f32 %v20232_v24, %v17248_v25  ;;  %v20279_v39 = vpop.f32.mrf.mxu0  ;;  %v25357_v52 = vld [vmem:[#allocation49_spill] sm:$0xff] }
 0x529   : > { %v17499_v34 = vpop.f32.mrf.mxu1  ;;  %v17253_v36 = vadd.f32 %v25357_v52, %v16945_v26 }
 0x52a   : > { %17936 = vst [vmem:[%s24707_s27 + $0x60] sm:$0xff] %v17912_v20  ;;  %v17915_v30 = vmax.f32 %v17891_v9, 0.0  ;;  %v17890_v18 = vadd.f32 %v24692_v7, %v17859_v0  ;;  %v17862_v17 = vadd.f32 %v24748_v61, %v17555_v57  ;;  %v17554_v38 = vadd.f32 %v17499_v34, %v17247_v48  ;;  %v25352_v61 = vld [vmem:[#allocation10_spill] sm:$0xff]  ;;  %v17836_v0 = vpop.f32.mrf.mxu0 }
 0x52b   : > { %v20235_v5 = vpop.f32.mrf.mxu1  ;;  %v17252_v19 = vadd.f32 %v25352_v61, %v16944_v50 }
 0x52c   : > { %17939 = vst [vmem:[%s24707_s27 + $0x78] sm:$0xff] %v17915_v30  ;;  %v17914_v16 = vmax.f32 %v17890_v18, 0.0  ;;  %v17893_v12 = vadd.f32 %v24692_v7, %v17862_v17  ;;  %v17861_v8 = vadd.f32 %v17806_v23, %v17554_v38  ;;  %v17557_v3 = vadd.f32 %v20235_v5, %v17250_v55  ;;  %v25355_v23 = vld [vmem:[#allocation44_spill] sm:$0xff] }
 0x52d   : > { %v17509_v15 = vpop.f32.mrf.mxu1  ;;  %v17251_v6 = vadd.f32 %v25355_v23, %v16943_v43 }
 0x52e   : > { %17938 = vst [vmem:[%s24707_s27 + $0x70] sm:$0xff] %v17914_v16  ;;  %v17917_v45 = vmax.f32 %v17893_v12, 0.0  ;;  %v17892_v53 = vadd.f32 %v24692_v7, %v17861_v8  ;;  %v17864_v47 = vadd.f32 %v20273_v44, %v17557_v3  ;;  %v17556_v59 = vadd.f32 %v17509_v15, %v17249_v49 }
 0x52f   : > { %v20238_v62 = vpop.f32.mrf.mxu1 }
 0x530   : > { %17941 = vst [vmem:[%s24707_s27 + $0x88] sm:$0xff] %v17917_v45  ;;  %v17916_v4 = vmax.f32 %v17892_v53, 0.0  ;;  %v17895_v31 = vadd.f32 %v24692_v7, %v17864_v47  ;;  %v17863_v42 = vadd.f32 %v17816_v63, %v17556_v59  ;;  %v17559_v2 = vadd.f32 %v20238_v62, %v17252_v19 }
 0x531   : > { %v17519_v58 = vpop.f32.mrf.mxu1 }
 0x532   : > { %17940 = vst [vmem:[%s24707_s27 + $0x80] sm:$0xff] %v17916_v4  ;;  %v17919_v44 = vmax.f32 %v17895_v31, 0.0  ;;  %v17894_v22 = vadd.f32 %v24692_v7, %v17863_v42  ;;  %v17866_v37 = vadd.f32 %v20276_v28, %v17559_v2  ;;  %v17558_v25 = vadd.f32 %v17519_v58, %v17251_v6 }
 0x533   : > { %v20241_v46 = vpop.f32.mrf.mxu1 }
 0x534   : > { %17943 = vst [vmem:[%s24707_s27 + $0x98] sm:$0xff] %v17919_v44  ;;  %v17918_v35 = vmax.f32 %v17894_v22, 0.0  ;;  %v17897_v10 = vadd.f32 %v24692_v7, %v17866_v37  ;;  %v17865_v13 = vadd.f32 %v17826_v54, %v17558_v25  ;;  %v17561_v63 = vadd.f32 %v20241_v46, %v17254_v21 }
 0x535   : > { %v17529_v24 = vpop.f32.mrf.mxu1 }
 0x536   : > { %17942 = vst [vmem:[%s24707_s27 + $0x90] sm:$0xff] %v17918_v35  ;;  %v17921_v27 = vmax.f32 %v17897_v10, 0.0  ;;  %v17896_v48 = vadd.f32 %v24692_v7, %v17865_v13  ;;  %v17868_v20 = vadd.f32 %v20279_v39, %v17561_v63  ;;  %v17560_v9 = vadd.f32 %v17529_v24, %v17253_v36 }
 0x538   : > { %17945 = vst [vmem:[%s24707_s27 + $0xa8] sm:$0xff] %v17921_v27  ;;  %v17920_v57 = vmax.f32 %v17896_v48, 0.0  ;;  %v17899_v33 = vadd.f32 %v24692_v7, %v17868_v20  ;;  %v17867_v1 = vadd.f32 %v17836_v0, %v17560_v9 }
 0x53a   : > { %17944 = vst [vmem:[%s24707_s27 + $0xa0] sm:$0xff] %v17920_v57  ;;  %v17923_v50 = vmax.f32 %v17899_v33, 0.0  ;;  %v17898_v34 = vadd.f32 %v24692_v7, %v17867_v1 }
 0x53c   : > { %17947 = vst [vmem:[%s24707_s27 + $0xb8] sm:$0xff] %v17923_v50  ;;  %v17922_v56 = vmax.f32 %v17898_v34, 0.0 }
 0x53e   : > { %17946 = vst [vmem:[%s24707_s27 + $0xb0] sm:$0xff] %v17922_v56 }
 0x53f   : > { %20618 = shalt.err (!%p20615_p5)
}
 0x540   : > { %s20619_s14 = scalar_lea.hbm %s24831_s9, 3072  ;;  %s20623_s24 = scalar_lea.hbm %s24886_s5, 6144 }
 0x541   : > { %p20620_p6 = scmp.ne.s32.totalorder %s24831_s9, %s20619_s14  ;;  %p20624_p10 = scmp.lt.s32.totalorder %s24831_s9, %s24886_s5 }
 0x542   : > { %p20625_p11 = scmp.lt.s32.totalorder %s20623_s24, %s20619_s14 }
 0x543   : > { %p20621_p7 = pnand %p20620_p6, %p20757_p4 }
 0x544   : > { %p20626_p12 = por %p20625_p11, %p20624_p10 }
 0x545   : > { %p20622_p9 = pneg %p20621_p7 }
 0x547   : > { %p20627_p13 = pnand %p20626_p12, %p20622_p9 }
 0x549   : > { %20630 = shalt.err (!%p20627_p13)
}
 0x54a   : > { %s20685_s29 = smov 128   ;;  %s20686_s8 = smov 8  }
 0x54b   : > { %20285 = dma.vmem_to_hbm [thread:$0]  (%p20757_p4), %s24825_s7, 3072, %s24831_s9, %s24836_s21, %s20685_s29, %s20685_s29, %s20686_s8  }
 0x54c PF: > { %p20291_p0 = scmp.ge.s32.totalorder %s20681_s23, 2  ;;  %s17980_s17 = sand.u32 1, %s20661_s18  }
 0x54d   : > { %s17981_s10 = scalar_lea.sflag [#allocation4], %s17980_s17 }
 0x54e   : > { %p20288_p1 = pnand %p20291_p0, %p20764_p8 }
 0x550   : > { %p20289_p2 = pneg %p20288_p1 }
 0x552   : > { %20656 = dma.done.wait (%p20289_p2), %s17981_s10, 3072  }
 0x553   : > { %20658 = vsyncadd (%p20289_p2), %s17981_s10, 4294964224  ;;  %s18_s23 = sadd.s32 1, %s20681_s23   ;;  %s25358_s18 = smov %s20665_s19 }
 0x554   : > { %p15_p3 = scmp.ge.s32.totalorder %s18_s23, 4   ;;  %s25359_s19 = smov %s20669_s20 }
 0x555   : > { %s25360_s20 = smov %s20770_s6  ;;  %s25361_s21 = smov %s20677_s22 }
 0x556   : > { %s25362_s22 = smov %s25364_s26  ;;  %17 = sbr.rel (!%p15_p3) target bundleno = 4 (0x4), region = 96 }
 0x55b   :  { %17986 = vsyncpa [#allocation4], 1 }
 0x55c   :  { %17988 = vsyncpa [#allocation4 + $0x1], 1 }

</bundles_post_ra>
